<compile_context>
chip_gen: v7x
topology: tpu7x:2x2x1
jax: 0.10.0
libtpu: 0.0.40
codegen_flags: <defaults>
</compile_context>

<pallas_src>
import functools

import jax
import jax.numpy as jnp
from jax import lax
from jax.experimental import pallas as pl
from jax.experimental.pallas import tpu as pltpu

EPS = 1e-15


# --------------------------- hardware / tiling helpers ------------------------------
def _tpu_info():
    """(vmem_capacity_bytes, num_tensorcores) with conservative fallbacks."""
    vmem_cap, cores = 64 << 20, 1          # v7x-sized VMEM, single TensorCore
    try:
        info = pltpu.get_tpu_info()
        for name in ("vmem_capacity_bytes", "vmem_bytes", "vmem_size_bytes"):
            v = getattr(info, name, None)
            if v:
                vmem_cap = int(v)
                break
        for name in ("num_tensorcores", "tensorcores_per_chip", "num_cores",
                     "cores_per_chip", "num_tensor_cores"):
            v = getattr(info, name, None)
            if v:
                cores = int(v)
                break
    except Exception:
        pass
    return vmem_cap, cores


def _vmem_footprint(bt, N, Fin, emb_out, pool_out, md):
    """Rough per-step VMEM bytes: double-buffered ins/outs + scratches + live temps."""
    itm = jnp.dtype(md).itemsize
    m = bt * N
    fout, c = emb_out[-1], pool_out[-1]
    widths = [Fin] + [e + p for e, p in zip(emb_out, pool_out)]
    fmax = max(widths)
    bytes_in = 2 * (bt * N * Fin * itm + bt * N * N * itm + bt * N * 4)
    bytes_w = 2 * sum(wi * wo * itm + wo * 4
                      for wi, wo in zip(widths[:-1], widths[1:]))
    bytes_out = 2 * (fout * m + c * m + bt * c * fout + bt * c * c + 128) * 4
    bytes_scr = m * m * 4 + m * m * itm                    # raw + normalized block-diag
    bytes_live = 3 * m * m * 4 + 3 * m * fmax * 4          # norm temporaries + activations
    return bytes_in + bytes_w + bytes_out + bytes_scr + bytes_live


def _pick_block_batch(B, N, Fin, emb_out, pool_out, md):
    """Graphs per grid step: fill the MXU M dimension (Bt*N ~ 128..256 rows), keep the
    (Bt*N)^2 block-diagonal scratch small, respect a generation-aware VMEM budget, and
    only force multiple (core-count-divisible) tiles on multi-TensorCore chips."""
    vmem_cap, cores = _tpu_info()
    budget = int(0.35 * vmem_cap)
    target = max(1, min(B, max(1, 256 // max(N, 1))))
    divisors = [d for d in range(B, 0, -1) if B % d == 0]
    bt = 1
    for d in divisors:
        if d <= target and _vmem_footprint(d, N, Fin, emb_out, pool_out, md) <= budget:
            bt = d
            break
    if cores > 1 and B >= cores:
        # v7x: the parallel grid axis is sharded across TensorCores -> even tile count.
        cands = [d for d in divisors if d <= bt and (B // d) % cores == 0]
        if cands:
            bt = cands[0]
    # TODO(synk): pad B up to a multiple of the target tile (masking padded graphs out
    # of the loss partials) instead of shrinking Bt for awkward/prime batch sizes.
    return bt


def _input_spec(block_shape, index_map, buffers=2):
    """BlockSpec with optional deeper multi-buffering; falls back gracefully."""
    if buffers > 2:
        try:
            return pl.BlockSpec(block_shape, index_map,
                                pipeline_mode=pl.Buffered(buffers))
        except Exception:
            pass
    return pl.BlockSpec(block_shape, index_map)


# ------------------------------------ kernel ----------------------------------------
def _diffpool_kernel(n_layers, emb_out_sizes, pool_out_sizes, matmul_dtype,
                     x_ref, adj_ref, mask_ref, *refs):
    f32 = jnp.float32
    md = matmul_dtype
    n_w = 2 * n_layers
    w_refs = refs[:n_w]
    (emb_t_ref, pool_t_ref, new_emb_ref, new_adj_ref, loss_ref,
     adj_bd_ref, adj_norm_ref) = refs[n_w:]

    Bt, N, _ = adj_ref.shape
    M = Bt * N

    # --- raw adjacency: streaming sum of squares (link loss) + block-diag assembly ---
    # (No long-lived f32 copy of adj: the transient (Bt,N,N) f32 dies after this block,
    #  the block-diagonal VMEM scratch carries it into the tail.)
    adjf = adj_ref[...].astype(f32)                       # exact for 0/1 adjacency in bf16
    adj_sq_sum = jnp.sum(adjf * adjf)

    adj_bd_ref[...] = jnp.zeros_like(adj_bd_ref)          # scratch persists across steps
    for b in range(Bt):                                   # static Python loop, Bt small
        adj_bd_ref[pl.ds(b * N, N), pl.ds(b * N, N)] = adjf[b]

    # --- GCN normalization D^-1/2 (A + I) D^-1/2 on the block-diagonal form ----------
    # Pure elementwise + reductions; diag-place trick gives the column scale without a
    # transpose and stays exact for non-symmetric adjacency.
    adj_bd = adj_bd_ref[...]
    rows = lax.broadcasted_iota(jnp.int32, (M, M), 0)
    cols = lax.broadcasted_iota(jnp.int32, (M, M), 1)
    is_diag = rows == cols
    adj_sl = jnp.where(is_diag, 1.0, adj_bd)                            # self loops
    deg = jnp.maximum(jnp.sum(adj_sl, axis=-1, keepdims=True), 1.0)     # (M, 1)
    dis = lax.rsqrt(deg)
    dis_row = jnp.sum(jnp.where(is_diag, dis, 0.0), axis=0, keepdims=True)  # (1, M)
    adj_norm_ref[...] = ((dis * adj_sl) * dis_row).astype(adj_norm_ref.dtype)

    # --- fused embedding + pooling GCN stack ------------------------------------------
    h = x_ref[...].reshape(M, -1).astype(md)              # (M, Fin)
    mask2 = mask_ref[...].reshape(M, 1)                   # (M, 1) f32
    emb2 = pool2 = None
    for i in range(n_layers):
        w = w_refs[2 * i][...]                            # fused (block-diag) weights
        bias = w_refs[2 * i + 1][...]                     # (1, Fe+Fp) f32
        hw = lax.dot_general(h, w, (((1,), (0,)), ((), ())),
                             preferred_element_type=f32)  # one feature matmul per layer
        out = lax.dot_general(adj_norm_ref[...], hw.astype(md),
                              (((1,), (0,)), ((), ())),
                              preferred_element_type=f32)  # one propagation per layer
        out = out + bias
        fe = emb_out_sizes[i]
        if i < n_layers - 1:
            out = jnp.maximum(out, 0.0)                   # ReLU on both branches
            lane = lax.broadcasted_iota(jnp.int32, out.shape, 1)
            out = jnp.where(lane < fe, out * mask2, out)  # mask only the embedding lanes
            h = out.astype(md)
        else:
            emb2 = jnp.maximum(out[:, :fe], 0.0) * mask2  # (M, Fout) f32
            pool2 = out[:, fe:]                           # (M, C)   f32 (no act / mask)

    # --- dense_diff_pool tail (f32 throughout) -----------------------------------------
    fe_last = emb_out_sizes[-1]
    c = pool_out_sizes[-1]
    s = jax.nn.softmax(pool2, axis=-1)                    # (M, C)
    a_s = lax.dot_general(adj_bd, s, (((1,), (0,)), ((), ())),
                          preferred_element_type=f32)     # block-diag(adj) @ s, one pass

    s3 = s.reshape(Bt, N, c)
    emb3 = emb2.reshape(Bt, N, fe_last)
    a_s3 = a_s.reshape(Bt, N, c)
    new_emb = jnp.einsum('bnc,bnf->bcf', s3, emb3, preferred_element_type=f32)   # s^T emb
    new_adj = jnp.einsum('bnc,bnk->bck', s3, a_s3, preferred_element_type=f32)   # s^T A s
    sts = jnp.einsum('bnc,bnk->bck', s3, s3, preferred_element_type=f32)         # s^T s

    tr = jnp.sum(s * a_s)                                  # tr(s^T A s) over the tile
    link_sq = adj_sq_sum - 2.0 * tr + jnp.sum(sts * sts)   # ||adj - s s^T||_F^2
    ent = jnp.sum(-s * jnp.log(s + EPS))

    # --- stores -------------------------------------------------------------------------
    # embedding / pool logits go out transposed (feature rows, Bt*N lanes) so the store
    # slab is lane-dense.  Transpose realised as an identity matmul (guaranteed lowering).
    eye_fe = (lax.broadcasted_iota(jnp.int32, (fe_last, fe_last), 0)
              == lax.broadcasted_iota(jnp.int32, (fe_last, fe_last), 1)).astype(f32)
    eye_c = (lax.broadcasted_iota(jnp.int32, (c, c), 0)
             == lax.broadcasted_iota(jnp.int32, (c, c), 1)).astype(f32)
    emb_t_ref[...] = lax.dot_general(eye_fe, emb2, (((1,), (1,)), ((), ())),
                                     preferred_element_type=f32).astype(emb_t_ref.dtype)
    pool_t_ref[...] = lax.dot_general(eye_c, pool2, (((1,), (1,)), ((), ())),
                                      preferred_element_type=f32).astype(pool_t_ref.dtype)
    new_emb_ref[...] = new_emb.astype(new_emb_ref.dtype)
    new_adj_ref[...] = new_adj.astype(new_adj_ref.dtype)
    lane = lax.broadcasted_iota(jnp.int32, (1, 128), 1)
    loss_ref[...] = (jnp.where(lane == 0, link_sq, 0.0)
                     + jnp.where(lane == 1, ent, 0.0))


# ------------------------------------ wrapper ---------------------------------------
def diffpool_block_forward(x, adj, mask, emb_params, pool_params, *,
                           matmul_dtype=jnp.bfloat16, block_batch=None):
    """Pallas implementation of DiffPoolBlock.forward (forced_embeddings=None).

    GCN weights are (W[in, out], b[out]) pairs (pre-transposed vs. torch Linear).
    matmul_dtype: operand dtype for GCN MXU matmuls (accumulation always f32;
    softmax / entropy / link-loss / diff-pool tail math is always f32).
    """
    B, N, Fin = x.shape
    L = len(emb_params)
    assert len(pool_params) == L and L >= 1
    emb_out = [int(w.shape[1]) for (w, _) in emb_params]
    pool_out = [int(w.shape[1]) for (w, _) in pool_params]
    Fout, C = emb_out[-1], pool_out[-1]
    md = matmul_dtype

    Bt = block_batch if block_batch is not None else _pick_block_batch(
        B, N, Fin, emb_out, pool_out, md)
    assert B % Bt == 0, (B, Bt)
    num_tiles = B // Bt
    M = Bt * N

    # ---- fuse per-layer embedding + pooling GCN weights (block-diagonal) ------------
    weight_inputs, weight_specs = [], []
    for i in range(L):
        we, be = emb_params[i]
        wp, bp = pool_params[i]
        if i == 0:
            wf = jnp.concatenate([we, wp], axis=1)         # layer 0: both branches see x
        else:
            ke, oe = we.shape
            kp, op_ = wp.shape
            wf = jnp.zeros((ke + kp, oe + op_), jnp.float32)
            wf = wf.at[:ke, :oe].set(we).at[ke:, oe:].set(wp)
        bf = jnp.concatenate([be, bp]).reshape(1, -1).astype(jnp.float32)
        wf = wf.astype(md)
        weight_inputs += [wf, bf]
        weight_specs += [pl.BlockSpec(wf.shape, lambda i_: (0, 0)),
                         pl.BlockSpec(bf.shape, lambda i_: (0, 0))]

    mask3 = mask.reshape(B, N, 1).astype(jnp.float32)
    depth = 3 if num_tiles >= 4 else 2                     # deeper buffering only if useful
    in_specs = [
        _input_spec((Bt, N, Fin), lambda i: (i, 0, 0), depth),
        _input_spec((Bt, N, N), lambda i: (i, 0, 0), depth),
        pl.BlockSpec((Bt, N, 1), lambda i: (i, 0, 0)),
    ] + weight_specs

    out_shape = (
        jax.ShapeDtypeStruct((num_tiles, Fout, M), jnp.float32),   # embedding^T (lane-dense)
        jax.ShapeDtypeStruct((num_tiles, C, M), jnp.float32),      # pool logits^T
        jax.ShapeDtypeStruct((B, C, Fout), jnp.float32),           # new_embeddings
        jax.ShapeDtypeStruct((B, C, C), jnp.float32),              # new_adj
        jax.ShapeDtypeStruct((num_tiles, 1, 128), jnp.float32),    # [link_sq, ent] per tile
    )
    out_specs = (
        pl.BlockSpec((None, Fout, M), lambda i: (i, 0, 0)),
        pl.BlockSpec((None, C, M), lambda i: (i, 0, 0)),
        pl.BlockSpec((Bt, C, Fout), lambda i: (i, 0, 0)),
        pl.BlockSpec((Bt, C, C), lambda i: (i, 0, 0)),
        pl.BlockSpec((None, 1, 128), lambda i: (i, 0, 0)),
    )
    scratch_shapes = [pltpu.VMEM((M, M), jnp.float32),   # raw block-diag adjacency
                     pltpu.VMEM((M, M), md)]             # normalized block-diag adjacency

    vmem_cap, _ = _tpu_info()
    footprint = _vmem_footprint(Bt, N, Fin, emb_out, pool_out, md)
    vmem_limit = int(min(int(0.9 * vmem_cap), max(4 * footprint, 32 << 20)))

    kernel = functools.partial(_diffpool_kernel, L, tuple(emb_out), tuple(pool_out), md)
    outs = pl.pallas_call(
        kernel,
        grid=(num_tiles,),
        in_specs=in_specs,
        out_specs=out_specs,
        out_shape=out_shape,
        scratch_shapes=scratch_shapes,
        compiler_params=pltpu.CompilerParams(
            dimension_semantics=("parallel",),
            vmem_limit_bytes=vmem_limit),
    )(x.astype(md), adj.astype(md), mask3, *weight_inputs)

    emb_t, pool_t, new_emb, new_adj, loss_vec = outs
    embedding = emb_t.transpose(0, 2, 1).reshape(B, N, Fout)
    pool_logits = pool_t.transpose(0, 2, 1).reshape(B, N, C)

    link_total = jnp.maximum(jnp.sum(loss_vec[:, 0, 0]), 0.0)   # guard fp cancellation
    ent_total = jnp.sum(loss_vec[:, 0, 1])
    # torch.norm(adj - s s^T, p=2) is over the WHOLE batched tensor
    link_loss = jnp.sqrt(link_total) / float(B * N * N)
    ent_loss = ent_total / float(B * N)
    pool_loss = link_loss + ent_loss
    # matches: (new_embeddings, new_adj, None, None, loss_l+loss_e, pool, pool, embedding, mask)
    return (new_emb, new_adj, None, None, pool_loss,
            pool_logits, pool_logits, embedding, None)


# ------------------------- pure-JAX reference (for sanity check) ---------------------
def _reference_forward(x, adj, mask, emb_params, pool_params):
    B, N, _ = x.shape
    eye = jnp.eye(N, dtype=jnp.float32)
    adj_sl = jnp.where(eye > 0, 1.0, adj)
    deg = jnp.maximum(adj_sl.sum(-1), 1.0)
    dis = deg ** -0.5
    adj_norm = dis[:, :, None] * adj_sl * dis[:, None, :]

    def gcn(h, w, b, use_mask):
        out = jnp.einsum('bnm,bmf->bnf', adj_norm, h @ w) + b
        if use_mask:
            out = out * mask[:, :, None]
        return out

    emb = x
    for (w, b) in emb_params:
        emb = jax.nn.relu(gcn(emb, w, b, True))
    pool = x
    for i, (w, b) in enumerate(pool_params):
        pool = gcn(pool, w, b, False)
        if i < len(pool_params) - 1:
            pool = jax.nn.relu(pool)
    s = jax.nn.softmax(pool, axis=-1)
    out = jnp.einsum('bnc,bnf->bcf', s, emb)
    out_adj = jnp.einsum('bnc,bnm,bmk->bck', s, adj, s)
    diff = adj - jnp.einsum('bnc,bmc->bnm', s, s)
    link_loss = jnp.sqrt(jnp.sum(diff ** 2)) / adj.size
    ent_loss = jnp.mean(jnp.sum(-s * jnp.log(s + EPS), axis=-1))
    return out, out_adj, link_loss + ent_loss, pool, emb


if __name__ == "__main__":
    # DiffPoolBlock(embedding_sizes=[8, 16, 16], num_output_nodes=4)
    embedding_sizes = [8, 16, 16]
    num_output_nodes = 4
    pool_sizes = embedding_sizes.copy()
    pool_sizes[-1] = num_output_nodes

    B, N = 16, 16            # 16 dense graphs of 16 (padded) nodes
    Fin = embedding_sizes[0]

    key = jax.random.PRNGKey(0)
    keys = jax.random.split(key, 20)

    def glorot(k, fan_in, fan_out):
        lim = (6.0 / (fan_in + fan_out)) ** 0.5
        return jax.random.uniform(k, (fan_in, fan_out), jnp.float32, -lim, lim)

    emb_params, pool_params = [], []
    ki = 0
    for i in range(len(embedding_sizes) - 1):
        w = glorot(keys[ki], embedding_sizes[i], embedding_sizes[i + 1]); ki += 1
        b = 0.1 * jax.random.normal(keys[ki], (embedding_sizes[i + 1],), jnp.float32); ki += 1
        emb_params.append((w, b))
    for i in range(len(pool_sizes) - 1):
        w = glorot(keys[ki], pool_sizes[i], pool_sizes[i + 1]); ki += 1
        b = 0.1 * jax.random.normal(keys[ki], (pool_sizes[i + 1],), jnp.float32); ki += 1
        pool_params.append((w, b))

    # inputs: x [B,N,Fin], adj [B,N,N] dense 0/1 symmetric (no self loops), mask [B,N]
    x = jax.random.normal(keys[ki], (B, N, Fin), jnp.float32); ki += 1
    counts = jax.random.randint(keys[ki], (B,), 10, N + 1); ki += 1
    mask = (jnp.arange(N)[None, :] < counts[:, None]).astype(jnp.float32)
    a = (jax.random.uniform(keys[ki], (B, N, N)) < 0.3).astype(jnp.float32); ki += 1
    adj = jnp.maximum(a, jnp.swapaxes(a, 1, 2))
    adj = adj * (1.0 - jnp.eye(N, dtype=jnp.float32))      # no self loops in input
    adj = adj * mask[:, :, None] * mask[:, None, :]        # zero edges of padded nodes
    x = x * mask[:, :, None]

    r_emb, r_adj, r_loss, r_pool, r_embed = _reference_forward(
        x, adj, mask, emb_params, pool_params)

    # --- strict correctness check: f32 matmul mode vs pure-JAX reference ---
    outs32 = diffpool_block_forward(x, adj, mask, emb_params, pool_params,
                                    matmul_dtype=jnp.float32)
    outs32 = jax.block_until_ready(outs32)
    new_emb, new_adj, _, _, pool_loss, pool_assign, _, embedding, _ = outs32
    assert jnp.allclose(new_emb, r_emb, atol=1e-3, rtol=1e-3)
    assert jnp.allclose(new_adj, r_adj, atol=1e-3, rtol=1e-3)
    assert jnp.allclose(pool_assign, r_pool, atol=1e-3, rtol=1e-3)
    assert jnp.allclose(embedding, r_embed, atol=1e-3, rtol=1e-3)
    assert jnp.allclose(pool_loss, r_loss, atol=1e-3, rtol=1e-3)

    # --- default bf16-MXU mode (f32 accumulate, f32 loss math): looser check ---
    outsbf = diffpool_block_forward(x, adj, mask, emb_params, pool_params)
    outsbf = jax.block_until_ready(outsbf)
    b_emb, b_adj, _, _, b_loss, b_pool, _, b_embed, _ = outsbf
    assert jnp.allclose(b_emb, r_emb, atol=5e-2, rtol=5e-2)
    assert jnp.allclose(b_adj, r_adj, atol=5e-2, rtol=5e-2)
    assert jnp.allclose(b_pool, r_pool, atol=5e-2, rtol=5e-2)
    assert jnp.allclose(b_embed, r_embed, atol=5e-2, rtol=5e-2)
    assert jnp.allclose(b_loss, r_loss, atol=2e-2, rtol=2e-2)

    # TODO(synk): log_assignments / wandb logging path has no kernel equivalent (host-side only).
    print("KERNEL_OK")
</pallas_src>

<mosaic_0001>
module attributes {stable_mosaic.version = 11 : i64} {
  func.func @_diffpool_kernel(%arg0: i32, %arg1: memref<16x16x8xf32, #tpu.memory_space<vmem>>, %arg2: memref<16x16x16xf32, #tpu.memory_space<vmem>>, %arg3: memref<16x16x1xf32, #tpu.memory_space<vmem>>, %arg4: memref<8x32xf32, #tpu.memory_space<vmem>>, %arg5: memref<1x32xf32, #tpu.memory_space<vmem>>, %arg6: memref<32x20xf32, #tpu.memory_space<vmem>>, %arg7: memref<1x20xf32, #tpu.memory_space<vmem>>, %arg8: memref<1x16x256xf32, #tpu.memory_space<vmem>>, %arg9: memref<1x4x256xf32, #tpu.memory_space<vmem>>, %arg10: memref<16x4x16xf32, #tpu.memory_space<vmem>>, %arg11: memref<16x4x4xf32, #tpu.memory_space<vmem>>, %arg12: memref<1x1x128xf32, #tpu.memory_space<vmem>>, %arg13: memref<256x256xf32, #tpu.memory_space<vmem>>, %arg14: memref<256x256xf32, #tpu.memory_space<vmem>>) attributes {dimension_semantics = [#tpu.dimension_semantics<parallel>], iteration_bounds = array<i64: 1>, scalar_prefetch = 0 : i64, scratch_operands = 2 : i64, tpu.core_type = #tpu.core_type<tc>, window_params = [{transform_indices = @transform_0, window_bounds = array<i64: 16, 16, 8>}, {transform_indices = @transform_1, window_bounds = array<i64: 16, 16, 16>}, {transform_indices = @transform_2, window_bounds = array<i64: 16, 16, 1>}, {pipeline_mode = #tpu.pipeline_mode<synchronous>, transform_indices = @transform_3, window_bounds = array<i64: 8, 32>}, {pipeline_mode = #tpu.pipeline_mode<synchronous>, transform_indices = @transform_4, window_bounds = array<i64: 1, 32>}, {pipeline_mode = #tpu.pipeline_mode<synchronous>, transform_indices = @transform_5, window_bounds = array<i64: 32, 20>}, {pipeline_mode = #tpu.pipeline_mode<synchronous>, transform_indices = @transform_6, window_bounds = array<i64: 1, 20>}, {transform_indices = @transform_7, window_bounds = array<i64: 1, 16, 256>}, {transform_indices = @transform_8, window_bounds = array<i64: 1, 4, 256>}, {transform_indices = @transform_9, window_bounds = array<i64: 16, 4, 16>}, {transform_indices = @transform_10, window_bounds = array<i64: 16, 4, 4>}, {transform_indices = @transform_11, window_bounds = array<i64: 1, 1, 128>}]} {
    %c0 = arith.constant 0 : index
    %c0_0 = arith.constant 0 : index
    %c0_1 = arith.constant 0 : index
    %0 = vector.load %arg2[%c0, %c0_0, %c0_1] : memref<16x16x16xf32, #tpu.memory_space<vmem>>, vector<16x16x16xf32>
    %1 = arith.mulf %0, %0 : vector<16x16x16xf32>
    %2 = vector.shape_cast %1 : vector<16x16x16xf32> to vector<1x16x16x16xf32>
    %cst = arith.constant dense<0.000000e+00> : vector<1xf32>
    %3 = vector.multi_reduction <add>, %2, %cst [1, 2, 3] : vector<1x16x16x16xf32> to vector<1xf32>
    %4 = vector.shape_cast %3 : vector<1xf32> to vector<1x1x1x1xf32>
    %5 = vector.extract %4[0, 0, 0, 0] : f32 from vector<1x1x1x1xf32>
    %cst_2 = arith.constant 0.000000e+00 : f32
    %6 = vector.broadcast %cst_2 : f32 to vector<256x256xf32>
    %c0_3 = arith.constant 0 : index
    %c0_4 = arith.constant 0 : index
    %7 = vector.load %arg13[%c0_3, %c0_4] : memref<256x256xf32, #tpu.memory_space<vmem>>, vector<256x256xf32>
    tpu.vector_store %arg13[%c0_3, %c0_4], %6 {strides = array<i32>} : memref<256x256xf32, #tpu.memory_space<vmem>>, vector<256x256xf32>,
    %8 = vector.extract_strided_slice %0 {offsets = [0, 0, 0], sizes = [1, 16, 16], strides = [1, 1, 1]} : vector<16x16x16xf32> to vector<1x16x16xf32>
    %9 = vector.shape_cast %8 : vector<1x16x16xf32> to vector<16x16xf32>
    %c0_5 = arith.constant 0 : index
    %c0_6 = arith.constant 0 : index
    %10 = vector.load %arg13[%c0_5, %c0_6] : memref<256x256xf32, #tpu.memory_space<vmem>>, vector<16x16xf32>
    tpu.vector_store %arg13[%c0_5, %c0_6], %9 {strides = array<i32>} : memref<256x256xf32, #tpu.memory_space<vmem>>, vector<16x16xf32>,
    %11 = vector.extract_strided_slice %0 {offsets = [1, 0, 0], sizes = [1, 16, 16], strides = [1, 1, 1]} : vector<16x16x16xf32> to vector<1x16x16xf32>
    %12 = vector.shape_cast %11 : vector<1x16x16xf32> to vector<16x16xf32>
    %c16 = arith.constant 16 : index
    %c16_7 = arith.constant 16 : index
    %13 = vector.load %arg13[%c16, %c16_7] : memref<256x256xf32, #tpu.memory_space<vmem>>, vector<16x16xf32>
    tpu.vector_store %arg13[%c16, %c16_7], %12 {strides = array<i32>} : memref<256x256xf32, #tpu.memory_space<vmem>>, vector<16x16xf32>,
    %14 = vector.extract_strided_slice %0 {offsets = [2, 0, 0], sizes = [1, 16, 16], strides = [1, 1, 1]} : vector<16x16x16xf32> to vector<1x16x16xf32>
    %15 = vector.shape_cast %14 : vector<1x16x16xf32> to vector<16x16xf32>
    %c32 = arith.constant 32 : index
    %c32_8 = arith.constant 32 : index
    %16 = vector.load %arg13[%c32, %c32_8] : memref<256x256xf32, #tpu.memory_space<vmem>>, vector<16x16xf32>
    tpu.vector_store %arg13[%c32, %c32_8], %15 {strides = array<i32>} : memref<256x256xf32, #tpu.memory_space<vmem>>, vector<16x16xf32>,
    %17 = vector.extract_strided_slice %0 {offsets = [3, 0, 0], sizes = [1, 16, 16], strides = [1, 1, 1]} : vector<16x16x16xf32> to vector<1x16x16xf32>
    %18 = vector.shape_cast %17 : vector<1x16x16xf32> to vector<16x16xf32>
    %c48 = arith.constant 48 : index
    %c48_9 = arith.constant 48 : index
    %19 = vector.load %arg13[%c48, %c48_9] : memref<256x256xf32, #tpu.memory_space<vmem>>, vector<16x16xf32>
    tpu.vector_store %arg13[%c48, %c48_9], %18 {strides = array<i32>} : memref<256x256xf32, #tpu.memory_space<vmem>>, vector<16x16xf32>,
    %20 = vector.extract_strided_slice %0 {offsets = [4, 0, 0], sizes = [1, 16, 16], strides = [1, 1, 1]} : vector<16x16x16xf32> to vector<1x16x16xf32>
    %21 = vector.shape_cast %20 : vector<1x16x16xf32> to vector<16x16xf32>
    %c64 = arith.constant 64 : index
    %c64_10 = arith.constant 64 : index
    %22 = vector.load %arg13[%c64, %c64_10] : memref<256x256xf32, #tpu.memory_space<vmem>>, vector<16x16xf32>
    tpu.vector_store %arg13[%c64, %c64_10], %21 {strides = array<i32>} : memref<256x256xf32, #tpu.memory_space<vmem>>, vector<16x16xf32>,
    %23 = vector.extract_strided_slice %0 {offsets = [5, 0, 0], sizes = [1, 16, 16], strides = [1, 1, 1]} : vector<16x16x16xf32> to vector<1x16x16xf32>
    %24 = vector.shape_cast %23 : vector<1x16x16xf32> to vector<16x16xf32>
    %c80 = arith.constant 80 : index
    %c80_11 = arith.constant 80 : index
    %25 = vector.load %arg13[%c80, %c80_11] : memref<256x256xf32, #tpu.memory_space<vmem>>, vector<16x16xf32>
    tpu.vector_store %arg13[%c80, %c80_11], %24 {strides = array<i32>} : memref<256x256xf32, #tpu.memory_space<vmem>>, vector<16x16xf32>,
    %26 = vector.extract_strided_slice %0 {offsets = [6, 0, 0], sizes = [1, 16, 16], strides = [1, 1, 1]} : vector<16x16x16xf32> to vector<1x16x16xf32>
    %27 = vector.shape_cast %26 : vector<1x16x16xf32> to vector<16x16xf32>
    %c96 = arith.constant 96 : index
    %c96_12 = arith.constant 96 : index
    %28 = vector.load %arg13[%c96, %c96_12] : memref<256x256xf32, #tpu.memory_space<vmem>>, vector<16x16xf32>
    tpu.vector_store %arg13[%c96, %c96_12], %27 {strides = array<i32>} : memref<256x256xf32, #tpu.memory_space<vmem>>, vector<16x16xf32>,
    %29 = vector.extract_strided_slice %0 {offsets = [7, 0, 0], sizes = [1, 16, 16], strides = [1, 1, 1]} : vector<16x16x16xf32> to vector<1x16x16xf32>
    %30 = vector.shape_cast %29 : vector<1x16x16xf32> to vector<16x16xf32>
    %c112 = arith.constant 112 : index
    %c112_13 = arith.constant 112 : index
    %31 = vector.load %arg13[%c112, %c112_13] : memref<256x256xf32, #tpu.memory_space<vmem>>, vector<16x16xf32>
    tpu.vector_store %arg13[%c112, %c112_13], %30 {strides = array<i32>} : memref<256x256xf32, #tpu.memory_space<vmem>>, vector<16x16xf32>,
    %32 = vector.extract_strided_slice %0 {offsets = [8, 0, 0], sizes = [1, 16, 16], strides = [1, 1, 1]} : vector<16x16x16xf32> to vector<1x16x16xf32>
    %33 = vector.shape_cast %32 : vector<1x16x16xf32> to vector<16x16xf32>
    %c128 = arith.constant 128 : index
    %c128_14 = arith.constant 128 : index
    %34 = vector.load %arg13[%c128, %c128_14] : memref<256x256xf32, #tpu.memory_space<vmem>>, vector<16x16xf32>
    tpu.vector_store %arg13[%c128, %c128_14], %33 {strides = array<i32>} : memref<256x256xf32, #tpu.memory_space<vmem>>, vector<16x16xf32>,
    %35 = vector.extract_strided_slice %0 {offsets = [9, 0, 0], sizes = [1, 16, 16], strides = [1, 1, 1]} : vector<16x16x16xf32> to vector<1x16x16xf32>
    %36 = vector.shape_cast %35 : vector<1x16x16xf32> to vector<16x16xf32>
    %c144 = arith.constant 144 : index
    %c144_15 = arith.constant 144 : index
    %37 = vector.load %arg13[%c144, %c144_15] : memref<256x256xf32, #tpu.memory_space<vmem>>, vector<16x16xf32>
    tpu.vector_store %arg13[%c144, %c144_15], %36 {strides = array<i32>} : memref<256x256xf32, #tpu.memory_space<vmem>>, vector<16x16xf32>,
    %38 = vector.extract_strided_slice %0 {offsets = [10, 0, 0], sizes = [1, 16, 16], strides = [1, 1, 1]} : vector<16x16x16xf32> to vector<1x16x16xf32>
    %39 = vector.shape_cast %38 : vector<1x16x16xf32> to vector<16x16xf32>
    %c160 = arith.constant 160 : index
    %c160_16 = arith.constant 160 : index
    %40 = vector.load %arg13[%c160, %c160_16] : memref<256x256xf32, #tpu.memory_space<vmem>>, vector<16x16xf32>
    tpu.vector_store %arg13[%c160, %c160_16], %39 {strides = array<i32>} : memref<256x256xf32, #tpu.memory_space<vmem>>, vector<16x16xf32>,
    %41 = vector.extract_strided_slice %0 {offsets = [11, 0, 0], sizes = [1, 16, 16], strides = [1, 1, 1]} : vector<16x16x16xf32> to vector<1x16x16xf32>
    %42 = vector.shape_cast %41 : vector<1x16x16xf32> to vector<16x16xf32>
    %c176 = arith.constant 176 : index
    %c176_17 = arith.constant 176 : index
    %43 = vector.load %arg13[%c176, %c176_17] : memref<256x256xf32, #tpu.memory_space<vmem>>, vector<16x16xf32>
    tpu.vector_store %arg13[%c176, %c176_17], %42 {strides = array<i32>} : memref<256x256xf32, #tpu.memory_space<vmem>>, vector<16x16xf32>,
    %44 = vector.extract_strided_slice %0 {offsets = [12, 0, 0], sizes = [1, 16, 16], strides = [1, 1, 1]} : vector<16x16x16xf32> to vector<1x16x16xf32>
    %45 = vector.shape_cast %44 : vector<1x16x16xf32> to vector<16x16xf32>
    %c192 = arith.constant 192 : index
    %c192_18 = arith.constant 192 : index
    %46 = vector.load %arg13[%c192, %c192_18] : memref<256x256xf32, #tpu.memory_space<vmem>>, vector<16x16xf32>
    tpu.vector_store %arg13[%c192, %c192_18], %45 {strides = array<i32>} : memref<256x256xf32, #tpu.memory_space<vmem>>, vector<16x16xf32>,
    %47 = vector.extract_strided_slice %0 {offsets = [13, 0, 0], sizes = [1, 16, 16], strides = [1, 1, 1]} : vector<16x16x16xf32> to vector<1x16x16xf32>
    %48 = vector.shape_cast %47 : vector<1x16x16xf32> to vector<16x16xf32>
    %c208 = arith.constant 208 : index
    %c208_19 = arith.constant 208 : index
    %49 = vector.load %arg13[%c208, %c208_19] : memref<256x256xf32, #tpu.memory_space<vmem>>, vector<16x16xf32>
    tpu.vector_store %arg13[%c208, %c208_19], %48 {strides = array<i32>} : memref<256x256xf32, #tpu.memory_space<vmem>>, vector<16x16xf32>,
    %50 = vector.extract_strided_slice %0 {offsets = [14, 0, 0], sizes = [1, 16, 16], strides = [1, 1, 1]} : vector<16x16x16xf32> to vector<1x16x16xf32>
    %51 = vector.shape_cast %50 : vector<1x16x16xf32> to vector<16x16xf32>
    %c224 = arith.constant 224 : index
    %c224_20 = arith.constant 224 : index
    %52 = vector.load %arg13[%c224, %c224_20] : memref<256x256xf32, #tpu.memory_space<vmem>>, vector<16x16xf32>
    tpu.vector_store %arg13[%c224, %c224_20], %51 {strides = array<i32>} : memref<256x256xf32, #tpu.memory_space<vmem>>, vector<16x16xf32>,
    %53 = vector.extract_strided_slice %0 {offsets = [15, 0, 0], sizes = [1, 16, 16], strides = [1, 1, 1]} : vector<16x16x16xf32> to vector<1x16x16xf32>
    %54 = vector.shape_cast %53 : vector<1x16x16xf32> to vector<16x16xf32>
    %c240 = arith.constant 240 : index
    %c240_21 = arith.constant 240 : index
    %55 = vector.load %arg13[%c240, %c240_21] : memref<256x256xf32, #tpu.memory_space<vmem>>, vector<16x16xf32>
    tpu.vector_store %arg13[%c240, %c240_21], %54 {strides = array<i32>} : memref<256x256xf32, #tpu.memory_space<vmem>>, vector<16x16xf32>,
    %c0_22 = arith.constant 0 : index
    %c0_23 = arith.constant 0 : index
    %56 = vector.load %arg13[%c0_22, %c0_23] : memref<256x256xf32, #tpu.memory_space<vmem>>, vector<256x256xf32>
    %57 = tpu.iota {dimensions = array<i32: 0>} : vector<256x256xi32>
    %58 = tpu.iota {dimensions = array<i32: 1>} : vector<256x256xi32>
    %59 = arith.cmpi eq, %57, %58 : vector<256x256xi32>
    %cst_24 = arith.constant 1.000000e+00 : f32
    %60 = vector.broadcast %cst_24 : f32 to vector<256x256xf32>
    %61 = arith.select %59, %60, %56 : vector<256x256xi1>, vector<256x256xf32>
    %cst_25 = arith.constant dense<0.000000e+00> : vector<256xf32>
    %62 = vector.multi_reduction <add>, %61, %cst_25 [1] : vector<256x256xf32> to vector<256xf32>
    %63 = vector.shape_cast %62 : vector<256xf32> to vector<256x1xf32>
    %cst_26 = arith.constant 1.000000e+00 : f32
    %64 = vector.broadcast %cst_26 : f32 to vector<256x1xf32>
    %65 = arith.maximumf %63, %64 : vector<256x1xf32>
    %66 = math.rsqrt %65 : vector<256x1xf32>
    %cst_27 = arith.constant 0.000000e+00 : f32
    %67 = vector.shape_cast %66 : vector<256x1xf32> to vector<256x1xf32>
    %68 = vector.broadcast %67 : vector<256x1xf32> to vector<256x256xf32>
    %69 = vector.broadcast %cst_27 : f32 to vector<256x256xf32>
    %70 = arith.select %59, %68, %69 : vector<256x256xi1>, vector<256x256xf32>
    %cst_28 = arith.constant dense<0.000000e+00> : vector<256xf32>
    %71 = vector.multi_reduction <add>, %70, %cst_28 [0] : vector<256x256xf32> to vector<256xf32>
    %72 = vector.shape_cast %71 : vector<256xf32> to vector<1x256xf32>
    %73 = vector.broadcast %66 : vector<256x1xf32> to vector<256x256xf32>
    %74 = arith.mulf %73, %61 : vector<256x256xf32>
    %75 = vector.broadcast %72 : vector<1x256xf32> to vector<256x256xf32>
    %76 = arith.mulf %74, %75 : vector<256x256xf32>
    %c0_29 = arith.constant 0 : index
    %c0_30 = arith.constant 0 : index
    %77 = vector.load %arg14[%c0_29, %c0_30] : memref<256x256xf32, #tpu.memory_space<vmem>>, vector<256x256xf32>
    tpu.vector_store %arg14[%c0_29, %c0_30], %76 {strides = array<i32>} : memref<256x256xf32, #tpu.memory_space<vmem>>, vector<256x256xf32>,
    %c0_31 = arith.constant 0 : index
    %c0_32 = arith.constant 0 : index
    %c0_33 = arith.constant 0 : index
    %78 = vector.load %arg1[%c0_31, %c0_32, %c0_33] : memref<16x16x8xf32, #tpu.memory_space<vmem>>, vector<16x16x8xf32>
    %79 = vector.shape_cast %78 : vector<16x16x8xf32> to vector<256x8xf32>
    %c0_34 = arith.constant 0 : index
    %c0_35 = arith.constant 0 : index
    %c0_36 = arith.constant 0 : index
    %80 = vector.load %arg3[%c0_34, %c0_35, %c0_36] : memref<16x16x1xf32, #tpu.memory_space<vmem>>, vector<16x16x1xf32>
    %81 = vector.shape_cast %80 : vector<16x16x1xf32> to vector<256x1xf32>
    %c0_37 = arith.constant 0 : index
    %c0_38 = arith.constant 0 : index
    %82 = vector.load %arg4[%c0_37, %c0_38] : memref<8x32xf32, #tpu.memory_space<vmem>>, vector<8x32xf32>
    %c0_39 = arith.constant 0 : index
    %c0_40 = arith.constant 0 : index
    %83 = vector.load %arg5[%c0_39, %c0_40] : memref<1x32xf32, #tpu.memory_space<vmem>>, vector<1x32xf32>
    %cst_41 = arith.constant dense<0.000000e+00> : vector<256x32xf32>
    %84 = tpu.matmul %79, %82, %cst_41 {dimension_numbers = #tpu.dot_dimension_numbers<[1], [0], [0], [1], [0, 0, 1, 1], [], []>} : vector<256x8xf32>, vector<8x32xf32>, vector<256x32xf32> -> vector<256x32xf32>
    %c0_42 = arith.constant 0 : index
    %c0_43 = arith.constant 0 : index
    %85 = vector.load %arg14[%c0_42, %c0_43] : memref<256x256xf32, #tpu.memory_space<vmem>>, vector<256x256xf32>
    %cst_44 = arith.constant dense<0.000000e+00> : vector<256x32xf32>
    %86 = tpu.matmul %85, %84, %cst_44 {dimension_numbers = #tpu.dot_dimension_numbers<[1], [0], [0], [1], [0, 0, 1, 1], [], []>} : vector<256x256xf32>, vector<256x32xf32>, vector<256x32xf32> -> vector<256x32xf32>
    %87 = vector.broadcast %83 : vector<1x32xf32> to vector<256x32xf32>
    %88 = arith.addf %86, %87 : vector<256x32xf32>
    %cst_45 = arith.constant 0.000000e+00 : f32
    %89 = vector.broadcast %cst_45 : f32 to vector<256x32xf32>
    %90 = arith.maximumf %88, %89 : vector<256x32xf32>
    %91 = tpu.iota {dimensions = array<i32: 1>} : vector<256x32xi32>
    %c16_i32 = arith.constant 16 : i32
    %92 = vector.broadcast %c16_i32 : i32 to vector<256x32xi32>
    %93 = arith.cmpi slt, %91, %92 : vector<256x32xi32>
    %94 = vector.broadcast %81 : vector<256x1xf32> to vector<256x32xf32>
    %95 = arith.mulf %90, %94 : vector<256x32xf32>
    %96 = arith.select %93, %95, %90 : vector<256x32xi1>, vector<256x32xf32>
    %c0_46 = arith.constant 0 : index
    %c0_47 = arith.constant 0 : index
    %97 = vector.load %arg6[%c0_46, %c0_47] : memref<32x20xf32, #tpu.memory_space<vmem>>, vector<32x20xf32>
    %c0_48 = arith.constant 0 : index
    %c0_49 = arith.constant 0 : index
    %98 = vector.load %arg7[%c0_48, %c0_49] : memref<1x20xf32, #tpu.memory_space<vmem>>, vector<1x20xf32>
    %cst_50 = arith.constant dense<0.000000e+00> : vector<256x20xf32>
    %99 = tpu.matmul %96, %97, %cst_50 {dimension_numbers = #tpu.dot_dimension_numbers<[1], [0], [0], [1], [0, 0, 1, 1], [], []>} : vector<256x32xf32>, vector<32x20xf32>, vector<256x20xf32> -> vector<256x20xf32>
    %c0_51 = arith.constant 0 : index
    %c0_52 = arith.constant 0 : index
    %100 = vector.load %arg14[%c0_51, %c0_52] : memref<256x256xf32, #tpu.memory_space<vmem>>, vector<256x256xf32>
    %cst_53 = arith.constant dense<0.000000e+00> : vector<256x20xf32>
    %101 = tpu.matmul %100, %99, %cst_53 {dimension_numbers = #tpu.dot_dimension_numbers<[1], [0], [0], [1], [0, 0, 1, 1], [], []>} : vector<256x256xf32>, vector<256x20xf32>, vector<256x20xf32> -> vector<256x20xf32>
    %102 = vector.broadcast %98 : vector<1x20xf32> to vector<256x20xf32>
    %103 = arith.addf %101, %102 : vector<256x20xf32>
    %104 = vector.extract_strided_slice %103 {offsets = [0, 0], sizes = [256, 16], strides = [1, 1]} : vector<256x20xf32> to vector<256x16xf32>
    %cst_54 = arith.constant 0.000000e+00 : f32
    %105 = vector.broadcast %cst_54 : f32 to vector<256x16xf32>
    %106 = arith.maximumf %104, %105 : vector<256x16xf32>
    %107 = vector.broadcast %81 : vector<256x1xf32> to vector<256x16xf32>
    %108 = arith.mulf %106, %107 : vector<256x16xf32>
    %109 = vector.extract_strided_slice %103 {offsets = [0, 16], sizes = [256, 4], strides = [1, 1]} : vector<256x20xf32> to vector<256x4xf32>
    %cst_55 = arith.constant dense<0xFF800000> : vector<256xf32>
    %110 = vector.multi_reduction <maximumf>, %109, %cst_55 [1] : vector<256x4xf32> to vector<256xf32>
    %cst_56 = arith.constant 0xFF800000 : f32
    %111 = vector.broadcast %cst_56 : f32 to vector<256xf32>
    %112 = arith.maximumf %111, %110 : vector<256xf32>
    %113 = vector.shape_cast %112 : vector<256xf32> to vector<256x1xf32>
    %114 = vector.broadcast %113 : vector<256x1xf32> to vector<256x4xf32>
    %115 = arith.subf %109, %114 : vector<256x4xf32>
    %116 = math.exp %115 : vector<256x4xf32>
    %cst_57 = arith.constant dense<0.000000e+00> : vector<256xf32>
    %117 = vector.multi_reduction <add>, %116, %cst_57 [1] : vector<256x4xf32> to vector<256xf32>
    %118 = vector.shape_cast %117 : vector<256xf32> to vector<256x1xf32>
    %119 = vector.broadcast %118 : vector<256x1xf32> to vector<256x4xf32>
    %120 = arith.divf %116, %119 : vector<256x4xf32>
    %cst_58 = arith.constant dense<0.000000e+00> : vector<256x4xf32>
    %121 = tpu.matmul %56, %120, %cst_58 {dimension_numbers = #tpu.dot_dimension_numbers<[1], [0], [0], [1], [0, 0, 1, 1], [], []>} : vector<256x256xf32>, vector<256x4xf32>, vector<256x4xf32> -> vector<256x4xf32>
    %122 = vector.shape_cast %120 : vector<256x4xf32> to vector<16x16x4xf32>
    %123 = vector.shape_cast %108 : vector<256x16xf32> to vector<16x16x16xf32>
    %124 = vector.shape_cast %121 : vector<256x4xf32> to vector<16x16x4xf32>
    "tpu.trace_start"() <{level = 10 : i32, message = "bnc,bnf->bcf"}> : () -> ()
    %cst_59 = arith.constant dense<0.000000e+00> : vector<16x4x16xf32>
    %125 = tpu.matmul %122, %123, %cst_59 {dimension_numbers = #tpu.dot_dimension_numbers<[1], [1], [2], [2], [0, 0, 0, 2, 1, 2], [0], [0]>} : vector<16x16x4xf32>, vector<16x16x16xf32>, vector<16x4x16xf32> -> vector<16x4x16xf32>
    "tpu.trace_stop"() : () -> ()
    "tpu.trace_start"() <{level = 10 : i32, message = "bnc,bnk->bck"}> : () -> ()
    %cst_60 = arith.constant dense<0.000000e+00> : vector<16x4x4xf32>
    %126 = tpu.matmul %122, %124, %cst_60 {dimension_numbers = #tpu.dot_dimension_numbers<[1], [1], [2], [2], [0, 0, 0, 2, 1, 2], [0], [0]>} : vector<16x16x4xf32>, vector<16x16x4xf32>, vector<16x4x4xf32> -> vector<16x4x4xf32>
    %cst_61 = arith.constant dense<0.000000e+00> : vector<16x4x4xf32>
    %127 = tpu.matmul %122, %122, %cst_61 {dimension_numbers = #tpu.dot_dimension_numbers<[1], [1], [2], [2], [0, 0, 0, 2, 1, 2], [0], [0]>} : vector<16x16x4xf32>, vector<16x16x4xf32>, vector<16x4x4xf32> -> vector<16x4x4xf32>
    "tpu.trace_stop"() : () -> ()
    %128 = arith.mulf %120, %121 : vector<256x4xf32>
    %129 = vector.shape_cast %128 : vector<256x4xf32> to vector<1x256x4xf32>
    %cst_62 = arith.constant dense<0.000000e+00> : vector<1xf32>
    %130 = vector.multi_reduction <add>, %129, %cst_62 [1, 2] : vector<1x256x4xf32> to vector<1xf32>
    %131 = vector.shape_cast %130 : vector<1xf32> to vector<1x1x1xf32>
    %132 = vector.extract %131[0, 0, 0] : f32 from vector<1x1x1xf32>
    %cst_63 = arith.constant 2.000000e+00 : f32
    %133 = arith.mulf %cst_63, %132 : f32
    %134 = arith.subf %5, %133 : f32
    %135 = arith.mulf %127, %127 : vector<16x4x4xf32>
    %136 = vector.shape_cast %135 : vector<16x4x4xf32> to vector<1x16x4x4xf32>
    %cst_64 = arith.constant dense<0.000000e+00> : vector<1xf32>
    %137 = vector.multi_reduction <add>, %136, %cst_64 [1, 2, 3] : vector<1x16x4x4xf32> to vector<1xf32>
    %138 = vector.shape_cast %137 : vector<1xf32> to vector<1x1x1x1xf32>
    %139 = vector.extract %138[0, 0, 0, 0] : f32 from vector<1x1x1x1xf32>
    %140 = arith.addf %134, %139 : f32
    %cst_65 = arith.constant 0.000000e+00 : f32
    %141 = vector.broadcast %cst_65 : f32 to vector<256x4xf32>
    %142 = arith.subf %141, %120 : vector<256x4xf32>
    %cst_66 = arith.constant 1.000000e-15 : f32
    %143 = vector.broadcast %cst_66 : f32 to vector<256x4xf32>
    %144 = arith.addf %120, %143 : vector<256x4xf32>
    %145 = math.log %144 : vector<256x4xf32>
    %146 = arith.mulf %142, %145 : vector<256x4xf32>
    %147 = vector.shape_cast %146 : vector<256x4xf32> to vector<1x256x4xf32>
    %cst_67 = arith.constant dense<0.000000e+00> : vector<1xf32>
    %148 = vector.multi_reduction <add>, %147, %cst_67 [1, 2] : vector<1x256x4xf32> to vector<1xf32>
    %149 = vector.shape_cast %148 : vector<1xf32> to vector<1x1x1xf32>
    %150 = vector.extract %149[0, 0, 0] : f32 from vector<1x1x1xf32>
    %151 = tpu.iota {dimensions = array<i32: 0>} : vector<16x16xi32>
    %152 = tpu.iota {dimensions = array<i32: 1>} : vector<16x16xi32>
    %153 = arith.cmpi eq, %151, %152 : vector<16x16xi32>
    %154 = arith.extui %153 : vector<16x16xi1> to vector<16x16xi32>
    %155 = arith.sitofp %154 : vector<16x16xi32> to vector<16x16xf32>
    %156 = tpu.iota {dimensions = array<i32: 0>} : vector<4x4xi32>
    %157 = tpu.iota {dimensions = array<i32: 1>} : vector<4x4xi32>
    %158 = arith.cmpi eq, %156, %157 : vector<4x4xi32>
    %159 = arith.extui %158 : vector<4x4xi1> to vector<4x4xi32>
    %160 = arith.sitofp %159 : vector<4x4xi32> to vector<4x4xf32>
    %cst_68 = arith.constant dense<0.000000e+00> : vector<16x256xf32>
    %161 = tpu.matmul %155, %108, %cst_68 {dimension_numbers = #tpu.dot_dimension_numbers<[1], [1], [0], [0], [0, 0, 1, 0], [], []>} : vector<16x16xf32>, vector<256x16xf32>, vector<16x256xf32> -> vector<16x256xf32>
    %c0_69 = arith.constant 0 : index
    %c0_70 = arith.constant 0 : index
    %c0_71 = arith.constant 0 : index
    %162 = vector.load %arg8[%c0_69, %c0_70, %c0_71] : memref<1x16x256xf32, #tpu.memory_space<vmem>>, vector<1x16x256xf32>
    %163 = vector.shape_cast %162 : vector<1x16x256xf32> to vector<16x256xf32>
    %164 = vector.shape_cast %161 : vector<16x256xf32> to vector<1x16x256xf32>
    tpu.vector_store %arg8[%c0_69, %c0_70, %c0_71], %164 {strides = array<i32>} : memref<1x16x256xf32, #tpu.memory_space<vmem>>, vector<1x16x256xf32>,
    %cst_72 = arith.constant dense<0.000000e+00> : vector<4x256xf32>
    %165 = tpu.matmul %160, %109, %cst_72 {dimension_numbers = #tpu.dot_dimension_numbers<[1], [1], [0], [0], [0, 0, 1, 0], [], []>} : vector<4x4xf32>, vector<256x4xf32>, vector<4x256xf32> -> vector<4x256xf32>
    %c0_73 = arith.constant 0 : index
    %c0_74 = arith.constant 0 : index
    %c0_75 = arith.constant 0 : index
    %166 = vector.load %arg9[%c0_73, %c0_74, %c0_75] : memref<1x4x256xf32, #tpu.memory_space<vmem>>, vector<1x4x256xf32>
    %167 = vector.shape_cast %166 : vector<1x4x256xf32> to vector<4x256xf32>
    %168 = vector.shape_cast %165 : vector<4x256xf32> to vector<1x4x256xf32>
    tpu.vector_store %arg9[%c0_73, %c0_74, %c0_75], %168 {strides = array<i32>} : memref<1x4x256xf32, #tpu.memory_space<vmem>>, vector<1x4x256xf32>,
    %c0_76 = arith.constant 0 : index
    %c0_77 = arith.constant 0 : index
    %c0_78 = arith.constant 0 : index
    %169 = vector.load %arg10[%c0_76, %c0_77, %c0_78] : memref<16x4x16xf32, #tpu.memory_space<vmem>>, vector<16x4x16xf32>
    tpu.vector_store %arg10[%c0_76, %c0_77, %c0_78], %125 {strides = array<i32>} : memref<16x4x16xf32, #tpu.memory_space<vmem>>, vector<16x4x16xf32>,
    %c0_79 = arith.constant 0 : index
    %c0_80 = arith.constant 0 : index
    %c0_81 = arith.constant 0 : index
    %170 = vector.load %arg11[%c0_79, %c0_80, %c0_81] : memref<16x4x4xf32, #tpu.memory_space<vmem>>, vector<16x4x4xf32>
    tpu.vector_store %arg11[%c0_79, %c0_80, %c0_81], %126 {strides = array<i32>} : memref<16x4x4xf32, #tpu.memory_space<vmem>>, vector<16x4x4xf32>,
    %171 = tpu.iota {dimensions = array<i32: 1>} : vector<1x128xi32>
    %c0_i32 = arith.constant 0 : i32
    %172 = vector.broadcast %c0_i32 : i32 to vector<1x128xi32>
    %173 = arith.cmpi eq, %171, %172 : vector<1x128xi32>
    %cst_82 = arith.constant 0.000000e+00 : f32
    %174 = vector.broadcast %140 : f32 to vector<1x128xf32>
    %175 = vector.broadcast %cst_82 : f32 to vector<1x128xf32>
    %176 = arith.select %173, %174, %175 : vector<1x128xi1>, vector<1x128xf32>
    %c1_i32 = arith.constant 1 : i32
    %177 = vector.broadcast %c1_i32 : i32 to vector<1x128xi32>
    %178 = arith.cmpi eq, %171, %177 : vector<1x128xi32>
    %cst_83 = arith.constant 0.000000e+00 : f32
    %179 = vector.broadcast %150 : f32 to vector<1x128xf32>
    %180 = vector.broadcast %cst_83 : f32 to vector<1x128xf32>
    %181 = arith.select %178, %179, %180 : vector<1x128xi1>, vector<1x128xf32>
    %182 = arith.addf %176, %181 : vector<1x128xf32>
    %c0_84 = arith.constant 0 : index
    %c0_85 = arith.constant 0 : index
    %c0_86 = arith.constant 0 : index
    %183 = vector.load %arg12[%c0_84, %c0_85, %c0_86] : memref<1x1x128xf32, #tpu.memory_space<vmem>>, vector<1x1x128xf32>
    %184 = vector.shape_cast %183 : vector<1x1x128xf32> to vector<1x128xf32>
    %185 = vector.shape_cast %182 : vector<1x128xf32> to vector<1x1x128xf32>
    tpu.vector_store %arg12[%c0_84, %c0_85, %c0_86], %185 {strides = array<i32>} : memref<1x1x128xf32, #tpu.memory_space<vmem>>, vector<1x1x128xf32>,
    return
  }
  func.func @transform_0(%arg0: i32) -> (i32, i32, i32) {
    %c0_i32 = arith.constant 0 : i32
    %c0_i32_0 = arith.constant 0 : i32
    %c0_i32_1 = arith.constant 0 : i32
    return %arg0, %c0_i32, %c0_i32_0 : i32, i32, i32
  }
  func.func @transform_1(%arg0: i32) -> (i32, i32, i32) {
    %c0_i32 = arith.constant 0 : i32
    %c0_i32_0 = arith.constant 0 : i32
    %c0_i32_1 = arith.constant 0 : i32
    return %arg0, %c0_i32, %c0_i32_0 : i32, i32, i32
  }
  func.func @transform_2(%arg0: i32) -> (i32, i32, i32) {
    %c0_i32 = arith.constant 0 : i32
    %c0_i32_0 = arith.constant 0 : i32
    %c0_i32_1 = arith.constant 0 : i32
    return %arg0, %c0_i32, %c0_i32_0 : i32, i32, i32
  }
  func.func @transform_3(%arg0: i32) -> (i32, i32) {
    %c0_i32 = arith.constant 0 : i32
    %c0_i32_0 = arith.constant 0 : i32
    %c0_i32_1 = arith.constant 0 : i32
    return %c0_i32, %c0_i32_0 : i32, i32
  }
  func.func @transform_4(%arg0: i32) -> (i32, i32) {
    %c0_i32 = arith.constant 0 : i32
    %c0_i32_0 = arith.constant 0 : i32
    %c0_i32_1 = arith.constant 0 : i32
    return %c0_i32, %c0_i32_0 : i32, i32
  }
  func.func @transform_5(%arg0: i32) -> (i32, i32) {
    %c0_i32 = arith.constant 0 : i32
    %c0_i32_0 = arith.constant 0 : i32
    %c0_i32_1 = arith.constant 0 : i32
    return %c0_i32, %c0_i32_0 : i32, i32
  }
  func.func @transform_6(%arg0: i32) -> (i32, i32) {
    %c0_i32 = arith.constant 0 : i32
    %c0_i32_0 = arith.constant 0 : i32
    %c0_i32_1 = arith.constant 0 : i32
    return %c0_i32, %c0_i32_0 : i32, i32
  }
  func.func @transform_7(%arg0: i32) -> (i32, i32, i32) {
    %c0_i32 = arith.constant 0 : i32
    %c0_i32_0 = arith.constant 0 : i32
    %c0_i32_1 = arith.constant 0 : i32
    return %arg0, %c0_i32, %c0_i32_0 : i32, i32, i32
  }
  func.func @transform_8(%arg0: i32) -> (i32, i32, i32) {
    %c0_i32 = arith.constant 0 : i32
    %c0_i32_0 = arith.constant 0 : i32
    %c0_i32_1 = arith.constant 0 : i32
    return %arg0, %c0_i32, %c0_i32_0 : i32, i32, i32
  }
  func.func @transform_9(%arg0: i32) -> (i32, i32, i32) {
    %c0_i32 = arith.constant 0 : i32
    %c0_i32_0 = arith.constant 0 : i32
    %c0_i32_1 = arith.constant 0 : i32
    return %arg0, %c0_i32, %c0_i32_0 : i32, i32, i32
  }
  func.func @transform_10(%arg0: i32) -> (i32, i32, i32) {
    %c0_i32 = arith.constant 0 : i32
    %c0_i32_0 = arith.constant 0 : i32
    %c0_i32_1 = arith.constant 0 : i32
    return %arg0, %c0_i32, %c0_i32_0 : i32, i32, i32
  }
  func.func @transform_11(%arg0: i32) -> (i32, i32, i32) {
    %c0_i32 = arith.constant 0 : i32
    %c0_i32_0 = arith.constant 0 : i32
    %c0_i32_1 = arith.constant 0 : i32
    return %arg0, %c0_i32, %c0_i32_0 : i32, i32, i32
  }
}

</mosaic_0001>

<bundles_post_ra>
// kernel: tpu_custom_call.1
= control target key start
LH: loop header
LB: loop body
LE: loop exit
PB: predicated region body
PF: predicated region fallthrough
CT: control target
= control target key end

     0   :  { %17 = vsyncpa [#allocation5], 0  ;;  %s14127_s0 = inlined_call_operand.vmem [shape: f32[16,16,8], index: 0, kind: input, shape index: {}]   ;;  %s14128_s1 = inlined_call_operand.vmem [shape: f32[16,16,16], index: 1, kind: input, shape index: {}]   ;;  %s14129_s2 = inlined_call_operand.vmem [shape: f32[16,16,1], index: 2, kind: input, shape index: {}]   ;;  %s14130_s3 = inlined_call_operand.vmem [shape: f32[8,32], index: 3, kind: input, shape index: {}]   ;;  %s14131_s4 = inlined_call_operand.vmem [shape: f32[1,32], index: 4, kind: input, shape index: {}]   ;;  %s14132_s5 = inlined_call_operand.vmem [shape: f32[32,20], index: 5, kind: input, shape index: {}]   ;;  %s14133_s6 = inlined_call_operand.vmem [shape: f32[1,20], index: 6, kind: input, shape index: {}]   ;;  %s14134_s7 = inlined_call_operand.hbm [shape: f32[1,16,256], index: 7, kind: output, shape index: {0}]   ;;  %s14135_s8 = inlined_call_operand.hbm [shape: f32[1,4,256], index: 8, kind: output, shape index: {1}]   ;;  %s14136_s9 = inlined_call_operand.hbm [shape: f32[16,4,16], index: 9, kind: output, shape index: {2}]   ;;  %s14137_s10 = inlined_call_operand.vmem [shape: f32[16,4,4], index: 10, kind: output, shape index: {3}]   ;;  %s14138_s11 = inlined_call_operand.hbm [shape: f32[1,1,128], index: 11, kind: output, shape index: {4}]  }
   0x1   :  { %18 = vsyncpa [#allocation7], 0  ;;  %v10613_v0 = vld [vmem:[%s14128_s1 + $0x90] sm:$0xff]  ;;  %v10618_v1 = vld [vmem:[%s14128_s1 + $0x98] sm:$0xff]  ;;  %vm14139_vm0 = vcmask 130048   ;;  %s10533_s23 = smov 16  }
   0x2   :  { %v36_v2 = vld [vmem:[%s14128_s1 + $0x10] sm:$0xff]  ;;  %318 = vrot.lane.b32.xlu0 %v10613_v0, %s10533_s23  ;;  %320 = vrot.lane.b32.xlu1 %v10618_v1, %s10533_s23  ;;  %v10534_v3 = vmov 0.0   ;;  %v34_v4 = vld [vmem:[%s14128_s1] sm:$0xff]  ;;  %s10535_s19 = smov 32   ;;  %vm1170_vm1 = vcmask 64512   ;;  %s10536_s28 = smov 48  }
   0x3   :  { %171 = vst [vmem:[#allocation2] sm:$0xff] %v10534_v3  ;;  %173 = vst [vmem:[#allocation2 + $0x10] sm:$0xff] %v10534_v3  ;;  %v35_v5 = vld [vmem:[%s14128_s1 + $0x8] sm:$0xff]  ;;  %v68_v6 = vmul.f32 %v36_v2, %v36_v2  ;;  %v66_v7 = vmul.f32 %v34_v4, %v34_v4  ;;  %v37_v9 = vld [vmem:[%s14128_s1 + $0x18] sm:$0xff] }
   0x4   :  { %172 = vst [vmem:[#allocation2 + $0x8] sm:$0xff] %v10534_v3  ;;  %175 = vst [vmem:[#allocation2 + $0x20] sm:$0xff] %v10534_v3  ;;  %v67_v8 = vmul.f32 %v35_v5, %v35_v5  ;;  %v69_v10 = vmul.f32 %v37_v9, %v37_v9  ;;  %v38_v11 = vld [vmem:[%s14128_s1 + $0x20] sm:$0xff]  ;;  %v39_v17 = vld [vmem:[%s14128_s1 + $0x28] sm:$0xff] }
   0x5   :  { %177 = vst [vmem:[#allocation2 + $0x30] sm:$0xff] %v10534_v3  ;;  %179 = vst [vmem:[#allocation2 + $0x40] sm:$0xff] %v10534_v3  ;;  %v99_v12 = vsel %vm14139_vm0, %v66_v7, 0.0  ;;  %v102_v14 = vsel %vm14139_vm0, %v68_v6, 0.0  ;;  %v70_v15 = vmul.f32 %v38_v11, %v38_v11  ;;  %v10653_v19 = vld [vmem:[%s14128_s1 + $0xa0] sm:$0xff]  ;;  %v71_v20 = vmul.f32 %v39_v17, %v39_v17  ;;  %v40_v22 = vld [vmem:[%s14128_s1 + $0x30] sm:$0xff] }
   0x6   :  { %181 = vst [vmem:[#allocation2 + $0x50] sm:$0xff] %v10534_v3  ;;  %183 = vst [vmem:[#allocation2 + $0x60] sm:$0xff] %v10534_v3  ;;  %v100_v13 = vsel %vm14139_vm0, %v67_v8, 0.0  ;;  %239 = vrot.lane.b32.xlu0 %v36_v2, %s10533_s23  ;;  %241 = vrot.lane.b32.xlu1 %v37_v9, %s10533_s23  ;;  %v104_v18 = vsel %vm14139_vm0, %v69_v10, 0.0  ;;  %v72_v24 = vmul.f32 %v40_v22, %v40_v22  ;;  %v41_v26 = vld [vmem:[%s14128_s1 + $0x38] sm:$0xff]  ;;  %v10666_v27 = vld [vmem:[%s14128_s1 + $0xa8] sm:$0xff] }
   0x7   :  { %185 = vst [vmem:[#allocation2 + $0x70] sm:$0xff] %v10534_v3  ;;  %187 = vst [vmem:[#allocation2 + $0x80] sm:$0xff] %v10534_v3  ;;  %v101_v16 = vadd.f32 %v100_v13, %v99_v12  ;;  %v106_v23 = vsel %vm14139_vm0, %v70_v15, 0.0  ;;  %v108_v28 = vsel %vm14139_vm0, %v71_v20, 0.0  ;;  %v73_v29 = vmul.f32 %v41_v26, %v41_v26  ;;  %v10672_v30 = vld [vmem:[%s14128_s1 + $0x40] sm:$0xff]  ;;  %v10682_v33 = vld [vmem:[%s14128_s1 + $0x88] sm:$0xff] }
   0x8   :  { %189 = vst [vmem:[#allocation2 + $0x90] sm:$0xff] %v10534_v3  ;;  %191 = vst [vmem:[#allocation2 + $0xa0] sm:$0xff] %v10534_v3  ;;  %v10677_v32 = vld [vmem:[%s14128_s1 + $0x80] sm:$0xff]  ;;  %v110_v35 = vsel %vm14139_vm0, %v72_v24, 0.0  ;;  %v74_v36 = vmul.f32 %v10672_v30, %v10672_v30  ;;  %v1105_v38 = vld [vmem:[%s14127_s0 + $0x8] sm:$0xff] }
   0x9   :  { %193 = vst [vmem:[#allocation2 + $0xb0] sm:$0xff] %v10534_v3  ;;  %195 = vst [vmem:[#allocation2 + $0xc0] sm:$0xff] %v10534_v3  ;;  %v103_v21 = vadd.f32 %v102_v14, %v101_v16  ;;  %v1168_v34 = vld [vmem:[%s14130_s3] sm:$0xff]  ;;  %v10704_v40 = vld [vmem:[%s14128_s1 + $0x48] sm:$0xff]  ;;  %v112_v43 = vsel %vm14139_vm0, %v73_v29, 0.0 }
   0xa   :  { %197 = vst [vmem:[#allocation2 + $0xd0] sm:$0xff] %v10534_v3  ;;  %199 = vst [vmem:[#allocation2 + $0xe0] sm:$0xff] %v10534_v3  ;;  %328 = vrot.lane.b32.xlu0 %v10653_v19, %s10535_s19  ;;  %250 = vrot.lane.b32.xlu1 %v38_v11, %s10535_s19  ;;  %v1104_v37 = vld [vmem:[%s14127_s0] sm:$0xff]  ;;  %v1106_v41 = vld [vmem:[%s14127_s0 + $0x10] sm:$0xff]  ;;  %v75_v44 = vmul.f32 %v10704_v40, %v10704_v40  ;;  %v114_v47 = vsel %vm14139_vm0, %v74_v36, 0.0 }
   0xb   :  { %201 = vst [vmem:[#allocation2 + $0xf0] sm:$0xff] %v10534_v3  ;;  %204 = vst [vmem:[#allocation2 + $0x108] sm:$0xff] %v10534_v3  ;;  %v105_v25 = vadd.f32 %v104_v18, %v103_v21  ;;  %9196 = vmatprep.subr.mxu0 %v1168_v34  ;;  %v10712_v42 = vld [vmem:[%s14128_s1 + $0xb0] sm:$0xff]  ;;  %9198 = vmatprep.mubr.msk.f32.mxu0 %vm1170_vm1, %v1104_v37  ;;  %v1107_v49 = vld [vmem:[%s14127_s0 + $0x18] sm:$0xff] }
   0xc   :  { %206 = vst [vmem:[#allocation2 + $0x118] sm:$0xff] %v10534_v3  ;;  %208 = vst [vmem:[#allocation2 + $0x128] sm:$0xff] %v10534_v3  ;;  %9197 = vmatpush3.msra.mxu0 %v1168_v34  ;;  %v10721_v46 = vld [vmem:[%s14128_s1 + $0x50] sm:$0xff]  ;;  %v10735_v51 = vld [vmem:[%s14128_s1 + $0x58] sm:$0xff]  ;;  %v116_v54 = vsel %vm14139_vm0, %v75_v44, 0.0 }
   0xd   :  { %210 = vst [vmem:[#allocation2 + $0x138] sm:$0xff] %v10534_v3  ;;  %212 = vst [vmem:[#allocation2 + $0x148] sm:$0xff] %v10534_v3  ;;  %v107_v31 = vadd.f32 %v106_v23, %v105_v25  ;;  %9199 = vmatmul.mubr.msk.f32.vlgmr.msra.gmra.mrb[0].mxu0 %vm1170_vm1, %v1105_v38  ;;  %v76_v48 = vmul.f32 %v10721_v46, %v10721_v46  ;;  %v1108_v52 = vld [vmem:[%s14127_s0 + $0x20] sm:$0xff]  ;;  %v57_v53 = vld [vmem:[%s14128_s1 + $0xb8] sm:$0xff]  ;;  %v77_v55 = vmul.f32 %v10735_v51, %v10735_v51 }
   0xe   :  { %214 = vst [vmem:[#allocation2 + $0x158] sm:$0xff] %v10534_v3  ;;  %216 = vst [vmem:[#allocation2 + $0x168] sm:$0xff] %v10534_v3  ;;  %330 = vrot.lane.b32.xlu0 %v10666_v27, %s10535_s19  ;;  %252 = vrot.lane.b32.xlu1 %v39_v17, %s10535_s19  ;;  %v10749_v57 = vld [vmem:[%s14128_s1 + $0x60] sm:$0xff]  ;;  %v1109_v60 = vld [vmem:[%s14127_s0 + $0x28] sm:$0xff] }
   0xf   :  { %218 = vst [vmem:[#allocation2 + $0x178] sm:$0xff] %v10534_v3  ;;  %220 = vst [vmem:[#allocation2 + $0x188] sm:$0xff] %v10534_v3  ;;  %v109_v39 = vadd.f32 %v108_v28, %v107_v31  ;;  %9201 = vmatprep.mubr.msk.f32.mxu0 %vm1170_vm1, %v1106_v41  ;;  %v118_v58 = vsel %vm14139_vm0, %v76_v48, 0.0  ;;  %v78_v59 = vmul.f32 %v10749_v57, %v10749_v57  ;;  %v10762_v62 = vld [vmem:[%s14128_s1 + $0x68] sm:$0xff]  ;;  %v1110_v63 = vld [vmem:[%s14127_s0 + $0x30] sm:$0xff] }
  0x10   :  { %222 = vst [vmem:[#allocation2 + $0x198] sm:$0xff] %v10534_v3  ;;  %224 = vst [vmem:[#allocation2 + $0x1a8] sm:$0xff] %v10534_v3  ;;  %v58_v2 = vld [vmem:[%s14128_s1 + $0xc0] sm:$0xff]  ;;  %v10776_v7 = vld [vmem:[%s14128_s1 + $0x70] sm:$0xff] }
  0x11   :  { %226 = vst [vmem:[#allocation2 + $0x1b8] sm:$0xff] %v10534_v3  ;;  %228 = vst [vmem:[#allocation2 + $0x1c8] sm:$0xff] %v10534_v3  ;;  %v111_v45 = vadd.f32 %v110_v35, %v109_v39  ;;  %9202 = vmatmul.mubr.msk.f32.gmra.mrb[2].mxu0 %vm1170_vm1, %v1107_v49  ;;  %v122_v8 = vsel %vm14139_vm0, %v78_v59, 0.0  ;;  %v80_v9 = vmul.f32 %v10776_v7, %v10776_v7  ;;  %v1111_v10 = vld [vmem:[%s14127_s0 + $0x38] sm:$0xff] }
  0x12   :  { %230 = vst [vmem:[#allocation2 + $0x1d8] sm:$0xff] %v10534_v3  ;;  %232 = vst [vmem:[#allocation2 + $0x1e8] sm:$0xff] %v10534_v3  ;;  %338 = vrot.lane.b32.xlu0 %v10712_v42, %s10536_s28  ;;  %261 = vrot.lane.b32.xlu1 %v40_v22, %s10536_s28 }
  0x13   :  { %234 = vst [vmem:[#allocation2 + $0x1f8] sm:$0xff] %v10534_v3  ;;  %235 = vst.msk [vmem:[#allocation2] sm:$0xff] %vm14139_vm0, %v34_v4  ;;  %v113_v50 = vadd.f32 %v112_v43, %v111_v45  ;;  %9204 = vmatprep.mubr.msk.f32.mxu0 %vm1170_vm1, %v1108_v52  ;;  %v120_v3 = vsel %vm14139_vm0, %v77_v55, 0.0  ;;  %v79_v4 = vmul.f32 %v10762_v62, %v10762_v62 }
  0x14   :  { %236 = vst.msk [vmem:[#allocation2 + $0x10] sm:$0xff] %vm14139_vm0, %v35_v5  ;;  %314 = vst.msk [vmem:[#allocation2 + $0x108] sm:$0xff] %vm14139_vm0, %v10677_v32  ;;  %v450_v5 = vlaneseq }
  0x15   :  { %315 = vst.msk [vmem:[#allocation2 + $0x118] sm:$0xff] %vm14139_vm0, %v10682_v33  ;;  %v115_v56 = vadd.f32 %v114_v47, %v113_v50  ;;  %9205 = vmatmul.mubr.msk.f32.gmra.mrb[4].mxu0 %vm1170_vm1, %v1109_v60 }
  0x16   :  { %340 = vrot.lane.b32.xlu0 %v57_v53, %s10536_s28  ;;  %263 = vrot.lane.b32.xlu1 %v41_v26, %s10536_s28 }
  0x17   :  { %v117_v61 = vadd.f32 %v116_v54, %v115_v56  ;;  %9207 = vmatprep.mubr.msk.f32.mxu0 %vm1170_vm1, %v1110_v63 }
  0x19   :  { %v119_v6 = vadd.f32 %v118_v58, %v117_v61 }
  0x1a   :  { %19 = vsyncpa [#allocation10], 0  ;;  %s10537_s30 = smov 64   ;;  %v10792_v12 = vld [vmem:[%s14128_s1 + $0x78] sm:$0xff]  ;;  %v1112_v13 = vld [vmem:[%s14127_s0 + $0x40] sm:$0xff]  ;;  %v124_v15 = vsel %vm14139_vm0, %v79_v4, 0.0  ;;  %9208 = vmatmul.mubr.msk.f32.gmra.mrb[6].mxu0 %vm1170_vm1, %v1111_v10  ;;  %v82_v21 = vmul.f32 %v10677_v32, %v10677_v32  ;;  %v83_v28 = vmul.f32 %v10682_v33, %v10682_v33  ;;  %v84_v34 = vmul.f32 %v10613_v0, %v10613_v0 }
  0x1b   :  { %348 = vrot.lane.b32.xlu0 %v58_v2, %s10537_s30  ;;  %272 = vrot.lane.b32.xlu1 %v10672_v30, %s10537_s30  ;;  %v121_v11 = vadd.f32 %v120_v3, %v119_v6  ;;  %v59_v14 = vld [vmem:[%s14128_s1 + $0xc8] sm:$0xff]  ;;  %v81_v16 = vmul.f32 %v10792_v12, %v10792_v12  ;;  %v10803_v17 = vand.u32 127, %v450_v5  ;;  %v126_v20 = vsel %vm14139_vm0, %v80_v9, 0.0  ;;  %v1114_v25 = vld [vmem:[%s14127_s0 + $0x50] sm:$0xff]  ;;  %s10538_s26 = smov 80   ;;  %s10539_s21 = smov 96  }
  0x1c   :  { %9210 = vmatprep.mubr.msk.f32.mxu0 %vm1170_vm1, %v1112_v13  ;;  %v1113_v22 = vld [vmem:[%s14127_s0 + $0x48] sm:$0xff]  ;;  %v10813_v23 = vshrl.u32 %v450_v5, 7  ;;  %v60_v26 = vld [vmem:[%s14128_s1 + $0xd0] sm:$0xff]  ;;  %v130_v35 = vsel %vm14139_vm0, %v82_v21, 0.0  ;;  %v1115_v33 = vld [vmem:[%s14127_s0 + $0x58] sm:$0xff]  ;;  %v85_v39 = vmul.f32 %v10618_v1, %v10618_v1  ;;  %v132_v41 = vsel %vm14139_vm0, %v83_v28, 0.0 }
  0x1d   :  { %14344 = vst [vmem:[#allocation14_spill] sm:$0xff] %v10803_v17  ;;  %v123_v18 = vadd.f32 %v122_v8, %v121_v11  ;;  %v128_v29 = vsel %vm14139_vm0, %v81_v16, 0.0  ;;  %v10828_v30 = vadd.s32 128, %v10803_v17  ;;  %v1116_v0 = vld [vmem:[%s14127_s0 + $0x60] sm:$0xff]  ;;  %v134_v45 = vsel %vm14139_vm0, %v84_v34, 0.0  ;;  %v1117_v47 = vld [vmem:[%s14127_s0 + $0x68] sm:$0xff] }
  0x1e   :  { %14345 = vst [vmem:[#allocation15_spill] sm:$0xff] %v10813_v23  ;;  %v10831_v31 = vadd.s32 184, %v10813_v23  ;;  %9211 = vmatmul.mubr.msk.f32.gmra.mrb[8].mxu0 %vm1170_vm1, %v1113_v22  ;;  %v10844_v36 = vadd.s32 192, %v10813_v23  ;;  %v10851_v38 = vadd.s32 200, %v10813_v23  ;;  %v10862_v43 = vadd.s32 208, %v10813_v23  ;;  %v1118_v49 = vld [vmem:[%s14127_s0 + $0x70] sm:$0xff] }
  0x1f   :  { %350 = vrot.lane.b32.xlu0 %v59_v14, %s10537_s30  ;;  %274 = vrot.lane.b32.xlu1 %v10704_v40, %s10537_s30  ;;  %v125_v24 = vadd.f32 %v124_v15, %v123_v18  ;;  %v61_v40 = vld [vmem:[%s14128_s1 + $0xd8] sm:$0xff]  ;;  %v10868_v1 = vadd.s32 216, %v10813_v23  ;;  %v136_v50 = vsel %vm14139_vm0, %v85_v39, 0.0  ;;  %v87_v52 = vmul.f32 %v10666_v27, %v10666_v27  ;;  %v1120_v59 = vld [vmem:[%s14127_s0 + $0x80] sm:$0xff]  ;;  %s10540_s16 = smov 112   ;;  %s10545_s29 = smov [#allocation4]  }
  0x20   :  { %9213 = vmatprep.mubr.msk.f32.mxu0 %vm1170_vm1, %v1114_v25  ;;  %vm533_vm2 = vcmp.eq.s32.totalorder %v10831_v31, %v10828_v30  ;;  %vm535_vm3 = vcmp.eq.s32.totalorder %v10844_v36, %v10828_v30  ;;  %vm537_vm4 = vcmp.eq.s32.totalorder %v10851_v38, %v10828_v30  ;;  %vm539_vm5 = vcmp.eq.s32.totalorder %v10862_v43, %v10828_v30  ;;  %v1119_v27 = vld [vmem:[%s14127_s0 + $0x78] sm:$0xff]  ;;  %v63_v61 = vld [vmem:[%s14128_s1 + $0xe8] sm:$0xff]  ;;  %v1122_v4 = vld [vmem:[%s14127_s0 + $0x90] sm:$0xff]  ;;  %s10546_s12 = smov [#allocation8]  }
  0x21   :  { %v127_v32 = vadd.f32 %v126_v20, %v125_v24  ;;  %vm541_vm6 = vcmp.eq.s32.totalorder %v10868_v1, %v10828_v30  ;;  %v10895_v53 = vadd.s32 232, %v10813_v23  ;;  %v88_v56 = vmul.f32 %v10712_v42, %v10712_v42  ;;  %v1121_v2 = vld [vmem:[%s14127_s0 + $0x88] sm:$0xff]  ;;  %v64_v6 = vld [vmem:[%s14128_s1 + $0xf0] sm:$0xff]  ;;  %v1124_v9 = vld [vmem:[%s14127_s0 + $0xa0] sm:$0xff]  ;;  %s8694_s13 = sshll.u32 %s10546_s12, 4  ;;  %s14060_s13 = int_to_ptr.vmem [resolvable:$true] %s8694_s13 }
  0x22   :  { %9214 = vmatmul.mubr.msk.f32.gmra.mrb[10].mxu0 %vm1170_vm1, %v1115_v33  ;;  %v10914_v42 = vadd.s32 240, %v10813_v23  ;;  %v140_v60 = vsel %vm14139_vm0, %v87_v52, 0.0  ;;  %v10933_v5 = vadd.s32 248, %v10813_v23  ;;  %v65_v10 = vld [vmem:[%s14128_s1 + $0xf8] sm:$0xff]  ;;  %v1125_v11 = vld [vmem:[%s14127_s0 + $0xa8] sm:$0xff]  ;;  %v1128_v14 = vld [vmem:[%s14127_s0 + $0xc0] sm:$0xff]  ;;  %vm14141_vm12 = vcmp.eq.s32.totalorder %v10813_v23, %v10803_v17 }
  0x23   :  { %358 = vrot.lane.b32.xlu0 %v60_v26, %s10538_s26  ;;  %283 = vrot.lane.b32.xlu1 %v10721_v46, %s10538_s26  ;;  %v129_v37 = vadd.f32 %v128_v29, %v127_v32  ;;  %v86_v46 = vmul.f32 %v10653_v19, %v10653_v19  ;;  %v10886_v19 = vadd.s32 224, %v10813_v23  ;;  %vm545_vm8 = vcmp.eq.s32.totalorder %v10895_v53, %v10828_v30  ;;  %v1127_v13 = vld [vmem:[%s14127_s0 + $0xb8] sm:$0xff]  ;;  %v1130_v15 = vld [vmem:[%s14127_s0 + $0xd0] sm:$0xff]  ;;  %v419_v25 = vld [vmem:[#allocation2 + $0x108] sm:$0xff] }
  0x24   :  { %9216 = vmatprep.mubr.msk.f32.mxu0 %vm1170_vm1, %v1116_v0  ;;  %vm547_vm9 = vcmp.eq.s32.totalorder %v10914_v42, %v10828_v30  ;;  %vm549_vm10 = vcmp.eq.s32.totalorder %v10933_v5, %v10828_v30  ;;  %v1131_v16 = vld [vmem:[%s14127_s0 + $0xd8] sm:$0xff]  ;;  %v1132_v18 = vld [vmem:[%s14127_s0 + $0xe0] sm:$0xff]  ;;  %v1133_v20 = vld [vmem:[%s14127_s0 + $0xe8] sm:$0xff]  ;;  %v11000_v22 = vadd.s32 128, %v10813_v23  ;;  %v11010_v26 = vadd.s32 136, %v10813_v23 }
  0x25   :  { %v131_v44 = vadd.f32 %v130_v35, %v129_v37  ;;  %vm543_vm7 = vcmp.eq.s32.totalorder %v10886_v19, %v10828_v30  ;;  %v138_v55 = vsel %vm14139_vm0, %v86_v46, 0.0  ;;  %v1134_v21 = vld [vmem:[%s14127_s0 + $0xf0] sm:$0xff]  ;;  %v1135_v24 = vld [vmem:[%s14127_s0 + $0xf8] sm:$0xff]  ;;  %v386_v29 = vld [vmem:[#allocation2] sm:$0xff]  ;;  %v11021_v32 = vadd.s32 8, %v10813_v23 }
  0x26   :  { %9217 = vmatmul.mubr.msk.f32.gmra.mrb[12].mxu0 %vm1170_vm1, %v1117_v47  ;;  %vm519_vm11 = vcmp.eq.s32.totalorder %v11000_v22, %v10828_v30  ;;  %v421_v34 = vld [vmem:[#allocation2 + $0x118] sm:$0xff]  ;;  %vm14148_vm13 = vcmp.eq.s32.totalorder %v11010_v26, %v10828_v30  ;;  %v11028_v35 = vsel %vm14141_vm12, 1.0, %v386_v29  ;;  %v388_v37 = vld [vmem:[#allocation2 + $0x10] sm:$0xff]  ;;  %vm245_vm15 = vcmask 261248  }
  0x27   :  { %360 = vrot.lane.b32.xlu0 %v61_v40, %s10538_s26  ;;  %285 = vrot.lane.b32.xlu1 %v10735_v51, %s10538_s26  ;;  %v133_v48 = vadd.f32 %v132_v41, %v131_v44  ;;  %v62_v51 = vld [vmem:[%s14128_s1 + $0xe0] sm:$0xff]  ;;  %v11016_v28 = vsel %vm519_vm11, 1.0, %v419_v25  ;;  %14347 = vst [vmem:[#allocation17_spill] sm:$0xff] %v11021_v32  ;;  %v11033_v33 = vsel %vm14148_vm13, 1.0, %v421_v34  ;;  %vm14140_vm14 = vcmp.eq.s32.totalorder %v11021_v32, %v10803_v17  ;;  %v1151_v19 = vld [vmem:[%s14129_s2 + $0x78] sm:$0xff] }
  0x28   :  { %9219 = vmatprep.mubr.msk.f32.mxu0 %vm1170_vm1, %v1118_v49  ;;  %14348 = vst [vmem:[#allocation18_spill] sm:$0xff] %v11033_v33  ;;  %v11041_v0 = vsel %vm14140_vm14, 1.0, %v388_v37  ;;  %v11047_v41 = vadd.s32 144, %v10813_v23  ;;  %v11050_v44 = vadd.s32 152, %v10813_v23  ;;  %v11057_v47 = vadd.s32 16, %v10813_v23 }
  0x29   :  { %v135_v54 = vadd.f32 %v134_v45, %v133_v48  ;;  %14349 = vst [vmem:[#allocation19_spill] sm:$0xff] %v11041_v0  ;;  %v11060_v48 = vadd.s32 24, %v10813_v23 }
  0x2a   :  { %9220 = vmatmul.mubr.msk.f32.gmra.mrb[14].mxu0 %vm1170_vm1, %v1119_v27  ;;  %vm14142_vm14 = vcmp.eq.s32.totalorder %v11050_v44, %v10828_v30  ;;  %v11082_v27 = vadd.s32 32, %v10813_v23 }
  0x2b   :  { %368 = vrot.lane.b32.xlu0 %v62_v51, %s10539_s21  ;;  %294 = vrot.lane.b32.xlu1 %v10749_v57, %s10539_s21  ;;  %v137_v58 = vadd.f32 %v136_v50, %v135_v54  ;;  %v142_v57 = vsel %vm14139_vm0, %v88_v56, 0.0  ;;  %vm14143_vm0 = vcmp.eq.s32.totalorder %v11047_v41, %v10828_v30  ;;  %v11075_v56 = vadd.s32 160, %v10813_v23 }
  0x2c   :  { %9222 = vmatprep.mubr.msk.f32.mxu0 %vm1170_vm1, %v1120_v59  ;;  %vm14144_vm12 = vcmp.eq.s32.totalorder %v11060_v48, %v10803_v17 }
  0x2d   :  { %v139_v63 = vadd.f32 %v138_v55, %v137_v58 }
  0x2e   :  { %9223 = vmatmul.mubr.msk.f32.gmra.mrb[16].mxu0 %vm1170_vm1, %v1121_v2  ;;  %v11098_v2 = vadd.s32 168, %v10813_v23 }
  0x2f   :  { %370 = vrot.lane.b32.xlu0 %v63_v61, %s10539_s21  ;;  %296 = vrot.lane.b32.xlu1 %v10762_v62, %s10539_s21  ;;  %v141_v3 = vadd.f32 %v140_v60, %v139_v63  ;;  %v1123_v62 = vld [vmem:[%s14127_s0 + $0x98] sm:$0xff] }
  0x30   :  { %9225 = vmatprep.mubr.msk.f32.mxu0 %vm1170_vm1, %v1122_v4 }
  0x31   :  { %v10938_v8 = vadd.f32 %v142_v57, %v141_v3  ;;  %v11105_v3 = vadd.s32 40, %v10813_v23 }
  0x32   :  { %9226 = vmatmul.mubr.msk.f32.gmra.mrb[18].mxu0 %vm1170_vm1, %v1123_v62 }
  0x33   :  { %14346 = vst [vmem:[#allocation16_spill] sm:$0xff] %v10938_v8  ;;  %378 = vrot.lane.b32.xlu0 %v64_v6, %s10540_s16  ;;  %305 = vrot.lane.b32.xlu1 %v10776_v7, %s10540_s16  ;;  %v1126_v7 = vld [vmem:[%s14127_s0 + $0xb0] sm:$0xff] }
  0x34   :  { %9228 = vmatprep.mubr.msk.f32.mxu0 %vm1170_vm1, %v1124_v9 }
  0x36   :  { %9229 = vmatmul.mubr.msk.f32.gmra.mrb[20].mxu0 %vm1170_vm1, %v1125_v11 }
  0x37   :  { %380 = vrot.lane.b32.xlu0 %v65_v10, %s10540_s16  ;;  %307 = vrot.lane.b32.xlu1 %v10792_v12, %s10540_s16  ;;  %v1129_v12 = vld [vmem:[%s14127_s0 + $0xc8] sm:$0xff] }
  0x38   :  { %9231 = vmatprep.mubr.msk.f32.mxu0 %vm1170_vm1, %v1126_v7  ;;  %v11122_v7 = vadd.s32 176, %v10813_v23 }
  0x3a   :  { %9232 = vmatmul.mubr.msk.f32.gmra.mrb[22].mxu0 %vm1170_vm1, %v1127_v13  ;;  %v11129_v13 = vadd.s32 48, %v10813_v23 }
  0x3b   :  { %9234 = vmatprep.mubr.msk.f32.mxu0 %vm1170_vm1, %v1128_v14 }
  0x3c   :  { %vm14149_vm13 = vcmp.eq.s32.totalorder %v11129_v13, %v10803_v17 }
  0x3e   :  { %9235 = vmatmul.mubr.msk.f32.gmra.mrb[24].mxu0 %vm1170_vm1, %v1129_v12 }
  0x3f   :  { %9237 = vmatprep.mubr.msk.f32.mxu0 %vm1170_vm1, %v1130_v15 }
  0x42   :  { %9238 = vmatmul.mubr.msk.f32.gmra.mrb[26].mxu0 %vm1170_vm1, %v1131_v16 }
  0x43   :  { %9240 = vmatprep.mubr.msk.f32.mxu0 %vm1170_vm1, %v1132_v18 }
  0x46   :  { %9241 = vmatmul.mubr.msk.f32.gmra.mrb[28].mxu0 %vm1170_vm1, %v1133_v20 }
  0x47   :  { %9243 = vmatprep.mubr.msk.f32.mxu0 %vm1170_vm1, %v1134_v21  ;;  %v11150_v21 = vadd.s32 56, %v10813_v23 }
  0x4a   :  { %9244 = vmatmul.mubr.msk.f32.gmra.mrb[30].mxu0 %vm1170_vm1, %v1135_v24  ;;  %vm256_vm1 = vcmask 392448  }
  0x56   :  { %663 = vadd.xlane.f32.xlu0 %v11016_v28 }
  0x5a   :  { %615 = vadd.xlane.f32.xlu0 %v11028_v35 }
  0x5b   :  { %666 = vadd.xlane.f32.xlu1 %v11033_v33 }
  0x5e   :  { %618 = vadd.xlane.f32.xlu0 %v11041_v0 }
  0x74   :  { %v319_v39 = vpop.permute.xlu0 %318  ;;  %v321_v40 = vpop.permute.xlu1 %320 }
  0x75   :  { %324 = vst.msk [vmem:[#allocation2 + $0x128] sm:$0xff] %vm245_vm15, %v319_v39  ;;  %325 = vst.msk [vmem:[#allocation2 + $0x138] sm:$0xff] %vm245_vm15, %v321_v40  ;;  %v11169_v40 = vadd.s32 64, %v10813_v23 }
  0x78   :  { %v240_v45 = vpop.permute.xlu0 %239  ;;  %v242_v46 = vpop.permute.xlu1 %241 }
  0x79   :  { %246 = vst.msk [vmem:[#allocation2 + $0x20] sm:$0xff] %vm245_vm15, %v240_v45  ;;  %247 = vst.msk [vmem:[#allocation2 + $0x30] sm:$0xff] %vm245_vm15, %v242_v46  ;;  %vm14145_vm15 = vcmp.eq.s32.totalorder %v11057_v47, %v10803_v17 }
  0x7c   :  { %v329_v49 = vpop.permute.xlu0 %328  ;;  %v423_v50 = vld [vmem:[#allocation2 + $0x128] sm:$0xff]  ;;  %v251_v52 = vpop.permute.xlu1 %250  ;;  %v425_v51 = vld [vmem:[#allocation2 + $0x138] sm:$0xff] }
  0x7d   :  { %334 = vst.msk [vmem:[#allocation2 + $0x148] sm:$0xff] %vm256_vm1, %v329_v49  ;;  %v11066_v54 = vsel %vm14143_vm0, 1.0, %v423_v50  ;;  %257 = vst.msk [vmem:[#allocation2 + $0x40] sm:$0xff] %vm256_vm1, %v251_v52  ;;  %v11072_v55 = vsel %vm14142_vm14, 1.0, %v425_v51  ;;  %vm267_vm14 = vcmask 523648   ;;  %vm14147_vm0 = vcmp.eq.s32.totalorder %v11075_v56, %v10828_v30 }
  0x7e   :  { %14350 = vst [vmem:[#allocation20_spill] sm:$0xff] %v11066_v54  ;;  %14351 = vst [vmem:[#allocation21_spill] sm:$0xff] %v11072_v55  ;;  %669 = vadd.xlane.f32.xlu1 %v11066_v54 }
  0x80   :  { %v331_v58 = vpop.permute.xlu0 %330  ;;  %v253_v59 = vpop.permute.xlu1 %252  ;;  %v390_v60 = vld [vmem:[#allocation2 + $0x20] sm:$0xff]  ;;  %v392_v61 = vld [vmem:[#allocation2 + $0x30] sm:$0xff] }
  0x81   :  { %335 = vst.msk [vmem:[#allocation2 + $0x158] sm:$0xff] %vm256_vm1, %v331_v58  ;;  %258 = vst.msk [vmem:[#allocation2 + $0x50] sm:$0xff] %vm256_vm1, %v253_v59  ;;  %v11090_v63 = vsel %vm14145_vm15, 1.0, %v390_v60  ;;  %v11095_v57 = vsel %vm14144_vm12, 1.0, %v392_v61  ;;  %vm14146_vm1 = vcmp.eq.s32.totalorder %v11082_v27, %v10803_v17  ;;  %vm529_vm12 = vcmp.eq.s32.totalorder %v11098_v2, %v10828_v30 }
  0x82   :  { %14352 = vst [vmem:[#allocation22_spill] sm:$0xff] %v11090_v63  ;;  %14353 = vst [vmem:[#allocation23_spill] sm:$0xff] %v11095_v57  ;;  %672 = vadd.xlane.f32.xlu1 %v11072_v55  ;;  %621 = vadd.xlane.f32.xlu0 %v11090_v63  ;;  %vm14150_vm15 = vcmp.eq.s32.totalorder %v11105_v3, %v10803_v17  ;;  %v11188_v58 = vadd.s32 72, %v10813_v23 }
  0x84   :  { %v339_v4 = vpop.permute.xlu0 %338  ;;  %v262_v6 = vpop.permute.xlu1 %261  ;;  %v427_v62 = vld [vmem:[#allocation2 + $0x148] sm:$0xff]  ;;  %v394_v9 = vld [vmem:[#allocation2 + $0x40] sm:$0xff] }
  0x85   :  { %344 = vst.msk [vmem:[#allocation2 + $0x168] sm:$0xff] %vm267_vm14, %v339_v4  ;;  %268 = vst.msk [vmem:[#allocation2 + $0x60] sm:$0xff] %vm267_vm14, %v262_v6  ;;  %v11114_v10 = vsel %vm14147_vm0, 1.0, %v427_v62  ;;  %v11119_v11 = vsel %vm14146_vm1, 1.0, %v394_v9  ;;  %vm278_vm1 = vcmask 654848   ;;  %vm531_vm0 = vcmp.eq.s32.totalorder %v11122_v7, %v10828_v30 }
  0x86   :  { %14354 = vst [vmem:[#allocation24_spill] sm:$0xff] %v11114_v10  ;;  %14355 = vst [vmem:[#allocation25_spill] sm:$0xff] %v11119_v11  ;;  %675 = vadd.xlane.f32.xlu1 %v11114_v10  ;;  %624 = vadd.xlane.f32.xlu0 %v11095_v57  ;;  %v11207_v9 = vadd.s32 80, %v10813_v23 }
  0x88   :  { %v341_v14 = vpop.permute.xlu0 %340  ;;  %v264_v12 = vpop.permute.xlu1 %263  ;;  %v429_v15 = vld [vmem:[#allocation2 + $0x158] sm:$0xff]  ;;  %v396_v16 = vld [vmem:[#allocation2 + $0x50] sm:$0xff] }
  0x89   :  { %345 = vst.msk [vmem:[#allocation2 + $0x178] sm:$0xff] %vm267_vm14, %v341_v14  ;;  %269 = vst.msk [vmem:[#allocation2 + $0x70] sm:$0xff] %vm267_vm14, %v264_v12  ;;  %v11138_v18 = vsel %vm529_vm12, 1.0, %v429_v15  ;;  %v11143_v20 = vsel %vm14150_vm15, 1.0, %v396_v16  ;;  %vm14152_vm14 = vcmp.eq.s32.totalorder %v11150_v21, %v10803_v17  ;;  %vm14151_vm15 = vcmp.eq.s32.totalorder %v11169_v40, %v10803_v17 }
  0x8a   :  { %14356 = vst [vmem:[#allocation26_spill] sm:$0xff] %v11138_v18  ;;  %14357 = vst [vmem:[#allocation27_spill] sm:$0xff] %v11143_v20  ;;  %678 = vadd.xlane.f32.xlu1 %v11138_v18  ;;  %627 = vadd.xlane.f32.xlu0 %v11119_v11 }
  0x8c   :  { %v431_v29 = vld [vmem:[#allocation2 + $0x168] sm:$0xff]  ;;  %v398_v34 = vld [vmem:[#allocation2 + $0x60] sm:$0xff] }
  0x8d   :  { %v349_v24 = vpop.permute.xlu0 %348  ;;  %v273_v25 = vpop.permute.xlu1 %272  ;;  %v11159_v37 = vsel %vm531_vm0, 1.0, %v431_v29  ;;  %v11164_v39 = vsel %vm14149_vm13, 1.0, %v398_v34  ;;  %vm289_vm13 = vcmask 786048   ;;  %v11226_v29 = vadd.s32 88, %v10813_v23 }
  0x8e   :  { %354 = vst.msk [vmem:[#allocation2 + $0x188] sm:$0xff] %vm278_vm1, %v349_v24  ;;  %279 = vst.msk [vmem:[#allocation2 + $0x80] sm:$0xff] %vm278_vm1, %v273_v25  ;;  %681 = vadd.xlane.f32.xlu1 %v11159_v37  ;;  %630 = vadd.xlane.f32.xlu0 %v11143_v20 }
  0x8f   :  { %14358 = vst [vmem:[#allocation28_spill] sm:$0xff] %v11159_v37  ;;  %14359 = vst [vmem:[#allocation29_spill] sm:$0xff] %v11164_v39 }
  0x90   :  { %v433_v49 = vld [vmem:[#allocation2 + $0x178] sm:$0xff]  ;;  %v400_v50 = vld [vmem:[#allocation2 + $0x70] sm:$0xff] }
  0x91   :  { %v351_v45 = vpop.permute.xlu0 %350  ;;  %v275_v46 = vpop.permute.xlu1 %274  ;;  %v11178_v52 = vsel %vm533_vm2, 1.0, %v433_v49  ;;  %v11183_v51 = vsel %vm14152_vm14, 1.0, %v400_v50  ;;  %vm14153_vm14 = vcmp.eq.s32.totalorder %v11207_v9, %v10803_v17 }
  0x92   :  { %355 = vst.msk [vmem:[#allocation2 + $0x198] sm:$0xff] %vm278_vm1, %v351_v45  ;;  %280 = vst.msk [vmem:[#allocation2 + $0x90] sm:$0xff] %vm278_vm1, %v275_v46  ;;  %684 = vadd.xlane.f32.xlu1 %v11178_v52  ;;  %633 = vadd.xlane.f32.xlu0 %v11164_v39  ;;  %vm14154_vm1 = vcmp.eq.s32.totalorder %v11188_v58, %v10803_v17 }
  0x93   :  { %14360 = vst [vmem:[#allocation30_spill] sm:$0xff] %v11178_v52  ;;  %14361 = vst [vmem:[#allocation31_spill] sm:$0xff] %v11183_v51 }
  0x95   :  { %v359_v59 = vpop.permute.xlu0 %358  ;;  %v284_v60 = vpop.permute.xlu1 %283  ;;  %v435_v61 = vld [vmem:[#allocation2 + $0x188] sm:$0xff]  ;;  %v402_v4 = vld [vmem:[#allocation2 + $0x80] sm:$0xff] }
  0x96   :  { %364 = vst.msk [vmem:[#allocation2 + $0x1a8] sm:$0xff] %vm289_vm13, %v359_v59  ;;  %290 = vst.msk [vmem:[#allocation2 + $0xa0] sm:$0xff] %vm289_vm13, %v284_v60  ;;  %v11197_v6 = vsel %vm535_vm3, 1.0, %v435_v61  ;;  %v11202_v62 = vsel %vm14151_vm15, 1.0, %v402_v4  ;;  %636 = vadd.xlane.f32.xlu0 %v11183_v51  ;;  %vm300_vm15 = vcmask 917248   ;;  %v11245_v60 = vadd.s32 96, %v10813_v23 }
  0x97   :  { %14362 = vst [vmem:[#allocation32_spill] sm:$0xff] %v11197_v6  ;;  %14363 = vst [vmem:[#allocation33_spill] sm:$0xff] %v11202_v62  ;;  %687 = vadd.xlane.f32.xlu1 %v11197_v6 }
  0x99   :  { %v361_v14 = vpop.permute.xlu0 %360  ;;  %v286_v12 = vpop.permute.xlu1 %285  ;;  %v437_v15 = vld [vmem:[#allocation2 + $0x198] sm:$0xff]  ;;  %v404_v16 = vld [vmem:[#allocation2 + $0x90] sm:$0xff] }
  0x9a   :  { %365 = vst.msk [vmem:[#allocation2 + $0x1b8] sm:$0xff] %vm289_vm13, %v361_v14  ;;  %291 = vst.msk [vmem:[#allocation2 + $0xb0] sm:$0xff] %vm289_vm13, %v286_v12  ;;  %v11216_v24 = vsel %vm537_vm4, 1.0, %v437_v15  ;;  %v11221_v25 = vsel %vm14154_vm1, 1.0, %v404_v16  ;;  %639 = vadd.xlane.f32.xlu0 %v11202_v62  ;;  %vm508_vm13 = vcmp.eq.s32.totalorder %v11226_v29, %v10803_v17  ;;  %vm14158_vm1 = vcmp.eq.s32.totalorder %v11245_v60, %v10803_v17 }
  0x9b   :  { %14364 = vst [vmem:[#allocation34_spill] sm:$0xff] %v11216_v24  ;;  %14365 = vst [vmem:[#allocation35_spill] sm:$0xff] %v11221_v25  ;;  %690 = vadd.xlane.f32.xlu1 %v11216_v24 }
  0x9d   :  { %v369_v34 = vpop.permute.xlu0 %368  ;;  %v295_v45 = vpop.permute.xlu1 %294  ;;  %v439_v46 = vld [vmem:[#allocation2 + $0x1a8] sm:$0xff]  ;;  %v406_v49 = vld [vmem:[#allocation2 + $0xa0] sm:$0xff] }
  0x9e   :  { %374 = vst.msk [vmem:[#allocation2 + $0x1c8] sm:$0xff] %vm300_vm15, %v369_v34  ;;  %301 = vst.msk [vmem:[#allocation2 + $0xc0] sm:$0xff] %vm300_vm15, %v295_v45  ;;  %v11235_v50 = vsel %vm539_vm5, 1.0, %v439_v46  ;;  %v11240_v59 = vsel %vm14153_vm14, 1.0, %v406_v49  ;;  %642 = vadd.xlane.f32.xlu0 %v11221_v25  ;;  %vm311_vm14 = vcmask 1048448   ;;  %v11264_v34 = vadd.s32 104, %v10813_v23 }
  0x9f   :  { %14366 = vst [vmem:[#allocation36_spill] sm:$0xff] %v11235_v50  ;;  %14367 = vst [vmem:[#allocation37_spill] sm:$0xff] %v11240_v59  ;;  %693 = vadd.xlane.f32.xlu1 %v11235_v50  ;;  %v11321_v25 = vld [vmem:[#allocation2 + $0x8] sm:$0xff] }
  0xa1   :  { %v371_v61 = vpop.permute.xlu0 %370  ;;  %v297_v4 = vpop.permute.xlu1 %296  ;;  %v441_v14 = vld [vmem:[#allocation2 + $0x1b8] sm:$0xff]  ;;  %v408_v12 = vld [vmem:[#allocation2 + $0xb0] sm:$0xff] }
  0xa2   :  { %375 = vst.msk [vmem:[#allocation2 + $0x1d8] sm:$0xff] %vm300_vm15, %v371_v61  ;;  %302 = vst.msk [vmem:[#allocation2 + $0xd0] sm:$0xff] %vm300_vm15, %v297_v4  ;;  %v11254_v15 = vsel %vm541_vm6, 1.0, %v441_v14  ;;  %v11259_v16 = vsel %vm508_vm13, 1.0, %v408_v12  ;;  %645 = vadd.xlane.f32.xlu0 %v11240_v59  ;;  %v14156_v12 = vmov 0.0|0.0   ;;  %vm512_vm15 = vcmp.eq.s32.totalorder %v11264_v34, %v10803_v17 }
  0xa3   :  { %14368 = vst [vmem:[#allocation38_spill] sm:$0xff] %v11254_v15  ;;  %14369 = vst [vmem:[#allocation39_spill] sm:$0xff] %v11259_v16  ;;  %696 = vadd.xlane.f32.xlu1 %v11254_v15  ;;  %9638 = vmatprep.subr.bf16.mxu1 %v14156_v12 }
  0xa5   :  { %v379_v45 = vpop.permute.xlu0 %378  ;;  %v306_v46 = vpop.permute.xlu1 %305  ;;  %v443_v49 = vld [vmem:[#allocation2 + $0x1c8] sm:$0xff]  ;;  %v410_v61 = vld [vmem:[#allocation2 + $0xc0] sm:$0xff] }
  0xa6   :  { %384 = vst.msk [vmem:[#allocation2 + $0x1e8] sm:$0xff] %vm311_vm14, %v379_v45  ;;  %312 = vst.msk [vmem:[#allocation2 + $0xe0] sm:$0xff] %vm311_vm14, %v306_v46  ;;  %v11273_v4 = vsel %vm543_vm7, 1.0, %v443_v49  ;;  %v11278_v14 = vsel %vm14158_vm1, 1.0, %v410_v61  ;;  %v11284_v45 = vadd.s32 112, %v10813_v23  ;;  %648 = vadd.xlane.f32.xlu0 %v11259_v16  ;;  %v11303_v16 = vadd.s32 120, %v10813_v23 }
  0xa7   :  { %14370 = vst [vmem:[#allocation40_spill] sm:$0xff] %v11273_v4  ;;  %14371 = vst [vmem:[#allocation41_spill] sm:$0xff] %v11278_v14  ;;  %699 = vadd.xlane.f32.xlu1 %v11273_v4 }
  0xa8   :  { %vm14189_vm1 = vcmp.eq.s32.totalorder %v11284_v45, %v10803_v17 }
  0xa9   :  { %v381_v46 = vpop.permute.xlu0 %380  ;;  %v308_v49 = vpop.permute.xlu1 %307  ;;  %v445_v8 = vld [vmem:[#allocation2 + $0x1d8] sm:$0xff]  ;;  %v412_v59 = vld [vmem:[#allocation2 + $0xd0] sm:$0xff] }
  0xaa   :  { %385 = vst.msk [vmem:[#allocation2 + $0x1f8] sm:$0xff] %vm311_vm14, %v381_v46  ;;  %313 = vst.msk [vmem:[#allocation2 + $0xf0] sm:$0xff] %vm311_vm14, %v308_v49  ;;  %v11293_v61 = vsel %vm545_vm8, 1.0, %v445_v8  ;;  %v11298_v12 = vsel %vm512_vm15, 1.0, %v412_v59  ;;  %651 = vadd.xlane.f32.xlu0 %v11278_v14  ;;  %vm14188_vm14 = vcmp.eq.s32.totalorder %v11303_v16, %v10803_v17 }
  0xab   :  { %14372 = vst [vmem:[#allocation42_spill] sm:$0xff] %v11293_v61  ;;  %14373 = vst [vmem:[#allocation43_spill] sm:$0xff] %v11298_v12  ;;  %702 = vadd.xlane.f32.xlu1 %v11293_v61  ;;  %v14378_v61 = vmov 0.0|0.0  }
  0xad   :  { %v447_v46 = vld [vmem:[#allocation2 + $0x1e8] sm:$0xff]  ;;  %v414_v49 = vld [vmem:[#allocation2 + $0xe0] sm:$0xff] }
  0xae   :  { %v11310_v8 = vsel %vm547_vm9, 1.0, %v447_v46  ;;  %v11315_v59 = vsel %vm14189_vm1, 1.0, %v414_v49  ;;  %654 = vadd.xlane.f32.xlu0 %v11298_v12  ;;  %vm14382_vm1 = vcmp.eq.s32.totalorder %v11021_v32, %v10803_v17  ;;  %v14412_v32 = vld [vmem:[#allocation38_spill] sm:$0xff] }
  0xaf   :  { %14374 = vst [vmem:[#allocation44_spill] sm:$0xff] %v11310_v8  ;;  %14375 = vst [vmem:[#allocation45_spill] sm:$0xff] %v11315_v59  ;;  %705 = vadd.xlane.f32.xlu1 %v11310_v8  ;;  %v656_v62 = vadd.f32 %v11321_v25, %v11315_v59 }
  0xb1   :  { %v449_v14 = vld [vmem:[#allocation2 + $0x1f8] sm:$0xff]  ;;  %v416_v46 = vld [vmem:[#allocation2 + $0xf0] sm:$0xff] }
  0xb2   :  { %v11328_v51 = vsel %vm549_vm10, 1.0, %v449_v14  ;;  %v11333_v49 = vsel %vm14188_vm14, 1.0, %v416_v46  ;;  %657 = vadd.xlane.f32.xlu0 %v656_v62  ;;  %vm14379_vm14 = vcmp.eq.s32.totalorder %v11010_v26, %v10828_v30 }
  0xb3   :  { %14376 = vst [vmem:[#allocation46_spill] sm:$0xff] %v11328_v51  ;;  %14377 = vst [vmem:[#allocation47_spill] sm:$0xff] %v11333_v49  ;;  %v707_v12 = vadd.f32 %v11321_v25, %v11328_v51  ;;  %v659_v39 = vadd.f32 %v11321_v25, %v11333_v49 }
  0xb5   :  { %708 = vadd.xlane.f32.xlu1 %v707_v12 }
  0xb6   :  { %660 = vadd.xlane.f32.xlu0 %v659_v39 }
  0xe0   :  { %v9200_v59 = vpop.f32.mrb[0].mxu0 }
  0xe1   :  { %v1333_v20 = vpop.f32.mrb[1].mxu0 }
  0xe2   :  { %v9639_v11 = vpack.c.bf16 %v9200_v59, %v1333_v20 }
  0xe4   :  { %v9203_v8 = vpop.f32.mrb[2].mxu0  ;;  %9640 = vmatpush1.bf16.msra.mxu1 %v9639_v11 }
  0xe5   :  { %v1343_v14 = vpop.f32.mrb[3].mxu0  ;;  %9641 = vmatprep.subr.bf16.mxu1 %v14378_v61 }
  0xe6   :  { %v9642_v4 = vpack.c.bf16 %v9203_v8, %v1343_v14 }
  0xe8   :  { %v9206_v46 = vpop.f32.mrb[4].mxu0  ;;  %9643 = vmatpush1.bf16.msra.mxu1 %v9642_v4 }
  0xe9   :  { %v1353_v15 = vpop.f32.mrb[5].mxu0  ;;  %9644 = vmatprep.subr.bf16.mxu1 %v14378_v61 }
  0xea   :  { %v9645_v12 = vpack.c.bf16 %v9206_v46, %v1353_v15 }
  0xec   :  { %9646 = vmatpush1.bf16.msra.mxu1 %v9645_v12 }
  0xed   :  { %v9209_v62 = vpop.f32.mrb[6].mxu0  ;;  %9647 = vmatprep.subr.bf16.mxu1 %v14378_v61 }
  0xee   :  { %v1363_v51 = vpop.f32.mrb[7].mxu0 }
  0xef   :  { %v9648_v39 = vpack.c.bf16 %v9209_v62, %v1363_v51  ;;  %v11346_v62 = vpop.xlane.xlu0 %663 }
  0xf1   :  { %v9212_v49 = vpop.f32.mrb[8].mxu0  ;;  %9649 = vmatpush1.bf16.msra.mxu1 %v9648_v39 }
  0xf2   :  { %v1373_v20 = vpop.f32.mrb[9].mxu0  ;;  %9650 = vmatprep.subr.bf16.mxu1 %v14378_v61 }
  0xf3   :  { %v9651_v11 = vpack.c.bf16 %v9212_v49, %v1373_v20 }
  0xf5   :  { %v9215_v59 = vpop.f32.mrb[10].mxu0  ;;  %9652 = vmatpush1.bf16.msra.mxu1 %v9651_v11 }
  0xf6   :  { %v1383_v8 = vpop.f32.mrb[11].mxu0  ;;  %9653 = vmatprep.subr.bf16.mxu1 %v14378_v61 }
  0xf7   :  { %v9654_v4 = vpack.c.bf16 %v9215_v59, %v1383_v8  ;;  %v11349_v59 = vpop.xlane.xlu0 %615 }
  0xf9   :  { %v9218_v14 = vpop.f32.mrb[12].mxu0  ;;  %9655 = vmatpush1.bf16.msra.mxu1 %v9654_v4 }
  0xfa   :  { %v1393_v15 = vpop.f32.mrb[13].mxu0  ;;  %9656 = vmatprep.subr.bf16.mxu1 %v14378_v61 }
  0xfb   :  { %v9657_v46 = vpack.c.bf16 %v9218_v14, %v1393_v15  ;;  %v667_v14 = vpop.xlane.xlu1 %666 }
  0xfc   :  { %v727_v55 = vmax.f32 %v667_v14, 1.0 }
  0xfd   :  { %v9221_v12 = vpop.f32.mrb[14].mxu0  ;;  %9658 = vmatpush1.bf16.msra.mxu1 %v9657_v46 }
  0xfe   :  { %v1403_v51 = vpop.f32.mrb[15].mxu0  ;;  %9659 = vmatprep.subr.bf16.mxu1 %v14378_v61 }
  0xff   :  { %v9660_v49 = vpack.c.bf16 %v9221_v12, %v1403_v51  ;;  %v619_v12 = vpop.xlane.xlu0 %618 }
 0x100   :  { %v711_v33 = vmax.f32 %v619_v12, 1.0 }
 0x101   :  { %v9224_v39 = vpop.f32.mrb[16].mxu0  ;;  %9661 = vmatpush1.bf16.msra.mxu1 %v9660_v49 }
 0x102   :  { %v1413_v20 = vpop.f32.mrb[17].mxu0  ;;  %9662 = vmatprep.subr.bf16.mxu1 %v14378_v61 }
 0x103   :  { %v9663_v11 = vpack.c.bf16 %v9224_v39, %v1413_v20 }
 0x105   :  { %v9227_v8 = vpop.f32.mrb[18].mxu0  ;;  %9664 = vmatpush1.bf16.msra.mxu1 %v9663_v11 }
 0x106   :  { %v1423_v4 = vpop.f32.mrb[19].mxu0  ;;  %9665 = vmatprep.subr.bf16.mxu1 %v14378_v61 }
 0x107   :  { %v9666_v15 = vpack.c.bf16 %v9227_v8, %v1423_v4 }
 0x109   :  { %v9230_v46 = vpop.f32.mrb[20].mxu0  ;;  %9667 = vmatpush1.bf16.msra.mxu1 %v9666_v15 }
 0x10a   :  { %v1433_v50 = vpop.f32.mrb[21].mxu0  ;;  %9668 = vmatprep.subr.bf16.mxu1 %v14378_v61 }
 0x10b   :  { %v670_v51 = vpop.xlane.xlu1 %669  ;;  %v9669_v49 = vpack.c.bf16 %v9230_v46, %v1433_v50 }
 0x10d   :  { %v9233_v24 = vpop.f32.mrb[22].mxu0  ;;  %9670 = vmatpush1.bf16.msra.mxu1 %v9669_v49 }
 0x10e   :  { %v1443_v39 = vpop.f32.mrb[23].mxu0  ;;  %9671 = vmatprep.subr.bf16.mxu1 %v14378_v61 }
 0x10f   :  { %v673_v20 = vpop.xlane.xlu1 %672  ;;  %v622_v11 = vpop.xlane.xlu0 %621  ;;  %v9672_v6 = vpack.c.bf16 %v9233_v24, %v1443_v39 }
 0x110   :  { %v729_v14 = vmax.f32 %v673_v20, 1.0 }
 0x111   :  { %v9236_v52 = vpop.f32.mrb[24].mxu0  ;;  %9673 = vmatpush1.bf16.msra.mxu1 %v9672_v6 }
 0x112   :  { %v1453_v37 = vpop.f32.mrb[25].mxu0  ;;  %9674 = vmatprep.subr.bf16.mxu1 %v14378_v61 }
 0x113   :  { %v676_v8 = vpop.xlane.xlu1 %675  ;;  %v625_v4 = vpop.xlane.xlu0 %624  ;;  %v9675_v15 = vpack.c.bf16 %v9236_v52, %v1453_v37  ;;  %v1136_v37 = vld [vmem:[%s14129_s2] sm:$0xff]  ;;  %v726_v52 = vmax.f32 %v11346_v62, 1.0  ;;  %v1138_v62 = vld [vmem:[%s14129_s2 + $0x10] sm:$0xff] }
 0x115   :  { %v9239_v18 = vpop.f32.mrb[26].mxu0  ;;  %9676 = vmatpush1.bf16.msra.mxu1 %v9675_v15  ;;  %v10542_v15 = vmov 0   ;;  %10137 = vrsqrt.f32 %v726_v52  ;;  %v713_v52 = vmax.f32 %v625_v4, 1.0 }
 0x116   :  { %v1463_v57 = vpop.f32.mrb[27].mxu0  ;;  %9677 = vmatprep.subr.bf16.mxu1 %v14378_v61  ;;  %10055 = vset.pattern.permute.xlu1 %v10542_v15  ;;  %10139 = vrsqrt.f32 %v727_v55 }
 0x117   :  { %v679_v50 = vpop.xlane.xlu1 %678  ;;  %v628_v46 = vpop.xlane.xlu0 %627  ;;  %v9678_v49 = vpack.c.bf16 %v9239_v18, %v1463_v57  ;;  %10056 = vset.pattern.permute.xlu0 %v10542_v15  ;;  %1822 = vperm.xlu1 %10055, %v1136_v37   ;;  %v710_v57 = vmax.f32 %v11349_v59, 1.0  ;;  %v730_v59 = vmax.f32 %v676_v8, 1.0 }
 0x118   :  { %v731_v55 = vmax.f32 %v679_v50, 1.0 }
 0x119   :  { %v9242_v10 = vpop.f32.mrb[28].mxu0  ;;  %9679 = vmatpush1.bf16.msra.mxu1 %v9678_v49  ;;  %v728_v49 = vmax.f32 %v670_v51, 1.0  ;;  %10141 = vrsqrt.f32 %v710_v57 }
 0x11a   :  { %v1473_v63 = vpop.f32.mrb[29].mxu0  ;;  %9680 = vmatprep.subr.bf16.mxu1 %v14378_v61 }
 0x11b   :  { %v682_v6 = vpop.xlane.xlu1 %681  ;;  %v631_v24 = vpop.xlane.xlu0 %630  ;;  %v9681_v39 = vpack.c.bf16 %v9242_v10, %v1473_v63  ;;  %1832 = vperm.xlu1 %10055, %v1138_v62   ;;  %10143 = vrsqrt.f32 %v728_v49  ;;  %v1141_v49 = vld [vmem:[%s14129_s2 + $0x28] sm:$0xff] }
 0x11c   :  { %10145 = vrsqrt.f32 %v711_v33  ;;  %v732_v8 = vmax.f32 %v682_v6, 1.0  ;;  %v715_v15 = vmax.f32 %v631_v24, 1.0 }
 0x11d   :  { %v9245_v54 = vpop.f32.mrb[30].mxu0  ;;  %9682 = vmatpush1.bf16.msra.mxu1 %v9681_v39  ;;  %v712_v39 = vmax.f32 %v622_v11, 1.0  ;;  %10147 = vrsqrt.f32 %v729_v14  ;;  %v1140_v11 = vld [vmem:[%s14129_s2 + $0x20] sm:$0xff] }
 0x11e   :  { %v1483_v18 = vpop.f32.mrb[31].mxu0  ;;  %9683 = vmatprep.subr.bf16.mxu1 %v14378_v61 }
 0x11f   :  { %v685_v63 = vpop.xlane.xlu1 %684  ;;  %v634_v10 = vpop.xlane.xlu0 %633  ;;  %v9684_v0 = vpack.c.bf16 %v9245_v54, %v1483_v18  ;;  %v1139_v54 = vld [vmem:[%s14129_s2 + $0x18] sm:$0xff]  ;;  %10149 = vrsqrt.f32 %v712_v39 }
 0x120   :  { %1837 = vperm.xlu1 %10055, %v1139_v54   ;;  %10151 = vrsqrt.f32 %v730_v59  ;;  %v11373_v57 = vpop.eup %10137  ;;  %v733_v33 = vmax.f32 %v685_v63, 1.0  ;;  %v716_v50 = vmax.f32 %v634_v10, 1.0 }
 0x121   :  { %9685 = vmatpush1.bf16.msra.mxu1 %v9684_v0  ;;  %v714_v0 = vmax.f32 %v628_v46, 1.0  ;;  %10153 = vrsqrt.f32 %v713_v52  ;;  %v11375_v4 = vpop.eup %10139  ;;  %v807_v10 = vsel %vm519_vm11, %v11373_v57, 0.0  ;;  %vm14380_vm11 = vcmp.eq.s32.totalorder %v11047_v41, %v10828_v30 }
 0x122   :  { %9742 = vmatprep.subr.bf16.mxu1 %v14378_v61  ;;  %10155 = vrsqrt.f32 %v731_v55  ;;  %v809_v39 = vsel %vm14379_vm14, %v11375_v4, 0.0  ;;  %v1142_v55 = vld [vmem:[%s14129_s2 + $0x30] sm:$0xff]  ;;  %vm14381_vm14 = vcmp.eq.s32.totalorder %v10813_v23, %v10803_v17 }
 0x123   :  { %v637_v37 = vpop.xlane.xlu0 %636  ;;  %10157 = vrsqrt.f32 %v714_v0  ;;  %v11380_v62 = vpop.eup %10141 }
 0x124   :  { %v688_v51 = vpop.xlane.xlu1 %687  ;;  %1842 = vperm.xlu1 %10055, %v1140_v11   ;;  %10159 = vrsqrt.f32 %v732_v8  ;;  %v717_v14 = vmax.f32 %v637_v37, 1.0  ;;  %v891_v11 = vadd.f32 %v809_v39, %v807_v10 }
 0x125   :  { %v734_v6 = vmax.f32 %v688_v51, 1.0  ;;  %v11382_v24 = vpop.eup %10143  ;;  %10161 = vrsqrt.f32 %v715_v15 }
 0x126   :  { %v11384_v63 = vpop.eup %10145  ;;  %10163 = vrsqrt.f32 %v733_v33  ;;  %v811_v22 = vsel %vm14380_vm11, %v11382_v24, 0.0  ;;  %vm14383_vm11 = vcmp.eq.s32.totalorder %v11050_v44, %v10828_v30 }
 0x127   :  { %v640_v20 = vpop.xlane.xlu0 %639  ;;  %v11394_v51 = vpop.eup %10147  ;;  %10165 = vrsqrt.f32 %v716_v50  ;;  %v776_v15 = vsel %vm14382_vm1, %v11384_v63, 0.0  ;;  %vm14384_vm1 = vcmp.eq.s32.totalorder %v11057_v47, %v10803_v17 }
 0x128   :  { %v691_v12 = vpop.xlane.xlu1 %690  ;;  %1847 = vperm.xlu1 %10055, %v1141_v49   ;;  %v718_v54 = vmax.f32 %v640_v20, 1.0  ;;  %10167 = vrsqrt.f32 %v734_v6  ;;  %v774_v20 = vsel %vm14381_vm14, %v11380_v62, 0.0  ;;  %v813_v41 = vsel %vm14383_vm11, %v11394_v51, 0.0 }
 0x129   :  { %v735_v59 = vmax.f32 %v691_v12, 1.0  ;;  %v11399_v0 = vpop.eup %10149  ;;  %10169 = vrsqrt.f32 %v717_v14  ;;  %v1143_v14 = vld [vmem:[%s14129_s2 + $0x38] sm:$0xff]  ;;  %vm14385_vm14 = vcmp.eq.s32.totalorder %v11075_v56, %v10828_v30  ;;  %vm14386_vm11 = vcmp.eq.s32.totalorder %v11060_v48, %v10803_v17 }
 0x12a   :  { %v11405_v12 = vpop.eup %10151  ;;  %v778_v44 = vsel %vm14384_vm1, %v11399_v0, 0.0  ;;  %vm14387_vm1 = vcmp.eq.s32.totalorder %v11082_v27, %v10803_v17 }
 0x12b   :  { %v643_v46 = vpop.xlane.xlu0 %642  ;;  %10171 = vrsqrt.f32 %v735_v59  ;;  %v11419_v50 = vpop.eup %10153  ;;  %v815_v39 = vsel %vm14385_vm14, %v11405_v12, 0.0  ;;  %vm10543_vm14 = vmmov 0  }
 0x12c   :  { %v694_v18 = vpop.xlane.xlu1 %693  ;;  %v719_v8 = vmax.f32 %v643_v46, 1.0  ;;  %1852 = vperm.xlu1 %10055, %v1142_v55   ;;  %10173 = vrsqrt.f32 %v718_v54  ;;  %v11424_v10 = vpop.eup %10155  ;;  %v780_v47 = vsel %vm14386_vm11, %v11419_v50, 0.0  ;;  %vm14544_vm11 = vcmask 130048  }
 0x12d   :  { %v736_v26 = vmax.f32 %v694_v18, 1.0  ;;  %v892_v18 = vadd.f32 %v891_v11, %v811_v22  ;;  %v11434_v54 = vpop.eup %10157 }
 0x12e   :  { %v11436_v22 = vpop.eup %10159  ;;  %v782_v48 = vsel %vm14387_vm1, %v11434_v54, 0.0  ;;  %vm14548_vm1 = vmmov %vm14544_vm11 }
 0x12f   :  { %v646_v52 = vpop.xlane.xlu0 %645  ;;  %10175 = vrsqrt.f32 %v736_v26  ;;  %v11442_v11 = vpop.eup %10161 }
 0x130   :  { %v697_v37 = vpop.xlane.xlu1 %696  ;;  %v720_v49 = vmax.f32 %v646_v52, 1.0  ;;  %v893_v52 = vadd.f32 %v892_v18, %v813_v41  ;;  %10177 = vrsqrt.f32 %v719_v8  ;;  %1857 = vperm.xlu1 %10055, %v1143_v14   ;;  %v1144_v41 = vld [vmem:[%s14129_s2 + $0x40] sm:$0xff]  ;;  %v11451_v18 = vpop.eup %10163 }
 0x131   :  { %v737_v33 = vmax.f32 %v697_v37, 1.0  ;;  %v838_v37 = vadd.f32 %v776_v15, %v774_v20  ;;  %v817_v20 = vsel %vm529_vm12, %v11424_v10, 0.0  ;;  %vm14388_vm12 = vcmp.eq.s32.totalorder %v11105_v3, %v10803_v17 }
 0x132   :  { %v894_v26 = vadd.f32 %v893_v52, %v815_v39  ;;  %v821_v7 = vsel %vm533_vm2, %v11451_v18, 0.0  ;;  %vm14390_vm2 = vcmp.eq.s32.totalorder %v11150_v21, %v10803_v17 }
 0x133   :  { %v649_v46 = vpop.xlane.xlu0 %648  ;;  %10179 = vrsqrt.f32 %v737_v33  ;;  %v839_v56 = vadd.f32 %v838_v37, %v778_v44 }
 0x134   :  { %v700_v6 = vpop.xlane.xlu1 %699  ;;  %v721_v55 = vmax.f32 %v649_v46, 1.0  ;;  %10181 = vrsqrt.f32 %v720_v49  ;;  %v11457_v46 = vpop.eup %10165  ;;  %v819_v49 = vsel %vm531_vm0, %v11436_v22, 0.0  ;;  %1862 = vperm.xlu1 %10055, %v1144_v41   ;;  %v895_v44 = vadd.f32 %v894_v26, %v817_v20 }
 0x135   :  { %v738_v59 = vmax.f32 %v700_v6, 1.0  ;;  %v840_v2 = vadd.f32 %v839_v56, %v780_v47  ;;  %v11463_v14 = vpop.eup %10167  ;;  %v1137_v47 = vld [vmem:[%s14129_s2 + $0x8] sm:$0xff]  ;;  %vm14389_vm0 = vcmp.eq.s32.totalorder %v11129_v13, %v10803_v17 }
 0x136   :  { %v11465_v39 = vpop.eup %10169  ;;  %v896_v26 = vadd.f32 %v895_v44, %v819_v49  ;;  %1827 = vperm.xlu0 %10056, %v1137_v47   ;;  %v786_v31 = vsel %vm14389_vm0, %v11457_v46, 0.0  ;;  %v1147_v44 = vld [vmem:[%s14129_s2 + $0x58] sm:$0xff]  ;;  %vm14562_vm0 = vmmov %vm14548_vm1 }
 0x137   :  { %v652_v15 = vpop.xlane.xlu0 %651  ;;  %10183 = vrsqrt.f32 %v738_v59  ;;  %v841_v27 = vadd.f32 %v840_v2, %v782_v48  ;;  %v784_v59 = vsel %vm14388_vm12, %v11442_v11, 0.0  ;;  %v11481_v56 = vpop.eup %10171  ;;  %v788_v2 = vsel %vm14390_vm2, %v11465_v39, 0.0  ;;  %vm14554_vm12 = vmmov %vm14548_vm1 }
 0x138   :  { %v703_v8 = vpop.xlane.xlu1 %702  ;;  %v722_v6 = vmax.f32 %v652_v15, 1.0  ;;  %10185 = vrsqrt.f32 %v721_v55  ;;  %v1145_v55 = vld [vmem:[%s14129_s2 + $0x48] sm:$0xff]  ;;  %v823_v15 = vsel %vm535_vm3, %v11463_v14, 0.0  ;;  %v825_v13 = vsel %vm537_vm4, %v11481_v56, 0.0  ;;  %vm14569_vm2 = vmmov %vm14562_vm0 }
 0x139   :  { %v739_v33 = vmax.f32 %v703_v8, 1.0  ;;  %v11483_v8 = vpop.eup %10173  ;;  %1867 = vperm.xlu1 %10055, %v1145_v55   ;;  %v842_v48 = vadd.f32 %v841_v27, %v784_v59  ;;  %vm14391_vm3 = vcmp.eq.s32.totalorder %v11169_v40, %v10803_v17  ;;  %vm14392_vm4 = vcmp.eq.s32.totalorder %v11188_v58, %v10803_v17 }
 0x13a   :  { %v11493_v41 = vpop.eup %10175  ;;  %v790_v38 = vsel %vm14391_vm3, %v11483_v8, 0.0  ;;  %vm14575_vm3 = vmmov %vm14562_vm0 }
 0x13b   :  { %10187 = vrsqrt.f32 %v739_v33  ;;  %v655_v52 = vpop.xlane.xlu0 %654  ;;  %v897_v33 = vadd.f32 %v896_v26, %v821_v7  ;;  %v843_v59 = vadd.f32 %v842_v48, %v786_v31  ;;  %v827_v55 = vsel %vm539_vm5, %v11493_v41, 0.0 }
 0x13c   :  { %v706_v37 = vpop.xlane.xlu1 %705  ;;  %10189 = vrsqrt.f32 %v722_v6  ;;  %v723_v20 = vmax.f32 %v655_v52, 1.0  ;;  %v11495_v6 = vpop.eup %10177  ;;  %vm14393_vm5 = vcmp.eq.s32.totalorder %v11207_v9, %v10803_v17 }
 0x13d   :  { %v740_v3 = vmax.f32 %v706_v37, 1.0  ;;  %v11508_v27 = vpop.eup %10179  ;;  %v898_v7 = vadd.f32 %v897_v33, %v823_v15  ;;  %1877 = vperm.xlu1 %10055, %v1147_v44   ;;  %v844_v26 = vadd.f32 %v843_v59, %v788_v2  ;;  %v792_v31 = vsel %vm14392_vm4, %v11495_v6, 0.0  ;;  %v1149_v15 = vld [vmem:[%s14129_s2 + $0x68] sm:$0xff]  ;;  %vm14579_vm4 = vmmov %vm14562_vm0 }
 0x13e   :  { %v11510_v21 = vpop.eup %10181  ;;  %v829_v40 = vsel %vm541_vm6, %v11508_v27, 0.0  ;;  %vm14394_vm6 = vcmp.eq.s32.totalorder %v11245_v60, %v10803_v17 }
 0x13f   :  { %10191 = vrsqrt.f32 %v740_v3  ;;  %v658_v49 = vpop.xlane.xlu0 %657  ;;  %v899_v3 = vadd.f32 %v898_v7, %v825_v13  ;;  %v845_v33 = vadd.f32 %v844_v26, %v790_v38  ;;  %v794_v58 = vsel %vm14393_vm5, %v11510_v21, 0.0  ;;  %vm14584_vm5 = vmmov %vm14562_vm0 }
 0x140   :  { %10193 = vrsqrt.f32 %v723_v20  ;;  %v724_v52 = vmax.f32 %v658_v49, 1.0 }
 0x141   :  { %v11520_v47 = vpop.eup %10183  ;;  %v900_v2 = vadd.f32 %v899_v3, %v827_v55  ;;  %1887 = vperm.xlu1 %10055, %v1149_v15   ;;  %v846_v49 = vadd.f32 %v845_v33, %v792_v31  ;;  %v1153_v31 = vld [vmem:[%s14129_s2 + $0x88] sm:$0xff] }
 0x142   :  { %v709_v36 = vpop.xlane.xlu1 %708  ;;  %v11522_v20 = vpop.eup %10185  ;;  %v831_v1 = vsel %vm543_vm7, %v11520_v47, 0.0  ;;  %vm14395_vm7 = vcmp.eq.s32.totalorder %v11284_v45, %v10803_v17  ;;  %v968_v23 = vmul.f32 %v11321_v25, %v11520_v47 }
 0x143   :  { %v741_v37 = vmax.f32 %v709_v36, 1.0  ;;  %v661_v43 = vpop.xlane.xlu0 %660  ;;  %v901_v44 = vadd.f32 %v900_v2, %v829_v40  ;;  %v796_v59 = vsel %vm508_vm13, %v11522_v20, 0.0  ;;  %vm2666_vm13 = vcmask 162944  }
 0x144   :  { %v725_v13 = vmax.f32 %v661_v43, 1.0 }
 0x145   :  { %10195 = vrsqrt.f32 %v741_v37  ;;  %v11535_v48 = vpop.eup %10187  ;;  %v847_v37 = vadd.f32 %v846_v49, %v794_v58  ;;  %1897 = vperm.xlu1 %10055, %v1151_v19   ;;  %v1146_v58 = vld [vmem:[%s14129_s2 + $0x50] sm:$0xff] }
 0x146   :  { %10197 = vrsqrt.f32 %v724_v52  ;;  %v11545_v36 = vpop.eup %10189  ;;  %v833_v9 = vsel %vm545_vm8, %v11535_v48, 0.0  ;;  %v902_v52 = vadd.f32 %v901_v44, %v831_v1  ;;  %1872 = vperm.xlu0 %10056, %v1146_v58   ;;  %vm14396_vm8 = vcmp.eq.s32.totalorder %v11303_v16, %v10803_v17 }
 0x147   :  { %10199 = vrsqrt.f32 %v725_v13  ;;  %v798_v29 = vsel %vm14394_vm6, %v11545_v36, 0.0  ;;  %v848_v55 = vadd.f32 %v847_v37, %v796_v59  ;;  %v1155_v13 = vld [vmem:[%s14129_s2 + $0x98] sm:$0xff]  ;;  %v1157_v59 = vld [vmem:[%s14129_s2 + $0xa8] sm:$0xff]  ;;  %v913_v16 = vmul.f32 %v11321_v25, %v11380_v62  ;;  %vm14588_vm6 = vmmov %vm14562_vm0 }
 0x148   :  { %v903_v26 = vadd.f32 %v902_v52, %v833_v9  ;;  %v1148_v9 = vld [vmem:[%s14129_s2 + $0x60] sm:$0xff] }
 0x149   :  { %v11558_v7 = vpop.eup %10191  ;;  %v849_v60 = vadd.f32 %v848_v55, %v798_v29  ;;  %1907 = vperm.xlu1 %10055, %v1153_v31   ;;  %v11613_v55 = vmul.f32 %v11373_v57, %v11016_v28  ;;  %v1150_v31 = vld [vmem:[%s14129_s2 + $0x70] sm:$0xff]  ;;  %v11631_v28 = vmul.f32 %v11321_v25, %v11375_v4 }
 0x14a   :  { %v11560_v38 = vpop.eup %10193  ;;  %v835_v53 = vsel %vm547_vm9, %v11558_v7, 0.0  ;;  %1882 = vperm.xlu0 %10056, %v1148_v9   ;;  %v952_v9 = vmul.f32 %v11321_v25, %v11405_v12  ;;  %vm1819_vm9 = vcmp.lt.s32.totalorder %v10803_v17, 16 }
 0x14b   :  { %v800_v3 = vsel %vm512_vm15, %v11560_v38, 0.0  ;;  %v904_v43 = vadd.f32 %v903_v26, %v835_v53  ;;  %v912_v53 = vmul.f32 %v11380_v62, %v11028_v35  ;;  %v11617_v26 = vmul.f32 %v11321_v25, %v11373_v57  ;;  %v14398_v62 = vld [vmem:[#allocation19_spill] sm:$0xff] }
 0x14c   :  { %v850_v33 = vadd.f32 %v849_v60, %v800_v3  ;;  %v1159_v3 = vld [vmem:[%s14129_s2 + $0xb8] sm:$0xff]  ;;  %v915_v57 = vmul.f32 %v11321_v25, %v11384_v63  ;;  %vm2987_vm15 = vcmask 31744  }
 0x14d   :  { %1917 = vperm.xlu1 %10055, %v1155_v13   ;;  %v11643_v13 = vmul.f32 %v11321_v25, %v11382_v24 }
 0x14e   :  { %1892 = vperm.xlu0 %10056, %v1150_v31   ;;  %v14405_v31 = vld [vmem:[#allocation26_spill] sm:$0xff] }
 0x14f   :  { %v11577_v40 = vpop.eup %10195 }
 0x150   :  { %v11579_v15 = vpop.eup %10197  ;;  %v837_v42 = vsel %vm549_vm10, %v11577_v40, 0.0  ;;  %vm2049_vm10 = vcmask 261120  }
 0x151   :  { %v905_v2 = vadd.f32 %v904_v43, %v837_v42  ;;  %v802_v34 = vsel %vm14395_vm7, %v11579_v15, 0.0  ;;  %v11595_v1 = vpop.eup %10199  ;;  %1927 = vperm.xlu1 %10055, %v1157_v59   ;;  %v14397_v42 = vld [vmem:[#allocation18_spill] sm:$0xff]  ;;  %vm14594_vm7 = vmmov %vm14562_vm0 }
 0x152   :  { %v851_v5 = vadd.f32 %v850_v33, %v802_v34  ;;  %v804_v49 = vsel %vm14396_vm8, %v11595_v1, 0.0  ;;  %v11627_v35 = vmul.f32 %v11375_v4, %v14397_v42  ;;  %v914_v33 = vmul.f32 %v11384_v63, %v14398_v62  ;;  %vm14598_vm8 = vmmov %vm14562_vm0 }
 0x153   :  { %v906_v30 = vrot.slane %v905_v2, 4  ;;  %v917_v63 = vmul.f32 %v11321_v25, %v11399_v0 }
 0x154   :  { %v852_v44 = vadd.f32 %v851_v5, %v804_v49  ;;  %v11653_v49 = vmul.f32 %v11321_v25, %v11394_v51 }
 0x155   :  { %v907_v45 = vadd.f32 %v906_v30, %v905_v2  ;;  %v14399_v2 = vld [vmem:[#allocation20_spill] sm:$0xff]  ;;  %1937 = vperm.xlu1 %10055, %v1159_v3   ;;  %v14400_v30 = vld [vmem:[#allocation21_spill] sm:$0xff] }
 0x156   :  { %v869_v37 = vrot.slane %v852_v44, 4  ;;  %v11639_v34 = vmul.f32 %v11382_v24, %v14399_v2  ;;  %v11649_v5 = vmul.f32 %v11394_v51, %v14400_v30  ;;  %v14402_v24 = vld [vmem:[#allocation24_spill] sm:$0xff]  ;;  %v14407_v2 = vld [vmem:[#allocation30_spill] sm:$0xff] }
 0x157   :  { %v908_v19 = vrot.slane %v907_v45, 2  ;;  %v953_v59 = vmul.f32 %v11405_v12, %v14402_v24  ;;  %v1152_v51 = vld [vmem:[%s14129_s2 + $0x80] sm:$0xff]  ;;  %v11680_v12 = vmul.f32 %v11321_v25, %v11434_v54  ;;  %v959_v30 = vmul.f32 %v11451_v18, %v14407_v2 }
 0x158   :  { %v870_v29 = vadd.f32 %v869_v37, %v852_v44  ;;  %1902 = vperm.xlu0 %10056, %v1152_v51   ;;  %v14408_v24 = vld [vmem:[#allocation32_spill] sm:$0xff]  ;;  %v14409_v51 = vld [vmem:[#allocation34_spill] sm:$0xff]  ;;  %v964_v2 = vmul.f32 %v11321_v25, %v11493_v41 }
 0x159   :  { %v909_v52 = vadd.f32 %v908_v19, %v907_v45  ;;  %v14401_v45 = vld [vmem:[#allocation22_spill] sm:$0xff] }
 0x15a   :  { %v871_v43 = vrot.slane %v870_v29, 2  ;;  %v916_v44 = vmul.f32 %v11399_v0, %v14401_v45  ;;  %v1161_v19 = vld [vmem:[%s14129_s2 + $0xc8] sm:$0xff]  ;;  %v919_v0 = vmul.f32 %v11321_v25, %v11419_v50  ;;  %v958_v45 = vmul.f32 %v11321_v25, %v11451_v18 }
 0x15b   :  { %v910_v60 = vrot.slane %v909_v52, 1  ;;  %1947 = vperm.xlu1 %10055, %v1161_v19   ;;  %v961_v19 = vmul.f32 %v11463_v14, %v14408_v24  ;;  %v962_v18 = vmul.f32 %v11321_v25, %v11481_v56  ;;  %v967_v24 = vmul.f32 %v11508_v27, %v14412_v32  ;;  %v14415_v32 = vld [vmem:[#allocation42_spill] sm:$0xff] }
 0x15c   :  { %v872_v4 = vadd.f32 %v871_v43, %v870_v29  ;;  %v14404_v29 = vld [vmem:[#allocation23_spill] sm:$0xff]  ;;  %v954_v43 = vmul.f32 %v11321_v25, %v11424_v10 }
 0x15d   :  { %v11645_v58 = vadd.f32 %v910_v60, %v909_v52  ;;  %v11676_v3 = vmul.f32 %v11419_v50, %v14404_v29  ;;  %v955_v60 = vmul.f32 %v11424_v10, %v14405_v31  ;;  %v956_v50 = vmul.f32 %v11321_v25, %v11436_v22  ;;  %v1163_v10 = vld [vmem:[%s14129_s2 + $0xd8] sm:$0xff] }
 0x15e   :  { %v873_v37 = vrot.slane %v872_v4, 1  ;;  %v14411_v31 = vld [vmem:[#allocation36_spill] sm:$0xff] }
 0x15f   :  { %v11670_v52 = vmul.f32 %v913_v16, %v11645_v58  ;;  %v14406_v16 = vld [vmem:[#allocation28_spill] sm:$0xff]  ;;  %1957 = vperm.xlu1 %10055, %v1163_v10   ;;  %v11746_v10 = vmul.f32 %v917_v63, %v11645_v58 }
 0x160   :  { %v957_v42 = vmul.f32 %v11436_v22, %v14406_v16  ;;  %v11688_v62 = vadd.f32 %v873_v37, %v872_v4  ;;  %v1154_v4 = vld [vmem:[%s14129_s2 + $0x90] sm:$0xff]  ;;  %v960_v22 = vmul.f32 %v11321_v25, %v11463_v14  ;;  %v963_v37 = vmul.f32 %v11481_v56, %v14409_v51  ;;  %v14414_v56 = vld [vmem:[#allocation40_spill] sm:$0xff] }
 0x161   :  { %14403 = vst [vmem:[#allocation18_spill] sm:$0xff] %v11670_v52  ;;  %1626 = vmatprep.mubr.f32.mxu1 %v11670_v52  ;;  %v965_v16 = vmul.f32 %v11493_v41, %v14411_v31  ;;  %1912 = vperm.xlu0 %10056, %v1154_v4   ;;  %v11721_v14 = vmul.f32 %v915_v57, %v11645_v58  ;;  %v1156_v41 = vld [vmem:[%s14129_s2 + $0xa0] sm:$0xff] }
 0x162   :  { %v11712_v29 = vmul.f32 %v912_v53, %v11688_v62  ;;  %v966_v51 = vmul.f32 %v11321_v25, %v11508_v27  ;;  %v969_v53 = vmul.f32 %v11520_v47, %v14414_v56  ;;  %v971_v57 = vmul.f32 %v11535_v48, %v14415_v32  ;;  %v14416_v27 = vld [vmem:[#allocation44_spill] sm:$0xff]  ;;  %v1165_v47 = vld [vmem:[%s14129_s2 + $0xe8] sm:$0xff] }
 0x163   :  { %14413 = vst [vmem:[#allocation20_spill] sm:$0xff] %v11721_v14  ;;  %v970_v4 = vmul.f32 %v11321_v25, %v11535_v48  ;;  %v973_v31 = vmul.f32 %v11558_v7, %v14416_v27  ;;  %v972_v56 = vmul.f32 %v11321_v25, %v11558_v7  ;;  %v11749_v32 = vmul.f32 %v919_v0, %v11645_v58 }
 0x164   :  { %14410 = vst [vmem:[#allocation19_spill] sm:$0xff] %v11712_v29  ;;  %1627 = vmatmul.mubr.f32.vlgmr.msra.gmra.mrb[0].mxu1 %v11712_v29  ;;  %v14417_v29 = vld [vmem:[#allocation46_spill] sm:$0xff]  ;;  %v974_v27 = vmul.f32 %v11321_v25, %v11577_v40  ;;  %v11756_v7 = vmul.f32 %v914_v33, %v11688_v62  ;;  %v11759_v52 = vmul.f32 %v916_v44, %v11688_v62  ;;  %v1167_v44 = vld [vmem:[%s14129_s2 + $0xf8] sm:$0xff] }
 0x165   :  { %1631 = vmatprep.mubr.f32.mxu1 %v11721_v14  ;;  %v975_v48 = vmul.f32 %v11577_v40, %v14417_v29  ;;  %v11763_v14 = vmul.f32 %v11613_v55, %v11645_v58  ;;  %v11767_v63 = vmul.f32 %v11617_v26, %v11688_v62  ;;  %1922 = vperm.xlu0 %10056, %v1156_v41   ;;  %v1158_v26 = vld [vmem:[%s14129_s2 + $0xb0] sm:$0xff] }
 0x166   :  { %v11771_v0 = vmul.f32 %v11627_v35, %v11645_v58  ;;  %v11775_v40 = vmul.f32 %v11631_v28, %v11688_v62  ;;  %v11779_v33 = vmul.f32 %v11639_v34, %v11645_v58  ;;  %v11783_v55 = vmul.f32 %v11643_v13, %v11688_v62  ;;  %1967 = vperm.xlu1 %10055, %v1165_v47  }
 0x167   :  { %v11791_v35 = vmul.f32 %v11649_v5, %v11645_v58  ;;  %v11795_v28 = vmul.f32 %v11653_v49, %v11688_v62  ;;  %v11798_v34 = vmul.f32 %v953_v59, %v11645_v58  ;;  %v11801_v13 = vmul.f32 %v952_v9, %v11688_v62 }
 0x168   :  { %1632 = vmatmul.mubr.f32.gmra.mrb[2].mxu1 %v11756_v7  ;;  %v11808_v29 = vmul.f32 %v955_v60, %v11645_v58  ;;  %v11811_v5 = vmul.f32 %v954_v43, %v11688_v62  ;;  %v11814_v49 = vmul.f32 %v957_v42, %v11645_v58  ;;  %v11817_v59 = vmul.f32 %v956_v50, %v11688_v62 }
 0x169   :  { %1636 = vmatprep.mubr.f32.mxu1 %v11746_v10  ;;  %v11820_v9 = vmul.f32 %v959_v30, %v11645_v58  ;;  %v11823_v41 = vmul.f32 %v958_v45, %v11688_v62  ;;  %v11826_v47 = vmul.f32 %v961_v19, %v11645_v58  ;;  %v11829_v60 = vmul.f32 %v960_v22, %v11688_v62  ;;  %v1160_v45 = vld [vmem:[%s14129_s2 + $0xc0] sm:$0xff] }
 0x16a   :  { %1932 = vperm.xlu0 %10056, %v1158_v26   ;;  %v11832_v43 = vmul.f32 %v963_v37, %v11645_v58  ;;  %v11835_v42 = vmul.f32 %v962_v18, %v11688_v62  ;;  %v11838_v50 = vmul.f32 %v965_v16, %v11645_v58  ;;  %v11841_v30 = vmul.f32 %v964_v2, %v11688_v62 }
 0x16b   :  { %1977 = vperm.xlu1 %10055, %v1167_v44   ;;  %v11848_v19 = vmul.f32 %v967_v24, %v11645_v58  ;;  %v11851_v22 = vmul.f32 %v966_v51, %v11688_v62  ;;  %v11854_v37 = vmul.f32 %v969_v53, %v11645_v58  ;;  %v11857_v18 = vmul.f32 %v968_v23, %v11688_v62  ;;  %v14427_v44 = vld [vmem:[#allocation27_spill] sm:$0xff] }
 0x16c   :  { %1637 = vmatmul.mubr.f32.gmra.mrb[4].mxu1 %v11759_v52  ;;  %v11861_v16 = vmul.f32 %v971_v57, %v11645_v58  ;;  %v11864_v2 = vmul.f32 %v970_v4, %v11688_v62  ;;  %v11867_v24 = vmul.f32 %v973_v31, %v11645_v58  ;;  %v11870_v51 = vmul.f32 %v972_v56, %v11688_v62  ;;  %v1162_v4 = vld [vmem:[%s14129_s2 + $0xd0] sm:$0xff]  ;;  %v14426_v31 = vld [vmem:[#allocation25_spill] sm:$0xff] }
 0x16d   :  { %14418 = vst [vmem:[#allocation21_spill] sm:$0xff] %v11854_v37  ;;  %14419 = vst [vmem:[#allocation22_spill] sm:$0xff] %v11857_v18  ;;  %1641 = vmatprep.mubr.f32.mxu1 %v11749_v32  ;;  %v11874_v53 = vmul.f32 %v11676_v3, %v11688_v62  ;;  %v11877_v23 = vmul.f32 %v975_v48, %v11645_v58  ;;  %v11880_v26 = vmul.f32 %v974_v27, %v11688_v62  ;;  %v1164_v27 = vld [vmem:[%s14129_s2 + $0xe0] sm:$0xff] }
 0x16e   :  { %14420 = vst [vmem:[#allocation24_spill] sm:$0xff] %v11861_v16  ;;  %14421 = vst [vmem:[#allocation23_spill] sm:$0xff] %v11864_v2  ;;  %1942 = vperm.xlu0 %10056, %v1160_v45   ;;  %v11884_v57 = vmul.f32 %v11680_v12, %v11645_v58  ;;  %v920_v3 = vmul.f32 %v11434_v54, %v14426_v31  ;;  %v923_v56 = vmul.f32 %v11321_v25, %v11442_v11 }
 0x16f   :  { %14422 = vst [vmem:[#allocation26_spill] sm:$0xff] %v11867_v24  ;;  %14423 = vst [vmem:[#allocation28_spill] sm:$0xff] %v11870_v51  ;;  %v922_v54 = vmul.f32 %v11442_v11, %v14427_v44  ;;  %v925_v45 = vmul.f32 %v11321_v25, %v11457_v46  ;;  %v927_v44 = vmul.f32 %v11321_v25, %v11465_v39 }
 0x170   :  { %14424 = vst [vmem:[#allocation30_spill] sm:$0xff] %v11877_v23  ;;  %14425 = vst [vmem:[#allocation32_spill] sm:$0xff] %v11880_v26  ;;  %1642 = vmatmul.mubr.f32.gmra.mrb[6].mxu1 %v11874_v53  ;;  %v11896_v48 = vmul.f32 %v920_v3, %v11688_v62  ;;  %v11899_v12 = vmul.f32 %v923_v56, %v11645_v58  ;;  %v1166_v3 = vld [vmem:[%s14129_s2 + $0xf0] sm:$0xff]  ;;  %v14429_v56 = vld [vmem:[#allocation29_spill] sm:$0xff] }
 0x171   :  { %1646 = vmatprep.mubr.f32.mxu1 %v11884_v57  ;;  %v11911_v31 = vmul.f32 %v922_v54, %v11688_v62  ;;  %v924_v11 = vmul.f32 %v11457_v46, %v14429_v56  ;;  %v929_v46 = vmul.f32 %v11321_v25, %v11483_v8 }
 0x172   :  { %1952 = vperm.xlu0 %10056, %v1162_v4   ;;  %v11914_v4 = vmul.f32 %v925_v45, %v11645_v58  ;;  %v14431_v45 = vld [vmem:[#allocation31_spill] sm:$0xff] }
 0x173   :  { %14428 = vst [vmem:[#allocation34_spill] sm:$0xff] %v11911_v31  ;;  %v11926_v54 = vmul.f32 %v924_v11, %v11688_v62  ;;  %v11941_v11 = vmul.f32 %v929_v46, %v11645_v58 }
 0x174   :  { %1647 = vmatmul.mubr.f32.gmra.mrb[8].mxu1 %v11896_v48 }
 0x175   :  { %1651 = vmatprep.mubr.f32.mxu1 %v11899_v12  ;;  %14432 = vst [vmem:[#allocation38_spill] sm:$0xff] %v11941_v11 }
 0x176   :  { %1962 = vperm.xlu0 %10056, %v1164_v27   ;;  %v11929_v27 = vmul.f32 %v927_v44, %v11645_v58 }
 0x178   :  { %1652 = vmatmul.mubr.f32.gmra.mrb[10].mxu1 %v11911_v31  ;;  %14430 = vst [vmem:[#allocation36_spill] sm:$0xff] %v11929_v27  ;;  %v926_v31 = vmul.f32 %v11465_v39, %v14431_v45  ;;  %v931_v39 = vmul.f32 %v11321_v25, %v11495_v6 }
 0x179   :  { %1656 = vmatprep.mubr.f32.mxu1 %v11914_v4 }
 0x17a   :  { %1972 = vperm.xlu0 %10056, %v1166_v3   ;;  %v11938_v56 = vmul.f32 %v926_v31, %v11688_v62  ;;  %v14433_v3 = vld [vmem:[#allocation33_spill] sm:$0xff]  ;;  %v14435_v31 = vld [vmem:[#allocation35_spill] sm:$0xff] }
 0x17b   :  { %v928_v44 = vmul.f32 %v11483_v8, %v14433_v3  ;;  %v930_v46 = vmul.f32 %v11495_v6, %v14435_v31  ;;  %v933_v8 = vmul.f32 %v11321_v25, %v11510_v21  ;;  %v935_v6 = vmul.f32 %v11321_v25, %v11522_v20 }
 0x17c   :  { %1657 = vmatmul.mubr.f32.gmra.mrb[12].mxu1 %v11926_v54 }
 0x17d   :  { %1661 = vmatprep.mubr.f32.mxu1 %v11929_v27  ;;  %v11950_v45 = vmul.f32 %v928_v44, %v11688_v62  ;;  %v11953_v27 = vmul.f32 %v931_v39, %v11645_v58  ;;  %v11962_v3 = vmul.f32 %v930_v46, %v11688_v62  ;;  %v14437_v44 = vld [vmem:[#allocation37_spill] sm:$0xff]  ;;  %v14439_v46 = vld [vmem:[#allocation39_spill] sm:$0xff] }
 0x17e   :  { %v932_v39 = vmul.f32 %v11510_v21, %v14437_v44  ;;  %v937_v21 = vmul.f32 %v11321_v25, %v11545_v36 }
 0x17f   :  { %14434 = vst [vmem:[#allocation40_spill] sm:$0xff] %v11953_v27 }
 0x180   :  { %1662 = vmatmul.mubr.f32.gmra.mrb[14].mxu1 %v11938_v56  ;;  %v11974_v31 = vmul.f32 %v932_v39, %v11688_v62  ;;  %v14441_v39 = vld [vmem:[#allocation41_spill] sm:$0xff] }
 0x181   :  { %1666 = vmatprep.mubr.f32.mxu1 %v11941_v11  ;;  %v11965_v11 = vmul.f32 %v933_v8, %v11645_v58  ;;  %v934_v8 = vmul.f32 %v11522_v20, %v14439_v46  ;;  %v939_v20 = vmul.f32 %v11321_v25, %v11560_v38 }
 0x183   :  { %14436 = vst [vmem:[#allocation42_spill] sm:$0xff] %v11965_v11  ;;  %v11986_v44 = vmul.f32 %v934_v8, %v11688_v62  ;;  %v14443_v8 = vld [vmem:[#allocation43_spill] sm:$0xff] }
 0x184   :  { %1667 = vmatmul.mubr.f32.gmra.mrb[16].mxu1 %v11950_v45 }
 0x185   :  { %1671 = vmatprep.mubr.f32.mxu1 %v11953_v27  ;;  %v11977_v27 = vmul.f32 %v935_v6, %v11645_v58  ;;  %v936_v6 = vmul.f32 %v11545_v36, %v14441_v39  ;;  %v941_v36 = vmul.f32 %v11321_v25, %v11579_v15 }
 0x187   :  { %14438 = vst [vmem:[#allocation44_spill] sm:$0xff] %v11977_v27  ;;  %v11998_v46 = vmul.f32 %v936_v6, %v11688_v62  ;;  %v14444_v6 = vld [vmem:[#allocation45_spill] sm:$0xff] }
 0x188   :  { %1672 = vmatmul.mubr.f32.gmra.mrb[18].mxu1 %v11962_v3 }
 0x189   :  { %1676 = vmatprep.mubr.f32.mxu1 %v11965_v11  ;;  %v11989_v11 = vmul.f32 %v937_v21, %v11645_v58  ;;  %v938_v21 = vmul.f32 %v11560_v38, %v14443_v8  ;;  %v943_v38 = vmul.f32 %v11321_v25, %v11595_v1  ;;  %v2044_v25 = vld [vmem:[%s14132_s5] sm:$0xff] }
 0x18b   :  { %14440 = vst [vmem:[#allocation46_spill] sm:$0xff] %v11989_v11  ;;  %v12010_v39 = vmul.f32 %v938_v21, %v11688_v62  ;;  %v14445_v21 = vld [vmem:[#allocation47_spill] sm:$0xff] }
 0x18c   :  { %1677 = vmatmul.mubr.f32.gmra.mrb[20].mxu1 %v11974_v31 }
 0x18d   :  { %1681 = vmatprep.mubr.f32.mxu1 %v11977_v27  ;;  %v12001_v27 = vmul.f32 %v939_v20, %v11645_v58  ;;  %v940_v20 = vmul.f32 %v11579_v15, %v14444_v6  ;;  %v2047_v6 = vld [vmem:[%s14132_s5 + $0x18] sm:$0xff] }
 0x18f   :  { %14442 = vst [vmem:[#allocation25_spill] sm:$0xff] %v12001_v27  ;;  %v12022_v8 = vmul.f32 %v940_v20, %v11688_v62 }
 0x190   :  { %1682 = vmatmul.mubr.f32.gmra.mrb[22].mxu1 %v11986_v44 }
 0x191   :  { %1686 = vmatprep.mubr.f32.mxu1 %v11989_v11  ;;  %v12013_v11 = vmul.f32 %v941_v36, %v11645_v58  ;;  %v942_v36 = vmul.f32 %v11595_v1, %v14445_v21  ;;  %v2045_v1 = vld [vmem:[%s14132_s5 + $0x8] sm:$0xff] }
 0x193   :  { %v12032_v15 = vmul.f32 %v942_v36, %v11688_v62  ;;  %v2046_v62 = vld [vmem:[%s14132_s5 + $0x10] sm:$0xff] }
 0x194   :  { %1687 = vmatmul.mubr.f32.gmra.mrb[24].mxu1 %v11998_v46  ;;  %v9690_v20 = vpack.c.bf16 %v2047_v6, %v2046_v62 }
 0x195   :  { %1691 = vmatprep.mubr.f32.mxu1 %v12001_v27  ;;  %v12025_v27 = vmul.f32 %v943_v38, %v11645_v58  ;;  %v9686_v58 = vpack.c.bf16 %v2045_v1, %v2044_v25  ;;  %v10394_v38 = vld [vmem:[#allocation2 + $0x8] sm:$0xff]  ;;  %v12087_v25 = vld [vmem:[%s14131_s4] ss:$0 sm:$0xff] }
 0x196   :  { %v12080_v21 = vpop.permute.xlu1 %1822 }
 0x197   :  { %9687 = vmatprep.subr.bf16.mxu0 %v9686_v58  ;;  %14446 = vst [vmem:[#allocation27_spill] sm:$0xff] %v12080_v21 }
 0x198   :  { %1692 = vmatmul.mubr.f32.gmra.mrb[26].mxu1 %v12010_v39  ;;  %9689 = vmatpush3.bf16.msra.mxu0 %v9686_v58 }
 0x199   :  { %1696 = vmatprep.mubr.f32.mxu1 %v12013_v11  ;;  %9691 = vmatprep.subr.bf16.mxu0 %v9690_v20 }
 0x19a   :  { %v12082_v36 = vpop.permute.xlu1 %1832 }
 0x19b   :  { %14447 = vst [vmem:[#allocation29_spill] sm:$0xff] %v12082_v36 }
 0x19c   :  { %1697 = vmatmul.mubr.f32.gmra.mrb[28].mxu1 %v12022_v8  ;;  %9693 = vmatpush3.bf16.msra.mxu0 %v9690_v20 }
 0x19d   :  { %1701 = vmatprep.mubr.f32.mxu1 %v12025_v27  ;;  %9694 = vmatprep.subr.bf16.mxu0 %v14378_v61 }
 0x19f   :  { %v12090_v20 = vpop.permute.xlu1 %1837 }
 0x1a0   :  { %1702 = vmatmul.mubr.f32.gmra.mrb[30].mxu1 %v12032_v15  ;;  %14448 = vst [vmem:[#allocation31_spill] sm:$0xff] %v12090_v20 }
 0x1a1   :  { %1706 = vmatprep.mubr.f32.mxu1 %v11763_v14 }
 0x1a4   :  { %1707 = vmatmul.mubr.f32.gmra.mrb[32].mxu1 %v11767_v63 }
 0x1a5   :  { %1711 = vmatprep.mubr.f32.mxu1 %v11771_v0 }
 0x1a8   :  { %1712 = vmatmul.mubr.f32.gmra.mrb[34].mxu1 %v11775_v40 }
 0x1a9   :  { %1716 = vmatprep.mubr.f32.mxu1 %v11779_v33 }
 0x1ac   :  { %1717 = vmatmul.mubr.f32.gmra.mrb[36].mxu1 %v11783_v55 }
 0x1ad   :  { %1721 = vmatprep.mubr.f32.mxu1 %v11791_v35 }
 0x1b0   :  { %1722 = vmatmul.mubr.f32.gmra.mrb[38].mxu1 %v11795_v28 }
 0x1b1   :  { %1726 = vmatprep.mubr.f32.mxu1 %v11798_v34 }
 0x1b4   :  { %1727 = vmatmul.mubr.f32.gmra.mrb[40].mxu1 %v11801_v13 }
 0x1b5   :  { %1731 = vmatprep.mubr.f32.mxu1 %v11808_v29 }
 0x1b8   :  { %1732 = vmatmul.mubr.f32.gmra.mrb[42].mxu1 %v11811_v5 }
 0x1b9   :  { %1736 = vmatprep.mubr.f32.mxu1 %v11814_v49 }
 0x1bc   :  { %1737 = vmatmul.mubr.f32.gmra.mrb[44].mxu1 %v11817_v59 }
 0x1bd   :  { %1741 = vmatprep.mubr.f32.mxu1 %v11820_v9 }
 0x1c0   :  { %1742 = vmatmul.mubr.f32.gmra.mrb[46].mxu1 %v11823_v41 }
 0x1c1   :  { %1746 = vmatprep.mubr.f32.mxu1 %v11826_v47 }
 0x1c4   :  { %1747 = vmatmul.mubr.f32.gmra.mrb[48].mxu1 %v11829_v60 }
 0x1c5   :  { %1751 = vmatprep.mubr.f32.mxu1 %v11832_v43 }
 0x1c8   :  { %1752 = vmatmul.mubr.f32.gmra.mrb[50].mxu1 %v11835_v42 }
 0x1c9   :  { %1756 = vmatprep.mubr.f32.mxu1 %v11838_v50 }
 0x1cc   :  { %1757 = vmatmul.mubr.f32.gmra.mrb[52].mxu1 %v11841_v30 }
 0x1cd   :  { %1761 = vmatprep.mubr.f32.mxu1 %v11848_v19 }
 0x1d0   :  { %1762 = vmatmul.mubr.f32.gmra.mrb[54].mxu1 %v11851_v22 }
 0x1d1   :  { %1766 = vmatprep.mubr.f32.mxu1 %v11854_v37  ;;  %v12102_v37 = vpop.permute.xlu1 %1842 }
 0x1d2   :  { %14450 = vst [vmem:[#allocation35_spill] sm:$0xff] %v12102_v37 }
 0x1d4   :  { %1767 = vmatmul.mubr.f32.gmra.mrb[56].mxu1 %v11857_v18 }
 0x1d5   :  { %1771 = vmatprep.mubr.f32.mxu1 %v11861_v16 }
 0x1d8   :  { %1772 = vmatmul.mubr.f32.gmra.mrb[58].mxu1 %v11864_v2 }
 0x1d9   :  { %1776 = vmatprep.mubr.f32.mxu1 %v11867_v24  ;;  %v12095_v24 = vpop.permute.xlu0 %1827 }
 0x1da   :  { %14449 = vst [vmem:[#allocation33_spill] sm:$0xff] %v12095_v24 }
 0x1dc   :  { %1777 = vmatmul.mubr.f32.gmra.mrb[60].mxu1 %v11870_v51 }
 0x1dd   :  { %1781 = vmatprep.mubr.f32.mxu1 %v11877_v23 }
 0x1e0   :  { %1782 = vmatmul.mubr.f32.gmra.mrb[62].mxu1 %v11880_v26 }
 0x1e1   :  { %3340 = vmatprep.mubr.f32.mxu1 %v10394_v38 }
 0x237   :  { %v1628_v1 = vpop.f32.mrb[0].mxu1 }
 0x238   :  { %v1629_v58 = vadd.f32 %v12087_v25, %v1628_v1  ;;  %v1630_v62 = vpop.f32.mrb[1].mxu1 }
 0x23a   :  { %v1787_v6 = vmax.f32 %v1629_v58, 0.0 }
 0x23b   :  { %v1633_v23 = vpop.f32.mrb[2].mxu1 }
 0x23c   :  { %v1980_v38 = vmul.f32 %v12080_v21, %v1787_v6  ;;  %v1634_v26 = vadd.f32 %v12087_v25, %v1633_v23  ;;  %v1635_v51 = vpop.f32.mrb[3].mxu1 }
 0x23e   :  { %v1788_v2 = vmax.f32 %v1634_v26, 0.0  ;;  %v2012_v16 = vsel %vm1819_vm9, %v1980_v38, %v1787_v6 }
 0x23f   :  { %v1638_v1 = vpop.f32.mrb[4].mxu1  ;;  %9254 = vmatprep.mubr.msk.f32.mxu0 %vm2049_vm10, %v2012_v16 }
 0x240   :  { %v1639_v58 = vadd.f32 %v12087_v25, %v1638_v1  ;;  %v1981_v62 = vmul.f32 %v12095_v24, %v1788_v2  ;;  %v1640_v18 = vpop.f32.mrb[5].mxu1  ;;  %v12111_v24 = vpop.permute.xlu1 %1847 }
 0x242   :  { %v1789_v21 = vmax.f32 %v1639_v58, 0.0  ;;  %v2013_v51 = vsel %vm1819_vm9, %v1981_v62, %v1788_v2 }
 0x243   :  { %v1643_v23 = vpop.f32.mrb[6].mxu1  ;;  %9255 = vmatmul.mubr.msk.f32.vlgmr.msra.gmra.mrb[32].mxu0 %vm2049_vm10, %v2013_v51 }
 0x244   :  { %v1982_v26 = vmul.f32 %v12082_v36, %v1789_v21  ;;  %v1644_v6 = vadd.f32 %v12087_v25, %v1643_v23  ;;  %v1645_v38 = vpop.f32.mrb[7].mxu1 }
 0x245   :  { %v12121_v38 = vpop.permute.xlu1 %1852 }
 0x246   :  { %v1790_v16 = vmax.f32 %v1644_v6, 0.0  ;;  %v2014_v1 = vsel %vm1819_vm9, %v1982_v26, %v1789_v21  ;;  %14451 = vst [vmem:[#allocation37_spill] sm:$0xff] %v12121_v38 }
 0x247   :  { %v1648_v18 = vpop.f32.mrb[8].mxu1  ;;  %9257 = vmatprep.mubr.msk.f32.mxu0 %vm2049_vm10, %v2014_v1 }
 0x248   :  { %v1983_v58 = vmul.f32 %v12090_v20, %v1790_v16  ;;  %v1649_v2 = vadd.f32 %v12087_v25, %v1648_v18  ;;  %v1650_v62 = vpop.f32.mrb[9].mxu1 }
 0x24a   :  { %v1791_v51 = vmax.f32 %v1649_v2, 0.0  ;;  %v2015_v36 = vsel %vm1819_vm9, %v1983_v58, %v1790_v16 }
 0x24b   :  { %v1653_v23 = vpop.f32.mrb[10].mxu1  ;;  %9258 = vmatmul.mubr.msk.f32.gmra.mrb[34].mxu0 %vm2049_vm10, %v2015_v36 }
 0x24c   :  { %v1984_v6 = vmul.f32 %v12102_v37, %v1791_v51  ;;  %v1654_v21 = vadd.f32 %v12087_v25, %v1653_v23  ;;  %v1655_v26 = vpop.f32.mrb[11].mxu1  ;;  %v12130_v23 = vpop.permute.xlu1 %1857 }
 0x24d   :  { %14452 = vst [vmem:[#allocation39_spill] sm:$0xff] %v12130_v23 }
 0x24e   :  { %v1792_v1 = vmax.f32 %v1654_v21, 0.0  ;;  %v2016_v20 = vsel %vm1819_vm9, %v1984_v6, %v1791_v51 }
 0x24f   :  { %v1658_v18 = vpop.f32.mrb[12].mxu1  ;;  %9260 = vmatprep.mubr.msk.f32.mxu0 %vm2049_vm10, %v2016_v20 }
 0x250   :  { %v1985_v2 = vmul.f32 %v12111_v24, %v1792_v1  ;;  %v1659_v16 = vadd.f32 %v12087_v25, %v1658_v18  ;;  %v1660_v58 = vpop.f32.mrb[13].mxu1 }
 0x251   :  { %v12140_v58 = vpop.permute.xlu1 %1862 }
 0x252   :  { %v1793_v36 = vmax.f32 %v1659_v16, 0.0  ;;  %v2017_v62 = vsel %vm1819_vm9, %v1985_v2, %v1792_v1  ;;  %14453 = vst [vmem:[#allocation41_spill] sm:$0xff] %v12140_v58 }
 0x253   :  { %v1663_v26 = vpop.f32.mrb[14].mxu1  ;;  %9261 = vmatmul.mubr.msk.f32.gmra.mrb[36].mxu0 %vm2049_vm10, %v2017_v62 }
 0x254   :  { %v1986_v21 = vmul.f32 %v12121_v38, %v1793_v36  ;;  %v1664_v51 = vadd.f32 %v12087_v25, %v1663_v26  ;;  %v1665_v6 = vpop.f32.mrb[15].mxu1 }
 0x256   :  { %v1794_v20 = vmax.f32 %v1664_v51, 0.0  ;;  %v2018_v37 = vsel %vm1819_vm9, %v1986_v21, %v1793_v36 }
 0x257   :  { %v1668_v18 = vpop.f32.mrb[16].mxu1  ;;  %9263 = vmatprep.mubr.msk.f32.mxu0 %vm2049_vm10, %v2018_v37 }
 0x258   :  { %v1987_v16 = vmul.f32 %v12130_v23, %v1794_v20  ;;  %v1669_v1 = vadd.f32 %v12087_v25, %v1668_v18  ;;  %v1670_v2 = vpop.f32.mrb[17].mxu1  ;;  %v12149_v18 = vpop.permute.xlu1 %1867 }
 0x259   :  { %14454 = vst [vmem:[#allocation43_spill] sm:$0xff] %v12149_v18 }
 0x25a   :  { %v1795_v62 = vmax.f32 %v1669_v1, 0.0  ;;  %v2019_v38 = vsel %vm1819_vm9, %v1987_v16, %v1794_v20 }
 0x25b   :  { %v1673_v26 = vpop.f32.mrb[18].mxu1  ;;  %9264 = vmatmul.mubr.msk.f32.gmra.mrb[38].mxu0 %vm2049_vm10, %v2019_v38 }
 0x25c   :  { %v1988_v51 = vmul.f32 %v12140_v58, %v1795_v62  ;;  %v1674_v36 = vadd.f32 %v12087_v25, %v1673_v26  ;;  %v1675_v21 = vpop.f32.mrb[19].mxu1  ;;  %v12156_v26 = vpop.permute.xlu0 %1872 }
 0x25d   :  { %14455 = vst [vmem:[#allocation45_spill] sm:$0xff] %v12156_v26 }
 0x25e   :  { %v1796_v37 = vmax.f32 %v1674_v36, 0.0  ;;  %v2020_v6 = vsel %vm1819_vm9, %v1988_v51, %v1795_v62 }
 0x25f   :  { %v1678_v2 = vpop.f32.mrb[20].mxu1  ;;  %9266 = vmatprep.mubr.msk.f32.mxu0 %vm2049_vm10, %v2020_v6 }
 0x260   :  { %v1989_v1 = vmul.f32 %v12149_v18, %v1796_v37  ;;  %v1679_v20 = vadd.f32 %v12087_v25, %v1678_v2  ;;  %v1680_v16 = vpop.f32.mrb[21].mxu1  ;;  %v12163_v2 = vpop.permute.xlu1 %1877 }
 0x261   :  { %14456 = vst [vmem:[#allocation47_spill] sm:$0xff] %v12163_v2 }
 0x262   :  { %v1797_v38 = vmax.f32 %v1679_v20, 0.0  ;;  %v2021_v58 = vsel %vm1819_vm9, %v1989_v1, %v1796_v37 }
 0x263   :  { %v1683_v36 = vpop.f32.mrb[22].mxu1  ;;  %9267 = vmatmul.mubr.msk.f32.gmra.mrb[40].mxu0 %vm2049_vm10, %v2021_v58 }
 0x264   :  { %v1990_v62 = vmul.f32 %v12156_v26, %v1797_v38  ;;  %v1684_v51 = vadd.f32 %v12087_v25, %v1683_v36  ;;  %v1685_v21 = vpop.f32.mrb[23].mxu1  ;;  %v12170_v36 = vpop.permute.xlu0 %1882 }
 0x265   :  { %14457 = vst [vmem:[#allocation48_spill] sm:$0xff] %v12170_v36 }
 0x266   :  { %v1798_v6 = vmax.f32 %v1684_v51, 0.0  ;;  %v2022_v18 = vsel %vm1819_vm9, %v1990_v62, %v1797_v38 }
 0x267   :  { %v1688_v20 = vpop.f32.mrb[24].mxu1  ;;  %9269 = vmatprep.mubr.msk.f32.mxu0 %vm2049_vm10, %v2022_v18 }
 0x268   :  { %v1991_v37 = vmul.f32 %v12163_v2, %v1798_v6  ;;  %v1689_v1 = vadd.f32 %v12087_v25, %v1688_v20  ;;  %v1690_v16 = vpop.f32.mrb[25].mxu1  ;;  %v12177_v20 = vpop.permute.xlu1 %1887 }
 0x269   :  { %14458 = vst [vmem:[#allocation49_spill] sm:$0xff] %v12177_v20 }
 0x26a   :  { %v1799_v58 = vmax.f32 %v1689_v1, 0.0  ;;  %v2023_v26 = vsel %vm1819_vm9, %v1991_v37, %v1798_v6 }
 0x26b   :  { %v1693_v51 = vpop.f32.mrb[26].mxu1  ;;  %9270 = vmatmul.mubr.msk.f32.gmra.mrb[42].mxu0 %vm2049_vm10, %v2023_v26 }
 0x26c   :  { %v1992_v38 = vmul.f32 %v12170_v36, %v1799_v58  ;;  %v1694_v62 = vadd.f32 %v12087_v25, %v1693_v51  ;;  %v1695_v21 = vpop.f32.mrb[27].mxu1  ;;  %v12184_v51 = vpop.permute.xlu0 %1892 }
 0x26d   :  { %14459 = vst [vmem:[#allocation50_spill] sm:$0xff] %v12184_v51 }
 0x26e   :  { %v1800_v18 = vmax.f32 %v1694_v62, 0.0  ;;  %v2024_v2 = vsel %vm1819_vm9, %v1992_v38, %v1799_v58 }
 0x26f   :  { %v1698_v1 = vpop.f32.mrb[28].mxu1  ;;  %9272 = vmatprep.mubr.msk.f32.mxu0 %vm2049_vm10, %v2024_v2 }
 0x270   :  { %v1993_v6 = vmul.f32 %v12177_v20, %v1800_v18  ;;  %v1699_v37 = vadd.f32 %v12087_v25, %v1698_v1  ;;  %v1700_v16 = vpop.f32.mrb[29].mxu1  ;;  %v12191_v1 = vpop.permute.xlu1 %1897 }
 0x271   :  { %14460 = vst [vmem:[#allocation51_spill] sm:$0xff] %v12191_v1 }
 0x272   :  { %v1801_v26 = vmax.f32 %v1699_v37, 0.0  ;;  %v2025_v36 = vsel %vm1819_vm9, %v1993_v6, %v1800_v18 }
 0x273   :  { %v1703_v62 = vpop.f32.mrb[30].mxu1  ;;  %9273 = vmatmul.mubr.msk.f32.gmra.mrb[44].mxu0 %vm2049_vm10, %v2025_v36 }
 0x274   :  { %v1994_v58 = vmul.f32 %v12184_v51, %v1801_v26  ;;  %v1704_v38 = vadd.f32 %v12087_v25, %v1703_v62  ;;  %v1705_v21 = vpop.f32.mrb[31].mxu1  ;;  %v12198_v62 = vpop.permute.xlu0 %1902 }
 0x275   :  { %14461 = vst [vmem:[#allocation52_spill] sm:$0xff] %v12198_v62 }
 0x276   :  { %v1802_v2 = vmax.f32 %v1704_v38, 0.0  ;;  %v2026_v20 = vsel %vm1819_vm9, %v1994_v58, %v1801_v26 }
 0x277   :  { %v1708_v37 = vpop.f32.mrb[32].mxu1  ;;  %9275 = vmatprep.mubr.msk.f32.mxu0 %vm2049_vm10, %v2026_v20 }
 0x278   :  { %v1995_v18 = vmul.f32 %v12191_v1, %v1802_v2  ;;  %v1709_v6 = vadd.f32 %v12087_v25, %v1708_v37  ;;  %v1710_v16 = vpop.f32.mrb[33].mxu1  ;;  %v12205_v37 = vpop.permute.xlu1 %1907 }
 0x279   :  { %14462 = vst [vmem:[#allocation53_spill] sm:$0xff] %v12205_v37 }
 0x27a   :  { %v1803_v36 = vmax.f32 %v1709_v6, 0.0  ;;  %v2027_v51 = vsel %vm1819_vm9, %v1995_v18, %v1802_v2 }
 0x27b   :  { %v1713_v38 = vpop.f32.mrb[34].mxu1  ;;  %9276 = vmatmul.mubr.msk.f32.gmra.mrb[46].mxu0 %vm2049_vm10, %v2027_v51 }
 0x27c   :  { %v1996_v26 = vmul.f32 %v12198_v62, %v1803_v36  ;;  %v1714_v58 = vadd.f32 %v12087_v25, %v1713_v38  ;;  %v1715_v21 = vpop.f32.mrb[35].mxu1  ;;  %v12212_v38 = vpop.permute.xlu0 %1912 }
 0x27d   :  { %14463 = vst [vmem:[#allocation54_spill] sm:$0xff] %v12212_v38 }
 0x27e   :  { %v1804_v20 = vmax.f32 %v1714_v58, 0.0  ;;  %v2028_v1 = vsel %vm1819_vm9, %v1996_v26, %v1803_v36 }
 0x27f   :  { %v1718_v6 = vpop.f32.mrb[36].mxu1  ;;  %9278 = vmatprep.mubr.msk.f32.mxu0 %vm2049_vm10, %v2028_v1 }
 0x280   :  { %v1997_v2 = vmul.f32 %v12205_v37, %v1804_v20  ;;  %v1719_v18 = vadd.f32 %v12087_v25, %v1718_v6  ;;  %v1720_v16 = vpop.f32.mrb[37].mxu1  ;;  %v12219_v6 = vpop.permute.xlu1 %1917 }
 0x281   :  { %14464 = vst [vmem:[#allocation55_spill] sm:$0xff] %v12219_v6 }
 0x282   :  { %v1805_v51 = vmax.f32 %v1719_v18, 0.0  ;;  %v2029_v62 = vsel %vm1819_vm9, %v1997_v2, %v1804_v20 }
 0x283   :  { %v1723_v58 = vpop.f32.mrb[38].mxu1  ;;  %9279 = vmatmul.mubr.msk.f32.gmra.mrb[48].mxu0 %vm2049_vm10, %v2029_v62 }
 0x284   :  { %v1998_v36 = vmul.f32 %v12212_v38, %v1805_v51  ;;  %v1724_v26 = vadd.f32 %v12087_v25, %v1723_v58  ;;  %v1725_v21 = vpop.f32.mrb[39].mxu1  ;;  %v12226_v58 = vpop.permute.xlu0 %1922 }
 0x285   :  { %14465 = vst [vmem:[#allocation56_spill] sm:$0xff] %v12226_v58 }
 0x286   :  { %v1806_v1 = vmax.f32 %v1724_v26, 0.0  ;;  %v2030_v37 = vsel %vm1819_vm9, %v1998_v36, %v1805_v51 }
 0x287   :  { %v1728_v18 = vpop.f32.mrb[40].mxu1  ;;  %9281 = vmatprep.mubr.msk.f32.mxu0 %vm2049_vm10, %v2030_v37 }
 0x288   :  { %v1999_v20 = vmul.f32 %v12219_v6, %v1806_v1  ;;  %v1729_v2 = vadd.f32 %v12087_v25, %v1728_v18  ;;  %v1730_v16 = vpop.f32.mrb[41].mxu1  ;;  %v12233_v18 = vpop.permute.xlu1 %1927 }
 0x289   :  { %14466 = vst [vmem:[#allocation57_spill] sm:$0xff] %v12233_v18 }
 0x28a   :  { %v1807_v62 = vmax.f32 %v1729_v2, 0.0  ;;  %v2031_v38 = vsel %vm1819_vm9, %v1999_v20, %v1806_v1 }
 0x28b   :  { %v1733_v26 = vpop.f32.mrb[42].mxu1  ;;  %9282 = vmatmul.mubr.msk.f32.gmra.mrb[50].mxu0 %vm2049_vm10, %v2031_v38 }
 0x28c   :  { %v2000_v51 = vmul.f32 %v12226_v58, %v1807_v62  ;;  %v1734_v36 = vadd.f32 %v12087_v25, %v1733_v26  ;;  %v1735_v21 = vpop.f32.mrb[43].mxu1  ;;  %v12240_v26 = vpop.permute.xlu0 %1932 }
 0x28d   :  { %14467 = vst [vmem:[#allocation58_spill] sm:$0xff] %v12240_v26 }
 0x28e   :  { %v1808_v37 = vmax.f32 %v1734_v36, 0.0  ;;  %v2032_v6 = vsel %vm1819_vm9, %v2000_v51, %v1807_v62 }
 0x28f   :  { %v1738_v2 = vpop.f32.mrb[44].mxu1  ;;  %9284 = vmatprep.mubr.msk.f32.mxu0 %vm2049_vm10, %v2032_v6 }
 0x290   :  { %v2001_v1 = vmul.f32 %v12233_v18, %v1808_v37  ;;  %v1739_v20 = vadd.f32 %v12087_v25, %v1738_v2  ;;  %v1740_v16 = vpop.f32.mrb[45].mxu1  ;;  %v12247_v2 = vpop.permute.xlu1 %1937 }
 0x291   :  { %14468 = vst [vmem:[#allocation59_spill] sm:$0xff] %v12247_v2 }
 0x292   :  { %v1809_v38 = vmax.f32 %v1739_v20, 0.0  ;;  %v2033_v58 = vsel %vm1819_vm9, %v2001_v1, %v1808_v37 }
 0x293   :  { %v1743_v36 = vpop.f32.mrb[46].mxu1  ;;  %9285 = vmatmul.mubr.msk.f32.gmra.mrb[52].mxu0 %vm2049_vm10, %v2033_v58 }
 0x294   :  { %v2002_v62 = vmul.f32 %v12240_v26, %v1809_v38  ;;  %v1744_v51 = vadd.f32 %v12087_v25, %v1743_v36  ;;  %v1745_v21 = vpop.f32.mrb[47].mxu1  ;;  %v12254_v36 = vpop.permute.xlu0 %1942 }
 0x295   :  { %14469 = vst [vmem:[#allocation60_spill] sm:$0xff] %v12254_v36 }
 0x296   :  { %v1810_v6 = vmax.f32 %v1744_v51, 0.0  ;;  %v2034_v18 = vsel %vm1819_vm9, %v2002_v62, %v1809_v38 }
 0x297   :  { %v1748_v20 = vpop.f32.mrb[48].mxu1  ;;  %9287 = vmatprep.mubr.msk.f32.mxu0 %vm2049_vm10, %v2034_v18 }
 0x298   :  { %v2003_v37 = vmul.f32 %v12247_v2, %v1810_v6  ;;  %v1749_v1 = vadd.f32 %v12087_v25, %v1748_v20  ;;  %v1750_v16 = vpop.f32.mrb[49].mxu1  ;;  %v12261_v20 = vpop.permute.xlu1 %1947 }
 0x299   :  { %14470 = vst [vmem:[#allocation61_spill] sm:$0xff] %v12261_v20 }
 0x29a   :  { %v1811_v58 = vmax.f32 %v1749_v1, 0.0  ;;  %v2035_v26 = vsel %vm1819_vm9, %v2003_v37, %v1810_v6 }
 0x29b   :  { %v1753_v51 = vpop.f32.mrb[50].mxu1  ;;  %9288 = vmatmul.mubr.msk.f32.gmra.mrb[54].mxu0 %vm2049_vm10, %v2035_v26 }
 0x29c   :  { %v2004_v38 = vmul.f32 %v12254_v36, %v1811_v58  ;;  %v1754_v62 = vadd.f32 %v12087_v25, %v1753_v51  ;;  %v1755_v21 = vpop.f32.mrb[51].mxu1  ;;  %v12268_v51 = vpop.permute.xlu0 %1952 }
 0x29d   :  { %14471 = vst [vmem:[#allocation62_spill] sm:$0xff] %v12268_v51 }
 0x29e   :  { %v1812_v18 = vmax.f32 %v1754_v62, 0.0  ;;  %v2036_v2 = vsel %vm1819_vm9, %v2004_v38, %v1811_v58 }
 0x29f   :  { %v1758_v1 = vpop.f32.mrb[52].mxu1  ;;  %9290 = vmatprep.mubr.msk.f32.mxu0 %vm2049_vm10, %v2036_v2 }
 0x2a0   :  { %v2005_v6 = vmul.f32 %v12261_v20, %v1812_v18  ;;  %v1759_v37 = vadd.f32 %v12087_v25, %v1758_v1  ;;  %v1760_v16 = vpop.f32.mrb[53].mxu1  ;;  %v12275_v1 = vpop.permute.xlu1 %1957 }
 0x2a1   :  { %14472 = vst [vmem:[#allocation63_spill] sm:$0xff] %v12275_v1 }
 0x2a2   :  { %v1813_v26 = vmax.f32 %v1759_v37, 0.0  ;;  %v2037_v36 = vsel %vm1819_vm9, %v2005_v6, %v1812_v18 }
 0x2a3   :  { %v1763_v62 = vpop.f32.mrb[54].mxu1  ;;  %9291 = vmatmul.mubr.msk.f32.gmra.mrb[56].mxu0 %vm2049_vm10, %v2037_v36 }
 0x2a4   :  { %v2006_v58 = vmul.f32 %v12268_v51, %v1813_v26  ;;  %v1764_v38 = vadd.f32 %v12087_v25, %v1763_v62  ;;  %v1765_v21 = vpop.f32.mrb[55].mxu1  ;;  %v12282_v62 = vpop.permute.xlu0 %1962 }
 0x2a5   :  { %14473 = vst [vmem:[#allocation64_spill] sm:$0xff] %v12282_v62 }
 0x2a6   :  { %v1814_v2 = vmax.f32 %v1764_v38, 0.0  ;;  %v2038_v20 = vsel %vm1819_vm9, %v2006_v58, %v1813_v26 }
 0x2a7   :  { %v1768_v37 = vpop.f32.mrb[56].mxu1  ;;  %9293 = vmatprep.mubr.msk.f32.mxu0 %vm2049_vm10, %v2038_v20 }
 0x2a8   :  { %v2007_v18 = vmul.f32 %v12275_v1, %v1814_v2  ;;  %v1769_v6 = vadd.f32 %v12087_v25, %v1768_v37  ;;  %v1770_v16 = vpop.f32.mrb[57].mxu1  ;;  %v12289_v37 = vpop.permute.xlu1 %1967 }
 0x2a9   :  { %14474 = vst [vmem:[#allocation65_spill] sm:$0xff] %v12289_v37 }
 0x2aa   :  { %v1815_v36 = vmax.f32 %v1769_v6, 0.0  ;;  %v2039_v51 = vsel %vm1819_vm9, %v2007_v18, %v1814_v2 }
 0x2ab   :  { %v1773_v38 = vpop.f32.mrb[58].mxu1  ;;  %9294 = vmatmul.mubr.msk.f32.gmra.mrb[58].mxu0 %vm2049_vm10, %v2039_v51 }
 0x2ac   :  { %v2008_v26 = vmul.f32 %v12282_v62, %v1815_v36  ;;  %v1774_v58 = vadd.f32 %v12087_v25, %v1773_v38  ;;  %v1775_v21 = vpop.f32.mrb[59].mxu1  ;;  %v12296_v38 = vpop.permute.xlu0 %1972 }
 0x2ad   :  { %14475 = vst [vmem:[#allocation66_spill] sm:$0xff] %v12296_v38 }
 0x2ae   :  { %v1816_v20 = vmax.f32 %v1774_v58, 0.0  ;;  %v2040_v1 = vsel %vm1819_vm9, %v2008_v26, %v1815_v36 }
 0x2af   :  { %v1778_v6 = vpop.f32.mrb[60].mxu1  ;;  %9296 = vmatprep.mubr.msk.f32.mxu0 %vm2049_vm10, %v2040_v1 }
 0x2b0   :  { %v2009_v2 = vmul.f32 %v12289_v37, %v1816_v20  ;;  %v1779_v18 = vadd.f32 %v12087_v25, %v1778_v6  ;;  %v1780_v16 = vpop.f32.mrb[61].mxu1  ;;  %v12303_v6 = vpop.permute.xlu1 %1977 }
 0x2b1   :  { %14476 = vst [vmem:[#allocation67_spill] sm:$0xff] %v12303_v6 }
 0x2b2   :  { %v1817_v51 = vmax.f32 %v1779_v18, 0.0  ;;  %v2041_v62 = vsel %vm1819_vm9, %v2009_v2, %v1816_v20 }
 0x2b3   :  { %v1783_v58 = vpop.f32.mrb[62].mxu1  ;;  %9297 = vmatmul.mubr.msk.f32.gmra.mrb[60].mxu0 %vm2049_vm10, %v2041_v62  ;;  %v14477_v62 = vld [vmem:[#allocation18_spill] sm:$0xff] }
 0x2b4   :  { %v2010_v36 = vmul.f32 %v12296_v38, %v1817_v51  ;;  %v1784_v26 = vadd.f32 %v12087_v25, %v1783_v58  ;;  %v1785_v21 = vpop.f32.mrb[63].mxu1 }
 0x2b6   :  { %v1818_v1 = vmax.f32 %v1784_v26, 0.0  ;;  %v2042_v37 = vsel %vm1819_vm9, %v2010_v36, %v1817_v51 }
 0x2b7   :  { %9299 = vmatprep.mubr.msk.f32.mxu0 %vm2049_vm10, %v2042_v37 }
 0x2b8   :  { %v2011_v20 = vmul.f32 %v12303_v6, %v1818_v1 }
 0x2ba   :  { %v2043_v2 = vsel %vm1819_vm9, %v2011_v20, %v1818_v1  ;;  %vm14602_vm9 = vmmov %vm14562_vm0 }
 0x2bb   :  { %9300 = vmatmul.mubr.msk.f32.gmra.mrb[62].mxu0 %vm2049_vm10, %v2043_v2  ;;  %vm14606_vm10 = vmmov %vm14562_vm0 }
 0x2bc   :  { %2441 = vmatprep.mubr.f32.mxu0 %v14477_v62 }
 0x316   :  { %v9256_v18 = vpop.f32.mrb[32].mxu0 }
 0x317   :  { %v2212_v25 = vpop.f32.mrb[33].mxu0 }
 0x318   :  { %v9695_v16 = vpack.c.bf16 %v9256_v18, %v2212_v25 }
 0x31a   :  { %9696 = vmatpush1.bf16.msra.mxu0 %v9695_v16 }
 0x31b   :  { %9697 = vmatprep.subr.bf16.mxu0 %v14378_v61 }
 0x31e   :  { %v9259_v51 = vpop.f32.mrb[34].mxu0 }
 0x31f   :  { %v2222_v58 = vpop.f32.mrb[35].mxu0 }
 0x320   :  { %v9698_v36 = vpack.c.bf16 %v9259_v51, %v2222_v58 }
 0x322   :  { %9699 = vmatpush1.bf16.msra.mxu0 %v9698_v36 }
 0x323   :  { %9700 = vmatprep.subr.bf16.mxu0 %v14378_v61 }
 0x326   :  { %v9262_v37 = vpop.f32.mrb[36].mxu0 }
 0x327   :  { %v2232_v26 = vpop.f32.mrb[37].mxu0 }
 0x328   :  { %v9701_v21 = vpack.c.bf16 %v9262_v37, %v2232_v26 }
 0x32a   :  { %9702 = vmatpush1.bf16.msra.mxu0 %v9701_v21 }
 0x32b   :  { %9703 = vmatprep.subr.bf16.mxu0 %v14378_v61 }
 0x32e   :  { %v9265_v1 = vpop.f32.mrb[38].mxu0 }
 0x32f   :  { %v2242_v20 = vpop.f32.mrb[39].mxu0 }
 0x330   :  { %v9704_v2 = vpack.c.bf16 %v9265_v1, %v2242_v20 }
 0x332   :  { %9705 = vmatpush1.bf16.msra.mxu0 %v9704_v2 }
 0x333   :  { %9706 = vmatprep.subr.bf16.mxu0 %v14378_v61 }
 0x336   :  { %v9268_v62 = vpop.f32.mrb[40].mxu0 }
 0x337   :  { %v2252_v18 = vpop.f32.mrb[41].mxu0 }
 0x338   :  { %v9707_v25 = vpack.c.bf16 %v9268_v62, %v2252_v18 }
 0x33a   :  { %9708 = vmatpush1.bf16.msra.mxu0 %v9707_v25 }
 0x33b   :  { %9709 = vmatprep.subr.bf16.mxu0 %v14378_v61 }
 0x33e   :  { %v9271_v16 = vpop.f32.mrb[42].mxu0 }
 0x33f   :  { %v2262_v51 = vpop.f32.mrb[43].mxu0 }
 0x340   :  { %v9710_v58 = vpack.c.bf16 %v9271_v16, %v2262_v51 }
 0x342   :  { %9711 = vmatpush1.bf16.msra.mxu0 %v9710_v58 }
 0x343   :  { %9712 = vmatprep.subr.bf16.mxu0 %v14378_v61 }
 0x346   :  { %v9274_v36 = vpop.f32.mrb[44].mxu0 }
 0x347   :  { %v2272_v37 = vpop.f32.mrb[45].mxu0 }
 0x348   :  { %v9713_v26 = vpack.c.bf16 %v9274_v36, %v2272_v37 }
 0x34a   :  { %9714 = vmatpush1.bf16.msra.mxu0 %v9713_v26 }
 0x34b   :  { %9715 = vmatprep.subr.bf16.mxu0 %v14378_v61 }
 0x34e   :  { %v9277_v21 = vpop.f32.mrb[46].mxu0 }
 0x34f   :  { %v2282_v1 = vpop.f32.mrb[47].mxu0 }
 0x350   :  { %v9716_v20 = vpack.c.bf16 %v9277_v21, %v2282_v1 }
 0x352   :  { %9717 = vmatpush1.bf16.msra.mxu0 %v9716_v20 }
 0x353   :  { %9718 = vmatprep.subr.bf16.mxu0 %v14378_v61 }
 0x356   :  { %v9280_v2 = vpop.f32.mrb[48].mxu0 }
 0x357   :  { %v2292_v62 = vpop.f32.mrb[49].mxu0 }
 0x358   :  { %v9719_v18 = vpack.c.bf16 %v9280_v2, %v2292_v62 }
 0x35a   :  { %9720 = vmatpush1.bf16.msra.mxu0 %v9719_v18 }
 0x35b   :  { %9721 = vmatprep.subr.bf16.mxu0 %v14378_v61 }
 0x35e   :  { %v9283_v25 = vpop.f32.mrb[50].mxu0 }
 0x35f   :  { %v2302_v16 = vpop.f32.mrb[51].mxu0 }
 0x360   :  { %v9722_v51 = vpack.c.bf16 %v9283_v25, %v2302_v16 }
 0x362   :  { %9723 = vmatpush1.bf16.msra.mxu0 %v9722_v51 }
 0x363   :  { %9724 = vmatprep.subr.bf16.mxu0 %v14378_v61 }
 0x366   :  { %v9286_v58 = vpop.f32.mrb[52].mxu0 }
 0x367   :  { %v2312_v36 = vpop.f32.mrb[53].mxu0 }
 0x368   :  { %v9725_v37 = vpack.c.bf16 %v9286_v58, %v2312_v36 }
 0x36a   :  { %9726 = vmatpush1.bf16.msra.mxu0 %v9725_v37 }
 0x36b   :  { %9727 = vmatprep.subr.bf16.mxu0 %v14378_v61 }
 0x36e   :  { %v9289_v26 = vpop.f32.mrb[54].mxu0 }
 0x36f   :  { %v2322_v21 = vpop.f32.mrb[55].mxu0 }
 0x370   :  { %v9728_v1 = vpack.c.bf16 %v9289_v26, %v2322_v21 }
 0x372   :  { %9729 = vmatpush1.bf16.msra.mxu0 %v9728_v1  ;;  %v14478_v1 = vld [vmem:[#allocation19_spill] sm:$0xff] }
 0x373   :  { %9730 = vmatprep.subr.bf16.mxu0 %v14378_v61 }
 0x376   :  { %v9292_v20 = vpop.f32.mrb[56].mxu0 }
 0x377   :  { %v2332_v2 = vpop.f32.mrb[57].mxu0 }
 0x378   :  { %v9731_v62 = vpack.c.bf16 %v9292_v20, %v2332_v2  ;;  %v14479_v20 = vld [vmem:[#allocation20_spill] sm:$0xff]  ;;  %v14480_v2 = vld [vmem:[#allocation34_spill] sm:$0xff] }
 0x37a   :  { %9732 = vmatpush1.bf16.msra.mxu0 %v9731_v62 }
 0x37b   :  { %9733 = vmatprep.subr.bf16.mxu0 %v14378_v61 }
 0x37e   :  { %v9295_v18 = vpop.f32.mrb[58].mxu0 }
 0x37f   :  { %v2342_v25 = vpop.f32.mrb[59].mxu0 }
 0x380   :  { %v9734_v16 = vpack.c.bf16 %v9295_v18, %v2342_v25 }
 0x382   :  { %9735 = vmatpush1.bf16.msra.mxu0 %v9734_v16 }
 0x383   :  { %9736 = vmatprep.subr.bf16.mxu0 %v14378_v61 }
 0x386   :  { %v9298_v51 = vpop.f32.mrb[60].mxu0 }
 0x387   :  { %v2352_v58 = vpop.f32.mrb[61].mxu0 }
 0x388   :  { %v9737_v36 = vpack.c.bf16 %v9298_v51, %v2352_v58 }
 0x38a   :  { %9738 = vmatpush1.bf16.msra.mxu0 %v9737_v36 }
 0x38b   :  { %9739 = vmatprep.subr.bf16.mxu0 %v14378_v61 }
 0x38e   :  { %v9301_v37 = vpop.f32.mrb[62].mxu0 }
 0x38f   :  { %v2362_v26 = vpop.f32.mrb[63].mxu0 }
 0x390   :  { %v9740_v21 = vpack.c.bf16 %v9301_v37, %v2362_v26 }
 0x392   :  { %9741 = vmatpush1.bf16.msra.mxu0 %v9740_v21 }
 0x393   :  { %9790 = vmatprep.subr.bf16.mxu0 %v14378_v61 }
 0x395   :  { %2442 = vmatmul.mubr.f32.vlgmr.msra.gmra.mrb[64].mxu0 %v14478_v1 }
 0x396   :  { %2446 = vmatprep.mubr.f32.mxu0 %v14479_v20 }
 0x399   :  { %2447 = vmatmul.mubr.f32.gmra.mrb[66].mxu0 %v11756_v7  ;;  %v14481_v7 = vld [vmem:[#allocation36_spill] sm:$0xff] }
 0x39a   :  { %2451 = vmatprep.mubr.f32.mxu0 %v11746_v10  ;;  %v14483_v10 = vld [vmem:[#allocation40_spill] sm:$0xff] }
 0x39d   :  { %2452 = vmatmul.mubr.f32.gmra.mrb[68].mxu0 %v11759_v52  ;;  %v14482_v52 = vld [vmem:[#allocation38_spill] sm:$0xff] }
 0x39e   :  { %2456 = vmatprep.mubr.f32.mxu0 %v11749_v32  ;;  %v14484_v32 = vld [vmem:[#allocation42_spill] sm:$0xff] }
 0x3a1   :  { %2457 = vmatmul.mubr.f32.gmra.mrb[70].mxu0 %v11874_v53  ;;  %v14485_v53 = vld [vmem:[#allocation44_spill] sm:$0xff] }
 0x3a2   :  { %2461 = vmatprep.mubr.f32.mxu0 %v11884_v57  ;;  %v14486_v57 = vld [vmem:[#allocation46_spill] sm:$0xff] }
 0x3a5   :  { %2462 = vmatmul.mubr.f32.gmra.mrb[72].mxu0 %v11896_v48  ;;  %v14487_v48 = vld [vmem:[#allocation25_spill] sm:$0xff] }
 0x3a6   :  { %2466 = vmatprep.mubr.f32.mxu0 %v11899_v12  ;;  %v14497_v12 = vld [vmem:[#allocation33_spill] sm:$0xff] }
 0x3a9   :  { %2467 = vmatmul.mubr.f32.gmra.mrb[74].mxu0 %v14480_v2 }
 0x3aa   :  { %2471 = vmatprep.mubr.f32.mxu0 %v11914_v4 }
 0x3ad   :  { %2472 = vmatmul.mubr.f32.gmra.mrb[76].mxu0 %v11926_v54 }
 0x3ae   :  { %2476 = vmatprep.mubr.f32.mxu0 %v14481_v7 }
 0x3b1   :  { %2477 = vmatmul.mubr.f32.gmra.mrb[78].mxu0 %v11938_v56 }
 0x3b2   :  { %2481 = vmatprep.mubr.f32.mxu0 %v14482_v52 }
 0x3b5   :  { %2482 = vmatmul.mubr.f32.gmra.mrb[80].mxu0 %v11950_v45 }
 0x3b6   :  { %2486 = vmatprep.mubr.f32.mxu0 %v14483_v10 }
 0x3b9   :  { %2487 = vmatmul.mubr.f32.gmra.mrb[82].mxu0 %v11962_v3 }
 0x3ba   :  { %2491 = vmatprep.mubr.f32.mxu0 %v14484_v32 }
 0x3bd   :  { %2492 = vmatmul.mubr.f32.gmra.mrb[84].mxu0 %v11974_v31 }
 0x3be   :  { %2496 = vmatprep.mubr.f32.mxu0 %v14485_v53 }
 0x3c1   :  { %2497 = vmatmul.mubr.f32.gmra.mrb[86].mxu0 %v11986_v44 }
 0x3c2   :  { %2501 = vmatprep.mubr.f32.mxu0 %v14486_v57 }
 0x3c5   :  { %2502 = vmatmul.mubr.f32.gmra.mrb[88].mxu0 %v11998_v46 }
 0x3c6   :  { %2506 = vmatprep.mubr.f32.mxu0 %v14487_v48 }
 0x3c9   :  { %2507 = vmatmul.mubr.f32.gmra.mrb[90].mxu0 %v12010_v39 }
 0x3ca   :  { %2511 = vmatprep.mubr.f32.mxu0 %v12013_v11 }
 0x3cd   :  { %2512 = vmatmul.mubr.f32.gmra.mrb[92].mxu0 %v12022_v8 }
 0x3ce   :  { %2516 = vmatprep.mubr.f32.mxu0 %v12025_v27 }
 0x3d1   :  { %2517 = vmatmul.mubr.f32.gmra.mrb[94].mxu0 %v12032_v15 }
 0x3d2   :  { %2521 = vmatprep.mubr.f32.mxu0 %v11763_v14  ;;  %v14488_v14 = vld [vmem:[#allocation21_spill] sm:$0xff] }
 0x3d5   :  { %2522 = vmatmul.mubr.f32.gmra.mrb[96].mxu0 %v11767_v63  ;;  %v14489_v63 = vld [vmem:[#allocation22_spill] sm:$0xff] }
 0x3d6   :  { %2526 = vmatprep.mubr.f32.mxu0 %v11771_v0  ;;  %v14490_v0 = vld [vmem:[#allocation24_spill] sm:$0xff] }
 0x3d9   :  { %2527 = vmatmul.mubr.f32.gmra.mrb[98].mxu0 %v11775_v40  ;;  %v14491_v40 = vld [vmem:[#allocation23_spill] sm:$0xff] }
 0x3da   :  { %2531 = vmatprep.mubr.f32.mxu0 %v11779_v33  ;;  %v14492_v33 = vld [vmem:[#allocation26_spill] sm:$0xff] }
 0x3dd   :  { %2532 = vmatmul.mubr.f32.gmra.mrb[100].mxu0 %v11783_v55  ;;  %v14493_v55 = vld [vmem:[#allocation28_spill] sm:$0xff] }
 0x3de   :  { %2536 = vmatprep.mubr.f32.mxu0 %v11791_v35  ;;  %v14494_v35 = vld [vmem:[#allocation30_spill] sm:$0xff] }
 0x3e1   :  { %2537 = vmatmul.mubr.f32.gmra.mrb[102].mxu0 %v11795_v28  ;;  %v14495_v28 = vld [vmem:[#allocation32_spill] sm:$0xff] }
 0x3e2   :  { %2541 = vmatprep.mubr.f32.mxu0 %v11798_v34  ;;  %v12393_v34 = vld [vmem:[%s14133_s6] ss:$0 sm:$0xff] }
 0x3e5   :  { %2542 = vmatmul.mubr.f32.gmra.mrb[104].mxu0 %v11801_v13 }
 0x3e6   :  { %2546 = vmatprep.mubr.f32.mxu0 %v11808_v29 }
 0x3e9   :  { %2547 = vmatmul.mubr.f32.gmra.mrb[106].mxu0 %v11811_v5 }
 0x3ea   :  { %2551 = vmatprep.mubr.f32.mxu0 %v11814_v49 }
 0x3ed   :  { %2552 = vmatmul.mubr.f32.gmra.mrb[108].mxu0 %v11817_v59 }
 0x3ee   :  { %2556 = vmatprep.mubr.f32.mxu0 %v11820_v9 }
 0x3f1   :  { %2557 = vmatmul.mubr.f32.gmra.mrb[110].mxu0 %v11823_v41 }
 0x3f2   :  { %2561 = vmatprep.mubr.f32.mxu0 %v11826_v47 }
 0x3f5   :  { %2562 = vmatmul.mubr.f32.gmra.mrb[112].mxu0 %v11829_v60 }
 0x3f6   :  { %2566 = vmatprep.mubr.f32.mxu0 %v11832_v43 }
 0x3f9   :  { %2567 = vmatmul.mubr.f32.gmra.mrb[114].mxu0 %v11835_v42 }
 0x3fa   :  { %2571 = vmatprep.mubr.f32.mxu0 %v11838_v50 }
 0x3fd   :  { %2572 = vmatmul.mubr.f32.gmra.mrb[116].mxu0 %v11841_v30 }
 0x3fe   :  { %2576 = vmatprep.mubr.f32.mxu0 %v11848_v19  ;;  %v14496_v19 = vld [vmem:[#allocation27_spill] sm:$0xff] }
 0x401   :  { %2577 = vmatmul.mubr.f32.gmra.mrb[118].mxu0 %v11851_v22 }
 0x402   :  { %2581 = vmatprep.mubr.f32.mxu0 %v14488_v14 }
 0x405   :  { %2582 = vmatmul.mubr.f32.gmra.mrb[120].mxu0 %v14489_v63 }
 0x406   :  { %2586 = vmatprep.mubr.f32.mxu0 %v14490_v0 }
 0x409   :  { %2587 = vmatmul.mubr.f32.gmra.mrb[122].mxu0 %v14491_v40 }
 0x40a   :  { %2591 = vmatprep.mubr.f32.mxu0 %v14492_v33 }
 0x40d   :  { %2592 = vmatmul.mubr.f32.gmra.mrb[124].mxu0 %v14493_v55 }
 0x40e   :  { %2596 = vmatprep.mubr.f32.mxu0 %v14494_v35 }
 0x411   :  { %2597 = vmatmul.mubr.f32.gmra.mrb[126].mxu0 %v14495_v28 }
 0x468   :  { %v2443_v13 = vpop.f32.mrb[64].mxu0 }
 0x469   :  { %v12396_v29 = vadd.f32 %v12393_v34, %v2443_v13  ;;  %v2445_v5 = vpop.f32.mrb[65].mxu0 }
 0x46b   :  { %v2667_v49 = vsel %vm2666_vm13, %v12396_v29, -inf  ;;  %v2602_v9 = vmax.f32 %v12396_v29, 0.0 }
 0x46c   :  { %v2448_v59 = vpop.f32.mrb[66].mxu0  ;;  %2668 = vmax.xlane.f32.xlu0 %v2667_v49 }
 0x46d   :  { %v12402_v41 = vadd.f32 %v12393_v34, %v2448_v59  ;;  %v2450_v47 = vpop.f32.mrb[67].mxu0  ;;  %v2634_v22 = vmul.f32 %v2602_v9, %v14496_v19 }
 0x46f   :  { %v2603_v60 = vmax.f32 %v12402_v41, 0.0  ;;  %v2670_v43 = vsel %vm2666_vm13, %v12402_v41, -inf }
 0x470   :  { %v2453_v42 = vpop.f32.mrb[68].mxu0  ;;  %2671 = vmax.xlane.f32.xlu1 %v2670_v43 }
 0x471   :  { %v12408_v50 = vadd.f32 %v12393_v34, %v2453_v42  ;;  %v2455_v30 = vpop.f32.mrb[69].mxu0  ;;  %v2635_v4 = vmul.f32 %v2603_v60, %v14497_v12 }
 0x473   :  { %v2673_v54 = vsel %vm2666_vm13, %v12408_v50, -inf  ;;  %v12414_v27 = vpack.c.bf16 %v2635_v4, %v2634_v22 }
 0x474   :  { %v2458_v56 = vpop.f32.mrb[70].mxu0  ;;  %2674 = vmax.xlane.f32.xlu0 %v2673_v54 }
 0x475   :  { %14498 = vst [vmem:[#allocation18_spill] sm:$0xff] %v12414_v27  ;;  %v12417_v11 = vadd.f32 %v12393_v34, %v2458_v56  ;;  %v2460_v45 = vpop.f32.mrb[71].mxu0  ;;  %9792 = vmatpush3.bf16.msra.mxu0 %v12414_v27 }
 0x476   :  { %9793 = vmatprep.subr.bf16.mxu0 %v14378_v61 }
 0x477   :  { %v2676_v3 = vsel %vm2666_vm13, %v12417_v11, -inf }
 0x478   :  { %v2463_v31 = vpop.f32.mrb[72].mxu0  ;;  %2677 = vmax.xlane.f32.xlu0 %v2676_v3 }
 0x479   :  { %v12424_v44 = vadd.f32 %v12393_v34, %v2463_v31  ;;  %v2465_v46 = vpop.f32.mrb[73].mxu0 }
 0x47b   :  { %v2679_v39 = vsel %vm2666_vm13, %v12424_v44, -inf }
 0x47c   :  { %v2468_v8 = vpop.f32.mrb[74].mxu0  ;;  %2680 = vmax.xlane.f32.xlu1 %v2679_v39 }
 0x47d   :  { %v12429_v15 = vadd.f32 %v12393_v34, %v2468_v8  ;;  %v2470_v62 = vpop.f32.mrb[75].mxu0 }
 0x47f   :  { %v2682_v18 = vsel %vm2666_vm13, %v12429_v15, -inf }
 0x480   :  { %v2473_v25 = vpop.f32.mrb[76].mxu0  ;;  %2683 = vmax.xlane.f32.xlu0 %v2682_v18 }
 0x481   :  { %v12434_v16 = vadd.f32 %v12393_v34, %v2473_v25  ;;  %v2475_v51 = vpop.f32.mrb[77].mxu0 }
 0x483   :  { %v2685_v58 = vsel %vm2666_vm13, %v12434_v16, -inf }
 0x484   :  { %v2478_v36 = vpop.f32.mrb[78].mxu0  ;;  %2686 = vmax.xlane.f32.xlu1 %v2685_v58 }
 0x485   :  { %v12439_v37 = vadd.f32 %v12393_v34, %v2478_v36  ;;  %v2480_v26 = vpop.f32.mrb[79].mxu0 }
 0x487   :  { %v2688_v21 = vsel %vm2666_vm13, %v12439_v37, -inf }
 0x488   :  { %v2483_v1 = vpop.f32.mrb[80].mxu0  ;;  %2689 = vmax.xlane.f32.xlu0 %v2688_v21 }
 0x489   :  { %v12444_v20 = vadd.f32 %v12393_v34, %v2483_v1  ;;  %v2485_v2 = vpop.f32.mrb[81].mxu0 }
 0x48b   :  { %14499 = vst [vmem:[#allocation19_spill] sm:$0xff] %v12444_v20  ;;  %v2691_v7 = vsel %vm2666_vm13, %v12444_v20, -inf }
 0x48c   :  { %v2488_v52 = vpop.f32.mrb[82].mxu0  ;;  %2692 = vmax.xlane.f32.xlu1 %v2691_v7 }
 0x48d   :  { %v12449_v10 = vadd.f32 %v12393_v34, %v2488_v52  ;;  %v2490_v32 = vpop.f32.mrb[83].mxu0 }
 0x48f   :  { %v2694_v53 = vsel %vm2666_vm13, %v12449_v10, -inf }
 0x490   :  { %v2493_v57 = vpop.f32.mrb[84].mxu0  ;;  %2695 = vmax.xlane.f32.xlu0 %v2694_v53 }
 0x491   :  { %v12454_v48 = vadd.f32 %v12393_v34, %v2493_v57  ;;  %v2495_v14 = vpop.f32.mrb[85].mxu0 }
 0x493   :  { %14500 = vst [vmem:[#allocation20_spill] sm:$0xff] %v12454_v48  ;;  %v2697_v63 = vsel %vm2666_vm13, %v12454_v48, -inf }
 0x494   :  { %v2498_v0 = vpop.f32.mrb[86].mxu0  ;;  %2698 = vmax.xlane.f32.xlu1 %v2697_v63 }
 0x495   :  { %v12459_v40 = vadd.f32 %v12393_v34, %v2498_v0  ;;  %v2500_v33 = vpop.f32.mrb[87].mxu0 }
 0x497   :  { %14501 = vst [vmem:[#allocation34_spill] sm:$0xff] %v12459_v40  ;;  %v2700_v55 = vsel %vm2666_vm13, %v12459_v40, -inf }
 0x498   :  { %v2503_v35 = vpop.f32.mrb[88].mxu0  ;;  %2701 = vmax.xlane.f32.xlu0 %v2700_v55 }
 0x499   :  { %v12464_v28 = vadd.f32 %v12393_v34, %v2503_v35  ;;  %v2505_v13 = vpop.f32.mrb[89].mxu0 }
 0x49b   :  { %14502 = vst [vmem:[#allocation36_spill] sm:$0xff] %v12464_v28  ;;  %v2703_v5 = vsel %vm2666_vm13, %v12464_v28, -inf }
 0x49c   :  { %v2508_v49 = vpop.f32.mrb[90].mxu0  ;;  %2704 = vmax.xlane.f32.xlu1 %v2703_v5 }
 0x49d   :  { %v12469_v59 = vadd.f32 %v12393_v34, %v2508_v49  ;;  %v2510_v9 = vpop.f32.mrb[91].mxu0 }
 0x49f   :  { %14503 = vst [vmem:[#allocation38_spill] sm:$0xff] %v12469_v59  ;;  %v2706_v47 = vsel %vm2666_vm13, %v12469_v59, -inf }
 0x4a0   :  { %v2513_v60 = vpop.f32.mrb[92].mxu0  ;;  %2707 = vmax.xlane.f32.xlu0 %v2706_v47 }
 0x4a1   :  { %v12474_v43 = vadd.f32 %v12393_v34, %v2513_v60  ;;  %v2515_v42 = vpop.f32.mrb[93].mxu0 }
 0x4a3   :  { %14504 = vst [vmem:[#allocation40_spill] sm:$0xff] %v12474_v43  ;;  %v2709_v30 = vsel %vm2666_vm13, %v12474_v43, -inf }
 0x4a4   :  { %v2518_v19 = vpop.f32.mrb[94].mxu0  ;;  %2710 = vmax.xlane.f32.xlu1 %v2709_v30 }
 0x4a5   :  { %v12479_v22 = vadd.f32 %v12393_v34, %v2518_v19  ;;  %v2520_v12 = vpop.f32.mrb[95].mxu0 }
 0x4a7   :  { %14505 = vst [vmem:[#allocation42_spill] sm:$0xff] %v12479_v22  ;;  %v2712_v4 = vsel %vm2666_vm13, %v12479_v22, -inf }
 0x4a8   :  { %v2523_v54 = vpop.f32.mrb[96].mxu0  ;;  %2713 = vmax.xlane.f32.xlu0 %v2712_v4 }
 0x4a9   :  { %v12484_v56 = vadd.f32 %v12393_v34, %v2523_v54  ;;  %v2525_v45 = vpop.f32.mrb[97].mxu0 }
 0x4ab   :  { %v2715_v3 = vsel %vm2666_vm13, %v12484_v56, -inf }
 0x4ac   :  { %v2528_v31 = vpop.f32.mrb[98].mxu0  ;;  %2716 = vmax.xlane.f32.xlu1 %v2715_v3 }
 0x4ad   :  { %v12489_v46 = vadd.f32 %v12393_v34, %v2528_v31  ;;  %v2530_v39 = vpop.f32.mrb[99].mxu0 }
 0x4af   :  { %v2718_v8 = vsel %vm2666_vm13, %v12489_v46, -inf }
 0x4b0   :  { %v2533_v62 = vpop.f32.mrb[100].mxu0  ;;  %2719 = vmax.xlane.f32.xlu0 %v2718_v8 }
 0x4b1   :  { %v12494_v18 = vadd.f32 %v12393_v34, %v2533_v62  ;;  %v2535_v25 = vpop.f32.mrb[101].mxu0 }
 0x4b3   :  { %v2721_v51 = vsel %vm2666_vm13, %v12494_v18, -inf }
 0x4b4   :  { %v2538_v58 = vpop.f32.mrb[102].mxu0  ;;  %2722 = vmax.xlane.f32.xlu1 %v2721_v51 }
 0x4b5   :  { %v12499_v36 = vadd.f32 %v12393_v34, %v2538_v58  ;;  %v2540_v26 = vpop.f32.mrb[103].mxu0 }
 0x4b7   :  { %v2724_v21 = vsel %vm2666_vm13, %v12499_v36, -inf }
 0x4b8   :  { %v2543_v1 = vpop.f32.mrb[104].mxu0  ;;  %2725 = vmax.xlane.f32.xlu0 %v2724_v21 }
 0x4b9   :  { %v12504_v2 = vadd.f32 %v12393_v34, %v2543_v1  ;;  %v2545_v7 = vpop.f32.mrb[105].mxu0 }
 0x4bb   :  { %v2727_v52 = vsel %vm2666_vm13, %v12504_v2, -inf }
 0x4bc   :  { %v2548_v32 = vpop.f32.mrb[106].mxu0  ;;  %2728 = vmax.xlane.f32.xlu1 %v2727_v52 }
 0x4bd   :  { %v12509_v53 = vadd.f32 %v12393_v34, %v2548_v32  ;;  %v2550_v57 = vpop.f32.mrb[107].mxu0 }
 0x4bf   :  { %v2730_v14 = vsel %vm2666_vm13, %v12509_v53, -inf }
 0x4c0   :  { %v2553_v63 = vpop.f32.mrb[108].mxu0  ;;  %2731 = vmax.xlane.f32.xlu0 %v2730_v14 }
 0x4c1   :  { %v12514_v0 = vadd.f32 %v12393_v34, %v2553_v63  ;;  %v2555_v33 = vpop.f32.mrb[109].mxu0 }
 0x4c3   :  { %v2733_v55 = vsel %vm2666_vm13, %v12514_v0, -inf }
 0x4c4   :  { %v2558_v35 = vpop.f32.mrb[110].mxu0  ;;  %2734 = vmax.xlane.f32.xlu1 %v2733_v55 }
 0x4c5   :  { %v12519_v13 = vadd.f32 %v12393_v34, %v2558_v35  ;;  %v2560_v5 = vpop.f32.mrb[111].mxu0 }
 0x4c7   :  { %v2736_v49 = vsel %vm2666_vm13, %v12519_v13, -inf }
 0x4c8   :  { %v2563_v9 = vpop.f32.mrb[112].mxu0  ;;  %2737 = vmax.xlane.f32.xlu0 %v2736_v49 }
 0x4c9   :  { %v12524_v47 = vadd.f32 %v12393_v34, %v2563_v9  ;;  %v2565_v60 = vpop.f32.mrb[113].mxu0 }
 0x4cb   :  { %14506 = vst [vmem:[#allocation44_spill] sm:$0xff] %v12524_v47  ;;  %v2739_v42 = vsel %vm2666_vm13, %v12524_v47, -inf }
 0x4cc   :  { %v2568_v30 = vpop.f32.mrb[114].mxu0  ;;  %2740 = vmax.xlane.f32.xlu1 %v2739_v42 }
 0x4cd   :  { %v12529_v19 = vadd.f32 %v12393_v34, %v2568_v30  ;;  %v2570_v12 = vpop.f32.mrb[115].mxu0 }
 0x4cf   :  { %14507 = vst [vmem:[#allocation46_spill] sm:$0xff] %v12529_v19  ;;  %v2742_v4 = vsel %vm2666_vm13, %v12529_v19, -inf }
 0x4d0   :  { %v2573_v54 = vpop.f32.mrb[116].mxu0  ;;  %2743 = vmax.xlane.f32.xlu0 %v2742_v4 }
 0x4d1   :  { %v12534_v45 = vadd.f32 %v12393_v34, %v2573_v54  ;;  %v2575_v3 = vpop.f32.mrb[117].mxu0 }
 0x4d3   :  { %14508 = vst [vmem:[#allocation25_spill] sm:$0xff] %v12534_v45  ;;  %v2745_v31 = vsel %vm2666_vm13, %v12534_v45, -inf }
 0x4d4   :  { %v2578_v39 = vpop.f32.mrb[118].mxu0  ;;  %2746 = vmax.xlane.f32.xlu1 %v2745_v31 }
 0x4d5   :  { %v12539_v8 = vadd.f32 %v12393_v34, %v2578_v39  ;;  %v2580_v62 = vpop.f32.mrb[119].mxu0 }
 0x4d7   :  { %14509 = vst [vmem:[#allocation21_spill] sm:$0xff] %v12539_v8  ;;  %v2748_v25 = vsel %vm2666_vm13, %v12539_v8, -inf }
 0x4d8   :  { %v2583_v51 = vpop.f32.mrb[120].mxu0  ;;  %2749 = vmax.xlane.f32.xlu0 %v2748_v25 }
 0x4d9   :  { %v12544_v58 = vadd.f32 %v12393_v34, %v2583_v51  ;;  %v2585_v26 = vpop.f32.mrb[121].mxu0 }
 0x4db   :  { %14510 = vst [vmem:[#allocation22_spill] sm:$0xff] %v12544_v58  ;;  %v2751_v21 = vsel %vm2666_vm13, %v12544_v58, -inf }
 0x4dc   :  { %v2588_v1 = vpop.f32.mrb[122].mxu0  ;;  %2752 = vmax.xlane.f32.xlu1 %v2751_v21 }
 0x4dd   :  { %v12549_v7 = vadd.f32 %v12393_v34, %v2588_v1  ;;  %v2590_v52 = vpop.f32.mrb[123].mxu0 }
 0x4df   :  { %14511 = vst [vmem:[#allocation24_spill] sm:$0xff] %v12549_v7  ;;  %v2754_v32 = vsel %vm2666_vm13, %v12549_v7, -inf }
 0x4e0   :  { %v2593_v57 = vpop.f32.mrb[124].mxu0  ;;  %2755 = vmax.xlane.f32.xlu0 %v2754_v32 }
 0x4e1   :  { %v12554_v14 = vadd.f32 %v12393_v34, %v2593_v57  ;;  %v2595_v63 = vpop.f32.mrb[125].mxu0 }
 0x4e3   :  { %14512 = vst [vmem:[#allocation23_spill] sm:$0xff] %v12554_v14  ;;  %v2757_v33 = vsel %vm2666_vm13, %v12554_v14, -inf }
 0x4e4   :  { %v2598_v55 = vpop.f32.mrb[126].mxu0  ;;  %2758 = vmax.xlane.f32.xlu1 %v2757_v33 }
 0x4e5   :  { %v12559_v35 = vadd.f32 %v12393_v34, %v2598_v55  ;;  %v2600_v5 = vpop.f32.mrb[127].mxu0 }
 0x4e7   :  { %14513 = vst [vmem:[#allocation26_spill] sm:$0xff] %v12559_v35  ;;  %v2760_v49 = vsel %vm2666_vm13, %v12559_v35, -inf  ;;  %vm14611_vm13 = vmmov %vm14562_vm0 }
 0x4e8   :  { %2761 = vmax.xlane.f32.xlu0 %v2760_v49 }
 0x4f9   :  { %v2669_v9 = vpop.xlane.xlu0 %2668 }
 0x4fa   :  { %v2763_v60 = vsub.f32 %v12396_v29, %v2669_v9 }
 0x4fc   :  { %v2795_v42 = vmul.f32 1.442695, %v2763_v60 }
 0x4fd   :  { %v2672_v30 = vpop.xlane.xlu1 %2671 }
 0x4fe   :  { %10201 = vpow2.f32 %v2795_v42  ;;  %v2764_v12 = vsub.f32 %v12402_v41, %v2672_v30 }
 0x500   :  { %v2797_v4 = vmul.f32 1.442695, %v2764_v12 }
 0x501   :  { %v2675_v54 = vpop.xlane.xlu0 %2674 }
 0x502   :  { %10203 = vpow2.f32 %v2797_v4  ;;  %v2765_v3 = vsub.f32 %v12408_v50, %v2675_v54 }
 0x504   :  { %v2799_v34 = vmul.f32 1.442695, %v2765_v3 }
 0x505   :  { %v2678_v31 = vpop.xlane.xlu0 %2677 }
 0x506   :  { %10205 = vpow2.f32 %v2799_v34  ;;  %v2766_v39 = vsub.f32 %v12417_v11, %v2678_v31 }
 0x508   :  { %v12567_v62 = vpop.eup %10201  ;;  %v2801_v25 = vmul.f32 1.442695, %v2766_v39 }
 0x509   :  { %v2681_v51 = vpop.xlane.xlu1 %2680  ;;  %2891 = vrot.lane.b32.xlu1 %v12567_v62, %s10540_s16 }
 0x50a   :  { %10207 = vpow2.f32 %v2801_v25  ;;  %v2767_v26 = vsub.f32 %v12424_v44, %v2681_v51 }
 0x50c   :  { %v12572_v21 = vpop.eup %10203  ;;  %v2803_v1 = vmul.f32 1.442695, %v2767_v26 }
 0x50d   :  { %2893 = vrot.lane.b32.xlu0 %v12572_v21, %s10540_s16  ;;  %v2684_v52 = vpop.xlane.xlu0 %2683 }
 0x50e   :  { %10209 = vpow2.f32 %v2803_v1  ;;  %v2768_v32 = vsub.f32 %v12429_v15, %v2684_v52 }
 0x510   :  { %v12577_v57 = vpop.eup %10205  ;;  %v2805_v63 = vmul.f32 1.442695, %v2768_v32 }
 0x511   :  { %v2687_v33 = vpop.xlane.xlu1 %2686  ;;  %2895 = vrot.lane.b32.xlu1 %v12577_v57, %s10540_s16 }
 0x512   :  { %10211 = vpow2.f32 %v2805_v63  ;;  %v2769_v55 = vsub.f32 %v12434_v16, %v2687_v33 }
 0x514   :  { %v12582_v5 = vpop.eup %10207  ;;  %v2807_v49 = vmul.f32 1.442695, %v2769_v55 }
 0x515   :  { %2897 = vrot.lane.b32.xlu1 %v12582_v5, %s10540_s16  ;;  %v2690_v9 = vpop.xlane.xlu0 %2689 }
 0x516   :  { %10213 = vpow2.f32 %v2807_v49  ;;  %v2770_v60 = vsub.f32 %v12439_v37, %v2690_v9 }
 0x518   :  { %v12587_v42 = vpop.eup %10209  ;;  %v2809_v30 = vmul.f32 1.442695, %v2770_v60 }
 0x519   :  { %v2693_v12 = vpop.xlane.xlu1 %2692  ;;  %2899 = vrot.lane.b32.xlu0 %v12587_v42, %s10540_s16 }
 0x51a   :  { %10215 = vpow2.f32 %v2809_v30  ;;  %v2771_v4 = vsub.f32 %v12444_v20, %v2693_v12 }
 0x51c   :  { %v12592_v54 = vpop.eup %10211  ;;  %v2811_v3 = vmul.f32 1.442695, %v2771_v4 }
 0x51d   :  { %2901 = vrot.lane.b32.xlu1 %v12592_v54, %s10540_s16  ;;  %v2696_v34 = vpop.xlane.xlu0 %2695 }
 0x51e   :  { %10217 = vpow2.f32 %v2811_v3  ;;  %v2772_v31 = vsub.f32 %v12449_v10, %v2696_v34 }
 0x520   :  { %v12597_v39 = vpop.eup %10213  ;;  %v2813_v25 = vmul.f32 1.442695, %v2772_v31 }
 0x521   :  { %v2699_v51 = vpop.xlane.xlu1 %2698  ;;  %2903 = vrot.lane.b32.xlu0 %v12597_v39, %s10540_s16 }
 0x522   :  { %10219 = vpow2.f32 %v2813_v25  ;;  %v2773_v26 = vsub.f32 %v12454_v48, %v2699_v51 }
 0x524   :  { %v12602_v1 = vpop.eup %10215  ;;  %v2815_v52 = vmul.f32 1.442695, %v2773_v26 }
 0x525   :  { %2905 = vrot.lane.b32.xlu1 %v12602_v1, %s10540_s16  ;;  %v2702_v32 = vpop.xlane.xlu0 %2701 }
 0x526   :  { %10221 = vpow2.f32 %v2815_v52  ;;  %v2774_v63 = vsub.f32 %v12459_v40, %v2702_v32 }
 0x528   :  { %v12607_v33 = vpop.eup %10217  ;;  %v2817_v55 = vmul.f32 1.442695, %v2774_v63 }
 0x529   :  { %v2705_v49 = vpop.xlane.xlu1 %2704  ;;  %2907 = vrot.lane.b32.xlu0 %v12607_v33, %s10540_s16 }
 0x52a   :  { %10223 = vpow2.f32 %v2817_v55  ;;  %v2775_v9 = vsub.f32 %v12464_v28, %v2705_v49 }
 0x52c   :  { %v12612_v60 = vpop.eup %10219  ;;  %v2819_v30 = vmul.f32 1.442695, %v2775_v9 }
 0x52d   :  { %2909 = vrot.lane.b32.xlu1 %v12612_v60, %s10540_s16  ;;  %v2708_v12 = vpop.xlane.xlu0 %2707 }
 0x52e   :  { %10225 = vpow2.f32 %v2819_v30  ;;  %v2776_v4 = vsub.f32 %v12469_v59, %v2708_v12 }
 0x530   :  { %v12617_v3 = vpop.eup %10221  ;;  %v2821_v34 = vmul.f32 1.442695, %v2776_v4 }
 0x531   :  { %v2711_v31 = vpop.xlane.xlu1 %2710  ;;  %2911 = vrot.lane.b32.xlu0 %v12617_v3, %s10540_s16 }
 0x532   :  { %10227 = vpow2.f32 %v2821_v34  ;;  %v2777_v25 = vsub.f32 %v12474_v43, %v2711_v31 }
 0x534   :  { %v12622_v51 = vpop.eup %10223  ;;  %v2823_v26 = vmul.f32 1.442695, %v2777_v25 }
 0x535   :  { %2913 = vrot.lane.b32.xlu1 %v12622_v51, %s10540_s16  ;;  %v2714_v52 = vpop.xlane.xlu0 %2713 }
 0x536   :  { %10229 = vpow2.f32 %v2823_v26  ;;  %v2778_v32 = vsub.f32 %v12479_v22, %v2714_v52 }
 0x538   :  { %v12627_v63 = vpop.eup %10225  ;;  %v2825_v55 = vmul.f32 1.442695, %v2778_v32 }
 0x539   :  { %v2717_v49 = vpop.xlane.xlu1 %2716  ;;  %2915 = vrot.lane.b32.xlu0 %v12627_v63, %s10540_s16 }
 0x53a   :  { %10231 = vpow2.f32 %v2825_v55  ;;  %v2779_v9 = vsub.f32 %v12484_v56, %v2717_v49 }
 0x53c   :  { %v12632_v30 = vpop.eup %10227  ;;  %v2827_v12 = vmul.f32 1.442695, %v2779_v9 }
 0x53d   :  { %2917 = vrot.lane.b32.xlu1 %v12632_v30, %s10540_s16  ;;  %v2720_v4 = vpop.xlane.xlu0 %2719 }
 0x53e   :  { %10233 = vpow2.f32 %v2827_v12  ;;  %v2780_v34 = vsub.f32 %v12489_v46, %v2720_v4 }
 0x540   :  { %v12637_v31 = vpop.eup %10229  ;;  %v2829_v25 = vmul.f32 1.442695, %v2780_v34 }
 0x541   :  { %v2723_v26 = vpop.xlane.xlu1 %2722  ;;  %2919 = vrot.lane.b32.xlu0 %v12637_v31, %s10540_s16 }
 0x542   :  { %10235 = vpow2.f32 %v2829_v25  ;;  %v2781_v52 = vsub.f32 %v12494_v18, %v2723_v26 }
 0x544   :  { %v12642_v32 = vpop.eup %10231  ;;  %v2831_v55 = vmul.f32 1.442695, %v2781_v52 }
 0x545   :  { %2921 = vrot.lane.b32.xlu1 %v12642_v32, %s10540_s16  ;;  %v2726_v49 = vpop.xlane.xlu0 %2725 }
 0x546   :  { %10237 = vpow2.f32 %v2831_v55  ;;  %v2782_v9 = vsub.f32 %v12499_v36, %v2726_v49 }
 0x548   :  { %v12647_v12 = vpop.eup %10233  ;;  %v2833_v4 = vmul.f32 1.442695, %v2782_v9 }
 0x549   :  { %v2729_v34 = vpop.xlane.xlu1 %2728  ;;  %2923 = vrot.lane.b32.xlu0 %v12647_v12, %s10540_s16 }
 0x54a   :  { %10239 = vpow2.f32 %v2833_v4  ;;  %v2783_v25 = vsub.f32 %v12504_v2, %v2729_v34 }
 0x54c   :  { %v12652_v26 = vpop.eup %10235  ;;  %v2835_v52 = vmul.f32 1.442695, %v2783_v25 }
 0x54d   :  { %2925 = vrot.lane.b32.xlu1 %v12652_v26, %s10540_s16  ;;  %v2732_v17 = vpop.xlane.xlu0 %2731 }
 0x54e   :  { %10241 = vpow2.f32 %v2835_v52  ;;  %v2784_v55 = vsub.f32 %v12509_v53, %v2732_v17 }
 0x550   :  { %v12657_v49 = vpop.eup %10237  ;;  %v2837_v9 = vmul.f32 1.442695, %v2784_v55 }
 0x551   :  { %v2735_v27 = vpop.xlane.xlu1 %2734  ;;  %2927 = vrot.lane.b32.xlu0 %v12657_v49, %s10540_s16 }
 0x552   :  { %10243 = vpow2.f32 %v2837_v9  ;;  %v2785_v4 = vsub.f32 %v12514_v0, %v2735_v27 }
 0x554   :  { %v12662_v34 = vpop.eup %10239  ;;  %v2839_v25 = vmul.f32 1.442695, %v2785_v4 }
 0x555   :  { %2929 = vrot.lane.b32.xlu1 %v12662_v34, %s10540_s16  ;;  %v2738_v38 = vpop.xlane.xlu0 %2737 }
 0x556   :  { %10245 = vpow2.f32 %v2839_v25  ;;  %v2786_v17 = vsub.f32 %v12519_v13, %v2738_v38 }
 0x558   :  { %v12667_v52 = vpop.eup %10241  ;;  %v2841_v55 = vmul.f32 1.442695, %v2786_v17 }
 0x559   :  { %v2741_v6 = vpop.xlane.xlu1 %2740  ;;  %2931 = vrot.lane.b32.xlu0 %v12667_v52, %s10540_s16 }
 0x55a   :  { %10247 = vpow2.f32 %v2841_v55  ;;  %v2787_v27 = vsub.f32 %v12524_v47, %v2741_v6 }
 0x55c   :  { %v12672_v9 = vpop.eup %10243  ;;  %v2843_v4 = vmul.f32 1.442695, %v2787_v27 }
 0x55d   :  { %2933 = vrot.lane.b32.xlu1 %v12672_v9, %s10540_s16  ;;  %v2744_v43 = vpop.xlane.xlu0 %2743 }
 0x55e   :  { %10249 = vpow2.f32 %v2843_v4  ;;  %v2788_v38 = vsub.f32 %v12529_v19, %v2744_v43 }
 0x560   :  { %v12677_v25 = vpop.eup %10245  ;;  %v2845_v17 = vmul.f32 1.442695, %v2788_v38 }
 0x561   :  { %v2747_v22 = vpop.xlane.xlu1 %2746  ;;  %2935 = vrot.lane.b32.xlu0 %v12677_v25, %s10540_s16 }
 0x562   :  { %10251 = vpow2.f32 %v2845_v17  ;;  %v2789_v6 = vsub.f32 %v12534_v45, %v2747_v22 }
 0x564   :  { %v12682_v55 = vpop.eup %10247  ;;  %v2847_v27 = vmul.f32 1.442695, %v2789_v6 }
 0x565   :  { %2937 = vrot.lane.b32.xlu1 %v12682_v55, %s10540_s16  ;;  %v2750_v28 = vpop.xlane.xlu0 %2749 }
 0x566   :  { %10253 = vpow2.f32 %v2847_v27  ;;  %v2790_v43 = vsub.f32 %v12539_v8, %v2750_v28 }
 0x568   :  { %v12687_v4 = vpop.eup %10249  ;;  %v2849_v38 = vmul.f32 1.442695, %v2790_v43 }
 0x569   :  { %v2753_v59 = vpop.xlane.xlu1 %2752  ;;  %2939 = vrot.lane.b32.xlu0 %v12687_v4, %s10540_s16 }
 0x56a   :  { %10255 = vpow2.f32 %v2849_v38  ;;  %v2791_v22 = vsub.f32 %v12544_v58, %v2753_v59 }
 0x56c   :  { %v12692_v17 = vpop.eup %10251  ;;  %v2851_v6 = vmul.f32 1.442695, %v2791_v22 }
 0x56d   :  { %2941 = vrot.lane.b32.xlu1 %v12692_v17, %s10540_s16  ;;  %v2756_v45 = vpop.xlane.xlu0 %2755 }
 0x56e   :  { %10257 = vpow2.f32 %v2851_v6  ;;  %v2792_v28 = vsub.f32 %v12549_v7, %v2756_v45 }
 0x570   :  { %v12697_v27 = vpop.eup %10253  ;;  %v2853_v43 = vmul.f32 1.442695, %v2792_v28 }
 0x571   :  { %2943 = vrot.lane.b32.xlu0 %v12697_v27, %s10540_s16  ;;  %v2759_v45 = vpop.xlane.xlu1 %2758 }
 0x572   :  { %10259 = vpow2.f32 %v2853_v43  ;;  %v2793_v7 = vsub.f32 %v12554_v14, %v2759_v45 }
 0x574   :  { %v12701_v38 = vpop.eup %10255  ;;  %v2855_v8 = vmul.f32 1.442695, %v2793_v7 }
 0x575   :  { %2945 = vrot.lane.b32.xlu1 %v12701_v38, %s10540_s16  ;;  %v2762_v43 = vpop.xlane.xlu0 %2761 }
 0x576   :  { %v2794_v48 = vsub.f32 %v12559_v35, %v2762_v43  ;;  %10261 = vpow2.f32 %v2855_v8 }
 0x578   :  { %v12705_v59 = vpop.eup %10257  ;;  %v2857_v47 = vmul.f32 1.442695, %v2794_v48 }
 0x579   :  { %2947 = vrot.lane.b32.xlu0 %v12705_v59, %s10540_s16 }
 0x57a   :  { %10263 = vpow2.f32 %v2857_v47 }
 0x57b   :  { %v2892_v6 = vpop.permute.xlu1 %2891 }
 0x57c   :  { %v12709_v22 = vpop.eup %10259  ;;  %v2988_v28 = vsel %vm2987_vm15, %v2892_v6, 0.0 }
 0x57d   :  { %2949 = vrot.lane.b32.xlu1 %v12709_v22, %s10540_s16 }
 0x57f   :  { %v2894_v58 = vpop.permute.xlu0 %2893 }
 0x580   :  { %v2991_v19 = vsel %vm2987_vm15, %v2894_v58, 0.0  ;;  %v12717_v40 = vpop.eup %10261 }
 0x583   :  { %v2896_v45 = vpop.permute.xlu1 %2895 }
 0x584   :  { %v12721_v6 = vpop.eup %10263  ;;  %v2994_v7 = vsel %vm2987_vm15, %v2896_v45, 0.0 }
 0x58b   :  { %v2900_v43 = vpop.permute.xlu0 %2899 }
 0x593   :  { %v2904_v35 = vpop.permute.xlu0 %2903 }
 0x594   :  { %v3006_v45 = vsel %vm2987_vm15, %v2904_v35, 0.0 }
 0x598   :  { %2989 = vadd.xlane.f32.xlu0 %v2988_v28  ;;  %v2898_v28 = vpop.permute.xlu1 %2897 }
 0x599   :  { %v2997_v58 = vsel %vm2987_vm15, %v2898_v28, 0.0 }
 0x59b   :  { %v2908_v23 = vpop.permute.xlu0 %2907 }
 0x59c   :  { %v2902_v48 = vpop.permute.xlu1 %2901 }
 0x59d   :  { %v3003_v47 = vsel %vm2987_vm15, %v2902_v48, 0.0 }
 0x5a0   :  { %v2906_v8 = vpop.permute.xlu1 %2905 }
 0x5a1   :  { %2992 = vadd.xlane.f32.xlu1 %v2991_v19  ;;  %v3000_v19 = vsel %vm2987_vm15, %v2900_v43, 0.0  ;;  %v3009_v14 = vsel %vm2987_vm15, %v2906_v8, 0.0 }
 0x5a3   :  { %v2912_v48 = vpop.permute.xlu0 %2911 }
 0x5a4   :  { %v2910_v20 = vpop.permute.xlu1 %2909  ;;  %v3018_v8 = vsel %vm2987_vm15, %v2912_v48, 0.0 }
 0x5a8   :  { %v2914_v43 = vpop.permute.xlu1 %2913 }
 0x5a9   :  { %v3021_v28 = vsel %vm2987_vm15, %v2914_v43, 0.0 }
 0x5ae   :  { %2951 = vrot.lane.b32.xlu0 %v12717_v40, %s10540_s16 }
 0x5b2   :  { %2953 = vrot.lane.b32.xlu1 %v12721_v6, %s10540_s16 }
 0x5cd   :  { %2995 = vadd.xlane.f32.xlu0 %v2994_v7  ;;  %v3015_v7 = vsel %vm2987_vm15, %v2910_v20, 0.0 }
 0x5d1   :  { %3001 = vadd.xlane.f32.xlu0 %v3000_v19  ;;  %v3012_v19 = vsel %vm2987_vm15, %v2908_v23, 0.0 }
 0x5d5   :  { %3004 = vadd.xlane.f32.xlu0 %v3003_v47  ;;  %v2918_v47 = vpop.permute.xlu1 %2917 }
 0x5d6   :  { %2998 = vadd.xlane.f32.xlu1 %v2997_v58  ;;  %v2916_v58 = vpop.permute.xlu0 %2915 }
 0x5d7   :  { %v3024_v20 = vsel %vm2987_vm15, %v2916_v58, 0.0 }
 0x5d9   :  { %3010 = vadd.xlane.f32.xlu0 %v3009_v14  ;;  %v3027_v14 = vsel %vm2987_vm15, %v2918_v47, 0.0  ;;  %v2922_v35 = vpop.permute.xlu1 %2921 }
 0x5da   :  { %3007 = vadd.xlane.f32.xlu1 %v3006_v45  ;;  %v2920_v45 = vpop.permute.xlu0 %2919  ;;  %v3033_v23 = vsel %vm2987_vm15, %v2922_v35, 0.0 }
 0x5db   :  { %v3030_v43 = vsel %vm2987_vm15, %v2920_v45, 0.0 }
 0x5dd   :  { %3016 = vadd.xlane.f32.xlu0 %v3015_v7  ;;  %v2926_v7 = vpop.permute.xlu1 %2925 }
 0x5de   :  { %3013 = vadd.xlane.f32.xlu1 %v3012_v19  ;;  %v2924_v19 = vpop.permute.xlu0 %2923  ;;  %v3039_v48 = vsel %vm2987_vm15, %v2926_v7, 0.0 }
 0x5df   :  { %v3036_v47 = vsel %vm2987_vm15, %v2924_v19, 0.0 }
 0x5e1   :  { %3022 = vadd.xlane.f32.xlu0 %v3021_v28  ;;  %v2930_v28 = vpop.permute.xlu1 %2929 }
 0x5e2   :  { %3019 = vadd.xlane.f32.xlu1 %v3018_v8  ;;  %v2928_v8 = vpop.permute.xlu0 %2927  ;;  %v3045_v58 = vsel %vm2987_vm15, %v2930_v28, 0.0 }
 0x5e3   :  { %v3042_v35 = vsel %vm2987_vm15, %v2928_v8, 0.0 }
 0x5e5   :  { %3028 = vadd.xlane.f32.xlu0 %v3027_v14  ;;  %v2934_v14 = vpop.permute.xlu1 %2933 }
 0x5e6   :  { %3025 = vadd.xlane.f32.xlu1 %v3024_v20  ;;  %v2932_v20 = vpop.permute.xlu0 %2931  ;;  %v3051_v45 = vsel %vm2987_vm15, %v2934_v14, 0.0 }
 0x5e7   :  { %v3048_v7 = vsel %vm2987_vm15, %v2932_v20, 0.0 }
 0x5e9   :  { %3034 = vadd.xlane.f32.xlu0 %v3033_v23  ;;  %v2938_v23 = vpop.permute.xlu1 %2937 }
 0x5ea   :  { %3031 = vadd.xlane.f32.xlu1 %v3030_v43  ;;  %v2936_v43 = vpop.permute.xlu0 %2935  ;;  %v3057_v19 = vsel %vm2987_vm15, %v2938_v23, 0.0 }
 0x5eb   :  { %v3054_v28 = vsel %vm2987_vm15, %v2936_v43, 0.0 }
 0x5ed   :  { %3040 = vadd.xlane.f32.xlu0 %v3039_v48  ;;  %v2942_v48 = vpop.permute.xlu1 %2941 }
 0x5ee   :  { %3037 = vadd.xlane.f32.xlu1 %v3036_v47  ;;  %v2940_v47 = vpop.permute.xlu0 %2939  ;;  %v3063_v8 = vsel %vm2987_vm15, %v2942_v48, 0.0 }
 0x5ef   :  { %v3060_v14 = vsel %vm2987_vm15, %v2940_v47, 0.0 }
 0x5f1   :  { %3046 = vadd.xlane.f32.xlu0 %v3045_v58  ;;  %v2946_v58 = vpop.permute.xlu1 %2945 }
 0x5f2   :  { %3043 = vadd.xlane.f32.xlu1 %v3042_v35  ;;  %v2944_v35 = vpop.permute.xlu0 %2943  ;;  %v3069_v20 = vsel %vm2987_vm15, %v2946_v58, 0.0 }
 0x5f3   :  { %v3066_v23 = vsel %vm2987_vm15, %v2944_v35, 0.0 }
 0x5f5   :  { %3052 = vadd.xlane.f32.xlu0 %v3051_v45  ;;  %v2950_v45 = vpop.permute.xlu1 %2949 }
 0x5f6   :  { %3049 = vadd.xlane.f32.xlu1 %v3048_v7  ;;  %v2948_v7 = vpop.permute.xlu0 %2947  ;;  %v3075_v43 = vsel %vm2987_vm15, %v2950_v45, 0.0 }
 0x5f9   :  { %3058 = vadd.xlane.f32.xlu0 %v3057_v19  ;;  %v3072_v19 = vsel %vm2987_vm15, %v2948_v7, 0.0 }
 0x5fa   :  { %3055 = vadd.xlane.f32.xlu1 %v3054_v28 }
 0x5fd   :  { %3064 = vadd.xlane.f32.xlu0 %v3063_v8 }
 0x5fe   :  { %3061 = vadd.xlane.f32.xlu1 %v3060_v14 }
 0x601   :  { %3070 = vadd.xlane.f32.xlu0 %v3069_v20 }
 0x602   :  { %3067 = vadd.xlane.f32.xlu1 %v3066_v23 }
 0x605   :  { %3076 = vadd.xlane.f32.xlu0 %v3075_v43 }
 0x606   :  { %3073 = vadd.xlane.f32.xlu1 %v3072_v19 }
 0x625   :  { %v2990_v48 = vpop.xlane.xlu0 %2989 }
 0x626   :  { %10265 = vrcp.f32 %v2990_v48 }
 0x629   :  { %v2952_v28 = vpop.permute.xlu0 %2951 }
 0x62a   :  { %v3078_v47 = vsel %vm2987_vm15, %v2952_v28, 0.0 }
 0x62b   :  { %3079 = vadd.xlane.f32.xlu1 %v3078_v47 }
 0x62e   :  { %v2993_v8 = vpop.xlane.xlu1 %2992 }
 0x62f   :  { %10267 = vrcp.f32 %v2993_v8 }
 0x630   :  { %v10266_v35 = vpop.eup %10265 }
 0x631   :  { %v12756_v20 = vmul.f32 %v10266_v35, %v12567_v62 }
 0x632   :  { %v2954_v58 = vpop.permute.xlu1 %2953 }
 0x633   :  { %v3081_v14 = vsel %vm2987_vm15, %v2954_v58, 0.0 }
 0x634   :  { %3082 = vadd.xlane.f32.xlu0 %v3081_v14 }
 0x639   :  { %v10268_v45 = vpop.eup %10267 }
 0x63a   :  { %v12761_v23 = vmul.f32 %v10268_v45, %v12572_v21 }
 0x63c   :  { %3180 = vrot.lane.b32.xlu1 %v12756_v20, %s10540_s16 }
 0x64a   :  { %3182 = vrot.lane.b32.xlu0 %v12761_v23, %s10540_s16 }
 0x65a   :  { %v2996_v7 = vpop.xlane.xlu0 %2995 }
 0x65b   :  { %10269 = vrcp.f32 %v2996_v7 }
 0x65e   :  { %v3002_v43 = vpop.xlane.xlu0 %3001 }
 0x65f   :  { %10271 = vrcp.f32 %v3002_v43 }
 0x662   :  { %v3005_v19 = vpop.xlane.xlu0 %3004 }
 0x663   :  { %v2999_v48 = vpop.xlane.xlu1 %2998 }
 0x664   :  { %10273 = vrcp.f32 %v2999_v48 }
 0x665   :  { %v10270_v62 = vpop.eup %10269  ;;  %10275 = vrcp.f32 %v3005_v19 }
 0x666   :  { %v3011_v28 = vpop.xlane.xlu0 %3010  ;;  %v12766_v47 = vmul.f32 %v10270_v62, %v12577_v57 }
 0x667   :  { %v3008_v8 = vpop.xlane.xlu1 %3007 }
 0x668   :  { %10277 = vrcp.f32 %v3008_v8  ;;  %3184 = vrot.lane.b32.xlu1 %v12766_v47, %s10540_s16 }
 0x669   :  { %v10272_v21 = vpop.eup %10271  ;;  %10279 = vrcp.f32 %v3011_v28 }
 0x66a   :  { %v3017_v58 = vpop.xlane.xlu0 %3016  ;;  %v12771_v14 = vmul.f32 %v10272_v21, %v12587_v42 }
 0x66b   :  { %v3014_v35 = vpop.xlane.xlu1 %3013 }
 0x66c   :  { %10281 = vrcp.f32 %v3014_v35  ;;  %3188 = vrot.lane.b32.xlu0 %v12771_v14, %s10540_s16 }
 0x66d   :  { %10283 = vrcp.f32 %v3017_v58 }
 0x66e   :  { %v10274_v45 = vpop.eup %10273  ;;  %v3023_v57 = vpop.xlane.xlu0 %3022 }
 0x66f   :  { %v3020_v7 = vpop.xlane.xlu1 %3019  ;;  %v12776_v43 = vmul.f32 %v10274_v45, %v12582_v5  ;;  %v10276_v19 = vpop.eup %10275 }
 0x670   :  { %10285 = vrcp.f32 %v3020_v7  ;;  %v12784_v8 = vmul.f32 %v10276_v19, %v12592_v54 }
 0x671   :  { %3186 = vrot.lane.b32.xlu1 %v12776_v43, %s10540_s16  ;;  %10287 = vrcp.f32 %v3023_v57 }
 0x672   :  { %v10278_v48 = vpop.eup %10277  ;;  %v3029_v42 = vpop.xlane.xlu0 %3028 }
 0x673   :  { %v3026_v62 = vpop.xlane.xlu1 %3025  ;;  %v12781_v28 = vmul.f32 %v10278_v48, %v12597_v39  ;;  %v10280_v21 = vpop.eup %10279 }
 0x674   :  { %10289 = vrcp.f32 %v3026_v62  ;;  %v12794_v39 = vmul.f32 %v10280_v21, %v12602_v1 }
 0x675   :  { %3192 = vrot.lane.b32.xlu0 %v12781_v28, %s10540_s16  ;;  %3190 = vrot.lane.b32.xlu1 %v12784_v8, %s10540_s16  ;;  %10291 = vrcp.f32 %v3029_v42 }
 0x676   :  { %v10282_v5 = vpop.eup %10281  ;;  %v3035_v58 = vpop.xlane.xlu0 %3034 }
 0x677   :  { %v3032_v35 = vpop.xlane.xlu1 %3031  ;;  %v12791_v45 = vmul.f32 %v10282_v5, %v12607_v33  ;;  %v10284_v54 = vpop.eup %10283 }
 0x678   :  { %10293 = vrcp.f32 %v3032_v35  ;;  %v12804_v33 = vmul.f32 %v10284_v54, %v12612_v60 }
 0x679   :  { %3196 = vrot.lane.b32.xlu0 %v12791_v45, %s10540_s16  ;;  %3194 = vrot.lane.b32.xlu1 %v12794_v39, %s10540_s16  ;;  %10295 = vrcp.f32 %v3035_v58 }
 0x67a   :  { %v10286_v57 = vpop.eup %10285  ;;  %v3041_v7 = vpop.xlane.xlu0 %3040 }
 0x67b   :  { %v3038_v19 = vpop.xlane.xlu1 %3037  ;;  %v12801_v48 = vmul.f32 %v10286_v57, %v12617_v3  ;;  %v10288_v1 = vpop.eup %10287 }
 0x67c   :  { %10297 = vrcp.f32 %v3038_v19  ;;  %v12814_v3 = vmul.f32 %v10288_v1, %v12622_v51 }
 0x67d   :  { %3200 = vrot.lane.b32.xlu0 %v12801_v48, %s10540_s16  ;;  %3198 = vrot.lane.b32.xlu1 %v12804_v33, %s10540_s16  ;;  %10299 = vrcp.f32 %v3041_v7 }
 0x67e   :  { %v10290_v42 = vpop.eup %10289  ;;  %v3047_v62 = vpop.xlane.xlu0 %3046  ;;  %14515 = vst [vmem:[#allocation30_spill] sm:$0xff] %v12814_v3 }
 0x67f   :  { %v3044_v21 = vpop.xlane.xlu1 %3043  ;;  %v12811_v5 = vmul.f32 %v10290_v42, %v12627_v63  ;;  %v10292_v60 = vpop.eup %10291 }
 0x680   :  { %10301 = vrcp.f32 %v3044_v21  ;;  %v12824_v63 = vmul.f32 %v10292_v60, %v12632_v30 }
 0x681   :  { %14514 = vst [vmem:[#allocation28_spill] sm:$0xff] %v12811_v5  ;;  %3204 = vrot.lane.b32.xlu0 %v12811_v5, %s10540_s16  ;;  %3202 = vrot.lane.b32.xlu1 %v12814_v3, %s10540_s16  ;;  %10303 = vrcp.f32 %v3047_v62 }
 0x682   :  { %v10294_v58 = vpop.eup %10293  ;;  %v3053_v35 = vpop.xlane.xlu0 %3052  ;;  %14517 = vst [vmem:[#allocation27_spill] sm:$0xff] %v12824_v63 }
 0x683   :  { %v3050_v54 = vpop.xlane.xlu1 %3049  ;;  %v12821_v57 = vmul.f32 %v10294_v58, %v12637_v31  ;;  %v10296_v51 = vpop.eup %10295 }
 0x684   :  { %10305 = vrcp.f32 %v3050_v54  ;;  %v12834_v31 = vmul.f32 %v10296_v51, %v12642_v32 }
 0x685   :  { %14516 = vst [vmem:[#allocation32_spill] sm:$0xff] %v12821_v57  ;;  %3208 = vrot.lane.b32.xlu0 %v12821_v57, %s10540_s16  ;;  %3206 = vrot.lane.b32.xlu1 %v12824_v63, %s10540_s16  ;;  %10307 = vrcp.f32 %v3053_v35 }
 0x686   :  { %v10298_v7 = vpop.eup %10297  ;;  %v3059_v19 = vpop.xlane.xlu0 %3058 }
 0x687   :  { %v3056_v1 = vpop.xlane.xlu1 %3055  ;;  %v12831_v42 = vmul.f32 %v10298_v7, %v12647_v12  ;;  %v10300_v30 = vpop.eup %10299 }
 0x688   :  { %10309 = vrcp.f32 %v3056_v1  ;;  %v12844_v12 = vmul.f32 %v10300_v30, %v12652_v26 }
 0x689   :  { %3212 = vrot.lane.b32.xlu0 %v12831_v42, %s10540_s16  ;;  %3210 = vrot.lane.b32.xlu1 %v12834_v31, %s10540_s16  ;;  %10311 = vrcp.f32 %v3059_v19 }
 0x68a   :  { %v10302_v62 = vpop.eup %10301  ;;  %v3065_v21 = vpop.xlane.xlu0 %3064 }
 0x68b   :  { %v3062_v60 = vpop.xlane.xlu1 %3061  ;;  %v12841_v58 = vmul.f32 %v10302_v62, %v12657_v49  ;;  %v10304_v32 = vpop.eup %10303 }
 0x68c   :  { %10313 = vrcp.f32 %v3062_v60  ;;  %v12854_v49 = vmul.f32 %v10304_v32, %v12662_v34 }
 0x68d   :  { %3216 = vrot.lane.b32.xlu0 %v12841_v58, %s10540_s16  ;;  %3214 = vrot.lane.b32.xlu1 %v12844_v12, %s10540_s16  ;;  %10315 = vrcp.f32 %v3065_v21 }
 0x68e   :  { %v10306_v35 = vpop.eup %10305  ;;  %v3071_v54 = vpop.xlane.xlu0 %3070 }
 0x68f   :  { %v3068_v51 = vpop.xlane.xlu1 %3067  ;;  %v12851_v7 = vmul.f32 %v10306_v35, %v12667_v52  ;;  %v10308_v26 = vpop.eup %10307 }
 0x690   :  { %10317 = vrcp.f32 %v3068_v51  ;;  %v12864_v52 = vmul.f32 %v10308_v26, %v12672_v9 }
 0x691   :  { %14518 = vst [vmem:[#allocation33_spill] sm:$0xff] %v12851_v7  ;;  %3220 = vrot.lane.b32.xlu0 %v12851_v7, %s10540_s16  ;;  %3218 = vrot.lane.b32.xlu1 %v12854_v49, %s10540_s16  ;;  %10319 = vrcp.f32 %v3071_v54 }
 0x692   :  { %v10310_v19 = vpop.eup %10309  ;;  %v3077_v1 = vpop.xlane.xlu0 %3076  ;;  %14520 = vst [vmem:[#allocation69_spill] sm:$0xff] %v12864_v52 }
 0x693   :  { %v3074_v30 = vpop.xlane.xlu1 %3073  ;;  %v12861_v62 = vmul.f32 %v10310_v19, %v12677_v25  ;;  %v10312_v34 = vpop.eup %10311 }
 0x694   :  { %10321 = vrcp.f32 %v3074_v30  ;;  %v12874_v32 = vmul.f32 %v10312_v34, %v12682_v55 }
 0x695   :  { %14519 = vst [vmem:[#allocation68_spill] sm:$0xff] %v12861_v62  ;;  %3224 = vrot.lane.b32.xlu0 %v12861_v62, %s10540_s16  ;;  %3222 = vrot.lane.b32.xlu1 %v12864_v52, %s10540_s16  ;;  %10323 = vrcp.f32 %v3077_v1 }
 0x696   :  { %v10314_v21 = vpop.eup %10313  ;;  %14522 = vst [vmem:[#allocation71_spill] sm:$0xff] %v12874_v32 }
 0x697   :  { %v12871_v60 = vmul.f32 %v10314_v21, %v12687_v4  ;;  %v10316_v25 = vpop.eup %10315 }
 0x698   :  { %v12884_v54 = vmul.f32 %v10316_v25, %v12692_v17 }
 0x699   :  { %14521 = vst [vmem:[#allocation70_spill] sm:$0xff] %v12871_v60  ;;  %3228 = vrot.lane.b32.xlu0 %v12871_v60, %s10540_s16  ;;  %3226 = vrot.lane.b32.xlu1 %v12874_v32, %s10540_s16 }
 0x69a   :  { %v10318_v9 = vpop.eup %10317  ;;  %14524 = vst [vmem:[#allocation73_spill] sm:$0xff] %v12884_v54 }
 0x69b   :  { %v12881_v35 = vmul.f32 %v10318_v9, %v12697_v27  ;;  %v10320_v51 = vpop.eup %10319 }
 0x69c   :  { %v12894_v26 = vmul.f32 %v10320_v51, %v12701_v38 }
 0x69d   :  { %14523 = vst [vmem:[#allocation72_spill] sm:$0xff] %v12881_v35  ;;  %3232 = vrot.lane.b32.xlu0 %v12881_v35, %s10540_s16  ;;  %3230 = vrot.lane.b32.xlu1 %v12884_v54, %s10540_s16 }
 0x69e   :  { %v10322_v55 = vpop.eup %10321  ;;  %14526 = vst [vmem:[#allocation75_spill] sm:$0xff] %v12894_v26 }
 0x69f   :  { %v12891_v4 = vmul.f32 %v10322_v55, %v12705_v59  ;;  %v10324_v19 = vpop.eup %10323 }
 0x6a0   :  { %v12901_v17 = vmul.f32 %v10324_v19, %v12709_v22  ;;  %v12921_v19 = vld [vmem:[#allocation2 + $0x8] sm:$0xff] }
 0x6a1   :  { %14525 = vst [vmem:[#allocation74_spill] sm:$0xff] %v12891_v4  ;;  %3236 = vrot.lane.b32.xlu0 %v12891_v4, %s10540_s16  ;;  %3234 = vrot.lane.b32.xlu1 %v12894_v26, %s10540_s16 }
 0x6a2   :  { %14527 = vst [vmem:[#allocation76_spill] sm:$0xff] %v12901_v17  ;;  %9306 = vmatprep.mubr.msk.f32.mxu0 %vm10543_vm14, %v12921_v19 }
 0x6a5   :  { %3238 = vrot.lane.b32.xlu1 %v12901_v17, %s10540_s16 }
 0x6b8   :  { %v3080_v27 = vpop.xlane.xlu1 %3079 }
 0x6b9   :  { %10325 = vrcp.f32 %v3080_v27 }
 0x6bc   :  { %v3181_v30 = vpop.permute.xlu1 %3180 }
 0x6c1   :  { %v3083_v59 = vpop.xlane.xlu0 %3082 }
 0x6c2   :  { %10327 = vrcp.f32 %v3083_v59 }
 0x6c3   :  { %v10326_v1 = vpop.eup %10325 }
 0x6c4   :  { %v12906_v38 = vmul.f32 %v10326_v1, %v12717_v40 }
 0x6c5   :  { %v3183_v34 = vpop.permute.xlu0 %3182 }
 0x6c6   :  { %14528 = vst [vmem:[#allocation77_spill] sm:$0xff] %v12906_v38  ;;  %v12908_v21 = vpack.c.bf16 %v3183_v34, %v3181_v30  ;;  %3240 = vrot.lane.b32.xlu0 %v12906_v38, %s10540_s16 }
 0x6c8   :  { %9744 = vmatpush1.bf16.msra.mxu1 %v12908_v21 }
 0x6c9   :  { %9745 = vmatprep.subr.bf16.mxu1 %v14378_v61 }
 0x6cc   :  { %v10328_v22 = vpop.eup %10327 }
 0x6cd   :  { %v12915_v25 = vmul.f32 %v10328_v22, %v12721_v6 }
 0x6cf   :  { %14529 = vst [vmem:[#allocation78_spill] sm:$0xff] %v12915_v25  ;;  %3242 = vrot.lane.b32.xlu1 %v12915_v25, %s10540_s16 }
 0x6da   :  { %v3185_v40 = vpop.permute.xlu1 %3184 }
 0x6de   :  { %v3189_v9 = vpop.permute.xlu0 %3188 }
 0x6e3   :  { %v3187_v51 = vpop.permute.xlu1 %3186 }
 0x6e4   :  { %v12919_v55 = vpack.c.bf16 %v3187_v51, %v3185_v40  ;;  %3501 = vxpose.xlu0.b32.start [1/2] (short) (narrow) %v3181_v30, 8 }
 0x6e6   :  { %9747 = vmatpush1.bf16.msra.mxu1 %v12919_v55 }
 0x6e7   :  { %v3191_v27 = vpop.permute.xlu1 %3190  ;;  %v3193_v6 = vpop.permute.xlu0 %3192  ;;  %9748 = vmatprep.subr.bf16.mxu1 %v14378_v61 }
 0x6e8   :  { %v12927_v59 = vpack.c.bf16 %v3191_v27, %v3189_v9  ;;  %3502 = vxpose.xlu0.b32.end [2/2] (short) (narrow) %v3183_v34, 8 }
 0x6ea   :  { %9750 = vmatpush1.bf16.msra.mxu1 %v12927_v59 }
 0x6eb   :  { %v3195_v1 = vpop.permute.xlu1 %3194  ;;  %v3197_v22 = vpop.permute.xlu0 %3196  ;;  %9751 = vmatprep.subr.bf16.mxu1 %v14378_v61 }
 0x6ec   :  { %v12931_v30 = vpack.c.bf16 %v3195_v1, %v3193_v6  ;;  %3711 = vxpose.xlu0.b32.start [1/2] (short) (narrow) %v3189_v9, 8 }
 0x6ee   :  { %14530 = vst [vmem:[#allocation79_spill] sm:$0xff] %v12931_v30  ;;  %9753 = vmatpush1.bf16.msra.mxu1 %v12931_v30  ;;  %v7874_v30 = vadd.f32 1e-15, %v12761_v23 }
 0x6ef   :  { %v3199_v25 = vpop.permute.xlu1 %3198  ;;  %v3201_v17 = vpop.permute.xlu0 %3200  ;;  %9754 = vmatprep.subr.bf16.mxu1 %v14378_v61 }
 0x6f0   :  { %v12935_v38 = vpack.c.bf16 %v3199_v25, %v3197_v22  ;;  %3712 = vxpose.xlu0.b32.end [2/2] (short) (narrow) %v3191_v27, 8 }
 0x6f2   :  { %9756 = vmatpush1.bf16.msra.mxu1 %v12935_v38 }
 0x6f3   :  { %v3203_v34 = vpop.permute.xlu1 %3202  ;;  %v3205_v4 = vpop.permute.xlu0 %3204  ;;  %9757 = vmatprep.subr.bf16.mxu1 %v14378_v61 }
 0x6f4   :  { %v12939_v26 = vpack.c.bf16 %v3203_v34, %v3201_v17  ;;  %3816 = vxpose.xlu0.b32.start [1/2] (short) (narrow) %v3193_v6, 8 }
 0x6f6   :  { %14531 = vst [vmem:[#allocation80_spill] sm:$0xff] %v12939_v26  ;;  %9759 = vmatpush1.bf16.msra.mxu1 %v12939_v26 }
 0x6f7   :  { %v3207_v9 = vpop.permute.xlu1 %3206  ;;  %v3209_v35 = vpop.permute.xlu0 %3208  ;;  %9760 = vmatprep.subr.bf16.mxu1 %v14378_v61 }
 0x6f8   :  { %v12943_v54 = vpack.c.bf16 %v3207_v9, %v3205_v4  ;;  %3606 = vxpose.xlu1.b32.start [1/2] (short) (narrow) %v3185_v40, 8  ;;  %3817 = vxpose.xlu0.b32.end [2/2] (short) (narrow) %v3195_v1, 8 }
 0x6fa   :  { %9762 = vmatpush1.bf16.msra.mxu1 %v12943_v54 }
 0x6fb   :  { %v3211_v27 = vpop.permute.xlu1 %3210  ;;  %v3213_v60 = vpop.permute.xlu0 %3212  ;;  %9763 = vmatprep.subr.bf16.mxu1 %v14378_v61 }
 0x6fc   :  { %v12947_v32 = vpack.c.bf16 %v3211_v27, %v3209_v35  ;;  %3607 = vxpose.xlu1.b32.end [2/2] (short) (narrow) %v3187_v51, 8  ;;  %4026 = vxpose.xlu0.b32.start [1/2] (short) (narrow) %v3201_v17, 8 }
 0x6fe   :  { %14532 = vst [vmem:[#allocation81_spill] sm:$0xff] %v12947_v32  ;;  %9765 = vmatpush1.bf16.msra.mxu1 %v12947_v32 }
 0x6ff   :  { %v3215_v6 = vpop.permute.xlu1 %3214  ;;  %v3217_v62 = vpop.permute.xlu0 %3216  ;;  %9766 = vmatprep.subr.bf16.mxu1 %v14378_v61 }
 0x700   :  { %v12951_v52 = vpack.c.bf16 %v3215_v6, %v3213_v60  ;;  %3921 = vxpose.xlu1.b32.start [1/2] (short) (narrow) %v3197_v22, 8  ;;  %4027 = vxpose.xlu0.b32.end [2/2] (short) (narrow) %v3203_v34, 8 }
 0x702   :  { %14533 = vst [vmem:[#allocation82_spill] sm:$0xff] %v12951_v52  ;;  %9768 = vmatpush1.bf16.msra.mxu1 %v12951_v52 }
 0x703   :  { %v3219_v40 = vpop.permute.xlu1 %3218  ;;  %v3221_v1 = vpop.permute.xlu0 %3220  ;;  %9769 = vmatprep.subr.bf16.mxu1 %v14378_v61 }
 0x704   :  { %v12955_v26 = vpack.c.bf16 %v3219_v40, %v3217_v62  ;;  %3922 = vxpose.xlu1.b32.end [2/2] (short) (narrow) %v3199_v25, 8  ;;  %4236 = vxpose.xlu0.b32.start [1/2] (short) (narrow) %v3209_v35, 8 }
 0x706   :  { %14534 = vst [vmem:[#allocation83_spill] sm:$0xff] %v12955_v26  ;;  %9771 = vmatpush1.bf16.msra.mxu1 %v12955_v26 }
 0x707   :  { %v3223_v17 = vpop.permute.xlu1 %3222  ;;  %v3225_v51 = vpop.permute.xlu0 %3224  ;;  %9772 = vmatprep.subr.bf16.mxu1 %v14378_v61 }
 0x708   :  { %v12959_v32 = vpack.c.bf16 %v3223_v17, %v3221_v1  ;;  %4131 = vxpose.xlu1.b32.start [1/2] (short) (narrow) %v3205_v4, 8  ;;  %4237 = vxpose.xlu0.b32.end [2/2] (short) (narrow) %v3211_v27, 8 }
 0x70a   :  { %14535 = vst [vmem:[#allocation84_spill] sm:$0xff] %v12959_v32  ;;  %9774 = vmatpush1.bf16.msra.mxu1 %v12959_v32 }
 0x70b   :  { %v3227_v22 = vpop.permute.xlu1 %3226  ;;  %v3229_v34 = vpop.permute.xlu0 %3228  ;;  %9775 = vmatprep.subr.bf16.mxu1 %v14378_v61 }
 0x70c   :  { %v12963_v52 = vpack.c.bf16 %v3227_v22, %v3225_v51  ;;  %4132 = vxpose.xlu1.b32.end [2/2] (short) (narrow) %v3207_v9, 8  ;;  %4446 = vxpose.xlu0.b32.start [1/2] (short) (narrow) %v3217_v62, 8 }
 0x70e   :  { %14536 = vst [vmem:[#allocation85_spill] sm:$0xff] %v12963_v52  ;;  %9777 = vmatpush1.bf16.msra.mxu1 %v12963_v52 }
 0x70f   :  { %v3231_v35 = vpop.permute.xlu1 %3230  ;;  %9778 = vmatprep.subr.bf16.mxu1 %v14378_v61  ;;  %v3233_v4 = vpop.permute.xlu0 %3232 }
 0x710   :  { %v12967_v25 = vpack.c.bf16 %v3231_v35, %v3229_v34  ;;  %4341 = vxpose.xlu1.b32.start [1/2] (short) (narrow) %v3213_v60, 8  ;;  %4447 = vxpose.xlu0.b32.end [2/2] (short) (narrow) %v3219_v40, 8 }
 0x712   :  { %14537 = vst [vmem:[#allocation86_spill] sm:$0xff] %v12967_v25  ;;  %9780 = vmatpush1.bf16.msra.mxu1 %v12967_v25  ;;  %v14568_v25 = vld [vmem:[#allocation40_spill] sm:$0xff] }
 0x713   :  { %v3235_v27 = vpop.permute.xlu1 %3234  ;;  %9781 = vmatprep.subr.bf16.mxu1 %v14378_v61  ;;  %v3237_v62 = vpop.permute.xlu0 %3236  ;;  %v2616_v32 = vmax.f32 %v14568_v25, 0.0 }
 0x714   :  { %v12971_v26 = vpack.c.bf16 %v3235_v27, %v3233_v4  ;;  %4342 = vxpose.xlu1.b32.end [2/2] (short) (narrow) %v3215_v6, 8  ;;  %4656 = vxpose.xlu0.b32.start [1/2] (short) (narrow) %v3225_v51, 8  ;;  %v7873_v6 = vadd.f32 1e-15, %v12756_v20 }
 0x716   :  { %14538 = vst [vmem:[#allocation87_spill] sm:$0xff] %v12971_v26  ;;  %9783 = vmatpush1.bf16.msra.mxu1 %v12971_v26  ;;  %10329 = vlog2.f32 %v7873_v6  ;;  %v14565_v26 = vld [vmem:[#allocation42_spill] sm:$0xff] }
 0x717   :  { %v3239_v9 = vpop.permute.xlu1 %3238  ;;  %9784 = vmatprep.subr.bf16.mxu1 %v14378_v61  ;;  %10331 = vlog2.f32 %v7874_v30  ;;  %v2623_v30 = vmax.f32 %v12509_v53, 0.0 }
 0x718   :  { %v12975_v52 = vpack.c.bf16 %v3239_v9, %v3237_v62  ;;  %4551 = vxpose.xlu1.b32.start [1/2] (short) (narrow) %v3221_v1, 8  ;;  %4657 = vxpose.xlu0.b32.end [2/2] (short) (narrow) %v3227_v22, 8  ;;  %v10396_v1 = vld [vmem:[#allocation2] sm:$0xff]  ;;  %v10397_v22 = vld [vmem:[#allocation2 + $0x10] sm:$0xff] }
 0x71a   :  { %14539 = vst [vmem:[#allocation88_spill] sm:$0xff] %v12975_v52  ;;  %9786 = vmatpush1.bf16.msra.mxu1 %v12975_v52  ;;  %v2617_v52 = vmax.f32 %v14565_v26, 0.0 }
 0x71b   :  { %9787 = vmatprep.subr.bf16.mxu1 %v14378_v61 }
 0x71c   :  { %4552 = vxpose.xlu1.b32.end [2/2] (short) (narrow) %v3223_v17, 8  ;;  %4866 = vxpose.xlu0.b32.start [1/2] (short) (narrow) %v3233_v4, 8  ;;  %v10057_v17 = vpack.i.bf16 %v12489_v46, %v12484_v56  ;;  %v10398_v4 = vld [vmem:[#allocation2 + $0x20] sm:$0xff] }
 0x720   :  { %4761 = vxpose.xlu1.b32.start [1/2] (short) (narrow) %v3229_v34, 8  ;;  %4867 = vxpose.xlu0.b32.end [2/2] (short) (narrow) %v3235_v27, 8  ;;  %v10067_v34 = vpack.i.bf16 %v12499_v36, %v12494_v18  ;;  %v10072_v27 = vpack.i.bf16 %v12417_v11, %v12408_v50 }
 0x724   :  { %4762 = vxpose.xlu1.b32.end [2/2] (short) (narrow) %v3231_v35, 8  ;;  %v10330_v35 = vpop.eup %10329 }
 0x728   :  { %4971 = vxpose.xlu1.b32.start [1/2] (short) (narrow) %v3237_v62, 8  ;;  %v7906_v62 = vmul.f32 0.6931472, %v10330_v35  ;;  %v14541_v35 = vld [vmem:[#allocation31_spill] sm:$0xff] }
 0x72c   :  { %4972 = vxpose.xlu1.b32.end [2/2] (short) (narrow) %v3239_v9, 8  ;;  %v7841_v9 = vsub.f32 0.0, %v12756_v20 }
 0x72e   :  { %v7969_v6 = vmul.f32 %v7906_v62, %v7841_v9  ;;  %v10403_v9 = vld [vmem:[#allocation2 + $0x70] sm:$0xff] }
 0x738   :  { %v3241_v60 = vpop.permute.xlu0 %3240 }
 0x739   :  { %5076 = vxpose.xlu0.b32.start [1/2] (short) (narrow) %v3241_v60, 8 }
 0x741   :  { %v3243_v40 = vpop.permute.xlu1 %3242 }
 0x742   :  { %v12980_v51 = vpack.c.bf16 %v3243_v40, %v3241_v60  ;;  %5077 = vxpose.xlu0.b32.end [2/2] (short) (narrow) %v3243_v40, 8  ;;  %v10399_v60 = vld [vmem:[#allocation2 + $0x30] sm:$0xff]  ;;  %v10400_v40 = vld [vmem:[#allocation2 + $0x40] sm:$0xff] }
 0x744   :  { %14540 = vst [vmem:[#allocation89_spill] sm:$0xff] %v12980_v51  ;;  %9789 = vmatpush1.bf16.msra.mxu1 %v12980_v51 }
 0x745   :  { %9838 = vmatprep.subr.bf16.mxu1 %v14378_v61 }
 0x747   :  { %3341 = vmatmul.mubr.f32.vlgmr.msra.gmra.mrb[64].mxu1 %v10396_v1  ;;  %v10401_v1 = vld [vmem:[#allocation2 + $0x50] sm:$0xff] }
 0x748   :  { %3345 = vmatprep.mubr.f32.mxu1 %v12921_v19 }
 0x74a   :  { %10058 = vrot.lane.b32.xlu1 %v10057_v17, %s10540_s16  ;;  %v2605_v17 = vmax.f32 %v12417_v11, 0.0  ;;  %v10062_v11 = vpack.i.bf16 %v12402_v41, %v12396_v29  ;;  %v10082_v29 = vpack.i.bf16 %v12429_v15, %v12424_v44  ;;  %v2606_v41 = vmax.f32 %v12424_v44, 0.0 }
 0x74b   :  { %3346 = vmatmul.mubr.f32.gmra.mrb[66].mxu1 %v10397_v22  ;;  %v2604_v22 = vmax.f32 %v12408_v50, 0.0  ;;  %v10404_v50 = vld [vmem:[#allocation2 + $0x80] sm:$0xff]  ;;  %v2611_v44 = vmax.f32 %v12449_v10, 0.0 }
 0x74c   :  { %3350 = vmatprep.mubr.f32.mxu1 %v12921_v19 }
 0x74e   :  { %10068 = vrot.lane.b32.xlu1 %v10067_v34, %s10540_s16  ;;  %v10402_v34 = vld [vmem:[#allocation2 + $0x60] sm:$0xff] }
 0x74f   :  { %3351 = vmatmul.mubr.f32.gmra.mrb[68].mxu1 %v10398_v4  ;;  %v2637_v4 = vmul.f32 %v2605_v17, %v14541_v35  ;;  %v10406_v17 = vld [vmem:[#allocation2 + $0xa0] sm:$0xff]  ;;  %v2609_v35 = vmax.f32 %v12439_v37, 0.0 }
 0x750   :  { %3355 = vmatprep.mubr.f32.mxu1 %v12921_v19 }
 0x752   :  { %10073 = vrot.lane.b32.xlu1 %v10072_v27, %s10540_s16  ;;  %v14542_v27 = vld [vmem:[#allocation29_spill] sm:$0xff] }
 0x753   :  { %3356 = vmatmul.mubr.f32.gmra.mrb[70].mxu1 %v10399_v60  ;;  %v2636_v62 = vmul.f32 %v2604_v22, %v14542_v27  ;;  %v2607_v22 = vmax.f32 %v12429_v15, 0.0  ;;  %v10087_v27 = vpack.i.bf16 %v12519_v13, %v12514_v0  ;;  %v10408_v15 = vld [vmem:[#allocation2 + $0xc0] sm:$0xff] }
 0x754   :  { %3360 = vmatprep.mubr.f32.mxu1 %v12921_v19 }
 0x756   :  { %8033 = vrot.lane.b32.xlu1 %v7969_v6, %s10540_s16  ;;  %v13008_v6 = vpack.c.bf16 %v2637_v4, %v2636_v62  ;;  %v2639_v4 = vmul.f32 %v2607_v22, %v12111_v24  ;;  %v2608_v62 = vmax.f32 %v12434_v16, 0.0  ;;  %v10092_v22 = vpack.i.bf16 %v12439_v37, %v12434_v16  ;;  %v14553_v16 = vld [vmem:[#allocation43_spill] sm:$0xff] }
 0x757   :  { %3361 = vmatmul.mubr.f32.gmra.mrb[72].mxu1 %v10400_v40  ;;  %v10405_v40 = vld [vmem:[#allocation2 + $0x90] sm:$0xff]  ;;  %v2643_v37 = vmul.f32 %v2611_v44, %v14553_v16 }
 0x758   :  { %3365 = vmatprep.mubr.f32.mxu1 %v12921_v19  ;;  %14543 = vst [vmem:[#allocation31_spill] sm:$0xff] %v13008_v6  ;;  %v14559_v44 = vld [vmem:[#allocation38_spill] sm:$0xff] }
 0x759   :  { %v2615_v16 = vmax.f32 %v14559_v44, 0.0 }
 0x75b   :  { %3366 = vmatmul.mubr.f32.gmra.mrb[74].mxu1 %v10401_v1  ;;  %v10077_v1 = vpack.i.bf16 %v12509_v53, %v12504_v2 }
 0x75c   :  { %3370 = vmatprep.mubr.f32.mxu1 %v12921_v19 }
 0x75f   :  { %3371 = vmatmul.mubr.f32.gmra.mrb[76].mxu1 %v10402_v34  ;;  %v10407_v34 = vld [vmem:[#allocation2 + $0xb0] sm:$0xff] }
 0x760   :  { %3375 = vmatprep.mubr.f32.mxu1 %v12921_v19 }
 0x763   :  { %3376 = vmatmul.mubr.f32.gmra.mrb[78].mxu1 %v10403_v9  ;;  %v14545_v9 = vld [vmem:[#allocation35_spill] sm:$0xff] }
 0x764   :  { %v13006_v60 = vpop.trf.xlu0  ;;  %3380 = vmatprep.mubr.f32.mxu1 %v12921_v19 }
 0x765   :  { %9307 = vmatmul.mubr.msk.f32.vlgmr.msra.gmra.mrb[128].mxu0 %vm14544_vm11, %v13006_v60  ;;  %vm14614_vm11 = vmmov %vm14562_vm0 }
 0x766   :  { %9795 = vmatpush3.bf16.msra.mxu0 %v13008_v6  ;;  %9313 = vmatprep.mubr.msk.f32.mxu0 %vm10543_vm14, %v12921_v19 }
 0x767   :  { %3381 = vmatmul.mubr.f32.gmra.mrb[80].mxu1 %v10404_v50  ;;  %9796 = vmatprep.subr.bf16.mxu0 %v14378_v61  ;;  %v2638_v50 = vmul.f32 %v2606_v41, %v14545_v9 }
 0x768   :  { %3385 = vmatprep.mubr.f32.mxu1 %v12921_v19 }
 0x76b   :  { %3386 = vmatmul.mubr.f32.gmra.mrb[82].mxu1 %v10405_v40  ;;  %10063 = vrot.lane.b32.xlu0 %v10062_v11, %s10540_s16  ;;  %v13042_v40 = vpack.c.bf16 %v2639_v4, %v2638_v50 }
 0x76c   :  { %3390 = vmatprep.mubr.f32.mxu1 %v12921_v19  ;;  %v13045_v24 = vpop.trf.xlu0 }
 0x76d   :  { %14546 = vst [vmem:[#allocation29_spill] sm:$0xff] %v13042_v40 }
 0x76f   :  { %3391 = vmatmul.mubr.f32.gmra.mrb[84].mxu1 %v10406_v17  ;;  %10078 = vrot.lane.b32.xlu0 %v10077_v1, %s10540_s16  ;;  %v14547_v1 = vld [vmem:[#allocation39_spill] sm:$0xff] }
 0x770   :  { %3395 = vmatprep.mubr.f32.mxu1 %v12921_v19  ;;  %v2641_v17 = vmul.f32 %v2609_v35, %v14547_v1  ;;  %v14551_v35 = vld [vmem:[#allocation34_spill] sm:$0xff] }
 0x771   :  { %v2613_v9 = vmax.f32 %v14551_v35, 0.0  ;;  %v14556_v1 = vld [vmem:[#allocation46_spill] sm:$0xff] }
 0x773   :  { %3396 = vmatmul.mubr.f32.gmra.mrb[86].mxu1 %v10407_v34  ;;  %10083 = vrot.lane.b32.xlu0 %v10082_v29, %s10540_s16  ;;  %v14549_v29 = vld [vmem:[#allocation19_spill] sm:$0xff]  ;;  %v14550_v34 = vld [vmem:[#allocation37_spill] sm:$0xff] }
 0x774   :  { %3400 = vmatprep.mubr.f32.mxu1 %v12921_v19  ;;  %v2610_v41 = vmax.f32 %v14549_v29, 0.0  ;;  %v2640_v4 = vmul.f32 %v2608_v62, %v14550_v34  ;;  %v14557_v34 = vld [vmem:[#allocation20_spill] sm:$0xff] }
 0x776   :  { %v13060_v50 = vpack.c.bf16 %v2641_v17, %v2640_v4  ;;  %v14558_v17 = vld [vmem:[#allocation41_spill] sm:$0xff] }
 0x777   :  { %3401 = vmatmul.mubr.f32.gmra.mrb[88].mxu1 %v10408_v15  ;;  %10088 = vrot.lane.b32.xlu0 %v10087_v27, %s10540_s16  ;;  %v10409_v27 = vld [vmem:[#allocation2 + $0xd0] sm:$0xff]  ;;  %v14555_v15 = vld [vmem:[#allocation44_spill] sm:$0xff]  ;;  %v2642_v4 = vmul.f32 %v2610_v41, %v14558_v17  ;;  %v10102_v41 = vpack.i.bf16 %v12449_v10, %v14549_v29  ;;  %v10412_v29 = vld [vmem:[#allocation2 + $0x108] sm:$0xff] }
 0x778   :  { %v13040_v11 = vpop.trf.xlu1  ;;  %3405 = vmatprep.mubr.f32.mxu1 %v12921_v19  ;;  %14552 = vst [vmem:[#allocation35_spill] sm:$0xff] %v13060_v50  ;;  %v10097_v62 = vpack.i.bf16 %v14556_v1, %v14555_v15  ;;  %v14563_v17 = vld [vmem:[#allocation36_spill] sm:$0xff] }
 0x779   :  { %9314 = vmatmul.mubr.msk.f32.vlgmr.msra.gmra.mrb[130].mxu0 %vm14548_vm1, %v13040_v11  ;;  %v13078_v6 = vpack.c.bf16 %v2643_v37, %v2642_v4  ;;  %v14564_v37 = vld [vmem:[#allocation45_spill] sm:$0xff]  ;;  %v10122_v53 = vpack.i.bf16 %v14559_v44, %v14563_v17  ;;  %vm14615_vm1 = vmmov %vm14562_vm0 }
 0x77a   :  { %9798 = vmatpush3.bf16.msra.mxu0 %v13042_v40  ;;  %9320 = vmatprep.mubr.msk.f32.mxu0 %vm10543_vm14, %v12921_v19  ;;  %v10410_v40 = vld [vmem:[#allocation2 + $0xe0] sm:$0xff] }
 0x77b   :  { %3406 = vmatmul.mubr.f32.gmra.mrb[90].mxu1 %v10409_v27  ;;  %10093 = vrot.lane.b32.xlu0 %v10092_v22, %s10540_s16  ;;  %v2612_v27 = vmax.f32 %v14557_v34, 0.0  ;;  %v13070_v22 = vpop.trf.xlu0  ;;  %14560 = vst [vmem:[#allocation39_spill] sm:$0xff] %v13078_v6 }
 0x77c   :  { %9799 = vmatprep.subr.bf16.mxu0 %v14378_v61  ;;  %3410 = vmatprep.mubr.f32.mxu1 %v12921_v19 }
 0x77d   :  { %9321 = vmatmul.mubr.msk.f32.vlgmr.msra.gmra.mrb[132].mxu0 %vm14554_vm12, %v13045_v24  ;;  %v2644_v4 = vmul.f32 %v2612_v27, %v14564_v37  ;;  %v14570_v27 = vld [vmem:[#allocation25_spill] sm:$0xff]  ;;  %vm14631_vm12 = vmmov %vm14562_vm0 }
 0x77e   :  { %9801 = vmatpush3.bf16.msra.mxu0 %v13060_v50  ;;  %9327 = vmatprep.mubr.msk.f32.mxu0 %vm10543_vm14, %v12921_v19  ;;  %v14561_v50 = vld [vmem:[#allocation47_spill] sm:$0xff]  ;;  %v14571_v37 = vld [vmem:[#allocation21_spill] sm:$0xff] }
 0x77f   :  { %3411 = vmatmul.mubr.f32.gmra.mrb[92].mxu1 %v10410_v40  ;;  %10098 = vrot.lane.b32.xlu0 %v10097_v62, %s10540_s16  ;;  %v2645_v51 = vmul.f32 %v2613_v9, %v14561_v50  ;;  %v2614_v40 = vmax.f32 %v14563_v17, 0.0  ;;  %v10411_v9 = vld [vmem:[#allocation2 + $0xf0] sm:$0xff]  ;;  %v14567_v50 = vld [vmem:[#allocation49_spill] sm:$0xff]  ;;  %v10107_v7 = vpack.i.bf16 %v14571_v37, %v14570_v27  ;;  %v7877_v17 = vadd.f32 1e-15, %v12771_v14 }
 0x780   :  { %9802 = vmatprep.subr.bf16.mxu0 %v14378_v61  ;;  %3415 = vmatprep.mubr.f32.mxu1 %v12921_v19  ;;  %v13088_v62 = vpop.trf.xlu1 }
 0x781   :  { %9328 = vmatmul.mubr.msk.f32.vlgmr.msra.gmra.mrb[134].mxu0 %vm14562_vm0, %v13070_v22  ;;  %v13096_v10 = vpack.c.bf16 %v2645_v51, %v2644_v4  ;;  %v14572_v51 = vld [vmem:[#allocation48_spill] sm:$0xff] }
 0x782   :  { %9804 = vmatpush3.bf16.msra.mxu0 %v13078_v6  ;;  %9334 = vmatprep.mubr.msk.f32.mxu0 %vm10543_vm14, %v12921_v19  ;;  %v2647_v6 = vmul.f32 %v2615_v16, %v14567_v50  ;;  %v14573_v16 = vld [vmem:[#allocation51_spill] sm:$0xff] }
 0x783   :  { %3416 = vmatmul.mubr.f32.gmra.mrb[94].mxu1 %v10411_v9  ;;  %10103 = vrot.lane.b32.xlu0 %v10102_v41, %s10540_s16  ;;  %14566 = vst [vmem:[#allocation19_spill] sm:$0xff] %v13096_v10  ;;  %v13105_v9 = vpop.trf.xlu0  ;;  %v2646_v41 = vmul.f32 %v2614_v40, %v14572_v51  ;;  %v2649_v4 = vmul.f32 %v2617_v52, %v14573_v16  ;;  %v14576_v51 = vld [vmem:[#allocation50_spill] sm:$0xff]  ;;  %v2618_v52 = vmax.f32 %v12484_v56, 0.0  ;;  %v14578_v56 = vld [vmem:[#allocation53_spill] sm:$0xff]  ;;  %v14581_v16 = vld [vmem:[#allocation24_spill] sm:$0xff] }
 0x784   :  { %9805 = vmatprep.subr.bf16.mxu0 %v14378_v61  ;;  %3420 = vmatprep.mubr.f32.mxu1 %v10412_v29  ;;  %v2619_v29 = vmax.f32 %v12489_v46, 0.0  ;;  %v10112_v40 = vpack.i.bf16 %v14551_v35, %v14557_v34  ;;  %v10414_v35 = vld [vmem:[#allocation2 + $0x128] sm:$0xff]  ;;  %v7875_v34 = vadd.f32 1e-15, %v12766_v47 }
 0x785   :  { %9335 = vmatmul.mubr.msk.f32.vlgmr.msra.gmra.mrb[136].mxu0 %vm14569_vm2, %v13088_v62  ;;  %v13115_v50 = vpack.c.bf16 %v2647_v6, %v2646_v41  ;;  %v14580_v41 = vld [vmem:[#allocation22_spill] sm:$0xff]  ;;  %vm14632_vm2 = vmmov %vm14562_vm0 }
 0x786   :  { %9807 = vmatpush3.bf16.msra.mxu0 %v13096_v10  ;;  %9341 = vmatprep.mubr.msk.f32.mxu0 %vm10543_vm14, %v12921_v19  ;;  %v10413_v10 = vld [vmem:[#allocation2 + $0x118] sm:$0xff]  ;;  %10333 = vlog2.f32 %v7875_v34 }
 0x787   :  { %3421 = vmatmul.mubr.f32.gmra.mrb[96].mxu1 %v12921_v19  ;;  %10108 = vrot.lane.b32.xlu0 %v10107_v7, %s10540_s16  ;;  %14574 = vst [vmem:[#allocation37_spill] sm:$0xff] %v13115_v50  ;;  %v2648_v7 = vmul.f32 %v2616_v32, %v14576_v51  ;;  %v2651_v32 = vmul.f32 %v2619_v29, %v14578_v56 }
 0x788   :  { %9808 = vmatprep.subr.bf16.mxu0 %v14378_v61  ;;  %3425 = vmatprep.mubr.f32.mxu1 %v10413_v10  ;;  %v13125_v46 = vpop.trf.xlu1  ;;  %v2621_v10 = vmax.f32 %v12499_v36, 0.0  ;;  %v10117_v51 = vpack.i.bf16 %v14581_v16, %v14580_v41  ;;  %v13143_v36 = vpop.trf.xlu0 }
 0x789   :  { %9342 = vmatmul.mubr.msk.f32.vlgmr.msra.gmra.mrb[138].mxu0 %vm14575_vm3, %v13105_v9  ;;  %v13131_v6 = vpack.c.bf16 %v2649_v4, %v2648_v7  ;;  %v2620_v4 = vmax.f32 %v12494_v18, 0.0  ;;  %v10415_v7 = vld [vmem:[#allocation2 + $0x138] sm:$0xff]  ;;  %vm14633_vm3 = vmmov %vm14562_vm0 }
 0x78a   :  { %9810 = vmatpush3.bf16.msra.mxu0 %v13115_v50  ;;  %9348 = vmatprep.mubr.msk.f32.mxu0 %vm10543_vm14, %v12921_v19  ;;  %v2622_v50 = vmax.f32 %v12504_v2, 0.0  ;;  %v14586_v2 = vld [vmem:[#allocation57_spill] sm:$0xff] }
 0x78b   :  { %3426 = vmatmul.mubr.f32.gmra.mrb[98].mxu1 %v12921_v19  ;;  %10113 = vrot.lane.b32.xlu0 %v10112_v40, %s10540_s16  ;;  %14577 = vst [vmem:[#allocation34_spill] sm:$0xff] %v13131_v6  ;;  %v14582_v40 = vld [vmem:[#allocation52_spill] sm:$0xff]  ;;  %v2655_v34 = vmul.f32 %v2623_v30, %v14586_v2  ;;  %v10332_v30 = vpop.eup %10331  ;;  %v7878_v2 = vadd.f32 1e-15, %v12784_v8 }
 0x78c   :  { %3430 = vmatprep.mubr.f32.mxu1 %v10414_v35  ;;  %9811 = vmatprep.subr.bf16.mxu0 %v14378_v61  ;;  %v2650_v29 = vmul.f32 %v2618_v52, %v14582_v40  ;;  %v14583_v35 = vld [vmem:[#allocation55_spill] sm:$0xff]  ;;  %v10416_v40 = vld [vmem:[#allocation2 + $0x148] sm:$0xff] }
 0x78d   :  { %9349 = vmatmul.mubr.msk.f32.vlgmr.msra.gmra.mrb[140].mxu0 %vm14579_vm4, %v13125_v46  ;;  %v2653_v56 = vmul.f32 %v2621_v10, %v14583_v35  ;;  %v14591_v35 = vld [vmem:[#allocation56_spill] sm:$0xff]  ;;  %vm14634_vm4 = vmmov %vm14562_vm0 }
 0x78e   :  { %9813 = vmatpush3.bf16.msra.mxu0 %v13131_v6  ;;  %9355 = vmatprep.mubr.msk.f32.mxu0 %vm10543_vm14, %v12921_v19  ;;  %v13152_v18 = vpack.c.bf16 %v2651_v32, %v2650_v29  ;;  %v7876_v6 = vadd.f32 1e-15, %v12776_v43  ;;  %v14585_v32 = vld [vmem:[#allocation54_spill] sm:$0xff] }
 0x78f   :  { %3431 = vmatmul.mubr.f32.gmra.mrb[100].mxu1 %v12921_v19  ;;  %10118 = vrot.lane.b32.xlu0 %v10117_v51, %s10540_s16  ;;  %v2652_v10 = vmul.f32 %v2620_v4, %v14585_v32  ;;  %v2625_v51 = vmax.f32 %v12519_v13, 0.0  ;;  %v14589_v4 = vld [vmem:[#allocation23_spill] sm:$0xff]  ;;  %v14590_v29 = vld [vmem:[#allocation26_spill] sm:$0xff]  ;;  %v2624_v13 = vmax.f32 %v12514_v0, 0.0  ;;  %v13182_v32 = vpop.trf.xlu0 }
 0x790   :  { %3435 = vmatprep.mubr.f32.mxu1 %v10415_v7  ;;  %9814 = vmatprep.subr.bf16.mxu0 %v14378_v61  ;;  %v13162_v52 = vpop.trf.xlu1  ;;  %10335 = vlog2.f32 %v7876_v6  ;;  %v10127_v7 = vpack.i.bf16 %v14590_v29, %v14589_v4  ;;  %v14593_v0 = vld [vmem:[#allocation59_spill] sm:$0xff] }
 0x791   :  { %9356 = vmatmul.mubr.msk.f32.vlgmr.msra.gmra.mrb[142].mxu0 %vm14584_vm5, %v13143_v36  ;;  %v13172_v44 = vpack.c.bf16 %v2653_v56, %v2652_v10  ;;  %v2627_v56 = vmax.f32 %v14556_v1, 0.0  ;;  %v10417_v10 = vld [vmem:[#allocation2 + $0x158] sm:$0xff]  ;;  %10337 = vlog2.f32 %v7877_v17  ;;  %vm14635_vm5 = vmmov %vm14562_vm0 }
 0x792   :  { %9816 = vmatpush3.bf16.msra.mxu0 %v13152_v18  ;;  %9362 = vmatprep.mubr.msk.f32.mxu0 %vm10543_vm14, %v12921_v19  ;;  %10339 = vlog2.f32 %v7878_v2  ;;  %v14600_v2 = vld [vmem:[#allocation63_spill] sm:$0xff] }
 0x793   :  { %3436 = vmatmul.mubr.f32.gmra.mrb[102].mxu1 %v12921_v19  ;;  %10123 = vrot.lane.b32.xlu0 %v10122_v53, %s10540_s16  ;;  %14587 = vst [vmem:[#allocation43_spill] sm:$0xff] %v13172_v44  ;;  %v2654_v53 = vmul.f32 %v2622_v50, %v14591_v35  ;;  %v2657_v50 = vmul.f32 %v2625_v51, %v14593_v0  ;;  %v2626_v35 = vmax.f32 %v14555_v15, 0.0  ;;  %v14595_v51 = vld [vmem:[#allocation58_spill] sm:$0xff]  ;;  %v7879_v0 = vadd.f32 1e-15, %v12781_v28 }
 0x794   :  { %3440 = vmatprep.mubr.f32.mxu1 %v10416_v40  ;;  %9817 = vmatprep.subr.bf16.mxu0 %v14378_v61  ;;  %v10132_v40 = vpack.i.bf16 %v14565_v26, %v14568_v25  ;;  %v2656_v17 = vmul.f32 %v2624_v13, %v14595_v51  ;;  %v7842_v26 = vsub.f32 0.0, %v12761_v23  ;;  %v10418_v25 = vld [vmem:[#allocation2 + $0x168] sm:$0xff]  ;;  %v2628_v13 = vmax.f32 %v14570_v27, 0.0 }
 0x795   :  { %9363 = vmatmul.mubr.msk.f32.vlgmr.msra.gmra.mrb[144].mxu0 %vm14588_vm6, %v13162_v52  ;;  %v13188_v6 = vpack.c.bf16 %v2655_v34, %v2654_v53  ;;  %v10334_v34 = vpop.eup %10333  ;;  %v2629_v53 = vmax.f32 %v14571_v37, 0.0  ;;  %v7843_v27 = vsub.f32 0.0, %v12766_v47  ;;  %10341 = vlog2.f32 %v7879_v0  ;;  %vm14636_vm6 = vmmov %vm14562_vm0 }
 0x796   :  { %9819 = vmatpush3.bf16.msra.mxu0 %v13172_v44  ;;  %9369 = vmatprep.mubr.msk.f32.mxu0 %vm10543_vm14, %v12921_v19  ;;  %v13210_v15 = vpack.c.bf16 %v2657_v50, %v2656_v17  ;;  %v14599_v50 = vld [vmem:[#allocation60_spill] sm:$0xff]  ;;  %v7844_v0 = vsub.f32 0.0, %v12776_v43 }
 0x797   :  { %3441 = vmatmul.mubr.f32.gmra.mrb[104].mxu1 %v12921_v19  ;;  %10128 = vrot.lane.b32.xlu0 %v10127_v7, %s10540_s16  ;;  %14592 = vst [vmem:[#allocation44_spill] sm:$0xff] %v13188_v6  ;;  %v7908_v7 = vmul.f32 0.6931472, %v10332_v30  ;;  %v14597_v30 = vld [vmem:[#allocation61_spill] sm:$0xff]  ;;  %v2661_v17 = vmul.f32 %v2629_v53, %v14600_v2  ;;  %v2630_v53 = vmax.f32 %v14580_v41, 0.0 }
 0x798   :  { %3445 = vmatprep.mubr.f32.mxu1 %v10417_v10  ;;  %9820 = vmatprep.subr.bf16.mxu0 %v14378_v61  ;;  %v13200_v1 = vpop.trf.xlu1  ;;  %14596 = vst [vmem:[#allocation46_spill] sm:$0xff] %v13210_v15  ;;  %v2659_v10 = vmul.f32 %v2627_v56, %v14597_v30  ;;  %v2658_v56 = vmul.f32 %v2626_v35, %v14599_v50  ;;  %v7880_v30 = vadd.f32 1e-15, %v12794_v39  ;;  %v14605_v41 = vld [vmem:[#allocation65_spill] sm:$0xff] }
 0x799   :  { %9370 = vmatmul.mubr.msk.f32.vlgmr.msra.gmra.mrb[146].mxu0 %vm14594_vm7, %v13182_v32  ;;  %v7970_v37 = vmul.f32 %v7908_v7, %v7842_v26  ;;  %v2631_v7 = vmax.f32 %v14581_v16, 0.0  ;;  %vm14637_vm7 = vmmov %vm14562_vm0 }
 0x79a   :  { %9822 = vmatpush3.bf16.msra.mxu0 %v13188_v6  ;;  %9376 = vmatprep.mubr.msk.f32.mxu0 %vm10543_vm14, %v12921_v19  ;;  %v10336_v51 = vpop.eup %10335  ;;  %v13229_v26 = vpack.c.bf16 %v2659_v10, %v2658_v56  ;;  %10343 = vlog2.f32 %v7880_v30  ;;  %v7881_v56 = vadd.f32 1e-15, %v12791_v45  ;;  %v7845_v30 = vsub.f32 0.0, %v12771_v14 }
 0x79b   :  { %3446 = vmatmul.mubr.f32.gmra.mrb[106].mxu1 %v12921_v19  ;;  %10133 = vrot.lane.b32.xlu0 %v10132_v40, %s10540_s16  ;;  %v7910_v40 = vmul.f32 0.6931472, %v10334_v34  ;;  %v10419_v34 = vld [vmem:[#allocation2 + $0x178] sm:$0xff]  ;;  %v10338_v6 = vpop.eup %10337 }
 0x79c   :  { %3450 = vmatprep.mubr.f32.mxu1 %v10418_v25  ;;  %9823 = vmatprep.subr.bf16.mxu0 %v14378_v61  ;;  %v13218_v25 = vpop.trf.xlu0  ;;  %14601 = vst [vmem:[#allocation20_spill] sm:$0xff] %v13229_v26  ;;  %v7914_v2 = vmul.f32 0.6931472, %v10338_v6  ;;  %v14610_v6 = vld [vmem:[#allocation67_spill] sm:$0xff]  ;;  %10345 = vlog2.f32 %v7881_v56  ;;  %v10422_v56 = vld [vmem:[#allocation2 + $0x1a8] sm:$0xff] }
 0x79d   :  { %9377 = vmatmul.mubr.msk.f32.vlgmr.msra.gmra.mrb[148].mxu0 %vm14598_vm8, %v13200_v1  ;;  %v7971_v35 = vmul.f32 %v7910_v40, %v7843_v27  ;;  %v10420_v40 = vld [vmem:[#allocation2 + $0x188] sm:$0xff]  ;;  %vm14638_vm8 = vmmov %vm14562_vm0 }
 0x79e   :  { %9825 = vmatpush3.bf16.msra.mxu0 %v13210_v15  ;;  %9383 = vmatprep.mubr.msk.f32.mxu0 %vm10543_vm14, %v12921_v19  ;;  %v7912_v15 = vmul.f32 0.6931472, %v10336_v51  ;;  %v2663_v51 = vmul.f32 %v2631_v7, %v14605_v41 }
 0x79f   :  { %3451 = vmatmul.mubr.f32.gmra.mrb[108].mxu1 %v12921_v19  ;;  %8035 = vrot.lane.b32.xlu0 %v7970_v37, %s10540_s16  ;;  %v14603_v37 = vld [vmem:[#allocation62_spill] sm:$0xff] }
 0x7a0   :  { %3455 = vmatprep.mubr.f32.mxu1 %v10419_v34  ;;  %9826 = vmatprep.subr.bf16.mxu0 %v14378_v61  ;;  %v2660_v50 = vmul.f32 %v2628_v13, %v14603_v37  ;;  %v13237_v16 = vpop.trf.xlu1  ;;  %v2633_v13 = vmax.f32 %v14590_v29, 0.0  ;;  %v7972_v27 = vmul.f32 %v7912_v15, %v7844_v0  ;;  %v2632_v34 = vmax.f32 %v14589_v4, 0.0  ;;  %v13254_v29 = vpop.trf.xlu0  ;;  %v10421_v15 = vld [vmem:[#allocation2 + $0x198] sm:$0xff] }
 0x7a1   :  { %9384 = vmatmul.mubr.msk.f32.vlgmr.msra.gmra.mrb[150].mxu0 %vm14602_vm9, %v13218_v25  ;;  %14607 = vst [vmem:[#allocation38_spill] sm:$0xff] %v13254_v29  ;;  %vm14639_vm9 = vmmov %vm14562_vm0 }
 0x7a2   :  { %9828 = vmatpush3.bf16.msra.mxu0 %v13229_v26  ;;  %9390 = vmatprep.mubr.msk.f32.mxu0 %vm10543_vm14, %v12921_v19  ;;  %v13243_v10 = vpack.c.bf16 %v2661_v17, %v2660_v50  ;;  %v10340_v17 = vpop.eup %10339  ;;  %v2665_v37 = vmul.f32 %v2633_v13, %v14610_v6  ;;  %v7882_v50 = vadd.f32 1e-15, %v12804_v33  ;;  %v7846_v13 = vsub.f32 0.0, %v12784_v8 }
 0x7a3   :  { %3456 = vmatmul.mubr.f32.gmra.mrb[110].mxu1 %v12921_v19  ;;  %8037 = vrot.lane.b32.xlu0 %v7971_v35, %s10540_s16  ;;  %v14608_v35 = vld [vmem:[#allocation64_spill] sm:$0xff]  ;;  %v7916_v0 = vmul.f32 0.6931472, %v10340_v17  ;;  %v7883_v17 = vadd.f32 1e-15, %v12801_v48 }
 0x7a4   :  { %14604 = vst [vmem:[#allocation41_spill] sm:$0xff] %v13243_v10  ;;  %3460 = vmatprep.mubr.f32.mxu1 %v10420_v40  ;;  %9829 = vmatprep.subr.bf16.mxu0 %v14378_v61  ;;  %v2662_v7 = vmul.f32 %v2630_v53, %v14608_v35  ;;  %v7973_v53 = vmul.f32 %v7914_v2, %v7845_v30  ;;  %v10342_v40 = vpop.eup %10341  ;;  %10347 = vlog2.f32 %v7882_v50  ;;  %v7847_v30 = vsub.f32 0.0, %v12781_v28 }
 0x7a5   :  { %9391 = vmatmul.mubr.msk.f32.vlgmr.msra.gmra.mrb[152].mxu0 %vm14606_vm10, %v13237_v16  ;;  %v7974_v35 = vmul.f32 %v7916_v0, %v7846_v13  ;;  %10349 = vlog2.f32 %v7883_v17  ;;  %v10424_v0 = vld [vmem:[#allocation2 + $0x1c8] sm:$0xff]  ;;  %v7849_v13 = vsub.f32 0.0, %v12791_v45  ;;  %v7884_v26 = vadd.f32 1e-15, %v12814_v3  ;;  %vm14640_vm10 = vmmov %vm14562_vm0 }
 0x7a6   :  { %9831 = vmatpush3.bf16.msra.mxu0 %v13243_v10  ;;  %9397 = vmatprep.mubr.msk.f32.mxu0 %vm10543_vm14, %v12921_v19  ;;  %v13263_v4 = vpack.c.bf16 %v2663_v51, %v2662_v7  ;;  %v14612_v51 = vld [vmem:[#allocation66_spill] sm:$0xff]  ;;  %v10344_v7 = vpop.eup %10343 }
 0x7a7   :  { %3461 = vmatmul.mubr.f32.gmra.mrb[112].mxu1 %v12921_v19  ;;  %8039 = vrot.lane.b32.xlu0 %v7972_v27, %s10540_s16  ;;  %v2664_v27 = vmul.f32 %v2632_v34, %v14612_v51  ;;  %v7918_v34 = vmul.f32 0.6931472, %v10342_v40  ;;  %v10346_v50 = vpop.eup %10345  ;;  %10351 = vlog2.f32 %v7884_v26 }
 0x7a8   :  { %3465 = vmatprep.mubr.f32.mxu1 %v10421_v15  ;;  %9832 = vmatprep.subr.bf16.mxu0 %v14378_v61  ;;  %14609 = vst [vmem:[#allocation47_spill] sm:$0xff] %v13263_v4  ;;  %v13270_v41 = vpop.trf.xlu1  ;;  %v10423_v15 = vld [vmem:[#allocation2 + $0x1b8] sm:$0xff]  ;;  %v7922_v51 = vmul.f32 0.6931472, %v10346_v50 }
 0x7a9   :  { %9398 = vmatmul.mubr.msk.f32.vlgmr.msra.gmra.mrb[154].mxu0 %vm14611_vm13, %v13254_v29  ;;  %v13279_v2 = vpack.c.bf16 %v2665_v37, %v2664_v27  ;;  %v7975_v6 = vmul.f32 %v7918_v34, %v7847_v30  ;;  %v7920_v37 = vmul.f32 0.6931472, %v10344_v7  ;;  %v7850_v7 = vsub.f32 0.0, %v12804_v33  ;;  %v10426_v30 = vld [vmem:[#allocation2 + $0x1e8] sm:$0xff]  ;;  %vm14641_vm13 = vmmov %vm14562_vm0 }
 0x7aa   :  { %9834 = vmatpush3.bf16.msra.mxu0 %v13263_v4  ;;  %9404 = vmatprep.mubr.msk.f32.mxu0 %vm10543_vm14, %v12921_v19  ;;  %v7977_v17 = vmul.f32 %v7922_v51, %v7849_v13 }
 0x7ab   :  { %3466 = vmatmul.mubr.f32.gmra.mrb[114].mxu1 %v12921_v19  ;;  %8041 = vrot.lane.b32.xlu0 %v7973_v53, %s10540_s16  ;;  %14613 = vst [vmem:[#allocation36_spill] sm:$0xff] %v13279_v2  ;;  %v7848_v53 = vsub.f32 0.0, %v12794_v39 }
 0x7ac   :  { %3470 = vmatprep.mubr.f32.mxu1 %v10422_v56  ;;  %9835 = vmatprep.subr.bf16.mxu0 %v14378_v61  ;;  %v10425_v56 = vld [vmem:[#allocation2 + $0x1d8] sm:$0xff] }
 0x7ad   :  { %9405 = vmatmul.mubr.msk.f32.vlgmr.msra.gmra.mrb[156].mxu0 %vm14614_vm11, %v13270_v41  ;;  %v7976_v40 = vmul.f32 %v7920_v37, %v7848_v53  ;;  %v7851_v37 = vsub.f32 0.0, %v12801_v48  ;;  %v10427_v53 = vld [vmem:[#allocation2 + $0x1f8] sm:$0xff]  ;;  %vm14642_vm11 = vmmov %vm14562_vm0 }
 0x7ae   :  { %9837 = vmatpush3.bf16.msra.mxu0 %v13279_v2  ;;  %9411 = vmatprep.mubr.msk.f32.mxu0 %vm10543_vm14, %v12921_v19  ;;  %v10348_v27 = vpop.eup %10347 }
 0x7af   :  { %3471 = vmatmul.mubr.f32.gmra.mrb[116].mxu1 %v12921_v19  ;;  %8043 = vrot.lane.b32.xlu0 %v7974_v35, %s10540_s16  ;;  %v7924_v35 = vmul.f32 0.6931472, %v10348_v27  ;;  %v10350_v34 = vpop.eup %10349 }
 0x7b0   :  { %3475 = vmatprep.mubr.f32.mxu1 %v10423_v15  ;;  %9841 = vmatprep.subr.bf16.mxu0 %v14378_v61 }
 0x7b1   :  { %v7978_v15 = vmul.f32 %v7924_v35, %v7850_v7 }
 0x7b3   :  { %3476 = vmatmul.mubr.f32.gmra.mrb[118].mxu1 %v12921_v19  ;;  %8045 = vrot.lane.b32.xlu0 %v7975_v6, %s10540_s16  ;;  %v7926_v6 = vmul.f32 0.6931472, %v10350_v34 }
 0x7b4   :  { %3480 = vmatprep.mubr.f32.mxu1 %v10424_v0 }
 0x7b5   :  { %v7979_v0 = vmul.f32 %v7926_v6, %v7851_v37 }
 0x7b7   :  { %3481 = vmatmul.mubr.f32.gmra.mrb[120].mxu1 %v12921_v19  ;;  %8047 = vrot.lane.b32.xlu0 %v7976_v40, %s10540_s16 }
 0x7b8   :  { %3485 = vmatprep.mubr.f32.mxu1 %v10425_v56 }
 0x7bb   :  { %3486 = vmatmul.mubr.f32.gmra.mrb[122].mxu1 %v12921_v19  ;;  %8049 = vrot.lane.b32.xlu0 %v7977_v17, %s10540_s16 }
 0x7bc   :  { %3490 = vmatprep.mubr.f32.mxu1 %v10426_v30  ;;  %v13331_v30 = vpop.permute.xlu1 %10058 }
 0x7be   :  { %v13303_v50 = vpop.trf.xlu0 }
 0x7bf   :  { %3491 = vmatmul.mubr.f32.gmra.mrb[124].mxu1 %v12921_v19  ;;  %8051 = vrot.lane.b32.xlu0 %v7978_v15, %s10540_s16 }
 0x7c0   :  { %3495 = vmatprep.mubr.f32.mxu1 %v10427_v53  ;;  %9412 = vmatmul.mubr.msk.f32.vlgmr.msra.gmra.mrb[158].mxu0 %vm14615_vm1, %v13303_v50  ;;  %v13335_v6 = vpop.permute.xlu1 %10068  ;;  %vm14643_vm1 = vmmov %vm14562_vm0 }
 0x7c1   :  { %9425 = vmatprep.mubr.msk.f32.mxu0 %vm10543_vm14, %v12921_v19  ;;  %14626 = vst [vmem:[#allocation22_spill] sm:$0xff] %v13335_v6 }
 0x7c3   :  { %3496 = vmatmul.mubr.f32.gmra.mrb[126].mxu1 %v12921_v19  ;;  %8053 = vrot.lane.b32.xlu0 %v7979_v0, %s10540_s16 }
 0x7c4   :  { %9418 = vmatprep.mubr.msk.f32.mxu1 %vm10543_vm14, %v12921_v19  ;;  %v13341_v0 = vpop.permute.xlu1 %10073 }
 0x7c5   :  { %14629 = vst [vmem:[#allocation55_spill] sm:$0xff] %v13341_v0 }
 0x7c8   :  { %v8034_v4 = vpop.permute.xlu1 %8033 }
 0x7dd   :  { %v13313_v40 = vpop.permute.xlu0 %10063 }
 0x7de   :  { %14616 = vst [vmem:[#allocation45_spill] sm:$0xff] %v13313_v40 }
 0x7e1   :  { %v13315_v51 = vpop.permute.xlu0 %10078 }
 0x7e2   :  { %14617 = vst [vmem:[#allocation42_spill] sm:$0xff] %v13315_v51 }
 0x7e5   :  { %v13317_v27 = vpop.permute.xlu0 %10083 }
 0x7e6   :  { %14618 = vst [vmem:[#allocation49_spill] sm:$0xff] %v13317_v27 }
 0x7e9   :  { %v13319_v13 = vpop.permute.xlu0 %10088 }
 0x7ea   :  { %14619 = vst [vmem:[#allocation40_spill] sm:$0xff] %v13319_v13 }
 0x7ed   :  { %v13321_v56 = vpop.permute.xlu0 %10093 }
 0x7ee   :  { %14620 = vst [vmem:[#allocation25_spill] sm:$0xff] %v13321_v56 }
 0x7f1   :  { %v13323_v17 = vpop.permute.xlu0 %10098 }
 0x7f2   :  { %14621 = vst [vmem:[#allocation21_spill] sm:$0xff] %v13323_v17 }
 0x7f5   :  { %v13325_v35 = vpop.permute.xlu0 %10103 }
 0x7f6   :  { %14622 = vst [vmem:[#allocation48_spill] sm:$0xff] %v13325_v35 }
 0x7f9   :  { %v13327_v34 = vpop.permute.xlu0 %10108 }
 0x7fa   :  { %14623 = vst [vmem:[#allocation51_spill] sm:$0xff] %v13327_v34 }
 0x7fd   :  { %v13329_v7 = vpop.permute.xlu0 %10113 }
 0x7fe   :  { %14624 = vst [vmem:[#allocation50_spill] sm:$0xff] %v13329_v7  ;;  %v8129_v7 = vsel %vm2987_vm15, %v8034_v4, 0.0 }
 0x801   :  { %v13333_v15 = vpop.permute.xlu0 %10118 }
 0x802   :  { %14625 = vst [vmem:[#allocation53_spill] sm:$0xff] %v13333_v15 }
 0x805   :  { %v13337_v37 = vpop.permute.xlu0 %10123 }
 0x806   :  { %14627 = vst [vmem:[#allocation24_spill] sm:$0xff] %v13337_v37 }
 0x809   :  { %v13339_v53 = vpop.permute.xlu0 %10128 }
 0x80a   :  { %14628 = vst [vmem:[#allocation52_spill] sm:$0xff] %v13339_v53 }
 0x80d   :  { %v13343_v2 = vpop.permute.xlu0 %10133 }
 0x80e   :  { %14630 = vst [vmem:[#allocation54_spill] sm:$0xff] %v13343_v2 }
 0x811   :  { %v8036_v35 = vpop.permute.xlu0 %8035 }
 0x812   :  { %v8130_v34 = vsel %vm2987_vm15, %v8036_v35, 0.0 }
 0x813   :  { %v8131_v10 = vadd.f32 %v8130_v34, %v8129_v7 }
 0x815   :  { %v8038_v17 = vpop.permute.xlu0 %8037 }
 0x816   :  { %v8132_v15 = vsel %vm2987_vm15, %v8038_v17, 0.0 }
 0x817   :  { %v8133_v56 = vadd.f32 %v8132_v15, %v8131_v10 }
 0x819   :  { %v8040_v37 = vpop.permute.xlu0 %8039 }
 0x81a   :  { %v8134_v53 = vsel %vm2987_vm15, %v8040_v37, 0.0  ;;  %v3342_v13 = vpop.f32.mrb[64].mxu1 }
 0x81b   :  { %v8135_v27 = vadd.f32 %v8134_v53, %v8133_v56  ;;  %7453 = vrot.lane.b32.xlu1 %v3342_v13, %s10533_s23  ;;  %v3344_v2 = vpop.f32.mrb[65].mxu1 }
 0x81d   :  { %v8042_v51 = vpop.permute.xlu0 %8041 }
 0x81e   :  { %v8136_v35 = vsel %vm2987_vm15, %v8042_v51, 0.0  ;;  %v3347_v4 = vpop.f32.mrb[66].mxu1  ;;  %v10352_v51 = vpop.eup %10351 }
 0x81f   :  { %v8137_v34 = vadd.f32 %v8136_v35, %v8135_v27  ;;  %v9839_v7 = vpack.c.bf16 %v3347_v4, %v3342_v13  ;;  %7455 = vrot.lane.b32.xlu1 %v3347_v4, %s10533_s23  ;;  %v3349_v10 = vpop.f32.mrb[67].mxu1 }
 0x820   :  { %v7928_v10 = vmul.f32 0.6931472, %v10352_v51 }
 0x821   :  { %9840 = vmatpush3.bf16.msra.mxu1 %v9839_v7  ;;  %v8044_v17 = vpop.permute.xlu0 %8043 }
 0x822   :  { %v8138_v15 = vsel %vm2987_vm15, %v8044_v17, 0.0  ;;  %v3352_v37 = vpop.f32.mrb[68].mxu1  ;;  %9844 = vmatprep.subr.bf16.mxu1 %v14378_v61 }
 0x823   :  { %v8139_v56 = vadd.f32 %v8138_v15, %v8137_v34  ;;  %7457 = vrot.lane.b32.xlu1 %v3352_v37, %s10533_s23  ;;  %v3354_v26 = vpop.f32.mrb[69].mxu1  ;;  %v7885_v34 = vadd.f32 1e-15, %v12811_v5 }
 0x824   :  { %9419 = vmatmul.mubr.msk.f32.vlgmr.msra.gmra.mrb[128].mxu1 %vm14631_vm12, %v13006_v60  ;;  %vm8626_vm12 = vcmask 125952  }
 0x825   :  { %v8046_v2 = vpop.permute.xlu0 %8045  ;;  %9432 = vmatprep.mubr.msk.f32.mxu1 %vm10543_vm14, %v12921_v19  ;;  %10353 = vlog2.f32 %v7885_v34 }
 0x826   :  { %v8140_v27 = vsel %vm2987_vm15, %v8046_v2, 0.0  ;;  %v3357_v13 = vpop.f32.mrb[70].mxu1 }
 0x827   :  { %v8141_v53 = vadd.f32 %v8140_v27, %v8139_v56  ;;  %v9842_v35 = vpack.c.bf16 %v3357_v13, %v3352_v37  ;;  %7459 = vrot.lane.b32.xlu1 %v3357_v13, %s10533_s23  ;;  %v3359_v4 = vpop.f32.mrb[71].mxu1  ;;  %v7852_v56 = vsub.f32 0.0, %v12814_v3 }
 0x829   :  { %v8048_v7 = vpop.permute.xlu0 %8047  ;;  %9843 = vmatpush3.bf16.msra.mxu0 %v9842_v35  ;;  %v7980_v2 = vmul.f32 %v7928_v10, %v7852_v56  ;;  %v13381_v10 = vld [vmem:[#allocation2 + $0x8] sm:$0xff] }
 0x82a   :  { %v8142_v17 = vsel %vm2987_vm15, %v8048_v7, 0.0  ;;  %v3362_v15 = vpop.f32.mrb[72].mxu1  ;;  %9847 = vmatprep.subr.bf16.mxu0 %v14378_v61 }
 0x82b   :  { %v8143_v26 = vadd.f32 %v8142_v17, %v8141_v53  ;;  %v3364_v0 = vpop.f32.mrb[73].mxu1  ;;  %7461 = vrot.lane.b32.xlu0 %v3362_v15, %s10533_s23 }
 0x82c   :  { %9426 = vmatmul.mubr.msk.f32.vlgmr.msra.gmra.mrb[160].mxu0 %vm14562_vm0, %v13040_v11 }
 0x82d   :  { %v8050_v37 = vpop.permute.xlu0 %8049  ;;  %9439 = vmatprep.mubr.msk.f32.mxu0 %vm10543_vm14, %v12921_v19 }
 0x82e   :  { %v8144_v51 = vsel %vm2987_vm15, %v8050_v37, 0.0  ;;  %v3367_v27 = vpop.f32.mrb[74].mxu1  ;;  %v7886_v37 = vadd.f32 1e-15, %v12824_v63 }
 0x82f   :  { %v8145_v13 = vadd.f32 %v8144_v51, %v8143_v26  ;;  %v9845_v35 = vpack.c.bf16 %v3367_v27, %v3362_v15  ;;  %7463 = vrot.lane.b32.xlu1 %v3367_v27, %s10533_s23  ;;  %v3369_v0 = vpop.f32.mrb[75].mxu1  ;;  %8055 = vrot.lane.b32.xlu0 %v7980_v2, %s10540_s16  ;;  %v10354_v17 = vpop.eup %10353 }
 0x830   :  { %v7930_v2 = vmul.f32 0.6931472, %v10354_v17  ;;  %10355 = vlog2.f32 %v7886_v37  ;;  %v7887_v37 = vadd.f32 1e-15, %v12821_v57 }
 0x831   :  { %9846 = vmatpush3.bf16.msra.mxu1 %v9845_v35  ;;  %v8052_v53 = vpop.permute.xlu0 %8051 }
 0x832   :  { %v8146_v4 = vsel %vm2987_vm15, %v8052_v53, 0.0  ;;  %v3372_v34 = vpop.f32.mrb[76].mxu1  ;;  %9850 = vmatprep.subr.bf16.mxu1 %v14378_v61  ;;  %10357 = vlog2.f32 %v7887_v37 }
 0x833   :  { %v13376_v7 = vadd.f32 %v8146_v4, %v8145_v13  ;;  %7465 = vrot.lane.b32.xlu1 %v3372_v34, %s10533_s23  ;;  %v3374_v19 = vpop.f32.mrb[77].mxu1  ;;  %v7853_v13 = vsub.f32 0.0, %v12811_v5 }
 0x834   :  { %9433 = vmatmul.mubr.msk.f32.vlgmr.msra.gmra.mrb[130].mxu1 %vm14632_vm2, %v13045_v24  ;;  %vm14644_vm2 = vmmov %vm14562_vm0 }
 0x835   :  { %9446 = vmatprep.mubr.msk.f32.mxu1 %vm10543_vm14, %v13381_v10  ;;  %v7981_v35 = vmul.f32 %v7930_v2, %v7853_v13  ;;  %v7854_v13 = vsub.f32 0.0, %v12824_v63 }
 0x836   :  { %v3377_v15 = vpop.f32.mrb[78].mxu1 }
 0x837   :  { %v9848_v26 = vpack.c.bf16 %v3377_v15, %v3372_v34  ;;  %7467 = vrot.lane.b32.xlu1 %v3377_v15, %s10533_s23  ;;  %v3379_v56 = vpop.f32.mrb[79].mxu1 }
 0x839   :  { %9849 = vmatpush3.bf16.msra.mxu0 %v9848_v26 }
 0x83a   :  { %v3382_v51 = vpop.f32.mrb[80].mxu1  ;;  %9853 = vmatprep.subr.bf16.mxu0 %v14378_v61  ;;  %v10356_v17 = vpop.eup %10355 }
 0x83b   :  { %v3384_v27 = vpop.f32.mrb[81].mxu1  ;;  %7469 = vrot.lane.b32.xlu0 %v3382_v51, %s10533_s23  ;;  %v7932_v2 = vmul.f32 0.6931472, %v10356_v17 }
 0x83c   :  { %9440 = vmatmul.mubr.msk.f32.vlgmr.msra.gmra.mrb[162].mxu0 %vm14633_vm3, %v13070_v22  ;;  %v10358_v17 = vpop.eup %10357  ;;  %vm14645_vm3 = vmmov %vm14562_vm0 }
 0x83d   :  { %9453 = vmatprep.mubr.msk.f32.mxu0 %vm10543_vm14, %v13381_v10  ;;  %v7934_v37 = vmul.f32 0.6931472, %v10358_v17 }
 0x83e   :  { %v3387_v0 = vpop.f32.mrb[82].mxu1 }
 0x83f   :  { %v9851_v53 = vpack.c.bf16 %v3387_v0, %v3382_v51  ;;  %7471 = vrot.lane.b32.xlu1 %v3387_v0, %s10533_s23  ;;  %v3389_v4 = vpop.f32.mrb[83].mxu1  ;;  %8057 = vrot.lane.b32.xlu0 %v7981_v35, %s10540_s16  ;;  %v7982_v35 = vmul.f32 %v7932_v2, %v7854_v13 }
 0x841   :  { %9852 = vmatpush3.bf16.msra.mxu1 %v9851_v53 }
 0x842   :  { %v3392_v34 = vpop.f32.mrb[84].mxu1  ;;  %9856 = vmatprep.subr.bf16.mxu1 %v14378_v61 }
 0x843   :  { %7473 = vrot.lane.b32.xlu1 %v3392_v34, %s10533_s23  ;;  %v3394_v19 = vpop.f32.mrb[85].mxu1 }
 0x844   :  { %9447 = vmatmul.mubr.msk.f32.vlgmr.msra.gmra.mrb[132].mxu1 %vm14634_vm4, %v13088_v62  ;;  %vm14646_vm4 = vmmov %vm14562_vm0 }
 0x845   :  { %9460 = vmatprep.mubr.msk.f32.mxu1 %vm10543_vm14, %v13381_v10 }
 0x846   :  { %v3397_v15 = vpop.f32.mrb[86].mxu1 }
 0x847   :  { %v9854_v26 = vpack.c.bf16 %v3397_v15, %v3392_v34  ;;  %7475 = vrot.lane.b32.xlu1 %v3397_v15, %s10533_s23  ;;  %v3399_v56 = vpop.f32.mrb[87].mxu1 }
 0x849   :  { %9855 = vmatpush3.bf16.msra.mxu0 %v9854_v26 }
 0x84a   :  { %v3402_v51 = vpop.f32.mrb[88].mxu1  ;;  %9859 = vmatprep.subr.bf16.mxu0 %v14378_v61 }
 0x84b   :  { %v3404_v27 = vpop.f32.mrb[89].mxu1  ;;  %7477 = vrot.lane.b32.xlu0 %v3402_v51, %s10533_s23 }
 0x84c   :  { %9454 = vmatmul.mubr.msk.f32.vlgmr.msra.gmra.mrb[164].mxu0 %vm14635_vm5, %v13105_v9  ;;  %v7855_v27 = vsub.f32 0.0, %v12821_v57  ;;  %vm14647_vm5 = vmmov %vm14562_vm0 }
 0x84d   :  { %9467 = vmatprep.mubr.msk.f32.mxu0 %vm10543_vm14, %v13381_v10 }
 0x84e   :  { %v3407_v0 = vpop.f32.mrb[90].mxu1  ;;  %v7983_v13 = vmul.f32 %v7934_v37, %v7855_v27 }
 0x84f   :  { %v9857_v53 = vpack.c.bf16 %v3407_v0, %v3402_v51  ;;  %7479 = vrot.lane.b32.xlu1 %v3407_v0, %s10533_s23  ;;  %v3409_v4 = vpop.f32.mrb[91].mxu1  ;;  %8059 = vrot.lane.b32.xlu0 %v7982_v35, %s10540_s16 }
 0x851   :  { %9858 = vmatpush3.bf16.msra.mxu1 %v9857_v53 }
 0x852   :  { %v3412_v34 = vpop.f32.mrb[92].mxu1  ;;  %9862 = vmatprep.subr.bf16.mxu1 %v14378_v61 }
 0x853   :  { %7481 = vrot.lane.b32.xlu1 %v3412_v34, %s10533_s23  ;;  %v3414_v19 = vpop.f32.mrb[93].mxu1 }
 0x854   :  { %9461 = vmatmul.mubr.msk.f32.vlgmr.msra.gmra.mrb[134].mxu1 %vm14636_vm6, %v13125_v46  ;;  %vm14648_vm6 = vmmov %vm14562_vm0 }
 0x855   :  { %9474 = vmatprep.mubr.msk.f32.mxu1 %vm10543_vm14, %v13381_v10 }
 0x856   :  { %v3417_v15 = vpop.f32.mrb[94].mxu1 }
 0x857   :  { %v9860_v26 = vpack.c.bf16 %v3417_v15, %v3412_v34  ;;  %7483 = vrot.lane.b32.xlu1 %v3417_v15, %s10533_s23  ;;  %v3419_v56 = vpop.f32.mrb[95].mxu1 }
 0x859   :  { %9861 = vmatpush3.bf16.msra.mxu0 %v9860_v26 }
 0x85a   :  { %v3422_v2 = vpop.f32.mrb[96].mxu1  ;;  %9865 = vmatprep.subr.bf16.mxu0 %v14378_v61 }
 0x85b   :  { %7485 = vrot.lane.b32.xlu0 %v3422_v2, %s10533_s23  ;;  %v3424_v51 = vpop.f32.mrb[97].mxu1 }
 0x85c   :  { %9468 = vmatmul.mubr.msk.f32.vlgmr.msra.gmra.mrb[166].mxu0 %vm14637_vm7, %v13143_v36  ;;  %vm14650_vm7 = vmmov %vm14562_vm0 }
 0x85d   :  { %9481 = vmatprep.mubr.msk.f32.mxu0 %vm10543_vm14, %v13381_v10 }
 0x85e   :  { %v3427_v35 = vpop.f32.mrb[98].mxu1 }
 0x85f   :  { %v9863_v0 = vpack.c.bf16 %v3427_v35, %v3422_v2  ;;  %7487 = vrot.lane.b32.xlu1 %v3427_v35, %s10533_s23  ;;  %8061 = vrot.lane.b32.xlu0 %v7983_v13, %s10540_s16  ;;  %v3429_v53 = vpop.f32.mrb[99].mxu1 }
 0x861   :  { %9864 = vmatpush3.bf16.msra.mxu1 %v9863_v0 }
 0x862   :  { %v3432_v4 = vpop.f32.mrb[100].mxu1  ;;  %9868 = vmatprep.subr.bf16.mxu1 %v14378_v61 }
 0x863   :  { %7489 = vrot.lane.b32.xlu1 %v3432_v4, %s10533_s23  ;;  %v3434_v34 = vpop.f32.mrb[101].mxu1 }
 0x864   :  { %9475 = vmatmul.mubr.msk.f32.vlgmr.msra.gmra.mrb[136].mxu1 %vm14638_vm8, %v13162_v52  ;;  %vm14652_vm8 = vmmov %vm14562_vm0 }
 0x865   :  { %9488 = vmatprep.mubr.msk.f32.mxu1 %vm10543_vm14, %v13381_v10 }
 0x866   :  { %v3437_v19 = vpop.f32.mrb[102].mxu1 }
 0x867   :  { %v9866_v17 = vpack.c.bf16 %v3437_v19, %v3432_v4  ;;  %7491 = vrot.lane.b32.xlu1 %v3437_v19, %s10533_s23  ;;  %v3439_v15 = vpop.f32.mrb[103].mxu1  ;;  %v3602_v19 = vpop.f32.mrb[128].mxu0 }
 0x868   :  { %v9308_v15 = vpop.f32.mrb[129].mxu0  ;;  %8627 = vst.msk [vmem:[#allocation8] sm:$0xf] %vm8626_vm12, %v3602_v19 }
 0x869   :  { %9867 = vmatpush3.bf16.msra.mxu0 %v9866_v17 }
 0x86a   :  { %v3442_v26 = vpop.f32.mrb[104].mxu1  ;;  %9871 = vmatprep.subr.bf16.mxu0 %v14378_v61 }
 0x86b   :  { %7493 = vrot.lane.b32.xlu0 %v3442_v26, %s10533_s23  ;;  %v3444_v56 = vpop.f32.mrb[105].mxu1 }
 0x86c   :  { %9482 = vmatmul.mubr.msk.f32.vlgmr.msra.gmra.mrb[168].mxu0 %vm14639_vm9, %v13182_v32  ;;  %vm14655_vm9 = vmmov %vm14562_vm0 }
 0x86d   :  { %9495 = vmatprep.mubr.msk.f32.mxu0 %vm10543_vm14, %v13381_v10 }
 0x86e   :  { %v3447_v37 = vpop.f32.mrb[106].mxu1 }
 0x86f   :  { %v9869_v2 = vpack.c.bf16 %v3447_v37, %v3442_v26  ;;  %7495 = vrot.lane.b32.xlu1 %v3447_v37, %s10533_s23  ;;  %v3449_v51 = vpop.f32.mrb[107].mxu1  ;;  %v3707_v37 = vpop.f32.mrb[130].mxu0 }
 0x870   :  { %8628 = vst.msk [vmem:[#allocation8 + $0x4] sm:$0xf] %vm8626_vm12, %v3707_v37 }
 0x871   :  { %9870 = vmatpush3.bf16.msra.mxu1 %v9869_v2  ;;  %v9315_v2 = vpop.f32.mrb[131].mxu0 }
 0x872   :  { %v3452_v27 = vpop.f32.mrb[108].mxu1  ;;  %9874 = vmatprep.subr.bf16.mxu1 %v14378_v61  ;;  %v3812_v51 = vpop.f32.mrb[132].mxu0 }
 0x873   :  { %7497 = vrot.lane.b32.xlu1 %v3452_v27, %s10533_s23  ;;  %v3454_v13 = vpop.f32.mrb[109].mxu1  ;;  %8629 = vst.msk [vmem:[#allocation8 + $0x8] sm:$0xf] %vm8626_vm12, %v3812_v51 }
 0x874   :  { %9489 = vmatmul.mubr.msk.f32.vlgmr.msra.gmra.mrb[138].mxu1 %vm14640_vm10, %v13200_v1  ;;  %v9322_v13 = vpop.f32.mrb[133].mxu0  ;;  %vm14657_vm10 = vmmov %vm14562_vm0 }
 0x875   :  { %9502 = vmatprep.mubr.msk.f32.mxu1 %vm10543_vm14, %v13381_v10 }
 0x876   :  { %v3457_v35 = vpop.f32.mrb[110].mxu1 }
 0x877   :  { %v9872_v0 = vpack.c.bf16 %v3457_v35, %v3452_v27  ;;  %7499 = vrot.lane.b32.xlu1 %v3457_v35, %s10533_s23  ;;  %v3459_v53 = vpop.f32.mrb[111].mxu1 }
 0x879   :  { %9873 = vmatpush3.bf16.msra.mxu0 %v9872_v0  ;;  %v3917_v0 = vpop.f32.mrb[134].mxu0 }
 0x87a   :  { %v3462_v4 = vpop.f32.mrb[112].mxu1  ;;  %9877 = vmatprep.subr.bf16.mxu0 %v14378_v61  ;;  %v9329_v53 = vpop.f32.mrb[135].mxu0  ;;  %8630 = vst.msk [vmem:[#allocation8 + $0xc] sm:$0xf] %vm8626_vm12, %v3917_v0 }
 0x87b   :  { %7501 = vrot.lane.b32.xlu0 %v3462_v4, %s10533_s23  ;;  %v3464_v34 = vpop.f32.mrb[113].mxu1 }
 0x87c   :  { %9496 = vmatmul.mubr.msk.f32.vlgmr.msra.gmra.mrb[170].mxu0 %vm14641_vm13, %v13218_v25  ;;  %vm14661_vm13 = vmmov %vm14562_vm0 }
 0x87d   :  { %9509 = vmatprep.mubr.msk.f32.mxu0 %vm10543_vm14, %v13381_v10 }
 0x87e   :  { %v3467_v17 = vpop.f32.mrb[114].mxu1 }
 0x87f   :  { %v9875_v26 = vpack.c.bf16 %v3467_v17, %v3462_v4  ;;  %7503 = vrot.lane.b32.xlu1 %v3467_v17, %s10533_s23  ;;  %v3469_v56 = vpop.f32.mrb[115].mxu1  ;;  %v4022_v4 = vpop.f32.mrb[136].mxu0 }
 0x880   :  { %v9336_v17 = vpop.f32.mrb[137].mxu0  ;;  %8631 = vst.msk [vmem:[#allocation8 + $0x10] sm:$0xf] %vm8626_vm12, %v4022_v4  ;;  %v8054_v4 = vpop.permute.xlu0 %8053 }
 0x881   :  { %9876 = vmatpush3.bf16.msra.mxu1 %v9875_v26  ;;  %v4127_v56 = vpop.f32.mrb[138].mxu0 }
 0x882   :  { %v3472_v27 = vpop.f32.mrb[116].mxu1  ;;  %9880 = vmatprep.subr.bf16.mxu1 %v14378_v61  ;;  %v9343_v2 = vpop.f32.mrb[139].mxu0  ;;  %8632 = vst.msk [vmem:[#allocation8 + $0x14] sm:$0xf] %vm8626_vm12, %v4127_v56 }
 0x883   :  { %7505 = vrot.lane.b32.xlu0 %v3472_v27, %s10533_s23  ;;  %v3474_v35 = vpop.f32.mrb[117].mxu1  ;;  %v4232_v13 = vpop.f32.mrb[140].mxu0  ;;  %v7888_v2 = vadd.f32 1e-15, %v12834_v31 }
 0x884   :  { %9503 = vmatmul.mubr.msk.f32.vlgmr.msra.gmra.mrb[140].mxu1 %vm14642_vm11, %v13237_v16  ;;  %v9350_v57 = vpop.f32.mrb[141].mxu0  ;;  %8633 = vst.msk [vmem:[#allocation8 + $0x18] sm:$0xf] %vm8626_vm12, %v4232_v13  ;;  %vm14662_vm11 = vmmov %vm14562_vm0 }
 0x885   :  { %9516 = vmatprep.mubr.msk.f32.mxu1 %vm10543_vm14, %v13381_v10  ;;  %v4337_v63 = vpop.f32.mrb[142].mxu0  ;;  %10359 = vlog2.f32 %v7888_v2 }
 0x886   :  { %v3477_v34 = vpop.f32.mrb[118].mxu1  ;;  %v9357_v17 = vpop.f32.mrb[143].mxu0  ;;  %8634 = vst.msk [vmem:[#allocation8 + $0x1c] sm:$0xf] %vm8626_vm12, %v4337_v63 }
 0x887   :  { %v9878_v15 = vpack.c.bf16 %v3477_v34, %v3472_v27  ;;  %7507 = vrot.lane.b32.xlu1 %v3477_v34, %s10533_s23  ;;  %v3479_v26 = vpop.f32.mrb[119].mxu1  ;;  %v4442_v34 = vpop.f32.mrb[144].mxu0 }
 0x888   :  { %v9364_v6 = vpop.f32.mrb[145].mxu0  ;;  %8635 = vst.msk [vmem:[#allocation8 + $0x20] sm:$0xf] %vm8626_vm12, %v4442_v34 }
 0x889   :  { %9879 = vmatpush3.bf16.msra.mxu0 %v9878_v15  ;;  %v4547_v5 = vpop.f32.mrb[146].mxu0 }
 0x88a   :  { %v3482_v35 = vpop.f32.mrb[120].mxu1  ;;  %9883 = vmatprep.subr.bf16.mxu0 %v14378_v61  ;;  %v9371_v40 = vpop.f32.mrb[147].mxu0  ;;  %8636 = vst.msk [vmem:[#allocation8 + $0x24] sm:$0xf] %vm8626_vm12, %v4547_v5 }
 0x88b   :  { %7509 = vrot.lane.b32.xlu0 %v3482_v35, %s10533_s23  ;;  %v3484_v53 = vpop.f32.mrb[121].mxu1  ;;  %v4652_v44 = vpop.f32.mrb[148].mxu0 }
 0x88c   :  { %9510 = vmatmul.mubr.msk.f32.vlgmr.msra.gmra.mrb[172].mxu0 %vm14643_vm1, %v13254_v29  ;;  %8637 = vst.msk [vmem:[#allocation8 + $0x28] sm:$0xf] %vm8626_vm12, %v4652_v44  ;;  %vm14666_vm1 = vmmov %vm14562_vm0 }
 0x88d   :  { %v7454_v27 = vpop.permute.xlu1 %7453  ;;  %9523 = vmatprep.mubr.msk.f32.mxu0 %vm10543_vm14, %v13381_v10 }
 0x88e   :  { %v7549_v15 = vmul.f32 %v7454_v27, %v12756_v20  ;;  %v3487_v26 = vpop.f32.mrb[122].mxu1  ;;  %v9378_v20 = vpop.f32.mrb[149].mxu0 }
 0x88f   :  { %v9881_v57 = vpack.c.bf16 %v3487_v26, %v3482_v35  ;;  %7511 = vrot.lane.b32.xlu1 %v3487_v26, %s10533_s23  ;;  %v3489_v53 = vpop.f32.mrb[123].mxu1  ;;  %v7889_v35 = vadd.f32 1e-15, %v12831_v42  ;;  %v8148_v26 = vsel %vm2987_vm15, %v8054_v4, 0.0  ;;  %v7858_v4 = vsub.f32 0.0, %v12844_v12 }
 0x890   :  { %7613 = vrot.lane.b32.xlu0 %v7549_v15, %s10540_s16  ;;  %v10360_v15 = vpop.eup %10359  ;;  %v7856_v53 = vsub.f32 0.0, %v12834_v31 }
 0x891   :  { %v7456_v17 = vpop.permute.xlu1 %7455  ;;  %9882 = vmatpush3.bf16.msra.mxu1 %v9881_v57  ;;  %10361 = vlog2.f32 %v7889_v35  ;;  %v7936_v57 = vmul.f32 0.6931472, %v10360_v15  ;;  %v14651_v35 = vld [vmem:[#allocation33_spill] sm:$0xff]  ;;  %v14663_v15 = vld [vmem:[#allocation71_spill] sm:$0xff] }
 0x892   :  { %v7550_v3 = vmul.f32 %v7456_v17, %v12761_v23  ;;  %v3492_v29 = vpop.f32.mrb[124].mxu1  ;;  %9886 = vmatprep.subr.bf16.mxu1 %v14378_v61  ;;  %v4757_v23 = vpop.f32.mrb[150].mxu0  ;;  %v7892_v17 = vadd.f32 1e-15, %v12854_v49 }
 0x893   :  { %v3494_v6 = vpop.f32.mrb[125].mxu1  ;;  %8638 = vst.msk [vmem:[#allocation8 + $0x2c] sm:$0xf] %vm8626_vm12, %v4757_v23  ;;  %v9385_v40 = vpop.f32.mrb[151].mxu0  ;;  %v7893_v23 = vadd.f32 1e-15, %v14651_v35 }
 0x894   :  { %7615 = vrot.lane.b32.xlu1 %v7550_v3, %s10540_s16  ;;  %7513 = vrot.lane.b32.xlu0 %v3492_v29, %s10533_s23  ;;  %v4862_v37 = vpop.f32.mrb[152].mxu0  ;;  %v14649_v6 = vld [vmem:[#allocation79_spill] sm:$0xff] }
 0x895   :  { %9517 = vmatmul.mubr.msk.f32.vlgmr.msra.gmra.mrb[142].mxu1 %vm14562_vm0, %v13270_v41  ;;  %v7458_v19 = vpop.permute.xlu1 %7457  ;;  %8639 = vst.msk [vmem:[#allocation8 + $0x30] sm:$0xf] %vm8626_vm12, %v4862_v37  ;;  %v9392_v3 = vpop.f32.mrb[153].mxu0  ;;  %v7857_v37 = vsub.f32 0.0, %v12831_v42 }
 0x896   :  { %v7551_v63 = vmul.f32 %v7458_v19, %v12766_v47  ;;  %9888 = vmatpush3.bf16.msra.mxu1 %v12908_v21  ;;  %v3497_v5 = vpop.f32.mrb[126].mxu1  ;;  %9530 = vmatprep.mubr.msk.f32.mxu1 %vm10543_vm14, %v13381_v10  ;;  %v4967_v0 = vpop.f32.mrb[154].mxu0  ;;  %v7890_v47 = vadd.f32 1e-15, %v12844_v12 }
 0x897   :  { %v9884_v44 = vpack.c.bf16 %v3497_v5, %v3492_v29  ;;  %9892 = vmatprep.subr.bf16.mxu1 %v14378_v61  ;;  %v3499_v51 = vpop.f32.mrb[127].mxu1  ;;  %8640 = vst.msk [vmem:[#allocation8 + $0x34] sm:$0xf] %vm8626_vm12, %v4967_v0  ;;  %v9399_v21 = vpop.f32.mrb[155].mxu0 }
 0x898   :  { %7515 = vrot.lane.b32.xlu1 %v3497_v5, %s10533_s23  ;;  %7617 = vrot.lane.b32.xlu0 %v7551_v63, %s10540_s16  ;;  %v5072_v29 = vpop.f32.mrb[156].mxu0  ;;  %10363 = vlog2.f32 %v7890_v47  ;;  %v14653_v63 = vld [vmem:[#allocation80_spill] sm:$0xff]  ;;  %v14654_v5 = vld [vmem:[#allocation82_spill] sm:$0xff]  ;;  %v14656_v51 = vld [vmem:[#allocation69_spill] sm:$0xff] }
 0x899   :  { %9531 = vmatmul.mubr.msk.f32.vlgmr.msra.gmra.mrb[144].mxu1 %vm14644_vm2, %v13006_v60  ;;  %v7460_v56 = vpop.permute.xlu1 %7459  ;;  %9885 = vmatpush3.bf16.msra.mxu0 %v9884_v44  ;;  %8641 = vst.msk [vmem:[#allocation8 + $0x38] sm:$0xf] %vm8626_vm12, %v5072_v29  ;;  %v9406_v27 = vpop.f32.mrb[157].mxu0  ;;  %v7894_v0 = vadd.f32 1e-15, %v14656_v51  ;;  %v14658_v47 = vld [vmem:[#allocation81_spill] sm:$0xff]  ;;  %vm14670_vm2 = vmmov %vm14666_vm1 }
 0x89a   :  { %v7552_v13 = vmul.f32 %v7460_v56, %v12776_v43  ;;  %9894 = vmatpush3.bf16.msra.mxu1 %v12927_v59  ;;  %9544 = vmatprep.mubr.msk.f32.mxu1 %vm10543_vm14, %v13381_v10  ;;  %v5177_v34 = vpop.f32.mrb[158].mxu0  ;;  %v7891_v43 = vadd.f32 1e-15, %v12841_v58  ;;  %v14659_v21 = vld [vmem:[#allocation84_spill] sm:$0xff]  ;;  %v7859_v27 = vsub.f32 0.0, %v12841_v58 }
 0x89b   :  { %9889 = vmatprep.subr.bf16.mxu0 %v14378_v61  ;;  %9898 = vmatprep.subr.bf16.mxu1 %v14378_v61  ;;  %8642 = vst.msk [vmem:[#allocation8 + $0x3c] sm:$0xf] %vm8626_vm12, %v5177_v34  ;;  %v9413_v59 = vpop.f32.mrb[159].mxu0  ;;  %vm14667_vm12 = vmmov %vm14562_vm0 }
 0x89c   :  { %7619 = vrot.lane.b32.xlu1 %v7552_v13, %s10540_s16  ;;  %9524 = vmatmul.mubr.msk.f32.vlgmr.msra.gmra.mrb[174].mxu0 %vm14645_vm3, %v13303_v50  ;;  %10365 = vlog2.f32 %v7891_v43  ;;  %v7896_v43 = vadd.f32 1e-15, %v14663_v15  ;;  %v14664_v59 = vld [vmem:[#allocation86_spill] sm:$0xff]  ;;  %vm13610_vm0 = vmpackc.low %vm14667_vm12, %vm14667_vm12 }
 0x89d   :  { %9545 = vmatmul.mubr.msk.f32.vlgmr.msra.gmra.mrb[146].mxu1 %vm14646_vm4, %v13045_v24  ;;  %v7462_v60 = vpop.permute.xlu0 %7461  ;;  %9891 = vmatpush3.bf16.msra.mxu0 %v12919_v55  ;;  %v10362_v55 = vpop.eup %10361  ;;  %10367 = vlog2.f32 %v7892_v17  ;;  %v14672_v17 = vld [vmem:[#allocation85_spill] sm:$0xff]  ;;  %vm14674_vm3 = vmmov %vm14666_vm1 }
 0x89e   :  { %9900 = vmatpush3.bf16.msra.mxu1 %v12935_v38  ;;  %v7553_v2 = vmul.f32 %v7462_v60, %v12771_v14  ;;  %9537 = vmatprep.mubr.msk.f32.mxu0 %vm10543_vm14, %v13381_v10  ;;  %v8149_v38 = vadd.f32 %v8148_v26, %v13376_v7  ;;  %10369 = vlog2.f32 %v7893_v23  ;;  %v14665_v60 = vld [vmem:[#allocation83_spill] sm:$0xff]  ;;  %v10060_v23 = vunpack.i.l.bf16 %v13331_v30  ;;  %vm14676_vm4 = vmmov %vm14666_vm1 }
 0x89f   :  { %9558 = vmatprep.mubr.msk.f32.mxu1 %vm10543_vm14, %v13381_v10  ;;  %9904 = vmatprep.subr.bf16.mxu1 %v14378_v61  ;;  %10371 = vlog2.f32 %v7894_v0  ;;  %v14684_v0 = vld [vmem:[#allocation89_spill] sm:$0xff]  ;;  %vm14730_vm12 = vmmov %vm14666_vm1 }
 0x8a0   :  { %7621 = vrot.lane.b32.xlu0 %v7553_v2, %s10540_s16  ;;  %9538 = vmatmul.mubr.msk.f32.vlgmr.msra.gmra.mrb[176].mxu0 %vm14647_vm5, %v13040_v11  ;;  %vm13649_vm5 = vmpackc.low %vm2987_vm15, %vm2987_vm15 }
 0x8a1   :  { %9559 = vmatmul.mubr.msk.f32.vlgmr.msra.gmra.mrb[148].mxu1 %vm14648_vm6, %v13088_v62  ;;  %9895 = vmatprep.subr.bf16.mxu0 %v14378_v61  ;;  %v7464_v14 = vpop.permute.xlu1 %7463  ;;  %v8056_v24 = vpop.permute.xlu0 %8055  ;;  %v7984_v62 = vmul.f32 %v7936_v57, %v7856_v53  ;;  %vm14682_vm6 = vmmov %vm14666_vm1 }
 0x8a2   :  { %v7554_v20 = vmul.f32 %v7464_v14, %v12784_v8  ;;  %9906 = vmatpush3.bf16.msra.mxu1 %v12943_v54  ;;  %v8150_v11 = vsel %vm2987_vm15, %v8056_v24, 0.0  ;;  %9897 = vmatpush3.bf16.msra.mxu0 %v14649_v6  ;;  %v7938_v8 = vmul.f32 0.6931472, %v10362_v55  ;;  %v10364_v40 = vpop.eup %10363  ;;  %v7860_v14 = vsub.f32 0.0, %v12854_v49  ;;  %v14673_v6 = vld [vmem:[#allocation70_spill] sm:$0xff] }
 0x8a3   :  { %v13541_v7 = vadd.f32 %v8150_v11, %v8149_v38  ;;  %9551 = vmatprep.mubr.msk.f32.mxu0 %vm10543_vm14, %v13381_v10  ;;  %9572 = vmatprep.mubr.msk.f32.mxu1 %vm10543_vm14, %v13381_v10  ;;  %v7940_v3 = vmul.f32 0.6931472, %v10364_v40 }
 0x8a4   :  { %7623 = vrot.lane.b32.xlu1 %v7554_v20, %s10540_s16  ;;  %9910 = vmatprep.subr.bf16.mxu1 %v14378_v61 }
 0x8a5   :  { %9573 = vmatmul.mubr.msk.f32.vlgmr.msra.gmra.mrb[150].mxu1 %vm14650_vm7, %v13125_v46  ;;  %8063 = vrot.lane.b32.xlu0 %v7984_v62, %s10540_s16  ;;  %v7466_v54 = vpop.permute.xlu1 %7465  ;;  %v7985_v46 = vmul.f32 %v7938_v8, %v7857_v37  ;;  %v14675_v8 = vld [vmem:[#allocation73_spill] sm:$0xff]  ;;  %vm7799_vm7 = vcmask 27648  }
 0x8a6   :  { %9552 = vmatmul.mubr.msk.f32.vlgmr.msra.gmra.mrb[178].mxu0 %vm14652_vm8, %v13070_v22  ;;  %9901 = vmatprep.subr.bf16.mxu0 %v14378_v61  ;;  %v7555_v19 = vmul.f32 %v7466_v54, %v12781_v28  ;;  %v10366_v28 = vpop.eup %10365  ;;  %v10061_v54 = vunpack.i.h.bf16 %v13331_v30  ;;  %v7862_v30 = vsub.f32 0.0, %v14656_v51  ;;  %vm14722_vm8 = vmmov %vm14666_vm1 }
 0x8a7   :  { %9903 = vmatpush3.bf16.msra.mxu0 %v14653_v63  ;;  %9912 = vmatpush3.bf16.msra.mxu1 %v14654_v5  ;;  %v7942_v56 = vmul.f32 0.6931472, %v10366_v28  ;;  %v10368_v13 = vpop.eup %10367  ;;  %v14680_v5 = vld [vmem:[#allocation72_spill] sm:$0xff]  ;;  %v14681_v28 = vld [vmem:[#allocation38_spill] sm:$0xff] }
 0x8a8   :  { %9565 = vmatprep.mubr.msk.f32.mxu0 %vm10543_vm14, %v13381_v10  ;;  %9586 = vmatprep.mubr.msk.f32.mxu1 %vm10543_vm14, %v13381_v10  ;;  %v7944_v57 = vmul.f32 0.6931472, %v10368_v13 }
 0x8a9   :  { %7625 = vrot.lane.b32.xlu1 %v7555_v19, %s10540_s16  ;;  %9916 = vmatprep.subr.bf16.mxu1 %v14378_v61  ;;  %v7468_v22 = vpop.permute.xlu1 %7467  ;;  %v7987_v26 = vmul.f32 %v7942_v56, %v7859_v27  ;;  %v14677_v19 = vld [vmem:[#allocation87_spill] sm:$0xff] }
 0x8aa   :  { %9587 = vmatmul.mubr.msk.f32.vlgmr.msra.gmra.mrb[152].mxu1 %vm14655_vm9, %v13162_v52  ;;  %8065 = vrot.lane.b32.xlu0 %v7985_v46, %s10540_s16  ;;  %v7556_v44 = vmul.f32 %v7468_v22, %v12794_v39  ;;  %v7986_v39 = vmul.f32 %v7940_v3, %v7858_v4  ;;  %v7988_v20 = vmul.f32 %v7944_v57, %v7860_v14  ;;  %v7899_v46 = vadd.f32 1e-15, %v14680_v5  ;;  %v14685_v4 = vld [vmem:[#allocation18_spill] sm:$0xff]  ;;  %v14687_v56 = vld [vmem:[#allocation43_spill] sm:$0xff]  ;;  %vm14724_vm9 = vmmov %vm14666_vm1 }
 0x8ab   :  { %9566 = vmatmul.mubr.msk.f32.vlgmr.msra.gmra.mrb[180].mxu0 %vm14657_vm10, %v13105_v9  ;;  %9907 = vmatprep.subr.bf16.mxu0 %v14378_v61  ;;  %v14660_v9 = vld [vmem:[#allocation68_spill] sm:$0xff]  ;;  %v9982_v3 = vpack.c.bf16 %v10061_v54, %v10060_v23  ;;  %v7865_v23 = vsub.f32 0.0, %v14673_v6  ;;  %vm14726_vm10 = vmmov %vm14666_vm1 }
 0x8ac   :  { %9909 = vmatpush3.bf16.msra.mxu0 %v14658_v47  ;;  %9918 = vmatpush3.bf16.msra.mxu1 %v14659_v21  ;;  %v7895_v29 = vadd.f32 1e-15, %v14660_v9  ;;  %v14695_v54 = vld [vmem:[#allocation44_spill] sm:$0xff] }
 0x8ad   :  { %9579 = vmatprep.mubr.msk.f32.mxu0 %vm10543_vm14, %v13381_v10  ;;  %9600 = vmatprep.mubr.msk.f32.mxu1 %vm10543_vm14, %v13381_v10  ;;  %v7470_v52 = vpop.permute.xlu0 %7469 }
 0x8ae   :  { %7627 = vrot.lane.b32.xlu1 %v7556_v44, %s10540_s16  ;;  %9922 = vmatprep.subr.bf16.mxu1 %v14378_v61  ;;  %v7557_v34 = vmul.f32 %v7470_v52, %v12791_v45  ;;  %10373 = vlog2.f32 %v7895_v29  ;;  %v10370_v45 = vpop.eup %10369  ;;  %v14683_v44 = vld [vmem:[#allocation30_spill] sm:$0xff]  ;;  %v7863_v29 = vsub.f32 0.0, %v14660_v9 }
 0x8af   :  { %9601 = vmatmul.mubr.msk.f32.vlgmr.msra.gmra.mrb[154].mxu1 %vm14661_vm13, %v13200_v1  ;;  %8067 = vrot.lane.b32.xlu0 %v7986_v39, %s10540_s16  ;;  %10375 = vlog2.f32 %v7896_v43  ;;  %v7946_v11 = vmul.f32 0.6931472, %v10370_v45  ;;  %v14686_v39 = vld [vmem:[#allocation75_spill] sm:$0xff]  ;;  %v14688_v43 = vld [vmem:[#allocation45_spill] sm:$0xff]  ;;  %vm14728_vm13 = vmmov %vm14666_vm1 }
 0x8b0   :  { %9580 = vmatmul.mubr.msk.f32.vlgmr.msra.gmra.mrb[182].mxu0 %vm14662_vm11, %v13143_v36  ;;  %9913 = vmatprep.subr.bf16.mxu0 %v14378_v61  ;;  %v7900_v52 = vadd.f32 1e-15, %v14686_v39  ;;  %vm14729_vm11 = vmmov %vm14666_vm1 }
 0x8b1   :  { %9924 = vmatpush3.bf16.msra.mxu1 %v14664_v59  ;;  %9915 = vmatpush3.bf16.msra.mxu0 %v14665_v60  ;;  %v7472_v2 = vpop.permute.xlu1 %7471  ;;  %v8058_v1 = vpop.permute.xlu0 %8057  ;;  %v10066_v59 = vunpack.i.h.bf16 %v14688_v43  ;;  %v10065_v60 = vunpack.i.l.bf16 %v14688_v43  ;;  %v14701_v43 = vld [vmem:[#allocation46_spill] sm:$0xff] }
 0x8b2   :  { %9593 = vmatprep.mubr.msk.f32.mxu0 %vm10543_vm14, %v13381_v10  ;;  %9614 = vmatprep.mubr.msk.f32.mxu1 %vm10543_vm14, %v13381_v10  ;;  %v8152_v36 = vsel %vm2987_vm15, %v8058_v1, 0.0  ;;  %v7558_v24 = vmul.f32 %v7472_v2, %v12804_v33  ;;  %v7861_v33 = vsub.f32 0.0, %v14651_v35  ;;  %v14691_v1 = vld [vmem:[#allocation22_spill] sm:$0xff] }
 0x8b3   :  { %9928 = vmatprep.subr.bf16.mxu1 %v14378_v61  ;;  %8069 = vrot.lane.b32.xlu0 %v7987_v26, %s10540_s16  ;;  %v13603_v55 = vadd.f32 %v8152_v36, %v13541_v7  ;;  %v7897_v7 = vadd.f32 1e-15, %v14673_v6  ;;  %v10071_v36 = vunpack.i.h.bf16 %v14691_v1  ;;  %v10070_v57 = vunpack.i.l.bf16 %v14691_v1 }
 0x8b4   :  { %9615 = vmatmul.mubr.msk.f32.vlgmr.msra.gmra.mrb[156].mxu1 %vm14666_vm1, %v13237_v16  ;;  %7629 = vrot.lane.b32.xlu1 %v7557_v34, %s10540_s16  ;;  %v14671_v16 = vld [vmem:[#allocation88_spill] sm:$0xff]  ;;  %v7989_v40 = vmul.f32 %v7946_v11, %v7861_v33  ;;  %v14693_v11 = vld [vmem:[#allocation27_spill] sm:$0xff] }
 0x8b5   :  { %9594 = vmatmul.mubr.msk.f32.vlgmr.msra.gmra.mrb[184].mxu0 %vm14670_vm2, %v13182_v32  ;;  %9919 = vmatprep.subr.bf16.mxu0 %v14378_v61  ;;  %v7474_v53 = vpop.permute.xlu1 %7473  ;;  %v10372_v32 = vpop.eup %10371  ;;  %10377 = vlog2.f32 %v7897_v7  ;;  %v14694_v33 = vld [vmem:[#allocation31_spill] sm:$0xff] }
 0x8b6   :  { %9930 = vmatpush3.bf16.msra.mxu1 %v14671_v16  ;;  %9921 = vmatpush3.bf16.msra.mxu0 %v14672_v17  ;;  %v7559_v62 = vmul.f32 %v7474_v53, %v12801_v48  ;;  %v7948_v48 = vmul.f32 0.6931472, %v10372_v32  ;;  %v7864_v53 = vsub.f32 0.0, %v14663_v15  ;;  %v14692_v17 = vld [vmem:[#allocation74_spill] sm:$0xff]  ;;  %v9988_v32 = vpack.c.bf16 %v10071_v36, %v10070_v57 }
 0x8b7   :  { %9936 = vmatprep.subr.msk.bf16.mxu1 %vm13610_vm0, %v13152_v18  ;;  %9607 = vmatprep.mubr.msk.f32.mxu0 %vm10543_vm14, %v13381_v10  ;;  %v7898_v18 = vadd.f32 1e-15, %v14675_v8 }
 0x8b8   :  { %9628 = vmatprep.mubr.msk.f32.mxu1 %vm10543_vm14, %v13381_v10  ;;  %8071 = vrot.lane.b32.xlu0 %v7988_v20, %s10540_s16  ;;  %v10374_v37 = vpop.eup %10373  ;;  %v7990_v47 = vmul.f32 %v7948_v48, %v7862_v30  ;;  %v9985_v20 = vpack.c.bf16 %v10066_v59, %v10065_v60  ;;  %v14697_v48 = vld [vmem:[#allocation32_spill] sm:$0xff]  ;;  %v14698_v30 = vld [vmem:[#allocation77_spill] sm:$0xff] }
 0x8b9   :  { %9629 = vmatmul.mubr.msk.f32.vlgmr.msra.gmra.mrb[158].mxu1 %vm14674_vm3, %v13270_v41  ;;  %7631 = vrot.lane.b32.xlu1 %v7558_v24, %s10540_s16  ;;  %v7476_v41 = vpop.permute.xlu1 %7475  ;;  %v10376_v22 = vpop.eup %10375  ;;  %10379 = vlog2.f32 %v7898_v18  ;;  %v7950_v21 = vmul.f32 0.6931472, %v10374_v37 }
 0x8ba   :  { %9608 = vmatmul.mubr.msk.f32.vlgmr.msra.gmra.mrb[186].mxu0 %vm14676_vm4, %v13218_v25  ;;  %9925 = vmatprep.subr.bf16.mxu0 %v14378_v61  ;;  %v7952_v34 = vmul.f32 0.6931472, %v10376_v22  ;;  %10381 = vlog2.f32 %v7899_v46  ;;  %v14699_v22 = vld [vmem:[#allocation42_spill] sm:$0xff] }
 0x8bb   :  { %9927 = vmatpush3.bf16.msra.mxu0 %v14677_v19  ;;  %9621 = vmatprep.mubr.msk.f32.mxu0 %vm10543_vm14, %v13381_v10  ;;  %v7991_v45 = vmul.f32 %v7950_v21, %v7863_v29  ;;  %10383 = vlog2.f32 %v7900_v52 }
 0x8bc   :  { %8073 = vrot.lane.b32.xlu0 %v7989_v40, %s10540_s16  ;;  %9931 = vmatprep.subr.bf16.mxu0 %v14378_v61  ;;  %v7560_v61 = vmul.f32 %v7476_v41, %v14683_v44  ;;  %v14696_v40 = vld [vmem:[#allocation55_spill] sm:$0xff] }
 0x8bd   :  { %7633 = vrot.lane.b32.xlu1 %v7559_v62, %s10540_s16  ;;  %v7478_v63 = vpop.permute.xlu0 %7477  ;;  %v10076_v19 = vunpack.i.h.bf16 %v14696_v40  ;;  %v10075_v41 = vunpack.i.l.bf16 %v14696_v40 }
 0x8be   :  { %9622 = vmatmul.mubr.msk.f32.vlgmr.msra.gmra.mrb[188].mxu0 %vm14682_vm6, %v14681_v28  ;;  %v10080_v28 = vunpack.i.l.bf16 %v14699_v22 }
 0x8bf   :  { %9933 = vmatpush3.bf16.msra.mxu0 %v14684_v0  ;;  %9939 = vmatpush3.bf16.xpose.msk.msra.mxu1 %vm13610_vm0, %v14685_v4  ;;  %v10378_v24 = vpop.eup %10377  ;;  %v7866_v4 = vsub.f32 0.0, %v14675_v8  ;;  %v9991_v52 = vpack.c.bf16 %v10076_v19, %v10075_v41 }
 0x8c0   :  { %9984 = vmatprep.subr.msk.bf16.mxu0 %vm13649_vm5, %v9982_v3  ;;  %9635 = vmatprep.mubr.msk.f32.mxu0 %vm10543_vm14, %v13381_v10  ;;  %vm14689_vm14 = vmmov %vm14666_vm1  ;;  %v14690_v10 = vld [vmem:[#allocation28_spill] sm:$0xff]  ;;  %v7954_v62 = vmul.f32 0.6931472, %v10378_v24  ;;  %v10081_v3 = vunpack.i.h.bf16 %v14699_v22 }
 0x8c1   :  { %9942 = vmatprep.subr.msk.bf16.mxu1 %vm13610_vm0, %v14687_v56  ;;  %8075 = vrot.lane.b32.xlu0 %v7990_v47, %s10540_s16  ;;  %v7480_v13 = vpop.permute.xlu1 %7479  ;;  %v8060_v27 = vpop.permute.xlu0 %8059  ;;  %v7561_v26 = vmul.f32 %v7478_v63, %v14690_v10  ;;  %v7903_v63 = vadd.f32 1e-15, %v14698_v30  ;;  %v14703_v24 = vld [vmem:[#allocation40_spill] sm:$0xff] }
 0x8c2   :  { %7635 = vrot.lane.b32.xlu1 %v7560_v61, %s10540_s16  ;;  %9636 = vmatmul.mubr.msk.f32.vlgmr.msra.gmra.mrb[190].mxu0 %vm14689_vm14, %v13303_v50  ;;  %v8154_v2 = vsel %vm2987_vm15, %v8060_v27, 0.0  ;;  %v7901_v50 = vadd.f32 1e-15, %v14692_v17  ;;  %v7562_v7 = vmul.f32 %v7480_v13, %v14693_v11  ;;  %v7993_v44 = vmul.f32 %v7954_v62, %v7865_v23  ;;  %v14700_v13 = vld [vmem:[#allocation29_spill] sm:$0xff] }
 0x8c3   :  { %v8155_v14 = vadd.f32 %v8154_v2, %v13603_v55  ;;  %v7992_v55 = vmul.f32 %v7952_v34, %v7864_v53  ;;  %v10380_v18 = vpop.eup %10379  ;;  %v9994_v29 = vpack.c.bf16 %v10081_v3, %v10080_v28  ;;  %v10091_v53 = vunpack.i.h.bf16 %v14703_v24  ;;  %v14706_v23 = vld [vmem:[#allocation25_spill] sm:$0xff] }
 0x8c4   :  { %10385 = vlog2.f32 %v7901_v50  ;;  %v10382_v46 = vpop.eup %10381  ;;  %v7956_v0 = vmul.f32 0.6931472, %v10380_v18  ;;  %v7868_v11 = vsub.f32 0.0, %v14686_v39  ;;  %v10096_v40 = vunpack.i.h.bf16 %v14706_v23 }
 0x8c5   :  { %8077 = vrot.lane.b32.xlu0 %v7991_v45, %s10540_s16  ;;  %v7482_v16 = vpop.permute.xlu1 %7481  ;;  %v10384_v21 = vpop.eup %10383  ;;  %10387 = vlog2.f32 %v7903_v63  ;;  %v7958_v34 = vmul.f32 0.6931472, %v10382_v46  ;;  %v10095_v19 = vunpack.i.l.bf16 %v14706_v23  ;;  %v7871_v28 = vsub.f32 0.0, %v14698_v30 }
 0x8c6   :  { %7637 = vrot.lane.b32.xlu1 %v7561_v26, %s10540_s16  ;;  %v7563_v37 = vmul.f32 %v7482_v16, %v14697_v48  ;;  %v7994_v27 = vmul.f32 %v7956_v0, %v7866_v4  ;;  %v7960_v10 = vmul.f32 0.6931472, %v10384_v21  ;;  %v14702_v26 = vld [vmem:[#allocation49_spill] sm:$0xff]  ;;  %v10090_v16 = vunpack.i.l.bf16 %v14703_v24  ;;  %v14708_v4 = vld [vmem:[#allocation39_spill] sm:$0xff] }
 0x8c7   :  { %9945 = vmatpush3.bf16.xpose.msk.msra.mxu1 %vm13610_vm0, %v14694_v33  ;;  %v10086_v2 = vunpack.i.h.bf16 %v14702_v26  ;;  %v10085_v1 = vunpack.i.l.bf16 %v14702_v26  ;;  %v14707_v48 = vld [vmem:[#allocation21_spill] sm:$0xff]  ;;  %v14712_v26 = vld [vmem:[#allocation19_spill] sm:$0xff] }
 0x8c8   :  { %9987 = vmatpush3.bf16.xpose.msk.msra.mxu0 %vm13649_vm5, %v9985_v20  ;;  %9948 = vmatprep.subr.msk.bf16.mxu1 %vm13610_vm0, %v14695_v54  ;;  %v10000_v33 = vpack.c.bf16 %v10091_v53, %v10090_v16  ;;  %v7996_v62 = vmul.f32 %v7960_v10, %v7868_v11  ;;  %v10100_v63 = vunpack.i.l.bf16 %v14707_v48  ;;  %v14709_v21 = vld [vmem:[#allocation41_spill] sm:$0xff] }
 0x8c9   :  { %9990 = vmatprep.subr.msk.bf16.mxu0 %vm13649_vm5, %v9988_v32  ;;  %8079 = vrot.lane.b32.xlu0 %v7992_v55, %s10540_s16  ;;  %v7484_v61 = vpop.permute.xlu1 %7483  ;;  %v9997_v32 = vpack.c.bf16 %v10086_v2, %v10085_v1  ;;  %v14704_v55 = vld [vmem:[#allocation35_spill] sm:$0xff] }
 0x8ca   :  { %7639 = vrot.lane.b32.xlu1 %v7562_v7, %s10540_s16  ;;  %v7564_v56 = vmul.f32 %v7484_v61, %v12834_v31  ;;  %v7867_v31 = vsub.f32 0.0, %v14680_v5  ;;  %v14713_v2 = vld [vmem:[#allocation47_spill] sm:$0xff] }
 0x8cc   :  { %v7995_v50 = vmul.f32 %v7958_v34, %v7867_v31 }
 0x8cd   :  { %8081 = vrot.lane.b32.xlu0 %v7993_v44, %s10540_s16  ;;  %v7486_v47 = vpop.permute.xlu0 %7485  ;;  %v10003_v44 = vpack.c.bf16 %v10096_v40, %v10095_v19  ;;  %v14720_v19 = vld [vmem:[#allocation34_spill] sm:$0xff] }
 0x8ce   :  { %7641 = vrot.lane.b32.xlu1 %v7563_v37, %s10540_s16  ;;  %v7565_v36 = vmul.f32 %v7486_v47, %v12831_v42  ;;  %v10386_v45 = vpop.eup %10385  ;;  %v10101_v37 = vunpack.i.h.bf16 %v14707_v48 }
 0x8cf   :  { %9951 = vmatpush3.bf16.xpose.msk.msra.mxu1 %vm13610_vm0, %v14700_v13  ;;  %v7962_v18 = vmul.f32 0.6931472, %v10386_v45  ;;  %v10388_v54 = vpop.eup %10387 }
 0x8d0   :  { %9993 = vmatpush3.bf16.xpose.msk.msra.mxu0 %vm13649_vm5, %v9991_v52  ;;  %9954 = vmatprep.subr.msk.bf16.mxu1 %vm13610_vm0, %v14701_v43  ;;  %v7966_v3 = vmul.f32 0.6931472, %v10388_v54  ;;  %v10006_v0 = vpack.c.bf16 %v10101_v37, %v10100_v63  ;;  %v14710_v52 = vld [vmem:[#allocation48_spill] sm:$0xff]  ;;  %v14721_v37 = vld [vmem:[#allocation54_spill] sm:$0xff] }
 0x8d1   :  { %9996 = vmatprep.subr.msk.bf16.mxu0 %vm13649_vm5, %v9994_v29  ;;  %8083 = vrot.lane.b32.xlu0 %v7994_v27, %s10540_s16  ;;  %v7488_v59 = vpop.permute.xlu1 %7487  ;;  %v8062_v60 = vpop.permute.xlu0 %8061  ;;  %v10105_v29 = vunpack.i.l.bf16 %v14710_v52  ;;  %v14711_v27 = vld [vmem:[#allocation51_spill] sm:$0xff]  ;;  %v10136_v63 = vunpack.i.h.bf16 %v14721_v37 }
 0x8d2   :  { %7643 = vrot.lane.b32.xlu1 %v7564_v56, %s10540_s16  ;;  %v8156_v57 = vsel %vm2987_vm15, %v8062_v60, 0.0  ;;  %v7566_v42 = vmul.f32 %v7488_v59, %v12844_v12  ;;  %v7869_v12 = vsub.f32 0.0, %v14692_v17  ;;  %v10106_v56 = vunpack.i.h.bf16 %v14710_v52 }
 0x8d3   :  { %v13729_v20 = vadd.f32 %v8156_v57, %v8155_v14  ;;  %v14705_v14 = vld [vmem:[#allocation20_spill] sm:$0xff]  ;;  %v10111_v34 = vunpack.i.h.bf16 %v14711_v27  ;;  %v10110_v43 = vunpack.i.l.bf16 %v14711_v27  ;;  %v14715_v57 = vld [vmem:[#allocation53_spill] sm:$0xff] }
 0x8d4   :  { %v7997_v46 = vmul.f32 %v7962_v18, %v7869_v12  ;;  %v10009_v59 = vpack.c.bf16 %v10106_v56, %v10105_v29  ;;  %v10121_v45 = vunpack.i.h.bf16 %v14715_v57  ;;  %v10120_v24 = vunpack.i.l.bf16 %v14715_v57  ;;  %v10432_v29 = vld [vmem:[%s14128_s1 + $0xd0] sm:$0xff] }
 0x8d5   :  { %8085 = vrot.lane.b32.xlu0 %v7995_v50, %s10540_s16  ;;  %v7490_v7 = vpop.permute.xlu1 %7489  ;;  %v10012_v10 = vpack.c.bf16 %v10111_v34, %v10110_v43  ;;  %v14725_v34 = vld [vmem:[#allocation16_spill] sm:$0xff] }
 0x8d6   :  { %7645 = vrot.lane.b32.xlu1 %v7565_v36, %s10540_s16  ;;  %v7567_v41 = vmul.f32 %v7490_v7, %v12841_v58  ;;  %v7999_v58 = vmul.f32 %v7966_v3, %v7871_v28  ;;  %v10018_v11 = vpack.c.bf16 %v10121_v45, %v10120_v24  ;;  %v14716_v7 = vld [vmem:[#allocation37_spill] sm:$0xff] }
 0x8d7   :  { %9957 = vmatpush3.bf16.xpose.msk.msra.mxu1 %vm13610_vm0, %v14704_v55  ;;  %v10430_v28 = vld [vmem:[%s14128_s1 + $0xc0] sm:$0xff] }
 0x8d8   :  { %9999 = vmatpush3.bf16.xpose.msk.msra.mxu0 %vm13649_vm5, %v9997_v32  ;;  %9960 = vmatprep.subr.msk.bf16.mxu1 %vm13610_vm0, %v14705_v14 }
 0x8d9   :  { %10002 = vmatprep.subr.msk.bf16.mxu0 %vm13649_vm5, %v10000_v33  ;;  %8087 = vrot.lane.b32.xlu0 %v7996_v62, %s10540_s16  ;;  %v7492_v22 = vpop.permute.xlu1 %7491  ;;  %v14719_v62 = vld [vmem:[#allocation52_spill] sm:$0xff] }
 0x8da   :  { %7647 = vrot.lane.b32.xlu1 %v7566_v42, %s10540_s16  ;;  %v7568_v61 = vmul.f32 %v7492_v22, %v12854_v49  ;;  %v14718_v42 = vld [vmem:[#allocation24_spill] sm:$0xff]  ;;  %v10131_v18 = vunpack.i.h.bf16 %v14719_v62  ;;  %v10130_v54 = vunpack.i.l.bf16 %v14719_v62 }
 0x8db   :  { %v10126_v33 = vunpack.i.h.bf16 %v14718_v42  ;;  %v10437_v62 = vld [vmem:[%s14128_s1 + $0xf8] sm:$0xff] }
 0x8dc   :  { %v10024_v40 = vpack.c.bf16 %v10131_v18, %v10130_v54  ;;  %v97_v18 = vmul.f32 %v10437_v62, %v10437_v62 }
 0x8dd   :  { %8089 = vrot.lane.b32.xlu0 %v7997_v46, %s10540_s16  ;;  %v7494_v47 = vpop.permute.xlu0 %7493  ;;  %v10135_v46 = vunpack.i.l.bf16 %v14721_v37 }
 0x8de   :  { %7649 = vrot.lane.b32.xlu1 %v7567_v41, %s10540_s16  ;;  %v7569_v13 = vmul.f32 %v7494_v47, %v14651_v35  ;;  %v14714_v35 = vld [vmem:[#allocation50_spill] sm:$0xff] }
 0x8df   :  { %9963 = vmatpush3.bf16.xpose.msk.msra.mxu1 %vm13610_vm0, %v14708_v4  ;;  %v10116_v1 = vunpack.i.h.bf16 %v14714_v35  ;;  %v10115_v36 = vunpack.i.l.bf16 %v14714_v35  ;;  %v10431_v4 = vld [vmem:[%s14128_s1 + $0xc8] sm:$0xff]  ;;  %v10027_v47 = vpack.c.bf16 %v10136_v63, %v10135_v46 }
 0x8e0   :  { %10005 = vmatpush3.bf16.xpose.msk.msra.mxu0 %vm13649_vm5, %v10003_v44  ;;  %9966 = vmatprep.subr.msk.bf16.mxu1 %vm13610_vm0, %v14709_v21  ;;  %v90_v44 = vmul.f32 %v10430_v28, %v10430_v28 }
 0x8e1   :  { %10008 = vmatprep.subr.msk.bf16.mxu0 %vm13649_vm5, %v10006_v0  ;;  %8093 = vrot.lane.b32.xlu0 %v7999_v58, %s10540_s16  ;;  %v7496_v49 = vpop.permute.xlu1 %7495  ;;  %v10015_v16 = vpack.c.bf16 %v10116_v1, %v10115_v36  ;;  %v91_v58 = vmul.f32 %v10431_v4, %v10431_v4  ;;  %v10434_v36 = vld [vmem:[%s14128_s1 + $0xe0] sm:$0xff] }
 0x8e2   :  { %7651 = vrot.lane.b32.xlu1 %v7568_v61, %s10540_s16  ;;  %v7570_v60 = vmul.f32 %v7496_v49, %v14656_v51  ;;  %v146_v56 = vsel %vm14724_vm9, %v90_v44, 0.0 }
 0x8e5   :  { %v7498_v31 = vpop.permute.xlu1 %7497 }
 0x8e6   :  { %7653 = vrot.lane.b32.xlu1 %v7569_v13, %s10540_s16  ;;  %v7571_v51 = vmul.f32 %v7498_v31, %v14660_v9  ;;  %v14717_v9 = vld [vmem:[#allocation36_spill] sm:$0xff]  ;;  %v92_v13 = vmul.f32 %v10432_v29, %v10432_v29  ;;  %v148_v31 = vsel %vm14726_vm10, %v91_v58, 0.0  ;;  %v14738_v29 = vld [vmem:[#allocation17_spill] sm:$0xff] }
 0x8e7   :  { %9969 = vmatpush3.bf16.xpose.msk.msra.mxu1 %vm13610_vm0, %v14712_v26  ;;  %v14727_v26 = vld [vmem:[#allocation78_spill] sm:$0xff] }
 0x8e8   :  { %10011 = vmatpush3.bf16.xpose.msk.msra.mxu0 %vm13649_vm5, %v10009_v59  ;;  %9972 = vmatprep.subr.msk.bf16.mxu1 %vm13610_vm0, %v14713_v2  ;;  %v10433_v59 = vld [vmem:[%s14128_s1 + $0xd8] sm:$0xff]  ;;  %v7904_v2 = vadd.f32 1e-15, %v14727_v26  ;;  %v150_v1 = vsel %vm14728_vm13, %v92_v13, 0.0  ;;  %v7872_v44 = vsub.f32 0.0, %v14727_v26 }
 0x8e9   :  { %10014 = vmatprep.subr.msk.bf16.mxu0 %vm13649_vm5, %v10012_v10  ;;  %v7500_v53 = vpop.permute.xlu1 %7499 }
 0x8ea   :  { %7655 = vrot.lane.b32.xlu1 %v7570_v60, %s10540_s16  ;;  %v7572_v50 = vmul.f32 %v7500_v53, %v14663_v15  ;;  %v10125_v15 = vunpack.i.l.bf16 %v14718_v42  ;;  %v93_v60 = vmul.f32 %v10433_v59, %v10433_v59 }
 0x8ec   :  { %v10021_v12 = vpack.c.bf16 %v10126_v33, %v10125_v15  ;;  %v152_v45 = vsel %vm14729_vm11, %v93_v60, 0.0 }
 0x8ed   :  { %v7502_v32 = vpop.permute.xlu0 %7501 }
 0x8ee   :  { %7657 = vrot.lane.b32.xlu1 %v7571_v51, %s10540_s16  ;;  %v7573_v55 = vmul.f32 %v7502_v32, %v14673_v6  ;;  %v94_v51 = vmul.f32 %v10434_v36, %v10434_v36 }
 0x8ef   :  { %9975 = vmatpush3.bf16.xpose.msk.msra.mxu1 %vm13610_vm0, %v14716_v7 }
 0x8f0   :  { %10017 = vmatpush3.bf16.xpose.msk.msra.mxu0 %vm13649_vm5, %v10015_v16  ;;  %9978 = vmatprep.subr.msk.bf16.mxu1 %vm13610_vm0, %v14717_v9  ;;  %v154_v32 = vsel %vm14666_vm1, %v94_v51, 0.0  ;;  %v10436_v9 = vld [vmem:[%s14128_s1 + $0xf0] sm:$0xff] }
 0x8f1   :  { %10020 = vmatprep.subr.msk.bf16.mxu0 %vm13649_vm5, %v10018_v11  ;;  %v7504_v14 = vpop.permute.xlu1 %7503  ;;  %v96_v42 = vmul.f32 %v10436_v9, %v10436_v9 }
 0x8f2   :  { %7659 = vrot.lane.b32.xlu1 %v7572_v50, %s10540_s16  ;;  %v7574_v23 = vmul.f32 %v7504_v14, %v14675_v8  ;;  %v10429_v8 = vld [vmem:[%s14128_s1 + $0xb8] sm:$0xff] }
 0x8f3   :  { %v89_v38 = vmul.f32 %v10429_v8, %v10429_v8 }
 0x8f5   :  { %v7506_v41 = vpop.permute.xlu0 %7505  ;;  %v144_v0 = vsel %vm14722_vm8, %v89_v38, 0.0 }
 0x8f6   :  { %7661 = vrot.lane.b32.xlu1 %v7573_v55, %s10540_s16  ;;  %v7575_v22 = vmul.f32 %v7506_v41, %v14680_v5  ;;  %v14723_v5 = vld [vmem:[#allocation76_spill] sm:$0xff]  ;;  %v145_v43 = vadd.f32 %v144_v0, %v14725_v34 }
 0x8f7   :  { %9981 = vmatpush3.bf16.xpose.msk.msra.mxu1 %vm13610_vm0, %v14720_v19  ;;  %v5247_v48 = vpop.f32.mrb[128].mxu1  ;;  %v7902_v49 = vadd.f32 1e-15, %v14723_v5  ;;  %vm14731_vm0 = vmmov %vm14666_vm1 }
 0x8f8   :  { %10023 = vmatpush3.bf16.xpose.msk.msra.mxu0 %vm13649_vm5, %v10021_v12  ;;  %8643 = vst.msk [vmem:[%s14137_s10] sm:$0xf] %vm7799_vm7, %v5247_v48  ;;  %v9420_v6 = vpop.f32.mrb[129].mxu1  ;;  %v147_v35 = vadd.f32 %v146_v56, %v145_v43  ;;  %vm14732_vm2 = vmmov %vm14731_vm0 }
 0x8f9   :  { %10026 = vmatprep.subr.msk.bf16.mxu0 %vm13649_vm5, %v10024_v40  ;;  %v7508_v3 = vpop.permute.xlu1 %7507  ;;  %10389 = vlog2.f32 %v7902_v49  ;;  %v160_v41 = vsel %vm14732_vm2, %v97_v18, 0.0  ;;  %v14734_v49 = vld [vmem:[#allocation14_spill] sm:$0xff]  ;;  %vm14736_vm4 = vmmov %vm14731_vm0 }
 0x8fa   :  { %7663 = vrot.lane.b32.xlu1 %v7574_v23, %s10540_s16  ;;  %v7576_v21 = vmul.f32 %v7508_v3, %v14686_v39  ;;  %v149_v57 = vadd.f32 %v148_v31, %v147_v35  ;;  %10391 = vlog2.f32 %v7904_v2  ;;  %v158_v23 = vsel %vm14731_vm0, %v96_v42, 0.0  ;;  %vm14740_vm14 = vmmov %vm14731_vm0 }
 0x8fb   :  { %vm14739_vm6 = vcmp.eq.s32.totalorder %v14738_v29, %v14734_v49  ;;  %vm14741_vm8 = vmmov %vm14731_vm0 }
 0x8fc   :  { %v151_v7 = vadd.f32 %v150_v1, %v149_v57 }
 0x8fd   :  { %v7510_v61 = vpop.permute.xlu0 %7509 }
 0x8fe   :  { %7665 = vrot.lane.b32.xlu1 %v7575_v22, %s10540_s16  ;;  %v7577_v25 = vmul.f32 %v7510_v61, %v14692_v17  ;;  %v10435_v17 = vld [vmem:[%s14128_s1 + $0xe8] sm:$0xff]  ;;  %v153_v15 = vadd.f32 %v152_v45, %v151_v7  ;;  %v7870_v22 = vsub.f32 0.0, %v14723_v5 }
 0x8ff   :  { %v5317_v52 = vpop.f32.mrb[160].mxu0  ;;  %v95_v24 = vmul.f32 %v10435_v17, %v10435_v17 }
 0x900   :  { %10029 = vmatpush3.bf16.xpose.msk.msra.mxu0 %vm13649_vm5, %v10027_v47  ;;  %8644 = vst.msk [vmem:[%s14137_s10 + $0x4] sm:$0xf] %vm7799_vm7, %v5317_v52  ;;  %v9427_v27 = vpop.f32.mrb[161].mxu0  ;;  %v155_v12 = vadd.f32 %v154_v32, %v153_v15  ;;  %vm14737_vm5 = vmmov %vm14731_vm0 }
 0x901   :  { %v7512_v39 = vpop.permute.xlu1 %7511  ;;  %v156_v55 = vsel %vm14730_vm12, %v95_v24, 0.0 }
 0x902   :  { %7667 = vrot.lane.b32.xlu1 %v7576_v21, %s10540_s16  ;;  %v13857_v10 = vpop.permute.xlu0 %7613  ;;  %v7578_v53 = vmul.f32 %v7512_v39, %v14723_v5  ;;  %v157_v19 = vadd.f32 %v156_v55, %v155_v12  ;;  %v10438_v21 = vld [vmem:[#allocation2 + $0x8] sm:$0xff]  ;;  %v14733_v5 = vld [vmem:[#allocation15_spill] sm:$0xff] }
 0x903   :  { %v10390_v40 = vpop.eup %10389  ;;  %vm14735_vm3 = vcmp.eq.s32.totalorder %v14733_v5, %v14734_v49  ;;  %v8845_v13 = vsel %vm14739_vm6, 1.0, %v10438_v21  ;;  %v7709_v15 = vsel %vm2987_vm15, %v13857_v10, 0.0 }
 0x904   :  { %v159_v8 = vadd.f32 %v158_v23, %v157_v19  ;;  %v7964_v38 = vmul.f32 0.6931472, %v10390_v40  ;;  %v10392_v37 = vpop.eup %10391  ;;  %v8844_v52 = vsel %vm14735_vm3, 1.0, %v10438_v21 }
 0x905   :  { %v7968_v28 = vmul.f32 0.6931472, %v10392_v37  ;;  %9158 = vmatprep.mubr.msk.f32.mxu1 %vm14736_vm4, %v8844_v52  ;;  %9194 = vmatprep.mubr.msk.f32.mxu0 %vm2987_vm15, %v8844_v52 }
 0x906   :  { %7669 = vrot.lane.b32.xlu1 %v7577_v25, %s10540_s16  ;;  %v13870_v16 = vpop.permute.xlu1 %7615  ;;  %v7514_v50 = vpop.permute.xlu0 %7513  ;;  %v161_v63 = vadd.f32 %v160_v41, %v159_v8  ;;  %v7998_v3 = vmul.f32 %v7964_v38, %v7870_v22  ;;  %9159 = vmatmul.mubr.msk.f32.vlgmr.msra.gmra.mrb[160].mxu1 %vm14737_vm5, %v8844_v52 }
 0x907   :  { %v5387_v11 = vpop.f32.mrb[130].mxu1  ;;  %v7579_v54 = vmul.f32 %v7514_v50, %v14698_v30  ;;  %v8000_v4 = vmul.f32 %v7968_v28, %v7872_v44  ;;  %9195 = vmatmul.mubr.msk.f32.vlgmr.msra.gmra.mrb[192].mxu0 %vm2987_vm15, %v8844_v52  ;;  %9160 = vmatprep.mubr.msk.f32.mxu1 %vm14740_vm14, %v8845_v13  ;;  %v7710_v32 = vsel %vm2987_vm15, %v13870_v16, 0.0 }
 0x908   :  { %8645 = vst.msk [vmem:[%s14137_s10 + $0x8] sm:$0xf] %vm7799_vm7, %v5387_v11  ;;  %v9434_v33 = vpop.f32.mrb[131].mxu1  ;;  %162 = vadd.xlane.f32.xlu0 %v161_v63  ;;  %v7711_v18 = vadd.f32 %v7710_v32, %v7709_v15 }
 0x90a   :  { %7671 = vrot.lane.b32.xlu1 %v7578_v53, %s10540_s16  ;;  %v7516_v14 = vpop.permute.xlu1 %7515  ;;  %9161 = vmatmul.mubr.msk.f32.gmra.mrb[162].mxu1 %vm14741_vm8, %v8845_v13  ;;  %v7618_v2 = vpop.permute.xlu0 %7617 }
 0x90b   :  { %v7580_v48 = vmul.f32 %v7516_v14, %v14727_v26  ;;  %v7712_v55 = vsel %vm2987_vm15, %v7618_v2, 0.0 }
 0x90c   :  { %v7713_v14 = vadd.f32 %v7712_v55, %v7711_v18 }
 0x90e   :  { %7673 = vrot.lane.b32.xlu1 %v7579_v54, %s10540_s16  ;;  %v7620_v46 = vpop.permute.xlu1 %7619 }
 0x90f   :  { %v5457_v6 = vpop.f32.mrb[162].mxu0  ;;  %v7714_v54 = vsel %vm2987_vm15, %v7620_v46, 0.0 }
 0x910   :  { %8646 = vst.msk [vmem:[%s14137_s10 + $0xc] sm:$0xf] %vm7799_vm7, %v5457_v6  ;;  %v9441_v30 = vpop.f32.mrb[163].mxu0  ;;  %v7715_v23 = vadd.f32 %v7714_v54, %v7713_v14 }
 0x912   :  { %7675 = vrot.lane.b32.xlu1 %v7580_v48, %s10540_s16  ;;  %v7622_v1 = vpop.permute.xlu0 %7621 }
 0x913   :  { %v7716_v12 = vsel %vm2987_vm15, %v7622_v1, 0.0 }
 0x914   :  { %v7717_v48 = vadd.f32 %v7716_v12, %v7715_v23 }
 0x916   :  { %8091 = vrot.lane.b32.xlu1 %v7998_v3, %s10540_s16  ;;  %v7624_v61 = vpop.permute.xlu1 %7623 }
 0x917   :  { %v5527_v0 = vpop.f32.mrb[132].mxu1  ;;  %v13931_v17 = vpop.permute.xlu0 %8063  ;;  %v7718_v40 = vsel %vm2987_vm15, %v7624_v61, 0.0 }
 0x918   :  { %8647 = vst.msk [vmem:[%s14137_s10 + $0x10] sm:$0xf] %vm7799_vm7, %v5527_v0  ;;  %v9448_v58 = vpop.f32.mrb[133].mxu1  ;;  %v7719_v38 = vadd.f32 %v7718_v40, %v7717_v48 }
 0x91a   :  { %8095 = vrot.lane.b32.xlu1 %v8000_v4, %s10540_s16  ;;  %s8672_s16 = sshll.u32 %s10545_s29, 4  ;;  %s14062_s16 = int_to_ptr.vmem [resolvable:$true] %s8672_s16 }
 0x91b   :  { %v7626_v47 = vpop.permute.xlu1 %7625 }
 0x91c   :  { %v13937_v11 = vpop.permute.xlu0 %8065  ;;  %v7720_v8 = vsel %vm2987_vm15, %v7626_v47, 0.0 }
 0x91d   :  { %v7721_v37 = vadd.f32 %v7720_v8, %v7719_v38 }
 0x91f   :  { %v5597_v56 = vpop.f32.mrb[164].mxu0 }
 0x920   :  { %v7628_v27 = vpop.permute.xlu1 %7627  ;;  %8648 = vst.msk [vmem:[%s14137_s10 + $0x14] sm:$0xf] %vm7799_vm7, %v5597_v56  ;;  %v9455_v39 = vpop.f32.mrb[165].mxu0 }
 0x921   :  { %v13948_v62 = vpop.permute.xlu0 %8067  ;;  %v7722_v30 = vsel %vm2987_vm15, %v7628_v27, 0.0 }
 0x922   :  { %v7723_v3 = vadd.f32 %v7722_v30, %v7721_v37 }
 0x925   :  { %v13953_v19 = vpop.permute.xlu0 %8069 }
 0x926   :  { %v7630_v34 = vpop.permute.xlu1 %7629 }
 0x927   :  { %v5667_v43 = vpop.f32.mrb[134].mxu1  ;;  %v7724_v46 = vsel %vm2987_vm15, %v7630_v34, 0.0 }
 0x928   :  { %8649 = vst.msk [vmem:[%s14137_s10 + $0x18] sm:$0xf] %vm7799_vm7, %v5667_v43  ;;  %v9462_v31 = vpop.f32.mrb[135].mxu1  ;;  %v7725_v61 = vadd.f32 %v7724_v46, %v7723_v3 }
 0x92a   :  { %v13962_v22 = vpop.permute.xlu0 %8071 }
 0x92b   :  { %v7632_v59 = vpop.permute.xlu1 %7631 }
 0x92c   :  { %v7726_v28 = vsel %vm2987_vm15, %v7632_v59, 0.0 }
 0x92d   :  { %v7727_v47 = vadd.f32 %v7726_v28, %v7725_v61 }
 0x92e   :  { %v13970_v21 = vpop.permute.xlu0 %8073 }
 0x92f   :  { %v7634_v60 = vpop.permute.xlu1 %7633  ;;  %v5737_v25 = vpop.f32.mrb[166].mxu0 }
 0x930   :  { %8650 = vst.msk [vmem:[%s14137_s10 + $0x1c] sm:$0xf] %vm7799_vm7, %v5737_v25  ;;  %v9469_v26 = vpop.f32.mrb[167].mxu0  ;;  %v7728_v58 = vsel %vm2987_vm15, %v7634_v60, 0.0 }
 0x931   :  { %v7729_v52 = vadd.f32 %v7728_v58, %v7727_v47 }
 0x933   :  { %v13979_v59 = vpop.permute.xlu0 %8075 }
 0x934   :  { %v7636_v35 = vpop.permute.xlu1 %7635 }
 0x935   :  { %v7730_v5 = vsel %vm2987_vm15, %v7636_v35, 0.0 }
 0x936   :  { %v7731_v13 = vadd.f32 %v7730_v5, %v7729_v52 }
 0x937   :  { %v5807_v36 = vpop.f32.mrb[136].mxu1 }
 0x938   :  { %v7638_v51 = vpop.permute.xlu1 %7637  ;;  %8651 = vst.msk [vmem:[%s14137_s10 + $0x20] sm:$0xf] %vm7799_vm7, %v5807_v36  ;;  %v9476_v57 = vpop.f32.mrb[137].mxu1 }
 0x939   :  { %v7732_v29 = vsel %vm2987_vm15, %v7638_v51, 0.0  ;;  %v13984_v51 = vpop.permute.xlu0 %8077 }
 0x93a   :  { %v7733_v34 = vadd.f32 %v7732_v29, %v7731_v13  ;;  %v8160_v29 = vsel %vm2987_vm15, %v13937_v11, 0.0 }
 0x93c   :  { %v7640_v45 = vpop.permute.xlu1 %7639 }
 0x93d   :  { %v7734_v27 = vsel %vm2987_vm15, %v7640_v45, 0.0  ;;  %v13993_v55 = vpop.permute.xlu0 %8079 }
 0x93e   :  { %v7735_v25 = vadd.f32 %v7734_v27, %v7733_v34 }
 0x93f   :  { %v5877_v24 = vpop.f32.mrb[168].mxu0 }
 0x940   :  { %v7642_v53 = vpop.permute.xlu1 %7641  ;;  %8652 = vst.msk [vmem:[%s14137_s10 + $0x24] sm:$0xf] %vm7799_vm7, %v5877_v24  ;;  %v9483_v50 = vpop.f32.mrb[169].mxu0 }
 0x941   :  { %v7736_v60 = vsel %vm2987_vm15, %v7642_v53, 0.0  ;;  %v14002_v30 = vpop.permute.xlu0 %8081 }
 0x942   :  { %v7737_v2 = vadd.f32 %v7736_v60, %v7735_v25  ;;  %v8162_v60 = vsel %vm2987_vm15, %v13948_v62, 0.0 }
 0x944   :  { %v7644_v7 = vpop.permute.xlu1 %7643 }
 0x945   :  { %v7738_v26 = vsel %vm2987_vm15, %v7644_v7, 0.0  ;;  %v14018_v11 = vpop.permute.xlu0 %8083 }
 0x946   :  { %v7739_v36 = vadd.f32 %v7738_v26, %v7737_v2 }
 0x947   :  { %v5947_v9 = vpop.f32.mrb[138].mxu1 }
 0x948   :  { %v7646_v42 = vpop.permute.xlu1 %7645  ;;  %8653 = vst.msk [vmem:[%s14137_s10 + $0x28] sm:$0xf] %vm7799_vm7, %v5947_v9  ;;  %v9490_v33 = vpop.f32.mrb[139].mxu1 }
 0x949   :  { %v7740_v1 = vsel %vm2987_vm15, %v7646_v42, 0.0 }
 0x94a   :  { %v7741_v45 = vadd.f32 %v7740_v1, %v7739_v36 }
 0x94c   :  { %v7648_v16 = vpop.permute.xlu1 %7647 }
 0x94d   :  { %v7742_v57 = vsel %vm2987_vm15, %v7648_v16, 0.0 }
 0x94e   :  { %v7743_v7 = vadd.f32 %v7742_v57, %v7741_v45 }
 0x94f   :  { %v6017_v41 = vpop.f32.mrb[170].mxu0 }
 0x950   :  { %v7650_v6 = vpop.permute.xlu1 %7649  ;;  %8654 = vst.msk [vmem:[%s14137_s10 + $0x2c] sm:$0xf] %vm7799_vm7, %v6017_v41  ;;  %v9497_v10 = vpop.f32.mrb[171].mxu0 }
 0x951   :  { %v7744_v32 = vsel %vm2987_vm15, %v7650_v6, 0.0 }
 0x952   :  { %v7745_v42 = vadd.f32 %v7744_v32, %v7743_v7 }
 0x954   :  { %v7652_v63 = vpop.permute.xlu1 %7651 }
 0x955   :  { %v7746_v9 = vsel %vm2987_vm15, %v7652_v63, 0.0 }
 0x956   :  { %v7747_v14 = vadd.f32 %v7746_v9, %v7745_v42 }
 0x957   :  { %v6087_v44 = vpop.f32.mrb[140].mxu1 }
 0x958   :  { %v7654_v0 = vpop.permute.xlu1 %7653  ;;  %8655 = vst.msk [vmem:[%s14137_s10 + $0x30] sm:$0xf] %vm7799_vm7, %v6087_v44  ;;  %v9504_v4 = vpop.f32.mrb[141].mxu1 }
 0x959   :  { %v7748_v18 = vsel %vm2987_vm15, %v7654_v0, 0.0  ;;  %v8158_v0 = vsel %vm2987_vm15, %v13931_v17, 0.0 }
 0x95a   :  { %v7749_v23 = vadd.f32 %v7748_v18, %v7747_v14  ;;  %v8166_v18 = vsel %vm2987_vm15, %v13962_v22, 0.0 }
 0x95c   :  { %v7656_v56 = vpop.permute.xlu1 %7655 }
 0x95d   :  { %v7750_v16 = vsel %vm2987_vm15, %v7656_v56, 0.0 }
 0x95e   :  { %v7751_v8 = vadd.f32 %v7750_v16, %v7749_v23 }
 0x95f   :  { %v6157_v39 = vpop.f32.mrb[172].mxu0 }
 0x960   :  { %v7658_v43 = vpop.permute.xlu1 %7657  ;;  %8656 = vst.msk [vmem:[%s14137_s10 + $0x34] sm:$0xf] %vm7799_vm7, %v6157_v39  ;;  %v9511_v31 = vpop.f32.mrb[173].mxu0  ;;  %v8159_v39 = vadd.f32 %v8158_v0, %v13729_v20  ;;  %v8172_v0 = vsel %vm2987_vm15, %v13984_v51, 0.0 }
 0x961   :  { %v7752_v48 = vsel %vm2987_vm15, %v7658_v43, 0.0 }
 0x962   :  { %v7753_v46 = vadd.f32 %v7752_v48, %v7751_v8  ;;  %v8161_v1 = vadd.f32 %v8160_v29, %v8159_v39  ;;  %v8174_v39 = vsel %vm2987_vm15, %v13993_v55, 0.0 }
 0x964   :  { %v7660_v35 = vpop.permute.xlu1 %7659  ;;  %v8163_v32 = vadd.f32 %v8162_v60, %v8161_v1 }
 0x965   :  { %v7754_v37 = vsel %vm2987_vm15, %v7660_v35, 0.0 }
 0x966   :  { %v7755_v5 = vadd.f32 %v7754_v37, %v7753_v46  ;;  %v8170_v46 = vsel %vm2987_vm15, %v13979_v59, 0.0 }
 0x968   :  { %v7662_v24 = vpop.permute.xlu1 %7661  ;;  %v6227_v50 = vpop.f32.mrb[142].mxu1 }
 0x969   :  { %8657 = vst.msk [vmem:[%s14137_s10 + $0x38] sm:$0xf] %vm7799_vm7, %v6227_v50  ;;  %v9518_v53 = vpop.f32.mrb[143].mxu1  ;;  %v7756_v4 = vsel %vm2987_vm15, %v7662_v24, 0.0  ;;  %v8164_v24 = vsel %vm2987_vm15, %v13953_v19, 0.0 }
 0x96a   :  { %v7757_v34 = vadd.f32 %v7756_v4, %v7755_v5 }
 0x96c   :  { %v7664_v33 = vpop.permute.xlu1 %7663  ;;  %v6367_v15 = vpop.f32.mrb[144].mxu1 }
 0x96d   :  { %v9532_v54 = vpop.f32.mrb[145].mxu1  ;;  %v7783_v38 = vmul.f32 %v6367_v15, %v6367_v15  ;;  %v7758_v13 = vsel %vm2987_vm15, %v7664_v33, 0.0  ;;  %v8165_v15 = vadd.f32 %v8164_v24, %v8163_v32 }
 0x96e   :  { %v7759_v36 = vadd.f32 %v7758_v13, %v7757_v34 }
 0x96f   :  { %v6297_v12 = vpop.f32.mrb[174].mxu0  ;;  %v7800_v52 = vsel %vm7799_vm7, %v7783_v38, 0.0  ;;  %v8167_v37 = vadd.f32 %v8166_v18, %v8165_v15 }
 0x970   :  { %v7666_v40 = vpop.permute.xlu1 %7665  ;;  %8658 = vst.msk [vmem:[%s14137_s10 + $0x3c] sm:$0xf] %vm7799_vm7, %v6297_v12  ;;  %v6507_v41 = vpop.f32.mrb[146].mxu1  ;;  %s10544_s10 = smov [#allocation6]  }
 0x971   :  { %v9525_v6 = vpop.f32.mrb[175].mxu0  ;;  %v9546_v10 = vpop.f32.mrb[147].mxu1  ;;  %v7785_v28 = vmul.f32 %v6507_v41, %v6507_v41  ;;  %v7760_v25 = vsel %vm2987_vm15, %v7666_v40, 0.0  ;;  %s8685_s28 = sshll.u32 %s10544_s10, 4  ;;  %s8686_s28 = int_to_ptr.vmem [resolvable:$true] %s8685_s28 }
 0x972   :  { %v7761_v53 = vadd.f32 %v7760_v25, %v7759_v36  ;;  %v8168_v6 = vsel %vm2987_vm15, %v13970_v21, 0.0  ;;  %v8086_v10 = vpop.permute.xlu0 %8085  ;;  %v8176_v25 = vsel %vm2987_vm15, %v14002_v30, 0.0  ;;  %s10439_s14 = scalar_lea.vmem %s8686_s28, 128  ;;  %p10444_p1 = scmp.lt.s32.totalorder %s8686_s28, %s8686_s28 }
 0x973   :  { %v6437_v63 = vpop.f32.mrb[176].mxu0  ;;  %v7803_v17 = vsel %vm7799_vm7, %v7785_v28, 0.0  ;;  %v8180_v32 = vsel %vm2987_vm15, %v8086_v10, 0.0  ;;  %p10440_p0 = scmp.ne.s32.totalorder %s8686_s28, %s10439_s14  ;;  %p10445_p2 = scmp.lt.s32.totalorder %s10439_s14, %s10439_s14 }
 0x974   :  { %v7668_v3 = vpop.permute.xlu1 %7667  ;;  %v7784_v44 = vmul.f32 %v6437_v63, %v6437_v63  ;;  %v6647_v61 = vpop.f32.mrb[148].mxu1 }
 0x975   :  { %v9539_v58 = vpop.f32.mrb[177].mxu0  ;;  %v9560_v47 = vpop.f32.mrb[149].mxu1  ;;  %v7787_v57 = vmul.f32 %v6647_v61, %v6647_v61  ;;  %v7762_v50 = vsel %vm2987_vm15, %v7668_v3, 0.0  ;;  %v8169_v61 = vadd.f32 %v8168_v6, %v8167_v37  ;;  %p10446_p3 = por %p10445_p2, %p10444_p1 }
 0x976   :  { %v7801_v56 = vsel %vm7799_vm7, %v7784_v44, 0.0  ;;  %v7763_v54 = vadd.f32 %v7762_v50, %v7761_v53  ;;  %v8088_v34 = vpop.permute.xlu0 %8087 }
 0x977   :  { %v7802_v27 = vadd.f32 %v7801_v56, %v7800_v52  ;;  %v7807_v14 = vsel %vm7799_vm7, %v7787_v57, 0.0  ;;  %v8182_v15 = vsel %vm2987_vm15, %v8088_v34, 0.0  ;;  %p10447_p4 = pnand %p10446_p3, %p10440_p0 }
 0x978   :  { %v7670_v43 = vpop.permute.xlu1 %7669  ;;  %v6787_v31 = vpop.f32.mrb[150].mxu1 }
 0x979   :  { %v6577_v26 = vpop.f32.mrb[178].mxu0  ;;  %v7804_v2 = vadd.f32 %v7803_v17, %v7802_v27  ;;  %v9574_v35 = vpop.f32.mrb[151].mxu1  ;;  %v7764_v9 = vsel %vm2987_vm15, %v7670_v43, 0.0  ;;  %v7789_v23 = vmul.f32 %v6787_v31, %v6787_v31  ;;  %v8171_v27 = vadd.f32 %v8170_v46, %v8169_v61 }
 0x97a   :  { %v7786_v45 = vmul.f32 %v6577_v26, %v6577_v26  ;;  %v9553_v20 = vpop.f32.mrb[179].mxu0  ;;  %v7765_v8 = vadd.f32 %v7764_v9, %v7763_v54  ;;  %v8090_v53 = vpop.permute.xlu0 %8089 }
 0x97b   :  { %v7811_v21 = vsel %vm7799_vm7, %v7789_v23, 0.0  ;;  %v8173_v43 = vadd.f32 %v8172_v0, %v8171_v27  ;;  %v8178_v20 = vsel %vm2987_vm15, %v14018_v11, 0.0 }
 0x97c   :  { %v7672_v62 = vpop.permute.xlu1 %7671  ;;  %v7805_v7 = vsel %vm7799_vm7, %v7786_v45, 0.0 }
 0x97d   :  { %v7806_v42 = vadd.f32 %v7805_v7, %v7804_v2  ;;  %v6927_v33 = vpop.f32.mrb[152].mxu1  ;;  %v7766_v12 = vsel %vm2987_vm15, %v7672_v62, 0.0  ;;  %v8175_v35 = vadd.f32 %v8174_v39, %v8173_v43 }
 0x97e   :  { %v6717_v16 = vpop.f32.mrb[180].mxu0  ;;  %v9588_v19 = vpop.f32.mrb[153].mxu1  ;;  %v7767_v3 = vadd.f32 %v7766_v12, %v7765_v8  ;;  %v7791_v47 = vmul.f32 %v6927_v33, %v6927_v33  ;;  %v8184_v12 = vsel %vm2987_vm15, %v8090_v53, 0.0 }
 0x97f   :  { %v7788_v40 = vmul.f32 %v6717_v16, %v6717_v16  ;;  %v7808_v41 = vadd.f32 %v7807_v14, %v7806_v42  ;;  %v9567_v48 = vpop.f32.mrb[181].mxu0  ;;  %v8177_v24 = vadd.f32 %v8176_v25, %v8175_v35 }
 0x980   :  { %v7674_v38 = vpop.permute.xlu1 %7673  ;;  %v7815_v26 = vsel %vm7799_vm7, %v7791_v47, 0.0 }
 0x981   :  { %v7768_v22 = vsel %vm2987_vm15, %v7674_v38, 0.0  ;;  %v7809_v63 = vsel %vm7799_vm7, %v7788_v40, 0.0  ;;  %v8179_v7 = vadd.f32 %v8178_v20, %v8177_v24 }
 0x982   :  { %v7810_v28 = vadd.f32 %v7809_v63, %v7808_v41  ;;  %v7067_v44 = vpop.f32.mrb[154].mxu1  ;;  %v7769_v5 = vadd.f32 %v7768_v22, %v7767_v3  ;;  %v8094_v3 = vpop.permute.xlu0 %8093 }
 0x983   :  { %v6857_v4 = vpop.f32.mrb[182].mxu0  ;;  %v9602_v58 = vpop.f32.mrb[155].mxu1  ;;  %v7793_v1 = vmul.f32 %v7067_v44, %v7067_v44  ;;  %v8181_v11 = vadd.f32 %v8180_v32, %v8179_v7 }
 0x984   :  { %v7676_v52 = vpop.permute.xlu1 %7675  ;;  %v7790_v56 = vmul.f32 %v6857_v4, %v6857_v4  ;;  %v7812_v29 = vadd.f32 %v7811_v21, %v7810_v28  ;;  %v9581_v13 = vpop.f32.mrb[183].mxu0 }
 0x985   :  { %v7770_v59 = vsel %vm2987_vm15, %v7676_v52, 0.0  ;;  %v7819_v9 = vsel %vm7799_vm7, %v7793_v1, 0.0  ;;  %v8183_v40 = vadd.f32 %v8182_v15, %v8181_v11 }
 0x986   :  { %v7771_v17 = vadd.f32 %v7770_v59, %v7769_v5  ;;  %v7813_v51 = vsel %vm7799_vm7, %v7790_v56, 0.0  ;;  %v8188_v5 = vsel %vm2987_vm15, %v8094_v3, 0.0 }
 0x987   :  { %v7814_v31 = vadd.f32 %v7813_v51, %v7812_v29  ;;  %v7207_v60 = vpop.f32.mrb[156].mxu1  ;;  %v8185_v22 = vadd.f32 %v8184_v12, %v8183_v40 }
 0x988   :  { %7772 = vadd.xlane.f32.xlu1 %v7771_v17  ;;  %v6997_v2 = vpop.f32.mrb[184].mxu0  ;;  %v9616_v55 = vpop.f32.mrb[157].mxu1  ;;  %v7795_v18 = vmul.f32 %v7207_v60, %v7207_v60 }
 0x989   :  { %v7792_v36 = vmul.f32 %v6997_v2, %v6997_v2  ;;  %v7816_v57 = vadd.f32 %v7815_v26, %v7814_v31  ;;  %v9595_v45 = vpop.f32.mrb[185].mxu0  ;;  %v8092_v19 = vpop.permute.xlu1 %8091 }
 0x98a   :  { %v7823_v6 = vsel %vm7799_vm7, %v7795_v18, 0.0  ;;  %v8186_v10 = vsel %vm2987_vm15, %v8092_v19, 0.0 }
 0x98b   :  { %v7817_v50 = vsel %vm7799_vm7, %v7792_v36, 0.0  ;;  %v8187_v28 = vadd.f32 %v8186_v10, %v8185_v22 }
 0x98c   :  { %v7818_v30 = vadd.f32 %v7817_v50, %v7816_v57  ;;  %v7347_v62 = vpop.f32.mrb[158].mxu1 }
 0x98d   :  { %v7137_v42 = vpop.f32.mrb[186].mxu0  ;;  %v9630_v33 = vpop.f32.mrb[159].mxu1  ;;  %v7797_v8 = vmul.f32 %v7347_v62, %v7347_v62  ;;  %v8189_v56 = vadd.f32 %v8188_v5, %v8187_v28 }
 0x98e   :  { %v7794_v54 = vmul.f32 %v7137_v42, %v7137_v42  ;;  %v7820_v14 = vadd.f32 %v7819_v9, %v7818_v30  ;;  %v9609_v16 = vpop.f32.mrb[187].mxu0  ;;  %v8096_v58 = vpop.permute.xlu1 %8095 }
 0x98f   :  { %v7827_v0 = vsel %vm7799_vm7, %v7797_v8, 0.0  ;;  %v8190_v13 = vsel %vm2987_vm15, %v8096_v58, 0.0 }
 0x990   :  { %v7821_v23 = vsel %vm7799_vm7, %v7794_v54, 0.0  ;;  %v8191_v27 = vadd.f32 %v8190_v13, %v8189_v56 }
 0x991   :  { %v7822_v41 = vadd.f32 %v7821_v23, %v7820_v14  ;;  %v7277_v48 = vpop.f32.mrb[188].mxu0 }
 0x992   :  { %v7796_v38 = vmul.f32 %v7277_v48, %v7277_v48  ;;  %v9623_v37 = vpop.f32.mrb[189].mxu0 }
 0x993   :  { %v7824_v63 = vadd.f32 %v7823_v6, %v7822_v41 }
 0x994   :  { %v7825_v46 = vsel %vm7799_vm7, %v7796_v38, 0.0 }
 0x995   :  { %v7826_v44 = vadd.f32 %v7825_v46, %v7824_v63  ;;  %v7417_v61 = vpop.f32.mrb[190].mxu0  ;;  %v163_v59 = vpop.xlane.xlu0 %162 }
 0x996   :  { %v7798_v21 = vmul.f32 %v7417_v61, %v7417_v61  ;;  %v9637_v4 = vpop.f32.mrb[191].mxu0  ;;  %v164_v39 = vrot.slane %v163_v59, 4 }
 0x997   :  { %v7828_v47 = vadd.f32 %v7827_v0, %v7826_v44 }
 0x998   :  { %v7829_v52 = vsel %vm7799_vm7, %v7798_v21, 0.0  ;;  %v165_v34 = vadd.f32 %v164_v39, %v163_v59 }
 0x999   :  { %v7830_v29 = vadd.f32 %v7829_v52, %v7828_v47 }
 0x99a   :  { %v166_v17 = vrot.slane %v165_v34, 2 }
 0x99b   :  { %7831 = vadd.xlane.f32.xlu0 %v7830_v29 }
 0x99c   :  { %v167_v51 = vadd.f32 %v166_v17, %v165_v34 }
 0x99e   :  { %v168_v43 = vrot.slane %v167_v51, 1 }
 0x99f   :  { %8192 = vadd.xlane.f32.xlu0 %v8191_v27 }
 0x9a0   :  { %v169_v31 = vadd.f32 %v168_v43, %v167_v51 }
 0x9a2   :  { %10030 = vpush %v169_v31 }
 0x9d9   :  { %v8373_v60 = vpop.f32.mrb[160].mxu1 }
 0x9da   :  { %v8616_v25 = vpop.f32.mrb[192].mxu0  ;;  %8384 = vst [vmem:[#allocation4] sm:$0xff] %v8373_v60  ;;  %v8375_v26 = vpop.f32.mrb[161].mxu1 }
 0x9db   :  { %v8618_v2 = vpop.f32.mrb[193].mxu0  ;;  %8385 = vst [vmem:[#allocation4 + $0x8] sm:$0xff] %v8375_v26 }
 0x9dc   :  { %v8623_v35 = vcombine.low %v8616_v25, %v8618_v2 }
 0x9dd   :  { %v8379_v1 = vpop.f32.mrb[162].mxu1 }
 0x9de   :  { %8625 = vst [vmem:[#allocation6] sm:$0xff] %v8623_v35  ;;  %8386 = vst [vmem:[#allocation4 + $0x10] sm:$0xff] %v8379_v1  ;;  %v8381_v36 = vpop.f32.mrb[163].mxu1 }
 0x9df   :  { %10450 = shalt.err (!%p10447_p4)
}
 0x9e0   :  { %s10451_s2 = scalar_lea.hbm %s14135_s8, 128 }
 0x9e1   :  { %p10452_p5 = scmp.ne.s32.totalorder %s14135_s8, %s10451_s2  ;;  %p10455_p6 = scmp.lt.u32.totalorder %s10451_s2, %s14135_s8 }
 0x9e3   :  { %p10457_p7 = pnand %p10455_p6, %p10452_p5 }
 0x9e5   :  { %10460 = shalt.err (!%p10457_p7)
}
 0x9e6   :  { %8688 = dma.vmem_to_hbm [thread:$0]  %s8686_s28, 128, %s14135_s8, [#allocation7]   ;;  %8387 = vst [vmem:[#allocation4 + $0x18] sm:$0xff] %v8381_v36 }
 0x9e7   :  { %s10461_s19 = scalar_lea.vmem %s14060_s13, 1024  ;;  %p10466_p9 = scmp.lt.s32.totalorder %s14060_s13, %s14060_s13 }
 0x9e8   :  { %p10462_p8 = scmp.ne.s32.totalorder %s14060_s13, %s10461_s19  ;;  %p10467_p10 = scmp.lt.s32.totalorder %s10461_s19, %s10461_s19 }
 0x9ea   :  { %p10468_p11 = por %p10467_p10, %p10466_p9 }
 0x9ec   :  { %p10469_p12 = pnand %p10468_p11, %p10462_p8 }
 0x9ee   :  { %10472 = shalt.err (!%p10469_p12)
}
 0x9ef   :  { %s10473_s4 = scalar_lea.hbm %s14136_s9, 1024 }
 0x9f0   :  { %p10474_p13 = scmp.ne.s32.totalorder %s14136_s9, %s10473_s4  ;;  %p10477_p0 = scmp.lt.u32.totalorder %s10473_s4, %s14136_s9 }
 0x9f2   :  { %p10479_p1 = pnand %p10477_p0, %p10474_p13 }
 0x9f4   :  { %10482 = shalt.err (!%p10479_p1)
}
 0x9f5   :  { %s10547_s8 = smov 4   ;;  %s10483_s28 = scalar_lea.vmem %s14062_s16, 512 }
 0x9f6   :  { %8700 = dma.vmem_to_hbm [thread:$0]  %s14060_s13, 1024, %s14136_s9, [#allocation7], %s10537_s30, %s10537_s30, %s10547_s8  }
 0x9f7   :  { %p10484_p2 = scmp.ne.s32.totalorder %s14062_s16, %s10483_s28  ;;  %p10488_p3 = scmp.lt.s32.totalorder %s14062_s16, %s14062_s16 }
 0x9f8   :  { %p10489_p4 = scmp.lt.s32.totalorder %s10483_s28, %s10483_s28 }
 0x9fa   :  { %p10490_p5 = por %p10489_p4, %p10488_p3 }
 0x9fc   :  { %p10491_p6 = pnand %p10490_p5, %p10484_p2 }
 0x9fe   :  { %10494 = shalt.err (!%p10491_p6)
}
 0x9ff   :  { %s10495_s14 = scalar_lea.hbm %s14134_s7, 512 }
 0xa00   :  { %p10496_p7 = scmp.ne.s32.totalorder %s14134_s7, %s10495_s14  ;;  %p10499_p8 = scmp.lt.u32.totalorder %s10495_s14, %s14134_s7 }
 0xa02   :  { %p10501_p9 = pnand %p10499_p8, %p10496_p7 }
 0xa04   :  { %10504 = shalt.err (!%p10501_p9)
}
 0xa05   :  { %s10548_s9 = smov 256   ;;  %vm8659_vm15 = vcmp.eq.s32.totalorder %v14734_v49, 0  ;;  %vm8662_vm7 = vcmp.eq.s32.totalorder %v14734_v49, 1  ;;  %s10549_s24 = smov [#allocation9]  }
 0xa06   :  { %8678 = dma.vmem_to_hbm [thread:$0]  %s14062_s16, 512, %s14134_s7, [#allocation5], %s10548_s9, %s10548_s9, %s10533_s23  }
 0xa07   :  { %s10031_s7 = spop %10030  ;;  %s8709_s19 = sshll.u32 %s10549_s24, 4  ;;  %s8710_s19 = int_to_ptr.vmem [resolvable:$true] %s8709_s19 }
 0xa08   :  { %s10505_s5 = scalar_lea.vmem %s8710_s19, 16  ;;  %s10509_s25 = scalar_lea.vmem %s8710_s19, 32 }
 0xa09   :  { %p10506_p10 = scmp.ne.s32.totalorder %s8710_s19, %s10505_s5  ;;  %p10510_p11 = scmp.lt.s32.totalorder %s8710_s19, %s8710_s19 }
 0xa0a   :  { %p10511_p12 = scmp.lt.s32.totalorder %s10509_s25, %s10505_s5 }
 0xa0c   :  { %p10512_p13 = por %p10511_p12, %p10510_p11 }
 0xa0e   :  { %p10513_p0 = pnand %p10512_p13, %p10506_p10 }
 0xa15   :  { %v7773_v57 = vpop.xlane.xlu1 %7772 }
 0xa16   :  { %v7774_v45 = vrot.slane %v7773_v57, 4 }
 0xa18   :  { %v7775_v55 = vadd.f32 %v7774_v45, %v7773_v57 }
 0xa1a   :  { %v7776_v20 = vrot.slane %v7775_v55, 2 }
 0xa1c   :  { %v7777_v24 = vadd.f32 %v7776_v20, %v7775_v55 }
 0xa1e   :  { %v7778_v50 = vrot.slane %v7777_v24, 1 }
 0xa20   :  { %v7779_v32 = vadd.f32 %v7778_v50, %v7777_v24 }
 0xa22   :  { %10032 = vpush %v7779_v32 }
 0xa28   :  { %v7832_v53 = vpop.xlane.xlu0 %7831 }
 0xa29   :  { %v7833_v30 = vrot.slane %v7832_v53, 4 }
 0xa2b   :  { %v7834_v62 = vadd.f32 %v7833_v30, %v7832_v53 }
 0xa2c   :  { %v8193_v7 = vpop.xlane.xlu0 %8192 }
 0xa2d   :  { %v7835_v9 = vrot.slane %v7834_v62, 2  ;;  %v8194_v42 = vrot.slane %v8193_v7, 4 }
 0xa2f   :  { %v8195_v33 = vadd.f32 %v8194_v42, %v8193_v7  ;;  %v7836_v15 = vadd.f32 %v7835_v9, %v7834_v62 }
 0xa31   :  { %v8196_v18 = vrot.slane %v8195_v33, 2  ;;  %v7837_v54 = vrot.slane %v7836_v15, 1 }
 0xa33   :  { %v8197_v14 = vadd.f32 %v8196_v18, %v8195_v33  ;;  %v7838_v16 = vadd.f32 %v7837_v54, %v7836_v15 }
 0xa35   :  { %10034 = vpush %v7838_v16  ;;  %v8198_v11 = vrot.slane %v8197_v14, 1 }
 0xa37   :  { %v8199_v19 = vadd.f32 %v8198_v11, %v8197_v14 }
 0xa39   :  { %10036 = vpush %v8199_v19 }
 0xa53   :  { %s10033_s23 = spop %10032 }
 0xa54   :  { %s7781_s16 = smul.f32 2.0, %s10033_s23 }
 0xa56   :  { %s7782_s18 = ssub.f32 %s10031_s7, %s7781_s16 }
 0xa66   :  { %s10035_s20 = spop %10034 }
 0xa67   :  { %s7840_s21 = sadd.f32 %s10035_s20, %s7782_s18 }
 0xa69   :  { %v8660_v12 = vstv %s7840_s21 }
 0xa6a   :  { %s10037_s22 = spop %10036  ;;  %v8661_v40 = vsel %vm8659_vm15, %v8660_v12, 0.0 }
 0xa6b   :  { %v8663_v23 = vstv %s10037_s22 }
 0xa6c   :  { %v8664_v41 = vsel %vm8662_vm7, %v8663_v23, 0.0 }
 0xa6d   :  { %v8665_v48 = vadd.f32 %v8664_v41, %v8661_v40 }
 0xa6f   :  { %8666 = vst [vmem:[#allocation9] sm:$0x1] %v8665_v48 }
 0xa70   :  { %10516 = shalt.err (!%p10513_p0)
}
 0xa71   :  { %s10517_s6 = scalar_lea.hbm %s14138_s11, 16 }
 0xa72   :  { %p10518_p1 = scmp.ne.s32.totalorder %s14138_s11, %s10517_s6  ;;  %p10521_p2 = scmp.lt.u32.totalorder %s10517_s6, %s14138_s11 }
 0xa74   :  { %p10523_p3 = pnand %p10521_p2, %p10518_p1 }
 0xa76   :  { %10526 = shalt.err (!%p10523_p3)
}
 0xa77   :  { %8712 = dma.vmem_to_hbm [thread:$0]  %s8710_s19, 16, %s14138_s11, [#allocation10]  }
 0xa78   :  { %10527 = dma.done.wait [#allocation5], 512  }
 0xa79   :  { %10528 = vsyncadd [#allocation5], 4294966784 }
 0xa7a   :  { %10529 = dma.done.wait [#allocation7], 1152  }
 0xa7b   :  { %10530 = vsyncadd [#allocation7], 4294966144 }
 0xa7c   :  { %10531 = dma.done.wait [#allocation10], 16  }
 0xa7d   :  { %10532 = vsyncadd [#allocation10], 4294967280 }
 0xa7e   :  { %8727 = vsyncpa [#allocation5], 1 }
 0xa7f   :  { %8728 = vsyncpa [#allocation7], 1 }
 0xa80   :  { %8729 = vsyncpa [#allocation10], 1 }

</bundles_post_ra>
